<compile_context>
chip_gen: v7x
topology: tpu7x:2x2x1
jax: 0.10.0
libtpu: 0.0.40
codegen_flags: <defaults>
</compile_context>

<pallas_src>
import functools

import jax
import jax.numpy as jnp
import numpy as np
from jax.experimental import pallas as pl
from jax.experimental.pallas import tpu as pltpu


# --------------------------------------------------------------------------
# In-kernel helpers (traced inside Pallas kernels)
# --------------------------------------------------------------------------
def _layernorm(x, g, b, eps=1e-5):
    mean = jnp.mean(x, axis=-1, keepdims=True)
    var = jnp.mean(jnp.square(x - mean), axis=-1, keepdims=True)
    return (x - mean) * jax.lax.rsqrt(var + eps) * g + b


def _dot_bf16(a, w, b=None):
    # bf16 MXU operands, f32 accumulation (weights are stored bf16).
    acc = jnp.dot(a.astype(jnp.bfloat16), w.astype(jnp.bfloat16),
                  preferred_element_type=jnp.float32)
    if b is not None:
        acc = acc + b
    return acc


# --------------------------------------------------------------------------
# Pallas kernels
# --------------------------------------------------------------------------
def _patch_embed_kernel(x_ref, w_ref, b_ref, g_ref, bb_ref, o_ref):
    """Fused patch-embed matmul + bias + LayerNorm (row tile)."""
    h = _dot_bf16(x_ref[...].astype(jnp.float32), w_ref[...], b_ref[...])
    o_ref[...] = _layernorm(h, g_ref[...], bb_ref[...]).astype(o_ref.dtype)


def _merge_kernel(x_ref, g_ref, b_ref, w_ref, o_ref):
    """Fused patch-merging LayerNorm + reduction linear (4C -> 2C), row tile."""
    h = _layernorm(x_ref[...].astype(jnp.float32), g_ref[...], b_ref[...])
    o_ref[...] = _dot_bf16(h, w_ref[...]).astype(o_ref.dtype)


def _ln_kernel(x_ref, g_ref, b_ref, o_ref):
    o_ref[...] = _layernorm(x_ref[...].astype(jnp.float32),
                            g_ref[...], b_ref[...]).astype(o_ref.dtype)


def _swin_block_kernel(*refs, wblk, N, num_heads, head_dim, has_mask):
    """One full Swin block (LN1 -> QKV -> window attention (+rel-pos bias
    (+shift mask)) -> proj -> residual -> LN2 -> MLP -> residual) for one
    (batch, window-chunk) grid point.

    x_ref / o_ref : [wblk*N, C] bf16 windowed tokens.
    rel_ref       : [num_heads, N, N] f32 relative-position bias (factored).
    mask_ref      : [wblk, N, N] f32 shift mask (only for shifted blocks).
    """
    if has_mask:
        (x_ref, n1g, n1b, qkvw, qkvb, projw, projb, n2g, n2b,
         f1w, f1b, f2w, f2b, rel_ref, mask_ref, o_ref) = refs
    else:
        (x_ref, n1g, n1b, qkvw, qkvb, projw, projb, n2g, n2b,
         f1w, f1b, f2w, f2b, rel_ref, o_ref) = refs
        mask_ref = None

    C = num_heads * head_dim
    R = wblk * N
    x = x_ref[...].astype(jnp.float32)                        # [R, C]

    # ---- window attention branch (pre-LN).  Scale is folded into qkv_w. ----
    h = _layernorm(x, n1g[...], n1b[...])
    qkv = _dot_bf16(h, qkvw[...], qkvb[...])                   # [R, 3C] f32
    q3 = qkv[:, :C].reshape(wblk, N, C)
    k3 = qkv[:, C:2 * C].reshape(wblk, N, C)
    v3 = qkv[:, 2 * C:].reshape(wblk, N, C)

    def split_heads(t):                           # [wblk,N,C] -> [nH*wblk,N,hd]
        parts = [t[:, :, hh * head_dim:(hh + 1) * head_dim]
                 for hh in range(num_heads)]
        return (jnp.stack(parts, axis=0)
                .reshape(num_heads * wblk, N, head_dim)
                .astype(jnp.bfloat16))

    qh, kh, vh = split_heads(q3), split_heads(k3), split_heads(v3)

    # One pair of batched einsums over the (head * window) batch axis.
    s = jnp.einsum("bnd,bmd->bnm", qh, kh,
                   preferred_element_type=jnp.float32)         # [nH*wblk, N, N]
    s = s.reshape(num_heads, wblk, N, N)
    s = s + rel_ref[...][:, None, :, :]                        # rel-pos bias
    if has_mask:
        s = s + mask_ref[...][None, :, :, :]                   # shift mask
    s = s - jnp.max(s, axis=-1, keepdims=True)
    p = jnp.exp(s)
    p = p * pl.reciprocal(jnp.sum(p, axis=-1, keepdims=True), approx=True)

    o = jnp.einsum("bnm,bmd->bnd",
                   p.reshape(num_heads * wblk, N, N).astype(jnp.bfloat16), vh,
                   preferred_element_type=jnp.float32)         # [nH*wblk, N, hd]
    o = o.reshape(num_heads, wblk, N, head_dim)
    attn = jnp.concatenate([o[hh] for hh in range(num_heads)], axis=-1)
    x = x + _dot_bf16(attn.reshape(R, C), projw[...], projb[...])

    # ---- MLP branch (pre-LN) ------------------------------------------------
    h = _layernorm(x, n2g[...], n2b[...])
    h = _dot_bf16(h, f1w[...], f1b[...])
    h = jax.nn.gelu(h, approximate=True)                       # tanh GELU (EUP)
    h = _dot_bf16(h, f2w[...], f2b[...])
    o_ref[...] = (x + h).astype(o_ref.dtype)


# --------------------------------------------------------------------------
# Tile sizing / VMEM budgeting
# --------------------------------------------------------------------------
def _vmem_capacity_bytes():
    try:
        return int(pltpu.get_tpu_info().vmem_capacity_bytes)
    except Exception:
        return 64 << 20            # conservative: v7x per-TensorCore VMEM


def _pick_wblk(nW, N, C, nH, hidden, budget_bytes, batch):
    """Largest window-chunk (a divisor of nW with (wblk*N)%8==0) whose per-step
    working set fits the per-generation VMEM budget; keeps >=2 grid points so
    both v7x TensorCores get work even at batch=1."""
    def step_bytes(d):
        rows = d * N
        f32_act = rows * (3 * C + hidden + 3 * C) * 4          # qkv + mlp + misc
        scores = d * nH * N * N * 4 * 2                        # s and p
        io = rows * C * 2 * 2 * 2                              # x/out bf16, 2-buf
        msk = d * N * N * 4 * 2
        return f32_act + scores + io + msk

    weight_bytes = ((C * 3 * C + C * C + 2 * C * hidden) * 2 * 2
                    + nH * N * N * 4 * 2)
    divs = [d for d in range(1, nW + 1) if nW % d == 0 and (d * N) % 8 == 0]
    if not divs:
        return nW
    fitting = [d for d in divs if weight_bytes + step_bytes(d) <= budget_bytes]
    fitting = fitting or divs[:1]
    wblk = fitting[-1]
    if batch * (nW // wblk) < 2:
        smaller = [d for d in fitting if nW // d >= 2 and d * N >= 256]
        smaller = smaller or [d for d in fitting if nW // d >= 2]
        if smaller:
            wblk = smaller[-1]
    return wblk


# --------------------------------------------------------------------------
# Static layout helpers (numpy, trace-time constants)
# --------------------------------------------------------------------------
def _win_src_index(Hp, Wp, ws, shift):
    """Windowed row r -> source flat index in the un-rolled spatial grid
    (equivalent to roll(-shift) followed by window_partition)."""
    Wn = Wp // ws
    N = ws * ws
    r = np.arange((Hp // ws) * Wn * N)
    win, n = r // N, r % N
    h = (win // Wn) * ws + n // ws
    w = (win % Wn) * ws + n % ws
    return ((h + shift) % Hp) * Wp + ((w + shift) % Wp)


def _spatial_to_win(Hp, Wp, ws, shift):
    return _win_src_index(Hp, Wp, ws, shift)


def _win_to_spatial(Hp, Wp, ws, shift):
    p = _win_src_index(Hp, Wp, ws, shift)
    inv = np.empty_like(p)
    inv[p] = np.arange(p.size)
    return inv


def _relative_position_index(ws):
    coords = np.stack(np.meshgrid(np.arange(ws), np.arange(ws), indexing="ij"))
    cf = coords.reshape(2, -1)
    rel = (cf[:, :, None] - cf[:, None, :]).transpose(1, 2, 0).astype(np.int64)
    rel[:, :, 0] += ws - 1
    rel[:, :, 1] += ws - 1
    rel[:, :, 0] *= 2 * ws - 1
    return rel.sum(-1)                                         # [N, N]


def _shift_attn_mask(Hp, Wp, ws, shift):
    img = np.zeros((Hp, Wp), np.int32)
    cnt = 0
    for hs in (slice(0, -ws), slice(-ws, -shift), slice(-shift, None)):
        for wsl in (slice(0, -ws), slice(-ws, -shift), slice(-shift, None)):
            img[hs, wsl] = cnt
            cnt += 1
    labels = img.reshape(-1)[_spatial_to_win(Hp, Wp, ws, 0)].reshape(-1, ws * ws)
    diff = labels[:, None, :] != labels[:, :, None]
    return np.where(diff, -100.0, 0.0).astype(np.float32)       # [nW, N, N]


# --------------------------------------------------------------------------
# Kernel wrappers
# --------------------------------------------------------------------------
def patch_embed(pixel_values, pe, patch_size, embed_dim, vmem_limit):
    B, Cin, H, W = pixel_values.shape
    p = patch_size
    Hp, Wp = H // p, W // p
    # Conv(kernel=stride=patch) == matmul over (c, dh, dw)-flattened patches.
    x = pixel_values.reshape(B, Cin, Hp, p, Wp, p)
    x = x.transpose(0, 2, 4, 1, 3, 5).reshape(B * Hp * Wp, Cin * p * p)
    M, K = x.shape
    E = embed_dim
    TM = M if M <= 2048 else 1024
    out = pl.pallas_call(
        _patch_embed_kernel,
        grid=(pl.cdiv(M, TM),),
        out_shape=jax.ShapeDtypeStruct((M, E), jnp.bfloat16),
        in_specs=[
            pl.BlockSpec((TM, K), lambda i: (i, 0)),
            pl.BlockSpec((K, E), lambda i: (0, 0)),
            pl.BlockSpec((1, E), lambda i: (0, 0)),
            pl.BlockSpec((1, E), lambda i: (0, 0)),
            pl.BlockSpec((1, E), lambda i: (0, 0)),
        ],
        out_specs=pl.BlockSpec((TM, E), lambda i: (i, 0)),
        compiler_params=pltpu.CompilerParams(
            dimension_semantics=("parallel",), vmem_limit_bytes=vmem_limit),
    )(x, pe["w"], pe["b"].reshape(1, E),
      pe["norm_g"].reshape(1, E), pe["norm_b"].reshape(1, E))
    return out.reshape(B, Hp, Wp, E)


def layer_norm_op(x2d, g, b, vmem_limit):
    M, C = x2d.shape
    TM = M if M <= 4096 else 2048
    return pl.pallas_call(
        _ln_kernel,
        grid=(pl.cdiv(M, TM),),
        out_shape=jax.ShapeDtypeStruct((M, C), jnp.float32),
        in_specs=[
            pl.BlockSpec((TM, C), lambda i: (i, 0)),
            pl.BlockSpec((1, C), lambda i: (0, 0)),
            pl.BlockSpec((1, C), lambda i: (0, 0)),
        ],
        out_specs=pl.BlockSpec((TM, C), lambda i: (i, 0)),
        compiler_params=pltpu.CompilerParams(
            dimension_semantics=("parallel",), vmem_limit_bytes=vmem_limit),
    )(x2d, g.reshape(1, C), b.reshape(1, C))


def patch_merging(x, ds, vmem_limit):
    B, H, W, C = x.shape
    x0 = x[:, 0::2, 0::2]
    x1 = x[:, 1::2, 0::2]
    x2 = x[:, 0::2, 1::2]
    x3 = x[:, 1::2, 1::2]
    xc = jnp.concatenate([x0, x1, x2, x3], axis=-1).reshape(-1, 4 * C)
    M = xc.shape[0]
    TM = M if M <= 4096 else 2048
    out = pl.pallas_call(
        _merge_kernel,
        grid=(pl.cdiv(M, TM),),
        out_shape=jax.ShapeDtypeStruct((M, 2 * C), jnp.bfloat16),
        in_specs=[
            pl.BlockSpec((TM, 4 * C), lambda i: (i, 0)),
            pl.BlockSpec((1, 4 * C), lambda i: (0, 0)),
            pl.BlockSpec((1, 4 * C), lambda i: (0, 0)),
            pl.BlockSpec((4 * C, 2 * C), lambda i: (0, 0)),
        ],
        out_specs=pl.BlockSpec((TM, 2 * C), lambda i: (i, 0)),
        compiler_params=pltpu.CompilerParams(
            dimension_semantics=("parallel",), vmem_limit_bytes=vmem_limit),
    )(xc, ds["norm_g"].reshape(1, 4 * C), ds["norm_b"].reshape(1, 4 * C),
      ds["reduction_w"])
    return out.reshape(B, H // 2, W // 2, 2 * C)


def swin_block(x_win, blk, rel_bias, mask, num_heads, ws, wblk, vmem_limit):
    """One fused Swin block.  x_win: [B, nW*N, C] bf16 windowed tokens."""
    B, T, C = x_win.shape
    N = ws * ws
    nW = T // N
    nwb = nW // wblk
    R = wblk * N
    hidden = blk["fc1_w"].shape[1]
    head_dim = C // num_heads
    xt = x_win.reshape(B * T, C)

    kern = functools.partial(_swin_block_kernel, wblk=wblk, N=N,
                             num_heads=num_heads, head_dim=head_dim,
                             has_mask=mask is not None)

    row_map = lambda b, w: (b * nwb + w, 0)
    const2 = lambda b, w: (0, 0)
    in_specs = [
        pl.BlockSpec((R, C), row_map),                          # x (window chunk)
        pl.BlockSpec((1, C), const2),                           # norm1_g
        pl.BlockSpec((1, C), const2),                           # norm1_b
        pl.BlockSpec((C, 3 * C), const2),                       # qkv_w (scale folded)
        pl.BlockSpec((1, 3 * C), const2),                       # qkv_b
        pl.BlockSpec((C, C), const2),                           # proj_w
        pl.BlockSpec((1, C), const2),                           # proj_b
        pl.BlockSpec((1, C), const2),                           # norm2_g
        pl.BlockSpec((1, C), const2),                           # norm2_b
        pl.BlockSpec((C, hidden), const2),                      # fc1_w
        pl.BlockSpec((1, hidden), const2),                      # fc1_b
        pl.BlockSpec((hidden, C), const2),                      # fc2_w
        pl.BlockSpec((1, C), const2),                           # fc2_b
        pl.BlockSpec((num_heads, N, N), lambda b, w: (0, 0, 0)),  # rel-pos bias
    ]
    args = [xt,
            blk["norm1_g"].reshape(1, C), blk["norm1_b"].reshape(1, C),
            blk["qkv_w"], blk["qkv_b"].reshape(1, 3 * C),
            blk["proj_w"], blk["proj_b"].reshape(1, C),
            blk["norm2_g"].reshape(1, C), blk["norm2_b"].reshape(1, C),
            blk["fc1_w"], blk["fc1_b"].reshape(1, hidden),
            blk["fc2_w"], blk["fc2_b"].reshape(1, C),
            rel_bias]
    if mask is not None:
        in_specs.append(pl.BlockSpec((wblk, N, N), lambda b, w: (w, 0, 0)))
        args.append(mask)

    out = pl.pallas_call(
        kern,
        grid=(B, nwb),
        out_shape=jax.ShapeDtypeStruct((B * T, C), jnp.bfloat16),
        in_specs=in_specs,
        out_specs=pl.BlockSpec((R, C), row_map),
        compiler_params=pltpu.CompilerParams(
            dimension_semantics=("parallel", "parallel"),
            vmem_limit_bytes=vmem_limit),
    )(*args)
    return out.reshape(B, T, C)


# --------------------------------------------------------------------------
# Full forward
# --------------------------------------------------------------------------
def dolphin_vision_forward(params, pixel_values, cfg):
    vmem_cap = _vmem_capacity_bytes()
    budget = max(8 << 20, vmem_cap // 4)       # ~16 MiB on v7x, ~32 MiB on v5e/v6e
    vmem_limit = int(min(vmem_cap * 3 // 4, 112 << 20))

    # pixel_values: NCHW float32 (PyTorch convention)
    x = patch_embed(pixel_values, params["patch_embed"],
                    cfg["patch_size"], cfg["embed_dim"], vmem_limit)  # [B,Hp,Wp,E] bf16

    for si, stage in enumerate(params["stages"]):
        nH = cfg["heads"][si]
        B_, H_, W_, C_ = x.shape
        window = cfg["window"]
        ws = min(window, H_, W_)
        # Donut/Swin rule: no shift (and window clamp) once resolution <= window.
        base_shift = 0 if min(H_, W_) <= window else window // 2
        N = ws * ws
        Hp2 = -(-H_ // ws) * ws
        Wp2 = -(-W_ // ws) * ws
        padded = (Hp2 != H_) or (Wp2 != W_)
        if padded:
            x = jnp.pad(x, ((0, 0), (0, Hp2 - H_), (0, Wp2 - W_), (0, 0)))
        nW = (Hp2 // ws) * (Wp2 // ws)
        hidden = stage["blocks"][0]["fc1_w"].shape[1]
        wblk = _pick_wblk(nW, N, C_, nH, hidden, budget, B_)

        rel_idx = _relative_position_index(ws).reshape(-1)
        masks = {0: None}
        if base_shift > 0:
            masks[base_shift] = jnp.asarray(
                _shift_attn_mask(Hp2, Wp2, ws, base_shift))
        if padded:
            q = np.arange(Hp2 * Wp2)
            valid_spatial = ((q // Wp2) < H_) & ((q % Wp2) < W_)

        x = x.reshape(B_, Hp2 * Wp2, C_)
        cur_shift = None
        for bi, blk in enumerate(stage["blocks"]):
            shift = 0 if bi % 2 == 0 else base_shift
            # fused window_reverse + roll + window_partition -> one gather
            p_next = _spatial_to_win(Hp2, Wp2, ws, shift)
            perm = (p_next if cur_shift is None
                    else _win_to_spatial(Hp2, Wp2, ws, cur_shift)[p_next])
            x = jnp.take(x, jnp.asarray(perm, jnp.int32), axis=1)
            if padded and cur_shift is not None:
                # re-zero pad tokens at each block input (matches HF per-layer pad)
                pmask = jnp.asarray(valid_spatial[p_next].astype(np.float32),
                                    jnp.bfloat16)
                x = x * pmask[None, :, None]
            cur_shift = shift

            rel = blk["rel_table"][rel_idx].reshape(N, N, nH).transpose(2, 0, 1)
            x = swin_block(x, blk, rel.astype(jnp.float32), masks[shift],
                           nH, ws, wblk, vmem_limit)

        inv = _win_to_spatial(Hp2, Wp2, ws, cur_shift)
        x = jnp.take(x, jnp.asarray(inv, jnp.int32), axis=1)
        x = x.reshape(B_, Hp2, Wp2, C_)
        if padded:
            x = x[:, :H_, :W_, :]
        if "downsample" in stage:
            x = patch_merging(x, stage["downsample"], vmem_limit)

    B_, Hf, Wf, Cf = x.shape
    x = layer_norm_op(x.reshape(-1, Cf), params["norm_g"], params["norm_b"],
                      vmem_limit)
    return x.reshape(B_, Hf * Wf, Cf)                 # [B, seq, hidden] f32


# --------------------------------------------------------------------------
# Deterministic synthetic parameters (no checkpoint load)
# --------------------------------------------------------------------------
def init_params(key, cfg):
    keys = iter(jax.random.split(key, 256))
    nk = lambda: next(keys)
    nrm = lambda k, shape: 0.02 * jax.random.normal(k, shape, jnp.float32)
    bf16 = jnp.bfloat16
    f32 = jnp.float32

    p, Cin, E, w = cfg["patch_size"], cfg["in_chans"], cfg["embed_dim"], cfg["window"]
    params = {
        "patch_embed": dict(
            w=nrm(nk(), (Cin * p * p, E)).astype(bf16),
            b=jnp.zeros((E,), f32),
            norm_g=jnp.ones((E,), f32),
            norm_b=jnp.zeros((E,), f32),
        )
    }
    stages = []
    C = E
    for si, (depth, nH) in enumerate(zip(cfg["depths"], cfg["heads"])):
        r = cfg["mlp_ratio"]
        blocks = []
        for _ in range(depth):
            head_dim = C // nH
            scale = head_dim ** -0.5
            qkv_w = nrm(nk(), (C, 3 * C))
            qkv_b = jnp.zeros((3 * C,), f32)
            # Fold the attention scale into the Q projection (weights + bias),
            # so the kernel has no per-block q*scale multiply.
            qkv_w = qkv_w.at[:, :C].multiply(scale)
            qkv_b = qkv_b.at[:C].multiply(scale)
            blocks.append(dict(
                norm1_g=jnp.ones((C,), f32), norm1_b=jnp.zeros((C,), f32),
                qkv_w=qkv_w.astype(bf16),
                qkv_b=qkv_b,
                rel_table=nrm(nk(), ((2 * w - 1) ** 2, nH)),
                proj_w=nrm(nk(), (C, C)).astype(bf16),
                proj_b=jnp.zeros((C,), f32),
                norm2_g=jnp.ones((C,), f32), norm2_b=jnp.zeros((C,), f32),
                fc1_w=nrm(nk(), (C, r * C)).astype(bf16),
                fc1_b=jnp.zeros((r * C,), f32),
                fc2_w=nrm(nk(), (r * C, C)).astype(bf16),
                fc2_b=jnp.zeros((C,), f32),
            ))
        stage = dict(blocks=blocks)
        if si < len(cfg["depths"]) - 1:
            stage["downsample"] = dict(
                norm_g=jnp.ones((4 * C,), f32),
                norm_b=jnp.zeros((4 * C,), f32),
                reduction_w=nrm(nk(), (4 * C, 2 * C)).astype(bf16),
            )
            C = 2 * C
        stages.append(stage)
    params["stages"] = stages
    params["norm_g"] = jnp.ones((C,), f32)
    params["norm_b"] = jnp.zeros((C,), f32)
    return params


# --------------------------------------------------------------------------
if __name__ == "__main__":
    cfg = dict(
        patch_size=4, in_chans=3, embed_dim=32,
        depths=(2, 2), heads=(2, 4), window=4, mlp_ratio=4,
    )
    key = jax.random.PRNGKey(0)
    kp, kx = jax.random.split(key)
    params = init_params(kp, cfg)

    pixel_values = jax.random.normal(kx, (2, 3, 32, 32), jnp.float32)  # NCHW

    fwd = jax.jit(lambda p, px: dolphin_vision_forward(p, px, cfg))
    out = fwd(params, pixel_values)
    out = jax.block_until_ready(out)
    assert out.shape == (2, 16, 64), out.shape
    assert jnp.all(jnp.isfinite(out))
    print("KERNEL_OK")
</pallas_src>

<mosaic_0001>
module attributes {stable_mosaic.version = 11 : i64} {
  func.func @_patch_embed_kernel(%arg0: i32, %arg1: memref<128x48xf32, #tpu.memory_space<vmem>>, %arg2: memref<48x32xbf16, #tpu.memory_space<vmem>>, %arg3: memref<1x32xf32, #tpu.memory_space<vmem>>, %arg4: memref<1x32xf32, #tpu.memory_space<vmem>>, %arg5: memref<1x32xf32, #tpu.memory_space<vmem>>, %arg6: memref<128x32xbf16, #tpu.memory_space<vmem>>) attributes {dimension_semantics = [#tpu.dimension_semantics<parallel>], iteration_bounds = array<i64: 1>, scalar_prefetch = 0 : i64, scratch_operands = 0 : i64, tpu.core_type = #tpu.core_type<tc>, window_params = [{transform_indices = @transform_0, window_bounds = array<i64: 128, 48>}, {pipeline_mode = #tpu.pipeline_mode<synchronous>, transform_indices = @transform_1, window_bounds = array<i64: 48, 32>}, {pipeline_mode = #tpu.pipeline_mode<synchronous>, transform_indices = @transform_2, window_bounds = array<i64: 1, 32>}, {pipeline_mode = #tpu.pipeline_mode<synchronous>, transform_indices = @transform_3, window_bounds = array<i64: 1, 32>}, {pipeline_mode = #tpu.pipeline_mode<synchronous>, transform_indices = @transform_4, window_bounds = array<i64: 1, 32>}, {transform_indices = @transform_5, window_bounds = array<i64: 128, 32>}]} {
    %c0 = arith.constant 0 : index
    %c0_0 = arith.constant 0 : index
    %0 = vector.load %arg1[%c0, %c0_0] : memref<128x48xf32, #tpu.memory_space<vmem>>, vector<128x48xf32>
    %c0_1 = arith.constant 0 : index
    %c0_2 = arith.constant 0 : index
    %1 = vector.load %arg2[%c0_1, %c0_2] : memref<48x32xbf16, #tpu.memory_space<vmem>>, vector<48x32xbf16>
    %c0_3 = arith.constant 0 : index
    %c0_4 = arith.constant 0 : index
    %2 = vector.load %arg3[%c0_3, %c0_4] : memref<1x32xf32, #tpu.memory_space<vmem>>, vector<1x32xf32>
    %3 = arith.truncf %0 : vector<128x48xf32> to vector<128x48xbf16>
    %cst = arith.constant dense<0.000000e+00> : vector<128x32xf32>
    %4 = tpu.matmul %3, %1, %cst {dimension_numbers = #tpu.dot_dimension_numbers<[1], [0], [0], [1], [0, 0, 1, 1], [], []>} : vector<128x48xbf16>, vector<48x32xbf16>, vector<128x32xf32> -> vector<128x32xf32>
    %5 = vector.broadcast %2 : vector<1x32xf32> to vector<128x32xf32>
    %6 = arith.addf %4, %5 : vector<128x32xf32>
    %c0_5 = arith.constant 0 : index
    %c0_6 = arith.constant 0 : index
    %7 = vector.load %arg4[%c0_5, %c0_6] : memref<1x32xf32, #tpu.memory_space<vmem>>, vector<1x32xf32>
    %c0_7 = arith.constant 0 : index
    %c0_8 = arith.constant 0 : index
    %8 = vector.load %arg5[%c0_7, %c0_8] : memref<1x32xf32, #tpu.memory_space<vmem>>, vector<1x32xf32>
    %cst_9 = arith.constant dense<0.000000e+00> : vector<128xf32>
    %9 = vector.multi_reduction <add>, %6, %cst_9 [1] : vector<128x32xf32> to vector<128xf32>
    %10 = vector.shape_cast %9 : vector<128xf32> to vector<128x1xf32>
    %cst_10 = arith.constant 3.200000e+01 : f32
    %11 = vector.broadcast %cst_10 : f32 to vector<128x1xf32>
    %12 = arith.divf %10, %11 : vector<128x1xf32>
    %13 = vector.broadcast %12 : vector<128x1xf32> to vector<128x32xf32>
    %14 = arith.subf %6, %13 : vector<128x32xf32>
    %15 = arith.mulf %14, %14 : vector<128x32xf32>
    %cst_11 = arith.constant dense<0.000000e+00> : vector<128xf32>
    %16 = vector.multi_reduction <add>, %15, %cst_11 [1] : vector<128x32xf32> to vector<128xf32>
    %17 = vector.shape_cast %16 : vector<128xf32> to vector<128x1xf32>
    %cst_12 = arith.constant 3.200000e+01 : f32
    %18 = vector.broadcast %cst_12 : f32 to vector<128x1xf32>
    %19 = arith.divf %17, %18 : vector<128x1xf32>
    %20 = vector.broadcast %12 : vector<128x1xf32> to vector<128x32xf32>
    %21 = arith.subf %6, %20 : vector<128x32xf32>
    %cst_13 = arith.constant 9.99999974E-6 : f32
    %22 = vector.broadcast %cst_13 : f32 to vector<128x1xf32>
    %23 = arith.addf %19, %22 : vector<128x1xf32>
    %24 = math.rsqrt %23 : vector<128x1xf32>
    %25 = vector.broadcast %24 : vector<128x1xf32> to vector<128x32xf32>
    %26 = arith.mulf %21, %25 : vector<128x32xf32>
    %27 = vector.broadcast %7 : vector<1x32xf32> to vector<128x32xf32>
    %28 = arith.mulf %26, %27 : vector<128x32xf32>
    %29 = vector.broadcast %8 : vector<1x32xf32> to vector<128x32xf32>
    %30 = arith.addf %28, %29 : vector<128x32xf32>
    %31 = arith.truncf %30 : vector<128x32xf32> to vector<128x32xbf16>
    %c0_14 = arith.constant 0 : index
    %c0_15 = arith.constant 0 : index
    %32 = vector.load %arg6[%c0_14, %c0_15] : memref<128x32xbf16, #tpu.memory_space<vmem>>, vector<128x32xbf16>
    tpu.vector_store %arg6[%c0_14, %c0_15], %31 {strides = array<i32>} : memref<128x32xbf16, #tpu.memory_space<vmem>>, vector<128x32xbf16>,
    return
  }
  func.func @transform_0(%arg0: i32) -> (i32, i32) {
    %c0_i32 = arith.constant 0 : i32
    %c0_i32_0 = arith.constant 0 : i32
    return %arg0, %c0_i32 : i32, i32
  }
  func.func @transform_1(%arg0: i32) -> (i32, i32) {
    %c0_i32 = arith.constant 0 : i32
    %c0_i32_0 = arith.constant 0 : i32
    %c0_i32_1 = arith.constant 0 : i32
    return %c0_i32, %c0_i32_0 : i32, i32
  }
  func.func @transform_2(%arg0: i32) -> (i32, i32) {
    %c0_i32 = arith.constant 0 : i32
    %c0_i32_0 = arith.constant 0 : i32
    %c0_i32_1 = arith.constant 0 : i32
    return %c0_i32, %c0_i32_0 : i32, i32
  }
  func.func @transform_3(%arg0: i32) -> (i32, i32) {
    %c0_i32 = arith.constant 0 : i32
    %c0_i32_0 = arith.constant 0 : i32
    %c0_i32_1 = arith.constant 0 : i32
    return %c0_i32, %c0_i32_0 : i32, i32
  }
  func.func @transform_4(%arg0: i32) -> (i32, i32) {
    %c0_i32 = arith.constant 0 : i32
    %c0_i32_0 = arith.constant 0 : i32
    %c0_i32_1 = arith.constant 0 : i32
    return %c0_i32, %c0_i32_0 : i32, i32
  }
  func.func @transform_5(%arg0: i32) -> (i32, i32) {
    %c0_i32 = arith.constant 0 : i32
    %c0_i32_0 = arith.constant 0 : i32
    return %arg0, %c0_i32 : i32, i32
  }
}

module attributes {stable_mosaic.version = 11 : i64} {
  func.func @_swin_block_kernel(%arg0: i32, %arg1: i32, %arg2: memref<64x32xbf16, #tpu.memory_space<vmem>>, %arg3: memref<1x32xf32, #tpu.memory_space<vmem>>, %arg4: memref<1x32xf32, #tpu.memory_space<vmem>>, %arg5: memref<32x96xbf16, #tpu.memory_space<vmem>>, %arg6: memref<1x96xf32, #tpu.memory_space<vmem>>, %arg7: memref<32x32xbf16, #tpu.memory_space<vmem>>, %arg8: memref<1x32xf32, #tpu.memory_space<vmem>>, %arg9: memref<1x32xf32, #tpu.memory_space<vmem>>, %arg10: memref<1x32xf32, #tpu.memory_space<vmem>>, %arg11: memref<32x128xbf16, #tpu.memory_space<vmem>>, %arg12: memref<1x128xf32, #tpu.memory_space<vmem>>, %arg13: memref<128x32xbf16, #tpu.memory_space<vmem>>, %arg14: memref<1x32xf32, #tpu.memory_space<vmem>>, %arg15: memref<2x16x16xf32, #tpu.memory_space<vmem>>, %arg16: memref<64x32xbf16, #tpu.memory_space<vmem>>) attributes {dimension_semantics = [#tpu.dimension_semantics<parallel>, #tpu.dimension_semantics<parallel>], iteration_bounds = array<i64: 2, 1>, scalar_prefetch = 0 : i64, scratch_operands = 0 : i64, tpu.core_type = #tpu.core_type<tc>, window_params = [{transform_indices = @transform_0, window_bounds = array<i64: 64, 32>}, {pipeline_mode = #tpu.pipeline_mode<synchronous>, transform_indices = @transform_1, window_bounds = array<i64: 1, 32>}, {pipeline_mode = #tpu.pipeline_mode<synchronous>, transform_indices = @transform_2, window_bounds = array<i64: 1, 32>}, {pipeline_mode = #tpu.pipeline_mode<synchronous>, transform_indices = @transform_3, window_bounds = array<i64: 32, 96>}, {pipeline_mode = #tpu.pipeline_mode<synchronous>, transform_indices = @transform_4, window_bounds = array<i64: 1, 96>}, {pipeline_mode = #tpu.pipeline_mode<synchronous>, transform_indices = @transform_5, window_bounds = array<i64: 32, 32>}, {pipeline_mode = #tpu.pipeline_mode<synchronous>, transform_indices = @transform_6, window_bounds = array<i64: 1, 32>}, {pipeline_mode = #tpu.pipeline_mode<synchronous>, transform_indices = @transform_7, window_bounds = array<i64: 1, 32>}, {pipeline_mode = #tpu.pipeline_mode<synchronous>, transform_indices = @transform_8, window_bounds = array<i64: 1, 32>}, {pipeline_mode = #tpu.pipeline_mode<synchronous>, transform_indices = @transform_9, window_bounds = array<i64: 32, 128>}, {pipeline_mode = #tpu.pipeline_mode<synchronous>, transform_indices = @transform_10, window_bounds = array<i64: 1, 128>}, {pipeline_mode = #tpu.pipeline_mode<synchronous>, transform_indices = @transform_11, window_bounds = array<i64: 128, 32>}, {pipeline_mode = #tpu.pipeline_mode<synchronous>, transform_indices = @transform_12, window_bounds = array<i64: 1, 32>}, {pipeline_mode = #tpu.pipeline_mode<synchronous>, transform_indices = @transform_13, window_bounds = array<i64: 2, 16, 16>}, {transform_indices = @transform_14, window_bounds = array<i64: 64, 32>}]} {
    %c0 = arith.constant 0 : index
    %c0_0 = arith.constant 0 : index
    %0 = vector.load %arg2[%c0, %c0_0] : memref<64x32xbf16, #tpu.memory_space<vmem>>, vector<64x32xbf16>
    %1 = arith.extf %0 : vector<64x32xbf16> to vector<64x32xf32>
    %c0_1 = arith.constant 0 : index
    %c0_2 = arith.constant 0 : index
    %2 = vector.load %arg3[%c0_1, %c0_2] : memref<1x32xf32, #tpu.memory_space<vmem>>, vector<1x32xf32>
    %c0_3 = arith.constant 0 : index
    %c0_4 = arith.constant 0 : index
    %3 = vector.load %arg4[%c0_3, %c0_4] : memref<1x32xf32, #tpu.memory_space<vmem>>, vector<1x32xf32>
    %cst = arith.constant dense<0.000000e+00> : vector<64xf32>
    %4 = vector.multi_reduction <add>, %1, %cst [1] : vector<64x32xf32> to vector<64xf32>
    %5 = vector.shape_cast %4 : vector<64xf32> to vector<64x1xf32>
    %cst_5 = arith.constant 3.200000e+01 : f32
    %6 = vector.broadcast %cst_5 : f32 to vector<64x1xf32>
    %7 = arith.divf %5, %6 : vector<64x1xf32>
    %8 = vector.broadcast %7 : vector<64x1xf32> to vector<64x32xf32>
    %9 = arith.subf %1, %8 : vector<64x32xf32>
    %10 = arith.mulf %9, %9 : vector<64x32xf32>
    %cst_6 = arith.constant dense<0.000000e+00> : vector<64xf32>
    %11 = vector.multi_reduction <add>, %10, %cst_6 [1] : vector<64x32xf32> to vector<64xf32>
    %12 = vector.shape_cast %11 : vector<64xf32> to vector<64x1xf32>
    %cst_7 = arith.constant 3.200000e+01 : f32
    %13 = vector.broadcast %cst_7 : f32 to vector<64x1xf32>
    %14 = arith.divf %12, %13 : vector<64x1xf32>
    %15 = vector.broadcast %7 : vector<64x1xf32> to vector<64x32xf32>
    %16 = arith.subf %1, %15 : vector<64x32xf32>
    %cst_8 = arith.constant 9.99999974E-6 : f32
    %17 = vector.broadcast %cst_8 : f32 to vector<64x1xf32>
    %18 = arith.addf %14, %17 : vector<64x1xf32>
    %19 = math.rsqrt %18 : vector<64x1xf32>
    %20 = vector.broadcast %19 : vector<64x1xf32> to vector<64x32xf32>
    %21 = arith.mulf %16, %20 : vector<64x32xf32>
    %22 = vector.broadcast %2 : vector<1x32xf32> to vector<64x32xf32>
    %23 = arith.mulf %21, %22 : vector<64x32xf32>
    %24 = vector.broadcast %3 : vector<1x32xf32> to vector<64x32xf32>
    %25 = arith.addf %23, %24 : vector<64x32xf32>
    %c0_9 = arith.constant 0 : index
    %c0_10 = arith.constant 0 : index
    %26 = vector.load %arg5[%c0_9, %c0_10] : memref<32x96xbf16, #tpu.memory_space<vmem>>, vector<32x96xbf16>
    %c0_11 = arith.constant 0 : index
    %c0_12 = arith.constant 0 : index
    %27 = vector.load %arg6[%c0_11, %c0_12] : memref<1x96xf32, #tpu.memory_space<vmem>>, vector<1x96xf32>
    %28 = arith.truncf %25 : vector<64x32xf32> to vector<64x32xbf16>
    %cst_13 = arith.constant dense<0.000000e+00> : vector<64x96xf32>
    %29 = tpu.matmul %28, %26, %cst_13 {dimension_numbers = #tpu.dot_dimension_numbers<[1], [0], [0], [1], [0, 0, 1, 1], [], []>} : vector<64x32xbf16>, vector<32x96xbf16>, vector<64x96xf32> -> vector<64x96xf32>
    %30 = vector.broadcast %27 : vector<1x96xf32> to vector<64x96xf32>
    %31 = arith.addf %29, %30 : vector<64x96xf32>
    %32 = vector.extract_strided_slice %31 {offsets = [0, 0], sizes = [64, 32], strides = [1, 1]} : vector<64x96xf32> to vector<64x32xf32>
    %33 = vector.shape_cast %32 : vector<64x32xf32> to vector<4x16x32xf32>
    %34 = vector.extract_strided_slice %31 {offsets = [0, 32], sizes = [64, 32], strides = [1, 1]} : vector<64x96xf32> to vector<64x32xf32>
    %35 = vector.shape_cast %34 : vector<64x32xf32> to vector<4x16x32xf32>
    %36 = vector.extract_strided_slice %31 {offsets = [0, 64], sizes = [64, 32], strides = [1, 1]} : vector<64x96xf32> to vector<64x32xf32>
    %37 = vector.shape_cast %36 : vector<64x32xf32> to vector<4x16x32xf32>
    %38 = vector.extract_strided_slice %33 {offsets = [0, 0, 0], sizes = [4, 16, 16], strides = [1, 1, 1]} : vector<4x16x32xf32> to vector<4x16x16xf32>
    %39 = vector.extract_strided_slice %33 {offsets = [0, 0, 16], sizes = [4, 16, 16], strides = [1, 1, 1]} : vector<4x16x32xf32> to vector<4x16x16xf32>
    %40 = vector.shape_cast %38 : vector<4x16x16xf32> to vector<1x4x16x16xf32>
    %41 = vector.shape_cast %39 : vector<4x16x16xf32> to vector<1x4x16x16xf32>
    %42 = tpu.concatenate %40, %41 in 0 : vector<1x4x16x16xf32>, vector<1x4x16x16xf32> -> vector<2x4x16x16xf32>
    %43 = vector.shape_cast %42 : vector<2x4x16x16xf32> to vector<8x16x16xf32>
    %44 = arith.truncf %43 : vector<8x16x16xf32> to vector<8x16x16xbf16>
    %45 = vector.extract_strided_slice %35 {offsets = [0, 0, 0], sizes = [4, 16, 16], strides = [1, 1, 1]} : vector<4x16x32xf32> to vector<4x16x16xf32>
    %46 = vector.extract_strided_slice %35 {offsets = [0, 0, 16], sizes = [4, 16, 16], strides = [1, 1, 1]} : vector<4x16x32xf32> to vector<4x16x16xf32>
    %47 = vector.shape_cast %45 : vector<4x16x16xf32> to vector<1x4x16x16xf32>
    %48 = vector.shape_cast %46 : vector<4x16x16xf32> to vector<1x4x16x16xf32>
    %49 = tpu.concatenate %47, %48 in 0 : vector<1x4x16x16xf32>, vector<1x4x16x16xf32> -> vector<2x4x16x16xf32>
    %50 = vector.shape_cast %49 : vector<2x4x16x16xf32> to vector<8x16x16xf32>
    %51 = arith.truncf %50 : vector<8x16x16xf32> to vector<8x16x16xbf16>
    %52 = vector.extract_strided_slice %37 {offsets = [0, 0, 0], sizes = [4, 16, 16], strides = [1, 1, 1]} : vector<4x16x32xf32> to vector<4x16x16xf32>
    %53 = vector.extract_strided_slice %37 {offsets = [0, 0, 16], sizes = [4, 16, 16], strides = [1, 1, 1]} : vector<4x16x32xf32> to vector<4x16x16xf32>
    %54 = vector.shape_cast %52 : vector<4x16x16xf32> to vector<1x4x16x16xf32>
    %55 = vector.shape_cast %53 : vector<4x16x16xf32> to vector<1x4x16x16xf32>
    %56 = tpu.concatenate %54, %55 in 0 : vector<1x4x16x16xf32>, vector<1x4x16x16xf32> -> vector<2x4x16x16xf32>
    %57 = vector.shape_cast %56 : vector<2x4x16x16xf32> to vector<8x16x16xf32>
    %58 = arith.truncf %57 : vector<8x16x16xf32> to vector<8x16x16xbf16>
    "tpu.trace_start"() <{level = 10 : i32, message = "bnd,bmd->bnm"}> : () -> ()
    %cst_14 = arith.constant dense<0.000000e+00> : vector<8x16x16xf32>
    %59 = tpu.matmul %44, %51, %cst_14 {dimension_numbers = #tpu.dot_dimension_numbers<[2], [2], [1], [1], [0, 0, 0, 1, 1, 1], [0], [0]>} : vector<8x16x16xbf16>, vector<8x16x16xbf16>, vector<8x16x16xf32> -> vector<8x16x16xf32>
    "tpu.trace_stop"() : () -> ()
    %60 = vector.shape_cast %59 : vector<8x16x16xf32> to vector<2x4x16x16xf32>
    %c0_15 = arith.constant 0 : index
    %c0_16 = arith.constant 0 : index
    %c0_17 = arith.constant 0 : index
    %61 = vector.load %arg15[%c0_15, %c0_16, %c0_17] : memref<2x16x16xf32, #tpu.memory_space<vmem>>, vector<2x16x16xf32>
    %62 = vector.shape_cast %61 : vector<2x16x16xf32> to vector<2x1x16x16xf32>
    %63 = vector.broadcast %62 : vector<2x1x16x16xf32> to vector<2x4x16x16xf32>
    %64 = arith.addf %60, %63 : vector<2x4x16x16xf32>
    %cst_18 = arith.constant dense<0xFF800000> : vector<2x4x16xf32>
    %65 = vector.multi_reduction <maximumf>, %64, %cst_18 [3] : vector<2x4x16x16xf32> to vector<2x4x16xf32>
    %66 = vector.shape_cast %65 : vector<2x4x16xf32> to vector<2x4x16x1xf32>
    %67 = vector.broadcast %66 : vector<2x4x16x1xf32> to vector<2x4x16x16xf32>
    %68 = arith.subf %64, %67 : vector<2x4x16x16xf32>
    %69 = math.exp %68 : vector<2x4x16x16xf32>
    %cst_19 = arith.constant dense<0.000000e+00> : vector<2x4x16xf32>
    %70 = vector.multi_reduction <add>, %69, %cst_19 [3] : vector<2x4x16x16xf32> to vector<2x4x16xf32>
    %71 = vector.shape_cast %70 : vector<2x4x16xf32> to vector<2x4x16x1xf32>
    %72 = tpu.reciprocal %71 {approx = true} : vector<2x4x16x1xf32> -> vector<2x4x16x1xf32>
    %73 = vector.broadcast %72 : vector<2x4x16x1xf32> to vector<2x4x16x16xf32>
    %74 = arith.mulf %69, %73 : vector<2x4x16x16xf32>
    %75 = vector.shape_cast %74 : vector<2x4x16x16xf32> to vector<8x16x16xf32>
    %76 = arith.truncf %75 : vector<8x16x16xf32> to vector<8x16x16xbf16>
    "tpu.trace_start"() <{level = 10 : i32, message = "bnm,bmd->bnd"}> : () -> ()
    %cst_20 = arith.constant dense<0.000000e+00> : vector<8x16x16xf32>
    %77 = tpu.matmul %76, %58, %cst_20 {dimension_numbers = #tpu.dot_dimension_numbers<[2], [1], [1], [2], [0, 0, 0, 1, 1, 2], [0], [0]>} : vector<8x16x16xbf16>, vector<8x16x16xbf16>, vector<8x16x16xf32> -> vector<8x16x16xf32>
    "tpu.trace_stop"() : () -> ()
    %78 = vector.shape_cast %77 : vector<8x16x16xf32> to vector<2x4x16x16xf32>
    %79 = vector.extract_strided_slice %78 {offsets = [0, 0, 0, 0], sizes = [1, 4, 16, 16], strides = [1, 1, 1, 1]} : vector<2x4x16x16xf32> to vector<1x4x16x16xf32>
    %80 = vector.shape_cast %79 : vector<1x4x16x16xf32> to vector<4x16x16xf32>
    %81 = vector.extract_strided_slice %78 {offsets = [1, 0, 0, 0], sizes = [1, 4, 16, 16], strides = [1, 1, 1, 1]} : vector<2x4x16x16xf32> to vector<1x4x16x16xf32>
    %82 = vector.shape_cast %81 : vector<1x4x16x16xf32> to vector<4x16x16xf32>
    %83 = tpu.concatenate %80, %82 in 2 : vector<4x16x16xf32>, vector<4x16x16xf32> -> vector<4x16x32xf32>
    %84 = vector.shape_cast %83 : vector<4x16x32xf32> to vector<64x32xf32>
    %c0_21 = arith.constant 0 : index
    %c0_22 = arith.constant 0 : index
    %85 = vector.load %arg7[%c0_21, %c0_22] : memref<32x32xbf16, #tpu.memory_space<vmem>>, vector<32x32xbf16>
    %c0_23 = arith.constant 0 : index
    %c0_24 = arith.constant 0 : index
    %86 = vector.load %arg8[%c0_23, %c0_24] : memref<1x32xf32, #tpu.memory_space<vmem>>, vector<1x32xf32>
    %87 = arith.truncf %84 : vector<64x32xf32> to vector<64x32xbf16>
    %cst_25 = arith.constant dense<0.000000e+00> : vector<64x32xf32>
    %88 = tpu.matmul %87, %85, %cst_25 {dimension_numbers = #tpu.dot_dimension_numbers<[1], [0], [0], [1], [0, 0, 1, 1], [], []>} : vector<64x32xbf16>, vector<32x32xbf16>, vector<64x32xf32> -> vector<64x32xf32>
    %89 = vector.broadcast %86 : vector<1x32xf32> to vector<64x32xf32>
    %90 = arith.addf %88, %89 : vector<64x32xf32>
    %91 = arith.addf %1, %90 : vector<64x32xf32>
    %c0_26 = arith.constant 0 : index
    %c0_27 = arith.constant 0 : index
    %92 = vector.load %arg9[%c0_26, %c0_27] : memref<1x32xf32, #tpu.memory_space<vmem>>, vector<1x32xf32>
    %c0_28 = arith.constant 0 : index
    %c0_29 = arith.constant 0 : index
    %93 = vector.load %arg10[%c0_28, %c0_29] : memref<1x32xf32, #tpu.memory_space<vmem>>, vector<1x32xf32>
    %cst_30 = arith.constant dense<0.000000e+00> : vector<64xf32>
    %94 = vector.multi_reduction <add>, %91, %cst_30 [1] : vector<64x32xf32> to vector<64xf32>
    %95 = vector.shape_cast %94 : vector<64xf32> to vector<64x1xf32>
    %cst_31 = arith.constant 3.200000e+01 : f32
    %96 = vector.broadcast %cst_31 : f32 to vector<64x1xf32>
    %97 = arith.divf %95, %96 : vector<64x1xf32>
    %98 = vector.broadcast %97 : vector<64x1xf32> to vector<64x32xf32>
    %99 = arith.subf %91, %98 : vector<64x32xf32>
    %100 = arith.mulf %99, %99 : vector<64x32xf32>
    %cst_32 = arith.constant dense<0.000000e+00> : vector<64xf32>
    %101 = vector.multi_reduction <add>, %100, %cst_32 [1] : vector<64x32xf32> to vector<64xf32>
    %102 = vector.shape_cast %101 : vector<64xf32> to vector<64x1xf32>
    %cst_33 = arith.constant 3.200000e+01 : f32
    %103 = vector.broadcast %cst_33 : f32 to vector<64x1xf32>
    %104 = arith.divf %102, %103 : vector<64x1xf32>
    %105 = vector.broadcast %97 : vector<64x1xf32> to vector<64x32xf32>
    %106 = arith.subf %91, %105 : vector<64x32xf32>
    %cst_34 = arith.constant 9.99999974E-6 : f32
    %107 = vector.broadcast %cst_34 : f32 to vector<64x1xf32>
    %108 = arith.addf %104, %107 : vector<64x1xf32>
    %109 = math.rsqrt %108 : vector<64x1xf32>
    %110 = vector.broadcast %109 : vector<64x1xf32> to vector<64x32xf32>
    %111 = arith.mulf %106, %110 : vector<64x32xf32>
    %112 = vector.broadcast %92 : vector<1x32xf32> to vector<64x32xf32>
    %113 = arith.mulf %111, %112 : vector<64x32xf32>
    %114 = vector.broadcast %93 : vector<1x32xf32> to vector<64x32xf32>
    %115 = arith.addf %113, %114 : vector<64x32xf32>
    %c0_35 = arith.constant 0 : index
    %c0_36 = arith.constant 0 : index
    %116 = vector.load %arg11[%c0_35, %c0_36] : memref<32x128xbf16, #tpu.memory_space<vmem>>, vector<32x128xbf16>
    %c0_37 = arith.constant 0 : index
    %c0_38 = arith.constant 0 : index
    %117 = vector.load %arg12[%c0_37, %c0_38] : memref<1x128xf32, #tpu.memory_space<vmem>>, vector<1x128xf32>
    %118 = arith.truncf %115 : vector<64x32xf32> to vector<64x32xbf16>
    %cst_39 = arith.constant dense<0.000000e+00> : vector<64x128xf32>
    %119 = tpu.matmul %118, %116, %cst_39 {dimension_numbers = #tpu.dot_dimension_numbers<[1], [0], [0], [1], [0, 0, 1, 1], [], []>} : vector<64x32xbf16>, vector<32x128xbf16>, vector<64x128xf32> -> vector<64x128xf32>
    %120 = vector.broadcast %117 : vector<1x128xf32> to vector<64x128xf32>
    %121 = arith.addf %119, %120 : vector<64x128xf32>
    %122 = arith.mulf %121, %121 : vector<64x128xf32>
    %123 = arith.mulf %121, %122 : vector<64x128xf32>
    %cst_40 = arith.constant 4.471500e-02 : f32
    %124 = vector.broadcast %cst_40 : f32 to vector<64x128xf32>
    %125 = arith.mulf %124, %123 : vector<64x128xf32>
    %126 = arith.addf %121, %125 : vector<64x128xf32>
    %cst_41 = arith.constant 0.797884583 : f32
    %127 = vector.broadcast %cst_41 : f32 to vector<64x128xf32>
    %128 = arith.mulf %127, %126 : vector<64x128xf32>
    %129 = math.tanh %128 : vector<64x128xf32>
    %cst_42 = arith.constant 1.000000e+00 : f32
    %130 = vector.broadcast %cst_42 : f32 to vector<64x128xf32>
    %131 = arith.addf %130, %129 : vector<64x128xf32>
    %cst_43 = arith.constant 5.000000e-01 : f32
    %132 = vector.broadcast %cst_43 : f32 to vector<64x128xf32>
    %133 = arith.mulf %132, %131 : vector<64x128xf32>
    %134 = arith.mulf %121, %133 : vector<64x128xf32>
    %c0_44 = arith.constant 0 : index
    %c0_45 = arith.constant 0 : index
    %135 = vector.load %arg13[%c0_44, %c0_45] : memref<128x32xbf16, #tpu.memory_space<vmem>>, vector<128x32xbf16>
    %c0_46 = arith.constant 0 : index
    %c0_47 = arith.constant 0 : index
    %136 = vector.load %arg14[%c0_46, %c0_47] : memref<1x32xf32, #tpu.memory_space<vmem>>, vector<1x32xf32>
    %137 = arith.truncf %134 : vector<64x128xf32> to vector<64x128xbf16>
    %cst_48 = arith.constant dense<0.000000e+00> : vector<64x32xf32>
    %138 = tpu.matmul %137, %135, %cst_48 {dimension_numbers = #tpu.dot_dimension_numbers<[1], [0], [0], [1], [0, 0, 1, 1], [], []>} : vector<64x128xbf16>, vector<128x32xbf16>, vector<64x32xf32> -> vector<64x32xf32>
    %139 = vector.broadcast %136 : vector<1x32xf32> to vector<64x32xf32>
    %140 = arith.addf %138, %139 : vector<64x32xf32>
    %141 = arith.addf %91, %140 : vector<64x32xf32>
    %142 = arith.truncf %141 : vector<64x32xf32> to vector<64x32xbf16>
    %c0_49 = arith.constant 0 : index
    %c0_50 = arith.constant 0 : index
    %143 = vector.load %arg16[%c0_49, %c0_50] : memref<64x32xbf16, #tpu.memory_space<vmem>>, vector<64x32xbf16>
    tpu.vector_store %arg16[%c0_49, %c0_50], %142 {strides = array<i32>} : memref<64x32xbf16, #tpu.memory_space<vmem>>, vector<64x32xbf16>,
    return
  }
  func.func @transform_0(%arg0: i32, %arg1: i32) -> (i32, i32) {
    %c1_i32 = arith.constant 1 : i32
    %0 = arith.muli %arg0, %c1_i32 : i32
    %1 = arith.addi %0, %arg1 : i32
    %c0_i32 = arith.constant 0 : i32
    %c0_i32_0 = arith.constant 0 : i32
    return %1, %c0_i32 : i32, i32
  }
  func.func @transform_1(%arg0: i32, %arg1: i32) -> (i32, i32) {
    %c0_i32 = arith.constant 0 : i32
    %c0_i32_0 = arith.constant 0 : i32
    %c0_i32_1 = arith.constant 0 : i32
    return %c0_i32, %c0_i32_0 : i32, i32
  }
  func.func @transform_2(%arg0: i32, %arg1: i32) -> (i32, i32) {
    %c0_i32 = arith.constant 0 : i32
    %c0_i32_0 = arith.constant 0 : i32
    %c0_i32_1 = arith.constant 0 : i32
    return %c0_i32, %c0_i32_0 : i32, i32
  }
  func.func @transform_3(%arg0: i32, %arg1: i32) -> (i32, i32) {
    %c0_i32 = arith.constant 0 : i32
    %c0_i32_0 = arith.constant 0 : i32
    %c0_i32_1 = arith.constant 0 : i32
    return %c0_i32, %c0_i32_0 : i32, i32
  }
  func.func @transform_4(%arg0: i32, %arg1: i32) -> (i32, i32) {
    %c0_i32 = arith.constant 0 : i32
    %c0_i32_0 = arith.constant 0 : i32
    %c0_i32_1 = arith.constant 0 : i32
    return %c0_i32, %c0_i32_0 : i32, i32
  }
  func.func @transform_5(%arg0: i32, %arg1: i32) -> (i32, i32) {
    %c0_i32 = arith.constant 0 : i32
    %c0_i32_0 = arith.constant 0 : i32
    %c0_i32_1 = arith.constant 0 : i32
    return %c0_i32, %c0_i32_0 : i32, i32
  }
  func.func @transform_6(%arg0: i32, %arg1: i32) -> (i32, i32) {
    %c0_i32 = arith.constant 0 : i32
    %c0_i32_0 = arith.constant 0 : i32
    %c0_i32_1 = arith.constant 0 : i32
    return %c0_i32, %c0_i32_0 : i32, i32
  }
  func.func @transform_7(%arg0: i32, %arg1: i32) -> (i32, i32) {
    %c0_i32 = arith.constant 0 : i32
    %c0_i32_0 = arith.constant 0 : i32
    %c0_i32_1 = arith.constant 0 : i32
    return %c0_i32, %c0_i32_0 : i32, i32
  }
  func.func @transform_8(%arg0: i32, %arg1: i32) -> (i32, i32) {
    %c0_i32 = arith.constant 0 : i32
    %c0_i32_0 = arith.constant 0 : i32
    %c0_i32_1 = arith.constant 0 : i32
    return %c0_i32, %c0_i32_0 : i32, i32
  }
  func.func @transform_9(%arg0: i32, %arg1: i32) -> (i32, i32) {
    %c0_i32 = arith.constant 0 : i32
    %c0_i32_0 = arith.constant 0 : i32
    %c0_i32_1 = arith.constant 0 : i32
    return %c0_i32, %c0_i32_0 : i32, i32
  }
  func.func @transform_10(%arg0: i32, %arg1: i32) -> (i32, i32) {
    %c0_i32 = arith.constant 0 : i32
    %c0_i32_0 = arith.constant 0 : i32
    %c0_i32_1 = arith.constant 0 : i32
    return %c0_i32, %c0_i32_0 : i32, i32
  }
  func.func @transform_11(%arg0: i32, %arg1: i32) -> (i32, i32) {
    %c0_i32 = arith.constant 0 : i32
    %c0_i32_0 = arith.constant 0 : i32
    %c0_i32_1 = arith.constant 0 : i32
    return %c0_i32, %c0_i32_0 : i32, i32
  }
  func.func @transform_12(%arg0: i32, %arg1: i32) -> (i32, i32) {
    %c0_i32 = arith.constant 0 : i32
    %c0_i32_0 = arith.constant 0 : i32
    %c0_i32_1 = arith.constant 0 : i32
    return %c0_i32, %c0_i32_0 : i32, i32
  }
  func.func @transform_13(%arg0: i32, %arg1: i32) -> (i32, i32, i32) {
    %c0_i32 = arith.constant 0 : i32
    %c0_i32_0 = arith.constant 0 : i32
    %c0_i32_1 = arith.constant 0 : i32
    %c0_i32_2 = arith.constant 0 : i32
    return %c0_i32, %c0_i32_0, %c0_i32_1 : i32, i32, i32
  }
  func.func @transform_14(%arg0: i32, %arg1: i32) -> (i32, i32) {
    %c1_i32 = arith.constant 1 : i32
    %0 = arith.muli %arg0, %c1_i32 : i32
    %1 = arith.addi %0, %arg1 : i32
    %c0_i32 = arith.constant 0 : i32
    %c0_i32_0 = arith.constant 0 : i32
    return %1, %c0_i32 : i32, i32
  }
}

module attributes {stable_mosaic.version = 11 : i64} {
  func.func @_swin_block_kernel(%arg0: i32, %arg1: i32, %arg2: memref<64x32xbf16, #tpu.memory_space<vmem>>, %arg3: memref<1x32xf32, #tpu.memory_space<vmem>>, %arg4: memref<1x32xf32, #tpu.memory_space<vmem>>, %arg5: memref<32x96xbf16, #tpu.memory_space<vmem>>, %arg6: memref<1x96xf32, #tpu.memory_space<vmem>>, %arg7: memref<32x32xbf16, #tpu.memory_space<vmem>>, %arg8: memref<1x32xf32, #tpu.memory_space<vmem>>, %arg9: memref<1x32xf32, #tpu.memory_space<vmem>>, %arg10: memref<1x32xf32, #tpu.memory_space<vmem>>, %arg11: memref<32x128xbf16, #tpu.memory_space<vmem>>, %arg12: memref<1x128xf32, #tpu.memory_space<vmem>>, %arg13: memref<128x32xbf16, #tpu.memory_space<vmem>>, %arg14: memref<1x32xf32, #tpu.memory_space<vmem>>, %arg15: memref<2x16x16xf32, #tpu.memory_space<vmem>>, %arg16: memref<4x16x16xf32, #tpu.memory_space<vmem>>, %arg17: memref<64x32xbf16, #tpu.memory_space<vmem>>) attributes {dimension_semantics = [#tpu.dimension_semantics<parallel>, #tpu.dimension_semantics<parallel>], iteration_bounds = array<i64: 2, 1>, scalar_prefetch = 0 : i64, scratch_operands = 0 : i64, tpu.core_type = #tpu.core_type<tc>, window_params = [{transform_indices = @transform_0, window_bounds = array<i64: 64, 32>}, {pipeline_mode = #tpu.pipeline_mode<synchronous>, transform_indices = @transform_1, window_bounds = array<i64: 1, 32>}, {pipeline_mode = #tpu.pipeline_mode<synchronous>, transform_indices = @transform_2, window_bounds = array<i64: 1, 32>}, {pipeline_mode = #tpu.pipeline_mode<synchronous>, transform_indices = @transform_3, window_bounds = array<i64: 32, 96>}, {pipeline_mode = #tpu.pipeline_mode<synchronous>, transform_indices = @transform_4, window_bounds = array<i64: 1, 96>}, {pipeline_mode = #tpu.pipeline_mode<synchronous>, transform_indices = @transform_5, window_bounds = array<i64: 32, 32>}, {pipeline_mode = #tpu.pipeline_mode<synchronous>, transform_indices = @transform_6, window_bounds = array<i64: 1, 32>}, {pipeline_mode = #tpu.pipeline_mode<synchronous>, transform_indices = @transform_7, window_bounds = array<i64: 1, 32>}, {pipeline_mode = #tpu.pipeline_mode<synchronous>, transform_indices = @transform_8, window_bounds = array<i64: 1, 32>}, {pipeline_mode = #tpu.pipeline_mode<synchronous>, transform_indices = @transform_9, window_bounds = array<i64: 32, 128>}, {pipeline_mode = #tpu.pipeline_mode<synchronous>, transform_indices = @transform_10, window_bounds = array<i64: 1, 128>}, {pipeline_mode = #tpu.pipeline_mode<synchronous>, transform_indices = @transform_11, window_bounds = array<i64: 128, 32>}, {pipeline_mode = #tpu.pipeline_mode<synchronous>, transform_indices = @transform_12, window_bounds = array<i64: 1, 32>}, {pipeline_mode = #tpu.pipeline_mode<synchronous>, transform_indices = @transform_13, window_bounds = array<i64: 2, 16, 16>}, {transform_indices = @transform_14, window_bounds = array<i64: 4, 16, 16>}, {transform_indices = @transform_15, window_bounds = array<i64: 64, 32>}]} {
    %c0 = arith.constant 0 : index
    %c0_0 = arith.constant 0 : index
    %0 = vector.load %arg2[%c0, %c0_0] : memref<64x32xbf16, #tpu.memory_space<vmem>>, vector<64x32xbf16>
    %1 = arith.extf %0 : vector<64x32xbf16> to vector<64x32xf32>
    %c0_1 = arith.constant 0 : index
    %c0_2 = arith.constant 0 : index
    %2 = vector.load %arg3[%c0_1, %c0_2] : memref<1x32xf32, #tpu.memory_space<vmem>>, vector<1x32xf32>
    %c0_3 = arith.constant 0 : index
    %c0_4 = arith.constant 0 : index
    %3 = vector.load %arg4[%c0_3, %c0_4] : memref<1x32xf32, #tpu.memory_space<vmem>>, vector<1x32xf32>
    %cst = arith.constant dense<0.000000e+00> : vector<64xf32>
    %4 = vector.multi_reduction <add>, %1, %cst [1] : vector<64x32xf32> to vector<64xf32>
    %5 = vector.shape_cast %4 : vector<64xf32> to vector<64x1xf32>
    %cst_5 = arith.constant 3.200000e+01 : f32
    %6 = vector.broadcast %cst_5 : f32 to vector<64x1xf32>
    %7 = arith.divf %5, %6 : vector<64x1xf32>
    %8 = vector.broadcast %7 : vector<64x1xf32> to vector<64x32xf32>
    %9 = arith.subf %1, %8 : vector<64x32xf32>
    %10 = arith.mulf %9, %9 : vector<64x32xf32>
    %cst_6 = arith.constant dense<0.000000e+00> : vector<64xf32>
    %11 = vector.multi_reduction <add>, %10, %cst_6 [1] : vector<64x32xf32> to vector<64xf32>
    %12 = vector.shape_cast %11 : vector<64xf32> to vector<64x1xf32>
    %cst_7 = arith.constant 3.200000e+01 : f32
    %13 = vector.broadcast %cst_7 : f32 to vector<64x1xf32>
    %14 = arith.divf %12, %13 : vector<64x1xf32>
    %15 = vector.broadcast %7 : vector<64x1xf32> to vector<64x32xf32>
    %16 = arith.subf %1, %15 : vector<64x32xf32>
    %cst_8 = arith.constant 9.99999974E-6 : f32
    %17 = vector.broadcast %cst_8 : f32 to vector<64x1xf32>
    %18 = arith.addf %14, %17 : vector<64x1xf32>
    %19 = math.rsqrt %18 : vector<64x1xf32>
    %20 = vector.broadcast %19 : vector<64x1xf32> to vector<64x32xf32>
    %21 = arith.mulf %16, %20 : vector<64x32xf32>
    %22 = vector.broadcast %2 : vector<1x32xf32> to vector<64x32xf32>
    %23 = arith.mulf %21, %22 : vector<64x32xf32>
    %24 = vector.broadcast %3 : vector<1x32xf32> to vector<64x32xf32>
    %25 = arith.addf %23, %24 : vector<64x32xf32>
    %c0_9 = arith.constant 0 : index
    %c0_10 = arith.constant 0 : index
    %26 = vector.load %arg5[%c0_9, %c0_10] : memref<32x96xbf16, #tpu.memory_space<vmem>>, vector<32x96xbf16>
    %c0_11 = arith.constant 0 : index
    %c0_12 = arith.constant 0 : index
    %27 = vector.load %arg6[%c0_11, %c0_12] : memref<1x96xf32, #tpu.memory_space<vmem>>, vector<1x96xf32>
    %28 = arith.truncf %25 : vector<64x32xf32> to vector<64x32xbf16>
    %cst_13 = arith.constant dense<0.000000e+00> : vector<64x96xf32>
    %29 = tpu.matmul %28, %26, %cst_13 {dimension_numbers = #tpu.dot_dimension_numbers<[1], [0], [0], [1], [0, 0, 1, 1], [], []>} : vector<64x32xbf16>, vector<32x96xbf16>, vector<64x96xf32> -> vector<64x96xf32>
    %30 = vector.broadcast %27 : vector<1x96xf32> to vector<64x96xf32>
    %31 = arith.addf %29, %30 : vector<64x96xf32>
    %32 = vector.extract_strided_slice %31 {offsets = [0, 0], sizes = [64, 32], strides = [1, 1]} : vector<64x96xf32> to vector<64x32xf32>
    %33 = vector.shape_cast %32 : vector<64x32xf32> to vector<4x16x32xf32>
    %34 = vector.extract_strided_slice %31 {offsets = [0, 32], sizes = [64, 32], strides = [1, 1]} : vector<64x96xf32> to vector<64x32xf32>
    %35 = vector.shape_cast %34 : vector<64x32xf32> to vector<4x16x32xf32>
    %36 = vector.extract_strided_slice %31 {offsets = [0, 64], sizes = [64, 32], strides = [1, 1]} : vector<64x96xf32> to vector<64x32xf32>
    %37 = vector.shape_cast %36 : vector<64x32xf32> to vector<4x16x32xf32>
    %38 = vector.extract_strided_slice %33 {offsets = [0, 0, 0], sizes = [4, 16, 16], strides = [1, 1, 1]} : vector<4x16x32xf32> to vector<4x16x16xf32>
    %39 = vector.extract_strided_slice %33 {offsets = [0, 0, 16], sizes = [4, 16, 16], strides = [1, 1, 1]} : vector<4x16x32xf32> to vector<4x16x16xf32>
    %40 = vector.shape_cast %38 : vector<4x16x16xf32> to vector<1x4x16x16xf32>
    %41 = vector.shape_cast %39 : vector<4x16x16xf32> to vector<1x4x16x16xf32>
    %42 = tpu.concatenate %40, %41 in 0 : vector<1x4x16x16xf32>, vector<1x4x16x16xf32> -> vector<2x4x16x16xf32>
    %43 = vector.shape_cast %42 : vector<2x4x16x16xf32> to vector<8x16x16xf32>
    %44 = arith.truncf %43 : vector<8x16x16xf32> to vector<8x16x16xbf16>
    %45 = vector.extract_strided_slice %35 {offsets = [0, 0, 0], sizes = [4, 16, 16], strides = [1, 1, 1]} : vector<4x16x32xf32> to vector<4x16x16xf32>
    %46 = vector.extract_strided_slice %35 {offsets = [0, 0, 16], sizes = [4, 16, 16], strides = [1, 1, 1]} : vector<4x16x32xf32> to vector<4x16x16xf32>
    %47 = vector.shape_cast %45 : vector<4x16x16xf32> to vector<1x4x16x16xf32>
    %48 = vector.shape_cast %46 : vector<4x16x16xf32> to vector<1x4x16x16xf32>
    %49 = tpu.concatenate %47, %48 in 0 : vector<1x4x16x16xf32>, vector<1x4x16x16xf32> -> vector<2x4x16x16xf32>
    %50 = vector.shape_cast %49 : vector<2x4x16x16xf32> to vector<8x16x16xf32>
    %51 = arith.truncf %50 : vector<8x16x16xf32> to vector<8x16x16xbf16>
    %52 = vector.extract_strided_slice %37 {offsets = [0, 0, 0], sizes = [4, 16, 16], strides = [1, 1, 1]} : vector<4x16x32xf32> to vector<4x16x16xf32>
    %53 = vector.extract_strided_slice %37 {offsets = [0, 0, 16], sizes = [4, 16, 16], strides = [1, 1, 1]} : vector<4x16x32xf32> to vector<4x16x16xf32>
    %54 = vector.shape_cast %52 : vector<4x16x16xf32> to vector<1x4x16x16xf32>
    %55 = vector.shape_cast %53 : vector<4x16x16xf32> to vector<1x4x16x16xf32>
    %56 = tpu.concatenate %54, %55 in 0 : vector<1x4x16x16xf32>, vector<1x4x16x16xf32> -> vector<2x4x16x16xf32>
    %57 = vector.shape_cast %56 : vector<2x4x16x16xf32> to vector<8x16x16xf32>
    %58 = arith.truncf %57 : vector<8x16x16xf32> to vector<8x16x16xbf16>
    "tpu.trace_start"() <{level = 10 : i32, message = "bnd,bmd->bnm"}> : () -> ()
    %cst_14 = arith.constant dense<0.000000e+00> : vector<8x16x16xf32>
    %59 = tpu.matmul %44, %51, %cst_14 {dimension_numbers = #tpu.dot_dimension_numbers<[2], [2], [1], [1], [0, 0, 0, 1, 1, 1], [0], [0]>} : vector<8x16x16xbf16>, vector<8x16x16xbf16>, vector<8x16x16xf32> -> vector<8x16x16xf32>
    "tpu.trace_stop"() : () -> ()
    %60 = vector.shape_cast %59 : vector<8x16x16xf32> to vector<2x4x16x16xf32>
    %c0_15 = arith.constant 0 : index
    %c0_16 = arith.constant 0 : index
    %c0_17 = arith.constant 0 : index
    %61 = vector.load %arg15[%c0_15, %c0_16, %c0_17] : memref<2x16x16xf32, #tpu.memory_space<vmem>>, vector<2x16x16xf32>
    %62 = vector.shape_cast %61 : vector<2x16x16xf32> to vector<2x1x16x16xf32>
    %63 = vector.broadcast %62 : vector<2x1x16x16xf32> to vector<2x4x16x16xf32>
    %64 = arith.addf %60, %63 : vector<2x4x16x16xf32>
    %c0_18 = arith.constant 0 : index
    %c0_19 = arith.constant 0 : index
    %c0_20 = arith.constant 0 : index
    %65 = vector.load %arg16[%c0_18, %c0_19, %c0_20] : memref<4x16x16xf32, #tpu.memory_space<vmem>>, vector<4x16x16xf32>
    %66 = vector.shape_cast %65 : vector<4x16x16xf32> to vector<1x4x16x16xf32>
    %67 = vector.broadcast %66 : vector<1x4x16x16xf32> to vector<2x4x16x16xf32>
    %68 = arith.addf %64, %67 : vector<2x4x16x16xf32>
    %cst_21 = arith.constant dense<0xFF800000> : vector<2x4x16xf32>
    %69 = vector.multi_reduction <maximumf>, %68, %cst_21 [3] : vector<2x4x16x16xf32> to vector<2x4x16xf32>
    %70 = vector.shape_cast %69 : vector<2x4x16xf32> to vector<2x4x16x1xf32>
    %71 = vector.broadcast %70 : vector<2x4x16x1xf32> to vector<2x4x16x16xf32>
    %72 = arith.subf %68, %71 : vector<2x4x16x16xf32>
    %73 = math.exp %72 : vector<2x4x16x16xf32>
    %cst_22 = arith.constant dense<0.000000e+00> : vector<2x4x16xf32>
    %74 = vector.multi_reduction <add>, %73, %cst_22 [3] : vector<2x4x16x16xf32> to vector<2x4x16xf32>
    %75 = vector.shape_cast %74 : vector<2x4x16xf32> to vector<2x4x16x1xf32>
    %76 = tpu.reciprocal %75 {approx = true} : vector<2x4x16x1xf32> -> vector<2x4x16x1xf32>
    %77 = vector.broadcast %76 : vector<2x4x16x1xf32> to vector<2x4x16x16xf32>
    %78 = arith.mulf %73, %77 : vector<2x4x16x16xf32>
    %79 = vector.shape_cast %78 : vector<2x4x16x16xf32> to vector<8x16x16xf32>
    %80 = arith.truncf %79 : vector<8x16x16xf32> to vector<8x16x16xbf16>
    "tpu.trace_start"() <{level = 10 : i32, message = "bnm,bmd->bnd"}> : () -> ()
    %cst_23 = arith.constant dense<0.000000e+00> : vector<8x16x16xf32>
    %81 = tpu.matmul %80, %58, %cst_23 {dimension_numbers = #tpu.dot_dimension_numbers<[2], [1], [1], [2], [0, 0, 0, 1, 1, 2], [0], [0]>} : vector<8x16x16xbf16>, vector<8x16x16xbf16>, vector<8x16x16xf32> -> vector<8x16x16xf32>
    "tpu.trace_stop"() : () -> ()
    %82 = vector.shape_cast %81 : vector<8x16x16xf32> to vector<2x4x16x16xf32>
    %83 = vector.extract_strided_slice %82 {offsets = [0, 0, 0, 0], sizes = [1, 4, 16, 16], strides = [1, 1, 1, 1]} : vector<2x4x16x16xf32> to vector<1x4x16x16xf32>
    %84 = vector.shape_cast %83 : vector<1x4x16x16xf32> to vector<4x16x16xf32>
    %85 = vector.extract_strided_slice %82 {offsets = [1, 0, 0, 0], sizes = [1, 4, 16, 16], strides = [1, 1, 1, 1]} : vector<2x4x16x16xf32> to vector<1x4x16x16xf32>
    %86 = vector.shape_cast %85 : vector<1x4x16x16xf32> to vector<4x16x16xf32>
    %87 = tpu.concatenate %84, %86 in 2 : vector<4x16x16xf32>, vector<4x16x16xf32> -> vector<4x16x32xf32>
    %88 = vector.shape_cast %87 : vector<4x16x32xf32> to vector<64x32xf32>
    %c0_24 = arith.constant 0 : index
    %c0_25 = arith.constant 0 : index
    %89 = vector.load %arg7[%c0_24, %c0_25] : memref<32x32xbf16, #tpu.memory_space<vmem>>, vector<32x32xbf16>
    %c0_26 = arith.constant 0 : index
    %c0_27 = arith.constant 0 : index
    %90 = vector.load %arg8[%c0_26, %c0_27] : memref<1x32xf32, #tpu.memory_space<vmem>>, vector<1x32xf32>
    %91 = arith.truncf %88 : vector<64x32xf32> to vector<64x32xbf16>
    %cst_28 = arith.constant dense<0.000000e+00> : vector<64x32xf32>
    %92 = tpu.matmul %91, %89, %cst_28 {dimension_numbers = #tpu.dot_dimension_numbers<[1], [0], [0], [1], [0, 0, 1, 1], [], []>} : vector<64x32xbf16>, vector<32x32xbf16>, vector<64x32xf32> -> vector<64x32xf32>
    %93 = vector.broadcast %90 : vector<1x32xf32> to vector<64x32xf32>
    %94 = arith.addf %92, %93 : vector<64x32xf32>
    %95 = arith.addf %1, %94 : vector<64x32xf32>
    %c0_29 = arith.constant 0 : index
    %c0_30 = arith.constant 0 : index
    %96 = vector.load %arg9[%c0_29, %c0_30] : memref<1x32xf32, #tpu.memory_space<vmem>>, vector<1x32xf32>
    %c0_31 = arith.constant 0 : index
    %c0_32 = arith.constant 0 : index
    %97 = vector.load %arg10[%c0_31, %c0_32] : memref<1x32xf32, #tpu.memory_space<vmem>>, vector<1x32xf32>
    %cst_33 = arith.constant dense<0.000000e+00> : vector<64xf32>
    %98 = vector.multi_reduction <add>, %95, %cst_33 [1] : vector<64x32xf32> to vector<64xf32>
    %99 = vector.shape_cast %98 : vector<64xf32> to vector<64x1xf32>
    %cst_34 = arith.constant 3.200000e+01 : f32
    %100 = vector.broadcast %cst_34 : f32 to vector<64x1xf32>
    %101 = arith.divf %99, %100 : vector<64x1xf32>
    %102 = vector.broadcast %101 : vector<64x1xf32> to vector<64x32xf32>
    %103 = arith.subf %95, %102 : vector<64x32xf32>
    %104 = arith.mulf %103, %103 : vector<64x32xf32>
    %cst_35 = arith.constant dense<0.000000e+00> : vector<64xf32>
    %105 = vector.multi_reduction <add>, %104, %cst_35 [1] : vector<64x32xf32> to vector<64xf32>
    %106 = vector.shape_cast %105 : vector<64xf32> to vector<64x1xf32>
    %cst_36 = arith.constant 3.200000e+01 : f32
    %107 = vector.broadcast %cst_36 : f32 to vector<64x1xf32>
    %108 = arith.divf %106, %107 : vector<64x1xf32>
    %109 = vector.broadcast %101 : vector<64x1xf32> to vector<64x32xf32>
    %110 = arith.subf %95, %109 : vector<64x32xf32>
    %cst_37 = arith.constant 9.99999974E-6 : f32
    %111 = vector.broadcast %cst_37 : f32 to vector<64x1xf32>
    %112 = arith.addf %108, %111 : vector<64x1xf32>
    %113 = math.rsqrt %112 : vector<64x1xf32>
    %114 = vector.broadcast %113 : vector<64x1xf32> to vector<64x32xf32>
    %115 = arith.mulf %110, %114 : vector<64x32xf32>
    %116 = vector.broadcast %96 : vector<1x32xf32> to vector<64x32xf32>
    %117 = arith.mulf %115, %116 : vector<64x32xf32>
    %118 = vector.broadcast %97 : vector<1x32xf32> to vector<64x32xf32>
    %119 = arith.addf %117, %118 : vector<64x32xf32>
    %c0_38 = arith.constant 0 : index
    %c0_39 = arith.constant 0 : index
    %120 = vector.load %arg11[%c0_38, %c0_39] : memref<32x128xbf16, #tpu.memory_space<vmem>>, vector<32x128xbf16>
    %c0_40 = arith.constant 0 : index
    %c0_41 = arith.constant 0 : index
    %121 = vector.load %arg12[%c0_40, %c0_41] : memref<1x128xf32, #tpu.memory_space<vmem>>, vector<1x128xf32>
    %122 = arith.truncf %119 : vector<64x32xf32> to vector<64x32xbf16>
    %cst_42 = arith.constant dense<0.000000e+00> : vector<64x128xf32>
    %123 = tpu.matmul %122, %120, %cst_42 {dimension_numbers = #tpu.dot_dimension_numbers<[1], [0], [0], [1], [0, 0, 1, 1], [], []>} : vector<64x32xbf16>, vector<32x128xbf16>, vector<64x128xf32> -> vector<64x128xf32>
    %124 = vector.broadcast %121 : vector<1x128xf32> to vector<64x128xf32>
    %125 = arith.addf %123, %124 : vector<64x128xf32>
    %126 = arith.mulf %125, %125 : vector<64x128xf32>
    %127 = arith.mulf %125, %126 : vector<64x128xf32>
    %cst_43 = arith.constant 4.471500e-02 : f32
    %128 = vector.broadcast %cst_43 : f32 to vector<64x128xf32>
    %129 = arith.mulf %128, %127 : vector<64x128xf32>
    %130 = arith.addf %125, %129 : vector<64x128xf32>
    %cst_44 = arith.constant 0.797884583 : f32
    %131 = vector.broadcast %cst_44 : f32 to vector<64x128xf32>
    %132 = arith.mulf %131, %130 : vector<64x128xf32>
    %133 = math.tanh %132 : vector<64x128xf32>
    %cst_45 = arith.constant 1.000000e+00 : f32
    %134 = vector.broadcast %cst_45 : f32 to vector<64x128xf32>
    %135 = arith.addf %134, %133 : vector<64x128xf32>
    %cst_46 = arith.constant 5.000000e-01 : f32
    %136 = vector.broadcast %cst_46 : f32 to vector<64x128xf32>
    %137 = arith.mulf %136, %135 : vector<64x128xf32>
    %138 = arith.mulf %125, %137 : vector<64x128xf32>
    %c0_47 = arith.constant 0 : index
    %c0_48 = arith.constant 0 : index
    %139 = vector.load %arg13[%c0_47, %c0_48] : memref<128x32xbf16, #tpu.memory_space<vmem>>, vector<128x32xbf16>
    %c0_49 = arith.constant 0 : index
    %c0_50 = arith.constant 0 : index
    %140 = vector.load %arg14[%c0_49, %c0_50] : memref<1x32xf32, #tpu.memory_space<vmem>>, vector<1x32xf32>
    %141 = arith.truncf %138 : vector<64x128xf32> to vector<64x128xbf16>
    %cst_51 = arith.constant dense<0.000000e+00> : vector<64x32xf32>
    %142 = tpu.matmul %141, %139, %cst_51 {dimension_numbers = #tpu.dot_dimension_numbers<[1], [0], [0], [1], [0, 0, 1, 1], [], []>} : vector<64x128xbf16>, vector<128x32xbf16>, vector<64x32xf32> -> vector<64x32xf32>
    %143 = vector.broadcast %140 : vector<1x32xf32> to vector<64x32xf32>
    %144 = arith.addf %142, %143 : vector<64x32xf32>
    %145 = arith.addf %95, %144 : vector<64x32xf32>
    %146 = arith.truncf %145 : vector<64x32xf32> to vector<64x32xbf16>
    %c0_52 = arith.constant 0 : index
    %c0_53 = arith.constant 0 : index
    %147 = vector.load %arg17[%c0_52, %c0_53] : memref<64x32xbf16, #tpu.memory_space<vmem>>, vector<64x32xbf16>
    tpu.vector_store %arg17[%c0_52, %c0_53], %146 {strides = array<i32>} : memref<64x32xbf16, #tpu.memory_space<vmem>>, vector<64x32xbf16>,
    return
  }
  func.func @transform_0(%arg0: i32, %arg1: i32) -> (i32, i32) {
    %c1_i32 = arith.constant 1 : i32
    %0 = arith.muli %arg0, %c1_i32 : i32
    %1 = arith.addi %0, %arg1 : i32
    %c0_i32 = arith.constant 0 : i32
    %c0_i32_0 = arith.constant 0 : i32
    return %1, %c0_i32 : i32, i32
  }
  func.func @transform_1(%arg0: i32, %arg1: i32) -> (i32, i32) {
    %c0_i32 = arith.constant 0 : i32
    %c0_i32_0 = arith.constant 0 : i32
    %c0_i32_1 = arith.constant 0 : i32
    return %c0_i32, %c0_i32_0 : i32, i32
  }
  func.func @transform_2(%arg0: i32, %arg1: i32) -> (i32, i32) {
    %c0_i32 = arith.constant 0 : i32
    %c0_i32_0 = arith.constant 0 : i32
    %c0_i32_1 = arith.constant 0 : i32
    return %c0_i32, %c0_i32_0 : i32, i32
  }
  func.func @transform_3(%arg0: i32, %arg1: i32) -> (i32, i32) {
    %c0_i32 = arith.constant 0 : i32
    %c0_i32_0 = arith.constant 0 : i32
    %c0_i32_1 = arith.constant 0 : i32
    return %c0_i32, %c0_i32_0 : i32, i32
  }
  func.func @transform_4(%arg0: i32, %arg1: i32) -> (i32, i32) {
    %c0_i32 = arith.constant 0 : i32
    %c0_i32_0 = arith.constant 0 : i32
    %c0_i32_1 = arith.constant 0 : i32
    return %c0_i32, %c0_i32_0 : i32, i32
  }
  func.func @transform_5(%arg0: i32, %arg1: i32) -> (i32, i32) {
    %c0_i32 = arith.constant 0 : i32
    %c0_i32_0 = arith.constant 0 : i32
    %c0_i32_1 = arith.constant 0 : i32
    return %c0_i32, %c0_i32_0 : i32, i32
  }
  func.func @transform_6(%arg0: i32, %arg1: i32) -> (i32, i32) {
    %c0_i32 = arith.constant 0 : i32
    %c0_i32_0 = arith.constant 0 : i32
    %c0_i32_1 = arith.constant 0 : i32
    return %c0_i32, %c0_i32_0 : i32, i32
  }
  func.func @transform_7(%arg0: i32, %arg1: i32) -> (i32, i32) {
    %c0_i32 = arith.constant 0 : i32
    %c0_i32_0 = arith.constant 0 : i32
    %c0_i32_1 = arith.constant 0 : i32
    return %c0_i32, %c0_i32_0 : i32, i32
  }
  func.func @transform_8(%arg0: i32, %arg1: i32) -> (i32, i32) {
    %c0_i32 = arith.constant 0 : i32
    %c0_i32_0 = arith.constant 0 : i32
    %c0_i32_1 = arith.constant 0 : i32
    return %c0_i32, %c0_i32_0 : i32, i32
  }
  func.func @transform_9(%arg0: i32, %arg1: i32) -> (i32, i32) {
    %c0_i32 = arith.constant 0 : i32
    %c0_i32_0 = arith.constant 0 : i32
    %c0_i32_1 = arith.constant 0 : i32
    return %c0_i32, %c0_i32_0 : i32, i32
  }
  func.func @transform_10(%arg0: i32, %arg1: i32) -> (i32, i32) {
    %c0_i32 = arith.constant 0 : i32
    %c0_i32_0 = arith.constant 0 : i32
    %c0_i32_1 = arith.constant 0 : i32
    return %c0_i32, %c0_i32_0 : i32, i32
  }
  func.func @transform_11(%arg0: i32, %arg1: i32) -> (i32, i32) {
    %c0_i32 = arith.constant 0 : i32
    %c0_i32_0 = arith.constant 0 : i32
    %c0_i32_1 = arith.constant 0 : i32
    return %c0_i32, %c0_i32_0 : i32, i32
  }
  func.func @transform_12(%arg0: i32, %arg1: i32) -> (i32, i32) {
    %c0_i32 = arith.constant 0 : i32
    %c0_i32_0 = arith.constant 0 : i32
    %c0_i32_1 = arith.constant 0 : i32
    return %c0_i32, %c0_i32_0 : i32, i32
  }
  func.func @transform_13(%arg0: i32, %arg1: i32) -> (i32, i32, i32) {
    %c0_i32 = arith.constant 0 : i32
    %c0_i32_0 = arith.constant 0 : i32
    %c0_i32_1 = arith.constant 0 : i32
    %c0_i32_2 = arith.constant 0 : i32
    return %c0_i32, %c0_i32_0, %c0_i32_1 : i32, i32, i32
  }
  func.func @transform_14(%arg0: i32, %arg1: i32) -> (i32, i32, i32) {
    %c0_i32 = arith.constant 0 : i32
    %c0_i32_0 = arith.constant 0 : i32
    %c0_i32_1 = arith.constant 0 : i32
    return %arg1, %c0_i32, %c0_i32_0 : i32, i32, i32
  }
  func.func @transform_15(%arg0: i32, %arg1: i32) -> (i32, i32) {
    %c1_i32 = arith.constant 1 : i32
    %0 = arith.muli %arg0, %c1_i32 : i32
    %1 = arith.addi %0, %arg1 : i32
    %c0_i32 = arith.constant 0 : i32
    %c0_i32_0 = arith.constant 0 : i32
    return %1, %c0_i32 : i32, i32
  }
}

module attributes {stable_mosaic.version = 11 : i64} {
  func.func @_merge_kernel(%arg0: i32, %arg1: memref<32x128xbf16, #tpu.memory_space<vmem>>, %arg2: memref<1x128xf32, #tpu.memory_space<vmem>>, %arg3: memref<1x128xf32, #tpu.memory_space<vmem>>, %arg4: memref<128x64xbf16, #tpu.memory_space<vmem>>, %arg5: memref<32x64xbf16, #tpu.memory_space<vmem>>) attributes {dimension_semantics = [#tpu.dimension_semantics<parallel>], iteration_bounds = array<i64: 1>, scalar_prefetch = 0 : i64, scratch_operands = 0 : i64, tpu.core_type = #tpu.core_type<tc>, window_params = [{transform_indices = @transform_0, window_bounds = array<i64: 32, 128>}, {pipeline_mode = #tpu.pipeline_mode<synchronous>, transform_indices = @transform_1, window_bounds = array<i64: 1, 128>}, {pipeline_mode = #tpu.pipeline_mode<synchronous>, transform_indices = @transform_2, window_bounds = array<i64: 1, 128>}, {pipeline_mode = #tpu.pipeline_mode<synchronous>, transform_indices = @transform_3, window_bounds = array<i64: 128, 64>}, {transform_indices = @transform_4, window_bounds = array<i64: 32, 64>}]} {
    %c0 = arith.constant 0 : index
    %c0_0 = arith.constant 0 : index
    %0 = vector.load %arg1[%c0, %c0_0] : memref<32x128xbf16, #tpu.memory_space<vmem>>, vector<32x128xbf16>
    %1 = arith.extf %0 : vector<32x128xbf16> to vector<32x128xf32>
    %c0_1 = arith.constant 0 : index
    %c0_2 = arith.constant 0 : index
    %2 = vector.load %arg2[%c0_1, %c0_2] : memref<1x128xf32, #tpu.memory_space<vmem>>, vector<1x128xf32>
    %c0_3 = arith.constant 0 : index
    %c0_4 = arith.constant 0 : index
    %3 = vector.load %arg3[%c0_3, %c0_4] : memref<1x128xf32, #tpu.memory_space<vmem>>, vector<1x128xf32>
    %cst = arith.constant dense<0.000000e+00> : vector<32xf32>
    %4 = vector.multi_reduction <add>, %1, %cst [1] : vector<32x128xf32> to vector<32xf32>
    %5 = vector.shape_cast %4 : vector<32xf32> to vector<32x1xf32>
    %cst_5 = arith.constant 1.280000e+02 : f32
    %6 = vector.broadcast %cst_5 : f32 to vector<32x1xf32>
    %7 = arith.divf %5, %6 : vector<32x1xf32>
    %8 = vector.broadcast %7 : vector<32x1xf32> to vector<32x128xf32>
    %9 = arith.subf %1, %8 : vector<32x128xf32>
    %10 = arith.mulf %9, %9 : vector<32x128xf32>
    %cst_6 = arith.constant dense<0.000000e+00> : vector<32xf32>
    %11 = vector.multi_reduction <add>, %10, %cst_6 [1] : vector<32x128xf32> to vector<32xf32>
    %12 = vector.shape_cast %11 : vector<32xf32> to vector<32x1xf32>
    %cst_7 = arith.constant 1.280000e+02 : f32
    %13 = vector.broadcast %cst_7 : f32 to vector<32x1xf32>
    %14 = arith.divf %12, %13 : vector<32x1xf32>
    %15 = vector.broadcast %7 : vector<32x1xf32> to vector<32x128xf32>
    %16 = arith.subf %1, %15 : vector<32x128xf32>
    %cst_8 = arith.constant 9.99999974E-6 : f32
    %17 = vector.broadcast %cst_8 : f32 to vector<32x1xf32>
    %18 = arith.addf %14, %17 : vector<32x1xf32>
    %19 = math.rsqrt %18 : vector<32x1xf32>
    %20 = vector.broadcast %19 : vector<32x1xf32> to vector<32x128xf32>
    %21 = arith.mulf %16, %20 : vector<32x128xf32>
    %22 = vector.broadcast %2 : vector<1x128xf32> to vector<32x128xf32>
    %23 = arith.mulf %21, %22 : vector<32x128xf32>
    %24 = vector.broadcast %3 : vector<1x128xf32> to vector<32x128xf32>
    %25 = arith.addf %23, %24 : vector<32x128xf32>
    %c0_9 = arith.constant 0 : index
    %c0_10 = arith.constant 0 : index
    %26 = vector.load %arg4[%c0_9, %c0_10] : memref<128x64xbf16, #tpu.memory_space<vmem>>, vector<128x64xbf16>
    %27 = arith.truncf %25 : vector<32x128xf32> to vector<32x128xbf16>
    %cst_11 = arith.constant dense<0.000000e+00> : vector<32x64xf32>
    %28 = tpu.matmul %27, %26, %cst_11 {dimension_numbers = #tpu.dot_dimension_numbers<[1], [0], [0], [1], [0, 0, 1, 1], [], []>} : vector<32x128xbf16>, vector<128x64xbf16>, vector<32x64xf32> -> vector<32x64xf32>
    %29 = arith.truncf %28 : vector<32x64xf32> to vector<32x64xbf16>
    %c0_12 = arith.constant 0 : index
    %c0_13 = arith.constant 0 : index
    %30 = vector.load %arg5[%c0_12, %c0_13] : memref<32x64xbf16, #tpu.memory_space<vmem>>, vector<32x64xbf16>
    tpu.vector_store %arg5[%c0_12, %c0_13], %29 {strides = array<i32>} : memref<32x64xbf16, #tpu.memory_space<vmem>>, vector<32x64xbf16>,
    return
  }
  func.func @transform_0(%arg0: i32) -> (i32, i32) {
    %c0_i32 = arith.constant 0 : i32
    %c0_i32_0 = arith.constant 0 : i32
    return %arg0, %c0_i32 : i32, i32
  }
  func.func @transform_1(%arg0: i32) -> (i32, i32) {
    %c0_i32 = arith.constant 0 : i32
    %c0_i32_0 = arith.constant 0 : i32
    %c0_i32_1 = arith.constant 0 : i32
    return %c0_i32, %c0_i32_0 : i32, i32
  }
  func.func @transform_2(%arg0: i32) -> (i32, i32) {
    %c0_i32 = arith.constant 0 : i32
    %c0_i32_0 = arith.constant 0 : i32
    %c0_i32_1 = arith.constant 0 : i32
    return %c0_i32, %c0_i32_0 : i32, i32
  }
  func.func @transform_3(%arg0: i32) -> (i32, i32) {
    %c0_i32 = arith.constant 0 : i32
    %c0_i32_0 = arith.constant 0 : i32
    %c0_i32_1 = arith.constant 0 : i32
    return %c0_i32, %c0_i32_0 : i32, i32
  }
  func.func @transform_4(%arg0: i32) -> (i32, i32) {
    %c0_i32 = arith.constant 0 : i32
    %c0_i32_0 = arith.constant 0 : i32
    return %arg0, %c0_i32 : i32, i32
  }
}

module attributes {stable_mosaic.version = 11 : i64} {
  func.func @_swin_block_kernel(%arg0: i32, %arg1: i32, %arg2: memref<16x64xbf16, #tpu.memory_space<vmem>>, %arg3: memref<1x64xf32, #tpu.memory_space<vmem>>, %arg4: memref<1x64xf32, #tpu.memory_space<vmem>>, %arg5: memref<64x192xbf16, #tpu.memory_space<vmem>>, %arg6: memref<1x192xf32, #tpu.memory_space<vmem>>, %arg7: memref<64x64xbf16, #tpu.memory_space<vmem>>, %arg8: memref<1x64xf32, #tpu.memory_space<vmem>>, %arg9: memref<1x64xf32, #tpu.memory_space<vmem>>, %arg10: memref<1x64xf32, #tpu.memory_space<vmem>>, %arg11: memref<64x256xbf16, #tpu.memory_space<vmem>>, %arg12: memref<1x256xf32, #tpu.memory_space<vmem>>, %arg13: memref<256x64xbf16, #tpu.memory_space<vmem>>, %arg14: memref<1x64xf32, #tpu.memory_space<vmem>>, %arg15: memref<4x16x16xf32, #tpu.memory_space<vmem>>, %arg16: memref<16x64xbf16, #tpu.memory_space<vmem>>) attributes {dimension_semantics = [#tpu.dimension_semantics<parallel>, #tpu.dimension_semantics<parallel>], iteration_bounds = array<i64: 2, 1>, scalar_prefetch = 0 : i64, scratch_operands = 0 : i64, tpu.core_type = #tpu.core_type<tc>, window_params = [{transform_indices = @transform_0, window_bounds = array<i64: 16, 64>}, {pipeline_mode = #tpu.pipeline_mode<synchronous>, transform_indices = @transform_1, window_bounds = array<i64: 1, 64>}, {pipeline_mode = #tpu.pipeline_mode<synchronous>, transform_indices = @transform_2, window_bounds = array<i64: 1, 64>}, {pipeline_mode = #tpu.pipeline_mode<synchronous>, transform_indices = @transform_3, window_bounds = array<i64: 64, 192>}, {pipeline_mode = #tpu.pipeline_mode<synchronous>, transform_indices = @transform_4, window_bounds = array<i64: 1, 192>}, {pipeline_mode = #tpu.pipeline_mode<synchronous>, transform_indices = @transform_5, window_bounds = array<i64: 64, 64>}, {pipeline_mode = #tpu.pipeline_mode<synchronous>, transform_indices = @transform_6, window_bounds = array<i64: 1, 64>}, {pipeline_mode = #tpu.pipeline_mode<synchronous>, transform_indices = @transform_7, window_bounds = array<i64: 1, 64>}, {pipeline_mode = #tpu.pipeline_mode<synchronous>, transform_indices = @transform_8, window_bounds = array<i64: 1, 64>}, {pipeline_mode = #tpu.pipeline_mode<synchronous>, transform_indices = @transform_9, window_bounds = array<i64: 64, 256>}, {pipeline_mode = #tpu.pipeline_mode<synchronous>, transform_indices = @transform_10, window_bounds = array<i64: 1, 256>}, {pipeline_mode = #tpu.pipeline_mode<synchronous>, transform_indices = @transform_11, window_bounds = array<i64: 256, 64>}, {pipeline_mode = #tpu.pipeline_mode<synchronous>, transform_indices = @transform_12, window_bounds = array<i64: 1, 64>}, {pipeline_mode = #tpu.pipeline_mode<synchronous>, transform_indices = @transform_13, window_bounds = array<i64: 4, 16, 16>}, {transform_indices = @transform_14, window_bounds = array<i64: 16, 64>}]} {
    %c0 = arith.constant 0 : index
    %c0_0 = arith.constant 0 : index
    %0 = vector.load %arg2[%c0, %c0_0] : memref<16x64xbf16, #tpu.memory_space<vmem>>, vector<16x64xbf16>
    %1 = arith.extf %0 : vector<16x64xbf16> to vector<16x64xf32>
    %c0_1 = arith.constant 0 : index
    %c0_2 = arith.constant 0 : index
    %2 = vector.load %arg3[%c0_1, %c0_2] : memref<1x64xf32, #tpu.memory_space<vmem>>, vector<1x64xf32>
    %c0_3 = arith.constant 0 : index
    %c0_4 = arith.constant 0 : index
    %3 = vector.load %arg4[%c0_3, %c0_4] : memref<1x64xf32, #tpu.memory_space<vmem>>, vector<1x64xf32>
    %cst = arith.constant dense<0.000000e+00> : vector<16xf32>
    %4 = vector.multi_reduction <add>, %1, %cst [1] : vector<16x64xf32> to vector<16xf32>
    %5 = vector.shape_cast %4 : vector<16xf32> to vector<16x1xf32>
    %cst_5 = arith.constant 6.400000e+01 : f32
    %6 = vector.broadcast %cst_5 : f32 to vector<16x1xf32>
    %7 = arith.divf %5, %6 : vector<16x1xf32>
    %8 = vector.broadcast %7 : vector<16x1xf32> to vector<16x64xf32>
    %9 = arith.subf %1, %8 : vector<16x64xf32>
    %10 = arith.mulf %9, %9 : vector<16x64xf32>
    %cst_6 = arith.constant dense<0.000000e+00> : vector<16xf32>
    %11 = vector.multi_reduction <add>, %10, %cst_6 [1] : vector<16x64xf32> to vector<16xf32>
    %12 = vector.shape_cast %11 : vector<16xf32> to vector<16x1xf32>
    %cst_7 = arith.constant 6.400000e+01 : f32
    %13 = vector.broadcast %cst_7 : f32 to vector<16x1xf32>
    %14 = arith.divf %12, %13 : vector<16x1xf32>
    %15 = vector.broadcast %7 : vector<16x1xf32> to vector<16x64xf32>
    %16 = arith.subf %1, %15 : vector<16x64xf32>
    %cst_8 = arith.constant 9.99999974E-6 : f32
    %17 = vector.broadcast %cst_8 : f32 to vector<16x1xf32>
    %18 = arith.addf %14, %17 : vector<16x1xf32>
    %19 = math.rsqrt %18 : vector<16x1xf32>
    %20 = vector.broadcast %19 : vector<16x1xf32> to vector<16x64xf32>
    %21 = arith.mulf %16, %20 : vector<16x64xf32>
    %22 = vector.broadcast %2 : vector<1x64xf32> to vector<16x64xf32>
    %23 = arith.mulf %21, %22 : vector<16x64xf32>
    %24 = vector.broadcast %3 : vector<1x64xf32> to vector<16x64xf32>
    %25 = arith.addf %23, %24 : vector<16x64xf32>
    %c0_9 = arith.constant 0 : index
    %c0_10 = arith.constant 0 : index
    %26 = vector.load %arg5[%c0_9, %c0_10] : memref<64x192xbf16, #tpu.memory_space<vmem>>, vector<64x192xbf16>
    %c0_11 = arith.constant 0 : index
    %c0_12 = arith.constant 0 : index
    %27 = vector.load %arg6[%c0_11, %c0_12] : memref<1x192xf32, #tpu.memory_space<vmem>>, vector<1x192xf32>
    %28 = arith.truncf %25 : vector<16x64xf32> to vector<16x64xbf16>
    %cst_13 = arith.constant dense<0.000000e+00> : vector<16x192xf32>
    %29 = tpu.matmul %28, %26, %cst_13 {dimension_numbers = #tpu.dot_dimension_numbers<[1], [0], [0], [1], [0, 0, 1, 1], [], []>} : vector<16x64xbf16>, vector<64x192xbf16>, vector<16x192xf32> -> vector<16x192xf32>
    %30 = vector.broadcast %27 : vector<1x192xf32> to vector<16x192xf32>
    %31 = arith.addf %29, %30 : vector<16x192xf32>
    %32 = vector.extract_strided_slice %31 {offsets = [0, 0], sizes = [16, 64], strides = [1, 1]} : vector<16x192xf32> to vector<16x64xf32>
    %33 = vector.shape_cast %32 : vector<16x64xf32> to vector<1x16x64xf32>
    %34 = vector.extract_strided_slice %31 {offsets = [0, 64], sizes = [16, 64], strides = [1, 1]} : vector<16x192xf32> to vector<16x64xf32>
    %35 = vector.shape_cast %34 : vector<16x64xf32> to vector<1x16x64xf32>
    %36 = vector.extract_strided_slice %31 {offsets = [0, 128], sizes = [16, 64], strides = [1, 1]} : vector<16x192xf32> to vector<16x64xf32>
    %37 = vector.shape_cast %36 : vector<16x64xf32> to vector<1x16x64xf32>
    %38 = vector.extract_strided_slice %33 {offsets = [0, 0, 0], sizes = [1, 16, 16], strides = [1, 1, 1]} : vector<1x16x64xf32> to vector<1x16x16xf32>
    %39 = vector.extract_strided_slice %33 {offsets = [0, 0, 16], sizes = [1, 16, 16], strides = [1, 1, 1]} : vector<1x16x64xf32> to vector<1x16x16xf32>
    %40 = vector.extract_strided_slice %33 {offsets = [0, 0, 32], sizes = [1, 16, 16], strides = [1, 1, 1]} : vector<1x16x64xf32> to vector<1x16x16xf32>
    %41 = vector.extract_strided_slice %33 {offsets = [0, 0, 48], sizes = [1, 16, 16], strides = [1, 1, 1]} : vector<1x16x64xf32> to vector<1x16x16xf32>
    %42 = vector.shape_cast %38 : vector<1x16x16xf32> to vector<1x1x16x16xf32>
    %43 = vector.shape_cast %39 : vector<1x16x16xf32> to vector<1x1x16x16xf32>
    %44 = vector.shape_cast %40 : vector<1x16x16xf32> to vector<1x1x16x16xf32>
    %45 = vector.shape_cast %41 : vector<1x16x16xf32> to vector<1x1x16x16xf32>
    %46 = tpu.concatenate %42, %43, %44, %45 in 0 : vector<1x1x16x16xf32>, vector<1x1x16x16xf32>, vector<1x1x16x16xf32>, vector<1x1x16x16xf32> -> vector<4x1x16x16xf32>
    %47 = vector.shape_cast %46 : vector<4x1x16x16xf32> to vector<4x16x16xf32>
    %48 = arith.truncf %47 : vector<4x16x16xf32> to vector<4x16x16xbf16>
    %49 = vector.extract_strided_slice %35 {offsets = [0, 0, 0], sizes = [1, 16, 16], strides = [1, 1, 1]} : vector<1x16x64xf32> to vector<1x16x16xf32>
    %50 = vector.extract_strided_slice %35 {offsets = [0, 0, 16], sizes = [1, 16, 16], strides = [1, 1, 1]} : vector<1x16x64xf32> to vector<1x16x16xf32>
    %51 = vector.extract_strided_slice %35 {offsets = [0, 0, 32], sizes = [1, 16, 16], strides = [1, 1, 1]} : vector<1x16x64xf32> to vector<1x16x16xf32>
    %52 = vector.extract_strided_slice %35 {offsets = [0, 0, 48], sizes = [1, 16, 16], strides = [1, 1, 1]} : vector<1x16x64xf32> to vector<1x16x16xf32>
    %53 = vector.shape_cast %49 : vector<1x16x16xf32> to vector<1x1x16x16xf32>
    %54 = vector.shape_cast %50 : vector<1x16x16xf32> to vector<1x1x16x16xf32>
    %55 = vector.shape_cast %51 : vector<1x16x16xf32> to vector<1x1x16x16xf32>
    %56 = vector.shape_cast %52 : vector<1x16x16xf32> to vector<1x1x16x16xf32>
    %57 = tpu.concatenate %53, %54, %55, %56 in 0 : vector<1x1x16x16xf32>, vector<1x1x16x16xf32>, vector<1x1x16x16xf32>, vector<1x1x16x16xf32> -> vector<4x1x16x16xf32>
    %58 = vector.shape_cast %57 : vector<4x1x16x16xf32> to vector<4x16x16xf32>
    %59 = arith.truncf %58 : vector<4x16x16xf32> to vector<4x16x16xbf16>
    %60 = vector.extract_strided_slice %37 {offsets = [0, 0, 0], sizes = [1, 16, 16], strides = [1, 1, 1]} : vector<1x16x64xf32> to vector<1x16x16xf32>
    %61 = vector.extract_strided_slice %37 {offsets = [0, 0, 16], sizes = [1, 16, 16], strides = [1, 1, 1]} : vector<1x16x64xf32> to vector<1x16x16xf32>
    %62 = vector.extract_strided_slice %37 {offsets = [0, 0, 32], sizes = [1, 16, 16], strides = [1, 1, 1]} : vector<1x16x64xf32> to vector<1x16x16xf32>
    %63 = vector.extract_strided_slice %37 {offsets = [0, 0, 48], sizes = [1, 16, 16], strides = [1, 1, 1]} : vector<1x16x64xf32> to vector<1x16x16xf32>
    %64 = vector.shape_cast %60 : vector<1x16x16xf32> to vector<1x1x16x16xf32>
    %65 = vector.shape_cast %61 : vector<1x16x16xf32> to vector<1x1x16x16xf32>
    %66 = vector.shape_cast %62 : vector<1x16x16xf32> to vector<1x1x16x16xf32>
    %67 = vector.shape_cast %63 : vector<1x16x16xf32> to vector<1x1x16x16xf32>
    %68 = tpu.concatenate %64, %65, %66, %67 in 0 : vector<1x1x16x16xf32>, vector<1x1x16x16xf32>, vector<1x1x16x16xf32>, vector<1x1x16x16xf32> -> vector<4x1x16x16xf32>
    %69 = vector.shape_cast %68 : vector<4x1x16x16xf32> to vector<4x16x16xf32>
    %70 = arith.truncf %69 : vector<4x16x16xf32> to vector<4x16x16xbf16>
    "tpu.trace_start"() <{level = 10 : i32, message = "bnd,bmd->bnm"}> : () -> ()
    %cst_14 = arith.constant dense<0.000000e+00> : vector<4x16x16xf32>
    %71 = tpu.matmul %48, %59, %cst_14 {dimension_numbers = #tpu.dot_dimension_numbers<[2], [2], [1], [1], [0, 0, 0, 1, 1, 1], [0], [0]>} : vector<4x16x16xbf16>, vector<4x16x16xbf16>, vector<4x16x16xf32> -> vector<4x16x16xf32>
    "tpu.trace_stop"() : () -> ()
    %72 = vector.shape_cast %71 : vector<4x16x16xf32> to vector<4x1x16x16xf32>
    %c0_15 = arith.constant 0 : index
    %c0_16 = arith.constant 0 : index
    %c0_17 = arith.constant 0 : index
    %73 = vector.load %arg15[%c0_15, %c0_16, %c0_17] : memref<4x16x16xf32, #tpu.memory_space<vmem>>, vector<4x16x16xf32>
    %74 = vector.shape_cast %73 : vector<4x16x16xf32> to vector<4x1x16x16xf32>
    %75 = arith.addf %72, %74 : vector<4x1x16x16xf32>
    %cst_18 = arith.constant dense<0xFF800000> : vector<4x1x16xf32>
    %76 = vector.multi_reduction <maximumf>, %75, %cst_18 [3] : vector<4x1x16x16xf32> to vector<4x1x16xf32>
    %77 = vector.shape_cast %76 : vector<4x1x16xf32> to vector<4x1x16x1xf32>
    %78 = vector.broadcast %77 : vector<4x1x16x1xf32> to vector<4x1x16x16xf32>
    %79 = arith.subf %75, %78 : vector<4x1x16x16xf32>
    %80 = math.exp %79 : vector<4x1x16x16xf32>
    %cst_19 = arith.constant dense<0.000000e+00> : vector<4x1x16xf32>
    %81 = vector.multi_reduction <add>, %80, %cst_19 [3] : vector<4x1x16x16xf32> to vector<4x1x16xf32>
    %82 = vector.shape_cast %81 : vector<4x1x16xf32> to vector<4x1x16x1xf32>
    %83 = tpu.reciprocal %82 {approx = true} : vector<4x1x16x1xf32> -> vector<4x1x16x1xf32>
    %84 = vector.broadcast %83 : vector<4x1x16x1xf32> to vector<4x1x16x16xf32>
    %85 = arith.mulf %80, %84 : vector<4x1x16x16xf32>
    %86 = vector.shape_cast %85 : vector<4x1x16x16xf32> to vector<4x16x16xf32>
    %87 = arith.truncf %86 : vector<4x16x16xf32> to vector<4x16x16xbf16>
    "tpu.trace_start"() <{level = 10 : i32, message = "bnm,bmd->bnd"}> : () -> ()
    %cst_20 = arith.constant dense<0.000000e+00> : vector<4x16x16xf32>
    %88 = tpu.matmul %87, %70, %cst_20 {dimension_numbers = #tpu.dot_dimension_numbers<[2], [1], [1], [2], [0, 0, 0, 1, 1, 2], [0], [0]>} : vector<4x16x16xbf16>, vector<4x16x16xbf16>, vector<4x16x16xf32> -> vector<4x16x16xf32>
    "tpu.trace_stop"() : () -> ()
    %89 = vector.shape_cast %88 : vector<4x16x16xf32> to vector<4x1x16x16xf32>
    %90 = vector.extract_strided_slice %89 {offsets = [0, 0, 0, 0], sizes = [1, 1, 16, 16], strides = [1, 1, 1, 1]} : vector<4x1x16x16xf32> to vector<1x1x16x16xf32>
    %91 = vector.shape_cast %90 : vector<1x1x16x16xf32> to vector<1x16x16xf32>
    %92 = vector.extract_strided_slice %89 {offsets = [1, 0, 0, 0], sizes = [1, 1, 16, 16], strides = [1, 1, 1, 1]} : vector<4x1x16x16xf32> to vector<1x1x16x16xf32>
    %93 = vector.shape_cast %92 : vector<1x1x16x16xf32> to vector<1x16x16xf32>
    %94 = vector.extract_strided_slice %89 {offsets = [2, 0, 0, 0], sizes = [1, 1, 16, 16], strides = [1, 1, 1, 1]} : vector<4x1x16x16xf32> to vector<1x1x16x16xf32>
    %95 = vector.shape_cast %94 : vector<1x1x16x16xf32> to vector<1x16x16xf32>
    %96 = vector.extract_strided_slice %89 {offsets = [3, 0, 0, 0], sizes = [1, 1, 16, 16], strides = [1, 1, 1, 1]} : vector<4x1x16x16xf32> to vector<1x1x16x16xf32>
    %97 = vector.shape_cast %96 : vector<1x1x16x16xf32> to vector<1x16x16xf32>
    %98 = tpu.concatenate %91, %93, %95, %97 in 2 : vector<1x16x16xf32>, vector<1x16x16xf32>, vector<1x16x16xf32>, vector<1x16x16xf32> -> vector<1x16x64xf32>
    %99 = vector.shape_cast %98 : vector<1x16x64xf32> to vector<16x64xf32>
    %c0_21 = arith.constant 0 : index
    %c0_22 = arith.constant 0 : index
    %100 = vector.load %arg7[%c0_21, %c0_22] : memref<64x64xbf16, #tpu.memory_space<vmem>>, vector<64x64xbf16>
    %c0_23 = arith.constant 0 : index
    %c0_24 = arith.constant 0 : index
    %101 = vector.load %arg8[%c0_23, %c0_24] : memref<1x64xf32, #tpu.memory_space<vmem>>, vector<1x64xf32>
    %102 = arith.truncf %99 : vector<16x64xf32> to vector<16x64xbf16>
    %cst_25 = arith.constant dense<0.000000e+00> : vector<16x64xf32>
    %103 = tpu.matmul %102, %100, %cst_25 {dimension_numbers = #tpu.dot_dimension_numbers<[1], [0], [0], [1], [0, 0, 1, 1], [], []>} : vector<16x64xbf16>, vector<64x64xbf16>, vector<16x64xf32> -> vector<16x64xf32>
    %104 = vector.broadcast %101 : vector<1x64xf32> to vector<16x64xf32>
    %105 = arith.addf %103, %104 : vector<16x64xf32>
    %106 = arith.addf %1, %105 : vector<16x64xf32>
    %c0_26 = arith.constant 0 : index
    %c0_27 = arith.constant 0 : index
    %107 = vector.load %arg9[%c0_26, %c0_27] : memref<1x64xf32, #tpu.memory_space<vmem>>, vector<1x64xf32>
    %c0_28 = arith.constant 0 : index
    %c0_29 = arith.constant 0 : index
    %108 = vector.load %arg10[%c0_28, %c0_29] : memref<1x64xf32, #tpu.memory_space<vmem>>, vector<1x64xf32>
    %cst_30 = arith.constant dense<0.000000e+00> : vector<16xf32>
    %109 = vector.multi_reduction <add>, %106, %cst_30 [1] : vector<16x64xf32> to vector<16xf32>
    %110 = vector.shape_cast %109 : vector<16xf32> to vector<16x1xf32>
    %cst_31 = arith.constant 6.400000e+01 : f32
    %111 = vector.broadcast %cst_31 : f32 to vector<16x1xf32>
    %112 = arith.divf %110, %111 : vector<16x1xf32>
    %113 = vector.broadcast %112 : vector<16x1xf32> to vector<16x64xf32>
    %114 = arith.subf %106, %113 : vector<16x64xf32>
    %115 = arith.mulf %114, %114 : vector<16x64xf32>
    %cst_32 = arith.constant dense<0.000000e+00> : vector<16xf32>
    %116 = vector.multi_reduction <add>, %115, %cst_32 [1] : vector<16x64xf32> to vector<16xf32>
    %117 = vector.shape_cast %116 : vector<16xf32> to vector<16x1xf32>
    %cst_33 = arith.constant 6.400000e+01 : f32
    %118 = vector.broadcast %cst_33 : f32 to vector<16x1xf32>
    %119 = arith.divf %117, %118 : vector<16x1xf32>
    %120 = vector.broadcast %112 : vector<16x1xf32> to vector<16x64xf32>
    %121 = arith.subf %106, %120 : vector<16x64xf32>
    %cst_34 = arith.constant 9.99999974E-6 : f32
    %122 = vector.broadcast %cst_34 : f32 to vector<16x1xf32>
    %123 = arith.addf %119, %122 : vector<16x1xf32>
    %124 = math.rsqrt %123 : vector<16x1xf32>
    %125 = vector.broadcast %124 : vector<16x1xf32> to vector<16x64xf32>
    %126 = arith.mulf %121, %125 : vector<16x64xf32>
    %127 = vector.broadcast %107 : vector<1x64xf32> to vector<16x64xf32>
    %128 = arith.mulf %126, %127 : vector<16x64xf32>
    %129 = vector.broadcast %108 : vector<1x64xf32> to vector<16x64xf32>
    %130 = arith.addf %128, %129 : vector<16x64xf32>
    %c0_35 = arith.constant 0 : index
    %c0_36 = arith.constant 0 : index
    %131 = vector.load %arg11[%c0_35, %c0_36] : memref<64x256xbf16, #tpu.memory_space<vmem>>, vector<64x256xbf16>
    %c0_37 = arith.constant 0 : index
    %c0_38 = arith.constant 0 : index
    %132 = vector.load %arg12[%c0_37, %c0_38] : memref<1x256xf32, #tpu.memory_space<vmem>>, vector<1x256xf32>
    %133 = arith.truncf %130 : vector<16x64xf32> to vector<16x64xbf16>
    %cst_39 = arith.constant dense<0.000000e+00> : vector<16x256xf32>
    %134 = tpu.matmul %133, %131, %cst_39 {dimension_numbers = #tpu.dot_dimension_numbers<[1], [0], [0], [1], [0, 0, 1, 1], [], []>} : vector<16x64xbf16>, vector<64x256xbf16>, vector<16x256xf32> -> vector<16x256xf32>
    %135 = vector.broadcast %132 : vector<1x256xf32> to vector<16x256xf32>
    %136 = arith.addf %134, %135 : vector<16x256xf32>
    %137 = arith.mulf %136, %136 : vector<16x256xf32>
    %138 = arith.mulf %136, %137 : vector<16x256xf32>
    %cst_40 = arith.constant 4.471500e-02 : f32
    %139 = vector.broadcast %cst_40 : f32 to vector<16x256xf32>
    %140 = arith.mulf %139, %138 : vector<16x256xf32>
    %141 = arith.addf %136, %140 : vector<16x256xf32>
    %cst_41 = arith.constant 0.797884583 : f32
    %142 = vector.broadcast %cst_41 : f32 to vector<16x256xf32>
    %143 = arith.mulf %142, %141 : vector<16x256xf32>
    %144 = math.tanh %143 : vector<16x256xf32>
    %cst_42 = arith.constant 1.000000e+00 : f32
    %145 = vector.broadcast %cst_42 : f32 to vector<16x256xf32>
    %146 = arith.addf %145, %144 : vector<16x256xf32>
    %cst_43 = arith.constant 5.000000e-01 : f32
    %147 = vector.broadcast %cst_43 : f32 to vector<16x256xf32>
    %148 = arith.mulf %147, %146 : vector<16x256xf32>
    %149 = arith.mulf %136, %148 : vector<16x256xf32>
    %c0_44 = arith.constant 0 : index
    %c0_45 = arith.constant 0 : index
    %150 = vector.load %arg13[%c0_44, %c0_45] : memref<256x64xbf16, #tpu.memory_space<vmem>>, vector<256x64xbf16>
    %c0_46 = arith.constant 0 : index
    %c0_47 = arith.constant 0 : index
    %151 = vector.load %arg14[%c0_46, %c0_47] : memref<1x64xf32, #tpu.memory_space<vmem>>, vector<1x64xf32>
    %152 = arith.truncf %149 : vector<16x256xf32> to vector<16x256xbf16>
    %cst_48 = arith.constant dense<0.000000e+00> : vector<16x64xf32>
    %153 = tpu.matmul %152, %150, %cst_48 {dimension_numbers = #tpu.dot_dimension_numbers<[1], [0], [0], [1], [0, 0, 1, 1], [], []>} : vector<16x256xbf16>, vector<256x64xbf16>, vector<16x64xf32> -> vector<16x64xf32>
    %154 = vector.broadcast %151 : vector<1x64xf32> to vector<16x64xf32>
    %155 = arith.addf %153, %154 : vector<16x64xf32>
    %156 = arith.addf %106, %155 : vector<16x64xf32>
    %157 = arith.truncf %156 : vector<16x64xf32> to vector<16x64xbf16>
    %c0_49 = arith.constant 0 : index
    %c0_50 = arith.constant 0 : index
    %158 = vector.load %arg16[%c0_49, %c0_50] : memref<16x64xbf16, #tpu.memory_space<vmem>>, vector<16x64xbf16>
    tpu.vector_store %arg16[%c0_49, %c0_50], %157 {strides = array<i32>} : memref<16x64xbf16, #tpu.memory_space<vmem>>, vector<16x64xbf16>,
    return
  }
  func.func @transform_0(%arg0: i32, %arg1: i32) -> (i32, i32) {
    %c1_i32 = arith.constant 1 : i32
    %0 = arith.muli %arg0, %c1_i32 : i32
    %1 = arith.addi %0, %arg1 : i32
    %c0_i32 = arith.constant 0 : i32
    %c0_i32_0 = arith.constant 0 : i32
    return %1, %c0_i32 : i32, i32
  }
  func.func @transform_1(%arg0: i32, %arg1: i32) -> (i32, i32) {
    %c0_i32 = arith.constant 0 : i32
    %c0_i32_0 = arith.constant 0 : i32
    %c0_i32_1 = arith.constant 0 : i32
    return %c0_i32, %c0_i32_0 : i32, i32
  }
  func.func @transform_2(%arg0: i32, %arg1: i32) -> (i32, i32) {
    %c0_i32 = arith.constant 0 : i32
    %c0_i32_0 = arith.constant 0 : i32
    %c0_i32_1 = arith.constant 0 : i32
    return %c0_i32, %c0_i32_0 : i32, i32
  }
  func.func @transform_3(%arg0: i32, %arg1: i32) -> (i32, i32) {
    %c0_i32 = arith.constant 0 : i32
    %c0_i32_0 = arith.constant 0 : i32
    %c0_i32_1 = arith.constant 0 : i32
    return %c0_i32, %c0_i32_0 : i32, i32
  }
  func.func @transform_4(%arg0: i32, %arg1: i32) -> (i32, i32) {
    %c0_i32 = arith.constant 0 : i32
    %c0_i32_0 = arith.constant 0 : i32
    %c0_i32_1 = arith.constant 0 : i32
    return %c0_i32, %c0_i32_0 : i32, i32
  }
  func.func @transform_5(%arg0: i32, %arg1: i32) -> (i32, i32) {
    %c0_i32 = arith.constant 0 : i32
    %c0_i32_0 = arith.constant 0 : i32
    %c0_i32_1 = arith.constant 0 : i32
    return %c0_i32, %c0_i32_0 : i32, i32
  }
  func.func @transform_6(%arg0: i32, %arg1: i32) -> (i32, i32) {
    %c0_i32 = arith.constant 0 : i32
    %c0_i32_0 = arith.constant 0 : i32
    %c0_i32_1 = arith.constant 0 : i32
    return %c0_i32, %c0_i32_0 : i32, i32
  }
  func.func @transform_7(%arg0: i32, %arg1: i32) -> (i32, i32) {
    %c0_i32 = arith.constant 0 : i32
    %c0_i32_0 = arith.constant 0 : i32
    %c0_i32_1 = arith.constant 0 : i32
    return %c0_i32, %c0_i32_0 : i32, i32
  }
  func.func @transform_8(%arg0: i32, %arg1: i32) -> (i32, i32) {
    %c0_i32 = arith.constant 0 : i32
    %c0_i32_0 = arith.constant 0 : i32
    %c0_i32_1 = arith.constant 0 : i32
    return %c0_i32, %c0_i32_0 : i32, i32
  }
  func.func @transform_9(%arg0: i32, %arg1: i32) -> (i32, i32) {
    %c0_i32 = arith.constant 0 : i32
    %c0_i32_0 = arith.constant 0 : i32
    %c0_i32_1 = arith.constant 0 : i32
    return %c0_i32, %c0_i32_0 : i32, i32
  }
  func.func @transform_10(%arg0: i32, %arg1: i32) -> (i32, i32) {
    %c0_i32 = arith.constant 0 : i32
    %c0_i32_0 = arith.constant 0 : i32
    %c0_i32_1 = arith.constant 0 : i32
    return %c0_i32, %c0_i32_0 : i32, i32
  }
  func.func @transform_11(%arg0: i32, %arg1: i32) -> (i32, i32) {
    %c0_i32 = arith.constant 0 : i32
    %c0_i32_0 = arith.constant 0 : i32
    %c0_i32_1 = arith.constant 0 : i32
    return %c0_i32, %c0_i32_0 : i32, i32
  }
  func.func @transform_12(%arg0: i32, %arg1: i32) -> (i32, i32) {
    %c0_i32 = arith.constant 0 : i32
    %c0_i32_0 = arith.constant 0 : i32
    %c0_i32_1 = arith.constant 0 : i32
    return %c0_i32, %c0_i32_0 : i32, i32
  }
  func.func @transform_13(%arg0: i32, %arg1: i32) -> (i32, i32, i32) {
    %c0_i32 = arith.constant 0 : i32
    %c0_i32_0 = arith.constant 0 : i32
    %c0_i32_1 = arith.constant 0 : i32
    %c0_i32_2 = arith.constant 0 : i32
    return %c0_i32, %c0_i32_0, %c0_i32_1 : i32, i32, i32
  }
  func.func @transform_14(%arg0: i32, %arg1: i32) -> (i32, i32) {
    %c1_i32 = arith.constant 1 : i32
    %0 = arith.muli %arg0, %c1_i32 : i32
    %1 = arith.addi %0, %arg1 : i32
    %c0_i32 = arith.constant 0 : i32
    %c0_i32_0 = arith.constant 0 : i32
    return %1, %c0_i32 : i32, i32
  }
}

module attributes {stable_mosaic.version = 11 : i64} {
  func.func @_ln_kernel(%arg0: i32, %arg1: memref<32x64xbf16, #tpu.memory_space<vmem>>, %arg2: memref<1x64xf32, #tpu.memory_space<vmem>>, %arg3: memref<1x64xf32, #tpu.memory_space<vmem>>, %arg4: memref<32x64xf32, #tpu.memory_space<vmem>>) attributes {dimension_semantics = [#tpu.dimension_semantics<parallel>], iteration_bounds = array<i64: 1>, scalar_prefetch = 0 : i64, scratch_operands = 0 : i64, tpu.core_type = #tpu.core_type<tc>, window_params = [{transform_indices = @transform_0, window_bounds = array<i64: 32, 64>}, {pipeline_mode = #tpu.pipeline_mode<synchronous>, transform_indices = @transform_1, window_bounds = array<i64: 1, 64>}, {pipeline_mode = #tpu.pipeline_mode<synchronous>, transform_indices = @transform_2, window_bounds = array<i64: 1, 64>}, {transform_indices = @transform_3, window_bounds = array<i64: 32, 64>}]} {
    %c0 = arith.constant 0 : index
    %c0_0 = arith.constant 0 : index
    %0 = vector.load %arg1[%c0, %c0_0] : memref<32x64xbf16, #tpu.memory_space<vmem>>, vector<32x64xbf16>
    %1 = arith.extf %0 : vector<32x64xbf16> to vector<32x64xf32>
    %c0_1 = arith.constant 0 : index
    %c0_2 = arith.constant 0 : index
    %2 = vector.load %arg2[%c0_1, %c0_2] : memref<1x64xf32, #tpu.memory_space<vmem>>, vector<1x64xf32>
    %c0_3 = arith.constant 0 : index
    %c0_4 = arith.constant 0 : index
    %3 = vector.load %arg3[%c0_3, %c0_4] : memref<1x64xf32, #tpu.memory_space<vmem>>, vector<1x64xf32>
    %cst = arith.constant dense<0.000000e+00> : vector<32xf32>
    %4 = vector.multi_reduction <add>, %1, %cst [1] : vector<32x64xf32> to vector<32xf32>
    %5 = vector.shape_cast %4 : vector<32xf32> to vector<32x1xf32>
    %cst_5 = arith.constant 6.400000e+01 : f32
    %6 = vector.broadcast %cst_5 : f32 to vector<32x1xf32>
    %7 = arith.divf %5, %6 : vector<32x1xf32>
    %8 = vector.broadcast %7 : vector<32x1xf32> to vector<32x64xf32>
    %9 = arith.subf %1, %8 : vector<32x64xf32>
    %10 = arith.mulf %9, %9 : vector<32x64xf32>
    %cst_6 = arith.constant dense<0.000000e+00> : vector<32xf32>
    %11 = vector.multi_reduction <add>, %10, %cst_6 [1] : vector<32x64xf32> to vector<32xf32>
    %12 = vector.shape_cast %11 : vector<32xf32> to vector<32x1xf32>
    %cst_7 = arith.constant 6.400000e+01 : f32
    %13 = vector.broadcast %cst_7 : f32 to vector<32x1xf32>
    %14 = arith.divf %12, %13 : vector<32x1xf32>
    %15 = vector.broadcast %7 : vector<32x1xf32> to vector<32x64xf32>
    %16 = arith.subf %1, %15 : vector<32x64xf32>
    %cst_8 = arith.constant 9.99999974E-6 : f32
    %17 = vector.broadcast %cst_8 : f32 to vector<32x1xf32>
    %18 = arith.addf %14, %17 : vector<32x1xf32>
    %19 = math.rsqrt %18 : vector<32x1xf32>
    %20 = vector.broadcast %19 : vector<32x1xf32> to vector<32x64xf32>
    %21 = arith.mulf %16, %20 : vector<32x64xf32>
    %22 = vector.broadcast %2 : vector<1x64xf32> to vector<32x64xf32>
    %23 = arith.mulf %21, %22 : vector<32x64xf32>
    %24 = vector.broadcast %3 : vector<1x64xf32> to vector<32x64xf32>
    %25 = arith.addf %23, %24 : vector<32x64xf32>
    %c0_9 = arith.constant 0 : index
    %c0_10 = arith.constant 0 : index
    %26 = vector.load %arg4[%c0_9, %c0_10] : memref<32x64xf32, #tpu.memory_space<vmem>>, vector<32x64xf32>
    tpu.vector_store %arg4[%c0_9, %c0_10], %25 {strides = array<i32>} : memref<32x64xf32, #tpu.memory_space<vmem>>, vector<32x64xf32>,
    return
  }
  func.func @transform_0(%arg0: i32) -> (i32, i32) {
    %c0_i32 = arith.constant 0 : i32
    %c0_i32_0 = arith.constant 0 : i32
    return %arg0, %c0_i32 : i32, i32
  }
  func.func @transform_1(%arg0: i32) -> (i32, i32) {
    %c0_i32 = arith.constant 0 : i32
    %c0_i32_0 = arith.constant 0 : i32
    %c0_i32_1 = arith.constant 0 : i32
    return %c0_i32, %c0_i32_0 : i32, i32
  }
  func.func @transform_2(%arg0: i32) -> (i32, i32) {
    %c0_i32 = arith.constant 0 : i32
    %c0_i32_0 = arith.constant 0 : i32
    %c0_i32_1 = arith.constant 0 : i32
    return %c0_i32, %c0_i32_0 : i32, i32
  }
  func.func @transform_3(%arg0: i32) -> (i32, i32) {
    %c0_i32 = arith.constant 0 : i32
    %c0_i32_0 = arith.constant 0 : i32
    return %arg0, %c0_i32 : i32, i32
  }
}

</mosaic_0001>

<bundles_post_ra>
// kernel: _lambda_.7
= control target key start
LH: loop header
LB: loop body
LE: loop exit
PB: predicated region body
PF: predicated region fallthrough
CT: control target
= control target key end

     0   :  { %vm76_vm0 = vcmask 392192   ;;  %vm200_vm1 = vcmask 261120   ;;  %vm518_vm2 = vcmask 257024   ;;  %s1039_s1 = inlined_call_operand.vmem [shape: bf16[48,32], index: 1, kind: input, shape index: {}]   ;;  %s1040_s0 = inlined_call_operand.vmem [shape: f32[128,48], index: 0, kind: input, shape index: {}]   ;;  %s1041_s2 = inlined_call_operand.vmem [shape: f32[1,32], index: 2, kind: input, shape index: {}]   ;;  %s1042_s3 = inlined_call_operand.vmem [shape: f32[1,32], index: 3, kind: input, shape index: {}]   ;;  %s1043_s4 = inlined_call_operand.vmem [shape: f32[1,32], index: 4, kind: input, shape index: {}]   ;;  %s1044_s5 = inlined_call_operand.vmem [shape: bf16[128,32], index: 5, kind: output, shape index: {}]  }
   0x1   :  { %v624_v0 = vld [vmem:[%s1039_s1] sm:$0xff]   ;;  %v625_v1 = vld [vmem:[%s1039_s1 + $0x8] sm:$0xff]   ;;  %v626_v5 = vld [vmem:[%s1039_s1 + $0x10] sm:$0xff]  }
   0x2   :  { %596 = vmatprep.subr.bf16.mxu0 %v624_v0  ;;  %618 = vmatprep.subr.bf16.mxu1 %v624_v0  ;;  %v21_v2 = vld [vmem:[%s1040_s0] sm:$0xff]  ;;  %v22_v3 = vld [vmem:[%s1040_s0 + $0x8] sm:$0xff]  ;;  %v23_v9 = vld [vmem:[%s1040_s0 + $0x10] sm:$0xff] }
   0x3   :  { %597 = vmatpush3.bf16.msra.mxu0 %v624_v0  ;;  %621 = vmatpush3.bf16.msra.mxu1 %v624_v0  ;;  %v29_v4 = vld [vmem:[%s1040_s0 + $0x40] sm:$0xff]  ;;  %v44_v6 = vpack.c.bf16 %v22_v3, %v21_v2  ;;  %v30_v7 = vld [vmem:[%s1040_s0 + $0x48] sm:$0xff]  ;;  %v24_v10 = vld [vmem:[%s1040_s0 + $0x18] sm:$0xff] }
   0x4   :  { %598 = vmatprep.subr.bf16.mxu0 %v625_v1  ;;  %619 = vmatprep.subr.bf16.mxu1 %v625_v1  ;;  %v48_v8 = vpack.c.bf16 %v30_v7, %v29_v4  ;;  %v31_v11 = vld [vmem:[%s1040_s0 + $0x50] sm:$0xff]  ;;  %v32_v12 = vld [vmem:[%s1040_s0 + $0x58] sm:$0xff]  ;;  %v25_v13 = vld [vmem:[%s1040_s0 + $0x20] sm:$0xff]  ;;  %v45_v17 = vpack.c.bf16 %v24_v10, %v23_v9 }
   0x5   :  { %602 = vmatprep.mubr.msk.bf16.mxu0 %vm76_vm0, %v44_v6  ;;  %v26_v14 = vld [vmem:[%s1040_s0 + $0x28] sm:$0xff]  ;;  %v33_v15 = vld [vmem:[%s1040_s0 + $0x60] sm:$0xff]  ;;  %v49_v18 = vpack.c.bf16 %v32_v12, %v31_v11  ;;  %v27_v21 = vld [vmem:[%s1040_s0 + $0x30] sm:$0xff] }
   0x6   :  { %v34_v16 = vld [vmem:[%s1040_s0 + $0x68] sm:$0xff]  ;;  %610 = vmatprep.mubr.msk.bf16.mxu1 %vm76_vm0, %v48_v8  ;;  %v46_v19 = vpack.c.bf16 %v26_v14, %v25_v13  ;;  %v28_v22 = vld [vmem:[%s1040_s0 + $0x38] sm:$0xff]  ;;  %v35_v23 = vld [vmem:[%s1040_s0 + $0x70] sm:$0xff] }
   0x7   :  { %599 = vmatpush3.bf16.msra.mxu0 %v625_v1  ;;  %622 = vmatpush3.bf16.msra.mxu1 %v625_v1  ;;  %v50_v20 = vpack.c.bf16 %v34_v16, %v33_v15  ;;  %v36_v24 = vld [vmem:[%s1040_s0 + $0x78] sm:$0xff]  ;;  %v47_v25 = vpack.c.bf16 %v28_v22, %v27_v21  ;;  %v539_v27 = vld [vmem:[%s1041_s2] ss:$0 sm:$0xff] }
   0x8   :  { %600 = vmatprep.subr.bf16.mxu0 %v626_v5  ;;  %620 = vmatprep.subr.bf16.mxu1 %v626_v5  ;;  %v51_v26 = vpack.c.bf16 %v36_v24, %v35_v23 }
   0xb   :  { %601 = vmatpush3.bf16.msra.mxu0 %v626_v5  ;;  %623 = vmatpush3.bf16.msra.mxu1 %v626_v5 }
   0xe   :  { %603 = vmatmul.mubr.msk.bf16.vlgmr.msra.gmra.mrb[0].mxu0 %vm76_vm0, %v45_v17  ;;  %611 = vmatmul.mubr.msk.bf16.vlgmr.msra.gmra.mrb[0].mxu1 %vm76_vm0, %v49_v18 }
   0xf   :  { %606 = vmatprep.mubr.msk.bf16.mxu0 %vm76_vm0, %v46_v19  ;;  %614 = vmatprep.mubr.msk.bf16.mxu1 %vm76_vm0, %v50_v20 }
  0x16   :  { %607 = vmatmul.mubr.msk.bf16.gmra.mrb[4].mxu0 %vm76_vm0, %v47_v25  ;;  %615 = vmatmul.mubr.msk.bf16.gmra.mrb[4].mxu1 %vm76_vm0, %v51_v26 }
  0xe1   :  { %v604_v28 = vpop.f32.mrb[0].mxu0  ;;  %v612_v29 = vpop.f32.mrb[0].mxu1 }
  0xe2   :  { %v757_v30 = vadd.f32 %v604_v28, %v539_v27  ;;  %v759_v31 = vadd.f32 %v612_v29, %v539_v27  ;;  %v135_v32 = vpop.f32.mrb[1].mxu0  ;;  %v167_v33 = vpop.f32.mrb[1].mxu1 }
  0xe3   :  { %v605_v34 = vpop.f32.mrb[2].mxu0  ;;  %v613_v35 = vpop.f32.mrb[2].mxu1  ;;  %v761_v36 = vadd.f32 %v539_v27, %v135_v32  ;;  %v769_v42 = vadd.f32 %v539_v27, %v167_v33 }
  0xe4   :  { %v763_v37 = vadd.f32 %v605_v34, %v539_v27  ;;  %v138_v38 = vpop.f32.mrb[3].mxu0  ;;  %v170_v39 = vpop.f32.mrb[3].mxu1  ;;  %v231_v40 = vsel %vm200_vm1, %v759_v31, 0.0  ;;  %v207_v41 = vsel %vm200_vm1, %v757_v30, 0.0  ;;  %v771_v43 = vadd.f32 %v613_v35, %v539_v27 }
  0xe5   :  { %232 = vadd.xlane.f32.xlu0 %v231_v40  ;;  %208 = vadd.xlane.f32.xlu1 %v207_v41  ;;  %v201_v45 = vsel %vm200_vm1, %v761_v36, 0.0  ;;  %v777_v52 = vadd.f32 %v539_v27, %v138_v38  ;;  %v779_v53 = vadd.f32 %v539_v27, %v170_v39  ;;  %v225_v55 = vsel %vm200_vm1, %v769_v42, 0.0 }
  0xe6   :  { %v210_v44 = vsel %vm200_vm1, %v763_v37, 0.0  ;;  %v234_v54 = vsel %vm200_vm1, %v771_v43, 0.0 }
  0xe7   :  { %v228_v60 = vsel %vm200_vm1, %v779_v53, 0.0  ;;  %v204_v61 = vsel %vm200_vm1, %v777_v52, 0.0 }
  0xe9   :  { %211 = vadd.xlane.f32.xlu1 %v210_v44  ;;  %202 = vadd.xlane.f32.xlu0 %v201_v45  ;;  %v608_v46 = vpop.f32.mrb[4].mxu0  ;;  %v616_v47 = vpop.f32.mrb[4].mxu1 }
  0xea   :  { %v151_v48 = vpop.f32.mrb[5].mxu0  ;;  %v183_v49 = vpop.f32.mrb[5].mxu1  ;;  %v785_v58 = vadd.f32 %v608_v46, %v539_v27  ;;  %v813_v8 = vadd.f32 %v616_v47, %v539_v27 }
  0xeb   :  { %v609_v50 = vpop.f32.mrb[6].mxu0  ;;  %v617_v51 = vpop.f32.mrb[6].mxu1  ;;  %v797_v0 = vadd.f32 %v539_v27, %v151_v48  ;;  %v801_v2 = vadd.f32 %v539_v27, %v183_v49 }
  0xec   :  { %v154_v56 = vpop.f32.mrb[7].mxu0  ;;  %v186_v57 = vpop.f32.mrb[7].mxu1  ;;  %v787_v59 = vadd.f32 %v609_v50, %v539_v27  ;;  %v219_v63 = vsel %vm200_vm1, %v785_v58, 0.0  ;;  %v815_v9 = vadd.f32 %v617_v51, %v539_v27  ;;  %v243_v11 = vsel %vm200_vm1, %v813_v8, 0.0 }
  0xed   :  { %235 = vadd.xlane.f32.xlu1 %v234_v54  ;;  %226 = vadd.xlane.f32.xlu0 %v225_v55  ;;  %v799_v1 = vadd.f32 %v539_v27, %v154_v56  ;;  %v803_v3 = vadd.f32 %v539_v27, %v186_v57  ;;  %v213_v5 = vsel %vm200_vm1, %v797_v0, 0.0  ;;  %v237_v7 = vsel %vm200_vm1, %v801_v2, 0.0 }
  0xee   :  { %v222_v62 = vsel %vm200_vm1, %v787_v59, 0.0  ;;  %v246_v10 = vsel %vm200_vm1, %v815_v9, 0.0 }
  0xef   :  { %v216_v4 = vsel %vm200_vm1, %v799_v1, 0.0  ;;  %v240_v6 = vsel %vm200_vm1, %v803_v3, 0.0 }
  0xf1   :  { %229 = vadd.xlane.f32.xlu1 %v228_v60  ;;  %205 = vadd.xlane.f32.xlu0 %v204_v61 }
  0xf5   :  { %223 = vadd.xlane.f32.xlu1 %v222_v62  ;;  %220 = vadd.xlane.f32.xlu0 %v219_v63 }
  0xf9   :  { %217 = vadd.xlane.f32.xlu1 %v216_v4  ;;  %214 = vadd.xlane.f32.xlu0 %v213_v5 }
  0xfd   :  { %241 = vadd.xlane.f32.xlu1 %v240_v6  ;;  %238 = vadd.xlane.f32.xlu0 %v237_v7 }
 0x101   :  { %247 = vadd.xlane.f32.xlu1 %v246_v10  ;;  %244 = vadd.xlane.f32.xlu0 %v243_v11 }
 0x172   :  { %v233_v12 = vpop.xlane.xlu0 %232  ;;  %v209_v13 = vpop.xlane.xlu1 %208 }
 0x173   :  { %v260_v14 = vmul.f32 0.03125, %v233_v12  ;;  %v252_v15 = vmul.f32 0.03125, %v209_v13 }
 0x175   :  { %v822_v16 = vsub.f32 %v759_v31, %v260_v14  ;;  %v825_v17 = vsub.f32 %v757_v30, %v252_v15 }
 0x176   :  { %v212_v18 = vpop.xlane.xlu1 %211  ;;  %v203_v19 = vpop.xlane.xlu0 %202 }
 0x177   :  { %v253_v20 = vmul.f32 0.03125, %v212_v18  ;;  %v250_v21 = vmul.f32 0.03125, %v203_v19  ;;  %v284_v22 = vmul.f32 %v825_v17, %v825_v17  ;;  %v292_v26 = vmul.f32 %v822_v16, %v822_v16 }
 0x179   :  { %v830_v23 = vsub.f32 %v763_v37, %v253_v20  ;;  %v833_v24 = vsub.f32 %v761_v36, %v250_v21  ;;  %v304_v25 = vsel %vm200_vm1, %v284_v22, 0.0  ;;  %v328_v36 = vsel %vm200_vm1, %v292_v26, 0.0 }
 0x17a   :  { %v236_v27 = vpop.xlane.xlu1 %235  ;;  %305 = vadd.xlane.f32.xlu0 %v304_v25  ;;  %v227_v28 = vpop.xlane.xlu0 %226 }
 0x17b   :  { %v261_v29 = vmul.f32 0.03125, %v236_v27  ;;  %v258_v30 = vmul.f32 0.03125, %v227_v28  ;;  %v285_v31 = vmul.f32 %v830_v23, %v830_v23  ;;  %v282_v32 = vmul.f32 %v833_v24, %v833_v24 }
 0x17d   :  { %v843_v33 = vsub.f32 %v771_v43, %v261_v29  ;;  %v846_v34 = vsub.f32 %v769_v42, %v258_v30  ;;  %v307_v35 = vsel %vm200_vm1, %v285_v31, 0.0  ;;  %v298_v44 = vsel %vm200_vm1, %v282_v32, 0.0 }
 0x17e   :  { %v230_v37 = vpop.xlane.xlu1 %229  ;;  %308 = vadd.xlane.f32.xlu1 %v307_v35  ;;  %329 = vadd.xlane.f32.xlu0 %v328_v36  ;;  %v206_v38 = vpop.xlane.xlu0 %205 }
 0x17f   :  { %v259_v39 = vmul.f32 0.03125, %v230_v37  ;;  %v251_v40 = vmul.f32 0.03125, %v206_v38  ;;  %v293_v41 = vmul.f32 %v843_v33, %v843_v33  ;;  %v290_v46 = vmul.f32 %v846_v34, %v846_v34 }
 0x181   :  { %v854_v43 = vsub.f32 %v779_v53, %v259_v39  ;;  %v857_v42 = vsub.f32 %v777_v52, %v251_v40  ;;  %v331_v45 = vsel %vm200_vm1, %v293_v41, 0.0  ;;  %v322_v55 = vsel %vm200_vm1, %v290_v46, 0.0 }
 0x182   :  { %v224_v47 = vpop.xlane.xlu1 %223  ;;  %332 = vadd.xlane.f32.xlu1 %v331_v45  ;;  %299 = vadd.xlane.f32.xlu0 %v298_v44  ;;  %v221_v48 = vpop.xlane.xlu0 %220 }
 0x183   :  { %v257_v49 = vmul.f32 0.03125, %v224_v47  ;;  %v256_v50 = vmul.f32 0.03125, %v221_v48  ;;  %v283_v51 = vmul.f32 %v857_v42, %v857_v42  ;;  %v291_v53 = vmul.f32 %v854_v43, %v854_v43 }
 0x185   :  { %v867_v52 = vsub.f32 %v787_v59, %v257_v49  ;;  %v870_v54 = vsub.f32 %v785_v58, %v256_v50  ;;  %v301_v56 = vsel %vm200_vm1, %v283_v51, 0.0  ;;  %v325_v4 = vsel %vm200_vm1, %v291_v53, 0.0 }
 0x186   :  { %v218_v57 = vpop.xlane.xlu1 %217  ;;  %323 = vadd.xlane.f32.xlu0 %v322_v55  ;;  %302 = vadd.xlane.f32.xlu1 %v301_v56  ;;  %v215_v60 = vpop.xlane.xlu0 %214 }
 0x187   :  { %v255_v61 = vmul.f32 0.03125, %v218_v57  ;;  %v254_v62 = vmul.f32 0.03125, %v215_v60  ;;  %v288_v63 = vmul.f32 %v870_v54, %v870_v54  ;;  %v289_v6 = vmul.f32 %v867_v52, %v867_v52  ;;  %v920_v60 = vld [vmem:[%s1042_s3] ss:$0 sm:$0xff] }
 0x189   :  { %v878_v59 = vsub.f32 %v799_v1, %v255_v61  ;;  %v881_v58 = vsub.f32 %v797_v0, %v254_v62  ;;  %v316_v5 = vsel %vm200_vm1, %v288_v63, 0.0  ;;  %v319_v15 = vsel %vm200_vm1, %v289_v6, 0.0  ;;  %v926_v6 = vld [vmem:[%s1043_s4] ss:$0 sm:$0xff] }
 0x18a   :  { %v242_v7 = vpop.xlane.xlu1 %241  ;;  %326 = vadd.xlane.f32.xlu1 %v325_v4  ;;  %317 = vadd.xlane.f32.xlu0 %v316_v5  ;;  %v239_v10 = vpop.xlane.xlu0 %238 }
 0x18b   :  { %v263_v11 = vmul.f32 0.03125, %v242_v7  ;;  %v262_v12 = vmul.f32 0.03125, %v239_v10  ;;  %v286_v13 = vmul.f32 %v881_v58, %v881_v58  ;;  %v287_v1 = vmul.f32 %v878_v59, %v878_v59 }
 0x18d   :  { %v891_v0 = vsub.f32 %v803_v3, %v263_v11  ;;  %v894_v14 = vsub.f32 %v801_v2, %v262_v12  ;;  %v310_v18 = vsel %vm200_vm1, %v286_v13, 0.0  ;;  %v313_v26 = vsel %vm200_vm1, %v287_v1, 0.0 }
 0x18e   :  { %v248_v19 = vpop.xlane.xlu1 %247  ;;  %320 = vadd.xlane.f32.xlu1 %v319_v15  ;;  %311 = vadd.xlane.f32.xlu0 %v310_v18  ;;  %v245_v20 = vpop.xlane.xlu0 %244 }
 0x18f   :  { %v265_v21 = vmul.f32 0.03125, %v248_v19  ;;  %v264_v22 = vmul.f32 0.03125, %v245_v20  ;;  %v294_v25 = vmul.f32 %v894_v14, %v894_v14  ;;  %v295_v28 = vmul.f32 %v891_v0, %v891_v0 }
 0x191   :  { %v902_v3 = vsub.f32 %v815_v9, %v265_v21  ;;  %v905_v2 = vsub.f32 %v813_v8, %v264_v22  ;;  %v334_v27 = vsel %vm200_vm1, %v294_v25, 0.0  ;;  %v337_v30 = vsel %vm200_vm1, %v295_v28, 0.0 }
 0x192   :  { %314 = vadd.xlane.f32.xlu1 %v313_v26  ;;  %335 = vadd.xlane.f32.xlu0 %v334_v27 }
 0x193   :  { %v296_v29 = vmul.f32 %v905_v2, %v905_v2  ;;  %v297_v9 = vmul.f32 %v902_v3, %v902_v3 }
 0x195   :  { %v340_v31 = vsel %vm200_vm1, %v296_v29, 0.0  ;;  %v343_v8 = vsel %vm200_vm1, %v297_v9, 0.0 }
 0x196   :  { %338 = vadd.xlane.f32.xlu1 %v337_v30  ;;  %341 = vadd.xlane.f32.xlu0 %v340_v31 }
 0x19a   :  { %344 = vadd.xlane.f32.xlu1 %v343_v8 }
 0x207   :  { %v306_v32 = vpop.xlane.xlu0 %305 }
 0x208   :  { %v348_v35 = vmul.f32 0.03125, %v306_v32 }
 0x20a   :  { %v364_v36 = vadd.f32 1e-05, %v348_v35 }
 0x20b   :  { %v309_v37 = vpop.xlane.xlu1 %308  ;;  %v330_v38 = vpop.xlane.xlu0 %329 }
 0x20c   :  { %627 = vrsqrt.f32 %v364_v36  ;;  %v349_v39 = vmul.f32 0.03125, %v309_v37  ;;  %v356_v40 = vmul.f32 0.03125, %v330_v38 }
 0x20e   :  { %v365_v41 = vadd.f32 1e-05, %v349_v39  ;;  %v372_v44 = vadd.f32 1e-05, %v356_v40 }
 0x20f   :  { %v333_v45 = vpop.xlane.xlu1 %332  ;;  %v300_v46 = vpop.xlane.xlu0 %299 }
 0x210   :  { %629 = vrsqrt.f32 %v365_v41  ;;  %v357_v47 = vmul.f32 0.03125, %v333_v45  ;;  %v346_v48 = vmul.f32 0.03125, %v300_v46 }
 0x211   :  { %631 = vrsqrt.f32 %v372_v44 }
 0x212   :  { %v373_v49 = vadd.f32 1e-05, %v357_v47  ;;  %v362_v50 = vadd.f32 1e-05, %v346_v48 }
 0x213   :  { %v303_v51 = vpop.xlane.xlu1 %302  ;;  %v324_v53 = vpop.xlane.xlu0 %323 }
 0x214   :  { %633 = vrsqrt.f32 %v373_v49  ;;  %v347_v55 = vmul.f32 0.03125, %v303_v51  ;;  %v354_v56 = vmul.f32 0.03125, %v324_v53 }
 0x215   :  { %635 = vrsqrt.f32 %v362_v50 }
 0x216   :  { %v628_v57 = vpop.eup %627  ;;  %v363_v61 = vadd.f32 1e-05, %v347_v55  ;;  %v370_v62 = vadd.f32 1e-05, %v354_v56 }
 0x217   :  { %v396_v63 = vmul.f32 %v628_v57, %v825_v17  ;;  %v327_v4 = vpop.xlane.xlu1 %326  ;;  %v318_v5 = vpop.xlane.xlu0 %317 }
 0x218   :  { %637 = vrsqrt.f32 %v363_v61  ;;  %v355_v7 = vmul.f32 0.03125, %v327_v4  ;;  %v352_v10 = vmul.f32 0.03125, %v318_v5 }
 0x219   :  { %v418_v11 = vmul.f32 %v920_v60, %v396_v63  ;;  %639 = vrsqrt.f32 %v370_v62 }
 0x21a   :  { %v630_v12 = vpop.eup %629  ;;  %v371_v13 = vadd.f32 1e-05, %v355_v7  ;;  %v368_v1 = vadd.f32 1e-05, %v352_v10 }
 0x21b   :  { %v632_v15 = vpop.eup %631  ;;  %v440_v17 = vadd.f32 %v926_v6, %v418_v11  ;;  %v397_v18 = vmul.f32 %v630_v12, %v830_v23  ;;  %v321_v19 = vpop.xlane.xlu1 %320 }
 0x21c   :  { %v312_v20 = vpop.xlane.xlu0 %311  ;;  %v404_v21 = vmul.f32 %v632_v15, %v822_v16  ;;  %641 = vrsqrt.f32 %v371_v13  ;;  %v353_v22 = vmul.f32 0.03125, %v321_v19 }
 0x21d   :  { %v350_v25 = vmul.f32 0.03125, %v312_v20  ;;  %v571_v26 = vpack.c.bf16 %v440_v17, %v440_v17  ;;  %v419_v27 = vmul.f32 %v920_v60, %v397_v18  ;;  %643 = vrsqrt.f32 %v368_v1 }
 0x21e   :  { %v634_v28 = vpop.eup %633  ;;  %v426_v29 = vmul.f32 %v920_v60, %v404_v21  ;;  %v369_v30 = vadd.f32 1e-05, %v353_v22 }
 0x21f   :  { %v366_v31 = vadd.f32 1e-05, %v350_v25  ;;  %v636_v9 = vpop.eup %635  ;;  %521 = vst.msk [vmem:[%s1044_s5 + $0x8] sm:$0xf] %vm518_vm2, %v571_v26  ;;  %v441_v16 = vadd.f32 %v926_v6, %v419_v27  ;;  %v405_v23 = vmul.f32 %v634_v28, %v843_v33  ;;  %v315_v8 = vpop.xlane.xlu1 %314 }
 0x220   :  { %v336_v32 = vpop.xlane.xlu0 %335  ;;  %v448_v35 = vadd.f32 %v926_v6, %v426_v29  ;;  %v394_v36 = vmul.f32 %v636_v9, %v833_v24  ;;  %645 = vrsqrt.f32 %v369_v30  ;;  %v351_v37 = vmul.f32 0.03125, %v315_v8 }
 0x221   :  { %v572_v38 = vpack.c.bf16 %v441_v16, %v441_v16  ;;  %v427_v39 = vmul.f32 %v920_v60, %v405_v23  ;;  %647 = vrsqrt.f32 %v366_v31  ;;  %v358_v40 = vmul.f32 0.03125, %v336_v32 }
 0x222   :  { %v638_v41 = vpop.eup %637  ;;  %v579_v44 = vpack.c.bf16 %v448_v35, %v448_v35  ;;  %v416_v45 = vmul.f32 %v920_v60, %v394_v36  ;;  %v367_v46 = vadd.f32 1e-05, %v351_v37 }
 0x223   :  { %v640_v47 = vpop.eup %639  ;;  %522 = vst.msk [vmem:[%s1044_s5 + $0xc] sm:$0xf] %vm518_vm2, %v572_v38  ;;  %v449_v24 = vadd.f32 %v926_v6, %v427_v39  ;;  %v395_v33 = vmul.f32 %v638_v41, %v857_v42  ;;  %v374_v48 = vadd.f32 1e-05, %v358_v40  ;;  %v339_v49 = vpop.xlane.xlu1 %338 }
 0x224   :  { %v342_v50 = vpop.xlane.xlu0 %341  ;;  %529 = vst.msk [vmem:[%s1044_s5 + $0x28] sm:$0xf] %vm518_vm2, %v579_v44  ;;  %v438_v51 = vadd.f32 %v926_v6, %v416_v45  ;;  %v402_v53 = vmul.f32 %v640_v47, %v846_v34  ;;  %649 = vrsqrt.f32 %v367_v46  ;;  %v359_v55 = vmul.f32 0.03125, %v339_v49 }
 0x225   :  { %v580_v56 = vpack.c.bf16 %v449_v24, %v449_v24  ;;  %v417_v57 = vmul.f32 %v920_v60, %v395_v33  ;;  %651 = vrsqrt.f32 %v374_v48  ;;  %v360_v61 = vmul.f32 0.03125, %v342_v50 }
 0x226   :  { %v642_v42 = vpop.eup %641  ;;  %v569_v62 = vpack.c.bf16 %v438_v51, %v438_v51  ;;  %v424_v63 = vmul.f32 %v920_v60, %v402_v53  ;;  %v375_v4 = vadd.f32 1e-05, %v359_v55 }
 0x227   :  { %v644_v5 = vpop.eup %643  ;;  %530 = vst.msk [vmem:[%s1044_s5 + $0x2c] sm:$0xf] %vm518_vm2, %v580_v56  ;;  %v439_v34 = vadd.f32 %v926_v6, %v417_v57  ;;  %v403_v7 = vmul.f32 %v642_v42, %v854_v43  ;;  %v376_v10 = vadd.f32 1e-05, %v360_v61  ;;  %v345_v11 = vpop.xlane.xlu1 %344 }
 0x228   :  { %519 = vst.msk [vmem:[%s1044_s5] sm:$0xf] %vm518_vm2, %v569_v62  ;;  %v446_v12 = vadd.f32 %v926_v6, %v424_v63  ;;  %v400_v13 = vmul.f32 %v644_v5, %v870_v54  ;;  %653 = vrsqrt.f32 %v375_v4  ;;  %v361_v1 = vmul.f32 0.03125, %v345_v11 }
 0x229   :  { %v570_v15 = vpack.c.bf16 %v439_v34, %v439_v34  ;;  %v425_v17 = vmul.f32 %v920_v60, %v403_v7  ;;  %655 = vrsqrt.f32 %v376_v10 }
 0x22a   :  { %v646_v18 = vpop.eup %645  ;;  %v577_v19 = vpack.c.bf16 %v446_v12, %v446_v12  ;;  %v422_v43 = vmul.f32 %v920_v60, %v400_v13  ;;  %v377_v20 = vadd.f32 1e-05, %v361_v1 }
 0x22b   :  { %v648_v21 = vpop.eup %647  ;;  %520 = vst.msk [vmem:[%s1044_s5 + $0x4] sm:$0xf] %vm518_vm2, %v570_v15  ;;  %v447_v22 = vadd.f32 %v926_v6, %v425_v17  ;;  %v401_v54 = vmul.f32 %v646_v18, %v867_v52 }
 0x22c   :  { %527 = vst.msk [vmem:[%s1044_s5 + $0x20] sm:$0xf] %vm518_vm2, %v577_v19  ;;  %v444_v25 = vadd.f32 %v926_v6, %v422_v43  ;;  %v398_v26 = vmul.f32 %v648_v21, %v881_v58  ;;  %657 = vrsqrt.f32 %v377_v20 }
 0x22d   :  { %v578_v27 = vpack.c.bf16 %v447_v22, %v447_v22  ;;  %v423_v28 = vmul.f32 %v920_v60, %v401_v54 }
 0x22e   :  { %v650_v29 = vpop.eup %649  ;;  %v575_v30 = vpack.c.bf16 %v444_v25, %v444_v25  ;;  %v420_v31 = vmul.f32 %v920_v60, %v398_v26 }
 0x22f   :  { %v652_v9 = vpop.eup %651  ;;  %528 = vst.msk [vmem:[%s1044_s5 + $0x24] sm:$0xf] %vm518_vm2, %v578_v27  ;;  %v445_v52 = vadd.f32 %v926_v6, %v423_v28  ;;  %v399_v16 = vmul.f32 %v650_v29, %v878_v59 }
 0x230   :  { %525 = vst.msk [vmem:[%s1044_s5 + $0x18] sm:$0xf] %vm518_vm2, %v575_v30  ;;  %v442_v58 = vadd.f32 %v926_v6, %v420_v31  ;;  %v406_v23 = vmul.f32 %v652_v9, %v894_v14 }
 0x231   :  { %v576_v8 = vpack.c.bf16 %v445_v52, %v445_v52  ;;  %v421_v32 = vmul.f32 %v920_v60, %v399_v16 }
 0x232   :  { %v654_v35 = vpop.eup %653  ;;  %v573_v36 = vpack.c.bf16 %v442_v58, %v442_v58  ;;  %v428_v37 = vmul.f32 %v920_v60, %v406_v23 }
 0x233   :  { %v656_v38 = vpop.eup %655  ;;  %526 = vst.msk [vmem:[%s1044_s5 + $0x1c] sm:$0xf] %vm518_vm2, %v576_v8  ;;  %v443_v59 = vadd.f32 %v926_v6, %v421_v32  ;;  %v407_v39 = vmul.f32 %v654_v35, %v891_v0 }
 0x234   :  { %523 = vst.msk [vmem:[%s1044_s5 + $0x10] sm:$0xf] %vm518_vm2, %v573_v36  ;;  %v450_v14 = vadd.f32 %v926_v6, %v428_v37  ;;  %v408_v40 = vmul.f32 %v656_v38, %v905_v2 }
 0x235   :  { %v574_v41 = vpack.c.bf16 %v443_v59, %v443_v59  ;;  %v429_v44 = vmul.f32 %v920_v60, %v407_v39 }
 0x236   :  { %v658_v45 = vpop.eup %657  ;;  %v581_v46 = vpack.c.bf16 %v450_v14, %v450_v14  ;;  %v430_v47 = vmul.f32 %v920_v60, %v408_v40 }
 0x237   :  { %524 = vst.msk [vmem:[%s1044_s5 + $0x14] sm:$0xf] %vm518_vm2, %v574_v41  ;;  %v451_v0 = vadd.f32 %v926_v6, %v429_v44  ;;  %v409_v24 = vmul.f32 %v658_v45, %v902_v3 }
 0x238   :  { %531 = vst.msk [vmem:[%s1044_s5 + $0x30] sm:$0xf] %vm518_vm2, %v581_v46  ;;  %v452_v2 = vadd.f32 %v926_v6, %v430_v47 }
 0x239   :  { %v582_v33 = vpack.c.bf16 %v451_v0, %v451_v0  ;;  %v431_v48 = vmul.f32 %v920_v60, %v409_v24 }
 0x23a   :  { %v583_v49 = vpack.c.bf16 %v452_v2, %v452_v2 }
 0x23b   :  { %532 = vst.msk [vmem:[%s1044_s5 + $0x34] sm:$0xf] %vm518_vm2, %v582_v33  ;;  %v453_v50 = vadd.f32 %v926_v6, %v431_v48 }
 0x23c   :  { %533 = vst.msk [vmem:[%s1044_s5 + $0x38] sm:$0xf] %vm518_vm2, %v583_v49 }
 0x23d   :  { %v584_v3 = vpack.c.bf16 %v453_v50, %v453_v50 }
 0x23f   :  { %534 = vst.msk [vmem:[%s1044_s5 + $0x3c] sm:$0xf] %vm518_vm2, %v584_v3 }

// kernel: _lambda_.10
= control target key start
LH: loop header
LB: loop body
LE: loop exit
PB: predicated region body
PF: predicated region fallthrough
CT: control target
= control target key end

     0   :  { %vm224_vm0 = vcmask 519168   ;;  %s379_s0 = inlined_call_operand.vmem [shape: bf16[32,128], index: 0, kind: input, shape index: {}]   ;;  %s380_s3 = inlined_call_operand.vmem [shape: bf16[128,64], index: 3, kind: input, shape index: {}]   ;;  %s381_s1 = inlined_call_operand.vmem [shape: f32[1,128], index: 1, kind: input, shape index: {}]   ;;  %s382_s2 = inlined_call_operand.vmem [shape: f32[1,128], index: 2, kind: input, shape index: {}]   ;;  %s383_s4 = inlined_call_operand.vmem [shape: bf16[32,64], index: 4, kind: output, shape index: {}]  }
   0x1   :  { %v252_v0 = vld [vmem:[%s379_s0] sm:$0xff]   ;;  %v259_v1 = vld [vmem:[%s379_s0 + $0x8] sm:$0xff]   ;;  %v292_v24 = vld [vmem:[%s380_s3 + $0x10] sm:$0xff]  }
   0x2   :  { %v253_v2 = vunpack.c.l.bf16 %v252_v0  ;;  %v257_v3 = vunpack.c.l.bf16 %v259_v1  ;;  %v254_v4 = vunpack.c.h.bf16 %v252_v0  ;;  %v258_v5 = vunpack.c.h.bf16 %v259_v1  ;;  %v290_v6 = vld [vmem:[%s380_s3] sm:$0xff]   ;;  %v291_v23 = vld [vmem:[%s380_s3 + $0x8] sm:$0xff]   ;;  %v293_v25 = vld [vmem:[%s380_s3 + $0x18] sm:$0xff]  }
   0x3   :  { %270 = vmatprep.subr.bf16.mxu0 %v290_v6  ;;  %v294_v26 = vld [vmem:[%s380_s3 + $0x20] sm:$0xff]   ;;  %v295_v27 = vld [vmem:[%s380_s3 + $0x28] sm:$0xff]   ;;  %v296_v28 = vld [vmem:[%s380_s3 + $0x30] sm:$0xff]  }
   0x4   :  { %28 = vadd.xlane.f32.xlu0 %v253_v2  ;;  %32 = vadd.xlane.f32.xlu1 %v257_v3  ;;  %v297_v29 = vld [vmem:[%s380_s3 + $0x38] sm:$0xff]   ;;  %v233_v44 = vld [vmem:[%s381_s1] ss:$0 sm:$0xff] }
   0x5   :  { %271 = vmatpush3.bf16.msra.mxu0 %v290_v6  ;;  %v234_v49 = vld [vmem:[%s382_s2] ss:$0 sm:$0xff] }
   0x6   :  { %272 = vmatprep.subr.bf16.mxu0 %v291_v23 }
   0x8   :  { %30 = vadd.xlane.f32.xlu0 %v254_v4  ;;  %34 = vadd.xlane.f32.xlu1 %v258_v5 }
   0x9   :  { %273 = vmatpush3.bf16.msra.mxu0 %v291_v23 }
   0xa   :  { %274 = vmatprep.subr.bf16.mxu0 %v292_v24 }
   0xd   :  { %275 = vmatpush3.bf16.msra.mxu0 %v292_v24 }
   0xe   :  { %276 = vmatprep.subr.bf16.mxu0 %v293_v25 }
  0x11   :  { %277 = vmatpush3.bf16.msra.mxu0 %v293_v25 }
  0x12   :  { %278 = vmatprep.subr.bf16.mxu0 %v294_v26 }
  0x15   :  { %279 = vmatpush3.bf16.msra.mxu0 %v294_v26 }
  0x16   :  { %280 = vmatprep.subr.bf16.mxu0 %v295_v27 }
  0x19   :  { %281 = vmatpush3.bf16.msra.mxu0 %v295_v27 }
  0x1a   :  { %282 = vmatprep.subr.bf16.mxu0 %v296_v28 }
  0x1d   :  { %283 = vmatpush3.bf16.msra.mxu0 %v296_v28 }
  0x1e   :  { %284 = vmatprep.subr.bf16.mxu0 %v297_v29 }
  0x21   :  { %285 = vmatpush3.bf16.msra.mxu0 %v297_v29 }
  0x91   :  { %v29_v7 = vpop.xlane.xlu0 %28  ;;  %v33_v8 = vpop.xlane.xlu1 %32 }
  0x92   :  { %v37_v9 = vmul.f32 0.0078125, %v29_v7  ;;  %v39_v10 = vmul.f32 0.0078125, %v33_v8 }
  0x94   :  { %v41_v11 = vsub.f32 %v253_v2, %v37_v9  ;;  %v43_v12 = vsub.f32 %v257_v3, %v39_v10 }
  0x95   :  { %v31_v13 = vpop.xlane.xlu0 %30  ;;  %v35_v14 = vpop.xlane.xlu1 %34 }
  0x96   :  { %v38_v15 = vmul.f32 0.0078125, %v31_v13  ;;  %v45_v16 = vmul.f32 %v41_v11, %v41_v11  ;;  %v40_v17 = vmul.f32 0.0078125, %v35_v14  ;;  %v47_v20 = vmul.f32 %v43_v12, %v43_v12 }
  0x98   :  { %v42_v18 = vsub.f32 %v254_v4, %v38_v15  ;;  %49 = vadd.xlane.f32.xlu0 %v45_v16  ;;  %v44_v19 = vsub.f32 %v258_v5, %v40_v17 }
  0x9a   :  { %v46_v21 = vmul.f32 %v42_v18, %v42_v18  ;;  %v48_v22 = vmul.f32 %v44_v19, %v44_v19 }
  0x9c   :  { %53 = vadd.xlane.f32.xlu0 %v47_v20  ;;  %51 = vadd.xlane.f32.xlu1 %v46_v21 }
  0xa0   :  { %55 = vadd.xlane.f32.xlu1 %v48_v22 }
 0x125   :  { %v50_v30 = vpop.xlane.xlu0 %49 }
 0x126   :  { %v57_v31 = vmul.f32 0.0078125, %v50_v30 }
 0x128   :  { %v61_v32 = vadd.f32 1e-05, %v57_v31 }
 0x129   :  { %v52_v33 = vpop.xlane.xlu1 %51  ;;  %v54_v34 = vpop.xlane.xlu0 %53 }
 0x12a   :  { %298 = vrsqrt.f32 %v61_v32  ;;  %v58_v35 = vmul.f32 0.0078125, %v52_v33  ;;  %v59_v36 = vmul.f32 0.0078125, %v54_v34 }
 0x12c   :  { %v62_v37 = vadd.f32 1e-05, %v58_v35  ;;  %v63_v38 = vadd.f32 1e-05, %v59_v36 }
 0x12d   :  { %v56_v39 = vpop.xlane.xlu1 %55 }
 0x12e   :  { %300 = vrsqrt.f32 %v62_v37  ;;  %v60_v40 = vmul.f32 0.0078125, %v56_v39 }
 0x12f   :  { %302 = vrsqrt.f32 %v63_v38 }
 0x130   :  { %v64_v41 = vadd.f32 1e-05, %v60_v40 }
 0x132   :  { %304 = vrsqrt.f32 %v64_v41 }
 0x134   :  { %v299_v42 = vpop.eup %298 }
 0x135   :  { %v69_v43 = vmul.f32 %v299_v42, %v41_v11 }
 0x137   :  { %v79_v48 = vmul.f32 %v233_v44, %v69_v43 }
 0x138   :  { %v301_v45 = vpop.eup %300 }
 0x139   :  { %v303_v46 = vpop.eup %302  ;;  %v70_v47 = vmul.f32 %v301_v45, %v42_v18  ;;  %v89_v53 = vadd.f32 %v234_v49, %v79_v48 }
 0x13a   :  { %v71_v50 = vmul.f32 %v303_v46, %v43_v12 }
 0x13b   :  { %v80_v51 = vmul.f32 %v233_v44, %v70_v47 }
 0x13c   :  { %v305_v52 = vpop.eup %304  ;;  %v81_v56 = vmul.f32 %v233_v44, %v71_v50 }
 0x13d   :  { %v90_v54 = vadd.f32 %v234_v49, %v80_v51  ;;  %v72_v55 = vmul.f32 %v305_v52, %v44_v19 }
 0x13e   :  { %v91_v59 = vadd.f32 %v234_v49, %v81_v56 }
 0x13f   :  { %v109_v57 = vpack.c.bf16 %v90_v54, %v89_v53  ;;  %v82_v58 = vmul.f32 %v233_v44, %v72_v55 }
 0x141   :  { %286 = vmatprep.mubr.bf16.mxu0 %v109_v57  ;;  %v92_v60 = vadd.f32 %v234_v49, %v82_v58 }
 0x143   :  { %v110_v61 = vpack.c.bf16 %v92_v60, %v91_v59 }
 0x145   :  { %287 = vmatmul.mubr.bf16.vlgmr.msra.gmra.mrb[0].mxu0 %v110_v61 }
 0x218   :  { %v288_v62 = vpop.f32.mrb[0].mxu0 }
 0x219   :  { %v249_v63 = vpack.c.bf16 %v288_v62, %v288_v62  ;;  %v193_v0 = vpop.f32.mrb[1].mxu0 }
 0x21a   :  { %v247_v1 = vpack.c.bf16 %v193_v0, %v193_v0  ;;  %v289_v2 = vpop.f32.mrb[2].mxu0 }
 0x21b   :  { %227 = vst.msk [vmem:[%s383_s4 + $0x8] sm:$0xf] %vm224_vm0, %v249_v63  ;;  %v250_v3 = vpack.c.bf16 %v289_v2, %v289_v2  ;;  %v196_v4 = vpop.f32.mrb[3].mxu0 }
 0x21c   :  { %225 = vst.msk [vmem:[%s383_s4] sm:$0xf] %vm224_vm0, %v247_v1  ;;  %v248_v5 = vpack.c.bf16 %v196_v4, %v196_v4 }
 0x21d   :  { %228 = vst.msk [vmem:[%s383_s4 + $0xc] sm:$0xf] %vm224_vm0, %v250_v3 }
 0x21e   :  { %226 = vst.msk [vmem:[%s383_s4 + $0x4] sm:$0xf] %vm224_vm0, %v248_v5 }

// kernel: _lambda_.8
= control target key start
LH: loop header
LB: loop body
LE: loop exit
PB: predicated region body
PF: predicated region fallthrough
CT: control target
= control target key end

     0   :  { %s3107_s29 = smov 0   ;;  %s3109_s30 = smov 0   ;;  %s3746_s0 = inlined_call_operand.vmem [shape: bf16[128,32], index: 0, kind: input, shape index: {}]   ;;  %s3747_s1 = inlined_call_operand.vmem [shape: f32[1,32], index: 1, kind: input, shape index: {}]   ;;  %s3748_s2 = inlined_call_operand.vmem [shape: f32[1,32], index: 2, kind: input, shape index: {}]   ;;  %s3749_s3 = inlined_call_operand.vmem [shape: bf16[32,96], index: 3, kind: input, shape index: {}]   ;;  %s3750_s4 = inlined_call_operand.vmem [shape: f32[1,96], index: 4, kind: input, shape index: {}]   ;;  %s3751_s5 = inlined_call_operand.vmem [shape: bf16[32,32], index: 5, kind: input, shape index: {}]   ;;  %s3752_s6 = inlined_call_operand.vmem [shape: f32[1,32], index: 6, kind: input, shape index: {}]   ;;  %s3753_s7 = inlined_call_operand.vmem [shape: f32[1,32], index: 7, kind: input, shape index: {}]   ;;  %s3754_s8 = inlined_call_operand.vmem [shape: f32[1,32], index: 8, kind: input, shape index: {}]   ;;  %s3755_s9 = inlined_call_operand.vmem [shape: bf16[32,128], index: 9, kind: input, shape index: {}]   ;;  %s3756_s10 = inlined_call_operand.vmem [shape: f32[1,128], index: 10, kind: input, shape index: {}]   ;;  %s3757_s11 = inlined_call_operand.vmem [shape: bf16[128,32], index: 11, kind: input, shape index: {}]   ;;  %s3758_s12 = inlined_call_operand.vmem [shape: f32[1,32], index: 12, kind: input, shape index: {}]   ;;  %s3759_s13 = inlined_call_operand.vmem [shape: f32[2,16,16], index: 13, kind: input, shape index: {}]   ;;  %s3760_s14 = inlined_call_operand.vmem [shape: bf16[128,32], index: 14, kind: output, shape index: {}]  }
   0x1   :  { %s3111_s15 = smov 0  }
   0x2 LB: > { %s36_s16 = sadd.s32 1, %s3020_s30  ;;  %p2496_p0 = scmp.ge.s32.totalorder %s3024_s15, 1  ;;  %s3024_s15 = sphi %s3111_s15, %s24_s15   ;;  %s3020_s30 = sphi %s3109_s30, %s3762_s30   ;;  %s3016_s29 = sphi %s3107_s29, %s3761_s29  }
   0x3   : > { %p38_p1 = scmp.ge.s32.totalorder %s36_s16, 2  ;;  %p431_p2 = scmp.lt.s32.totalorder %s3024_s15, 3 }
   0x5   : > { %s3764_s16 = smov (%p38_p1, %s36_s16), 0  ;;  %p432_p3 = pnand %p2496_p0, %p431_p2 }
   0x6   : > { %s2497_s17 = sshll.u32 (!%p432_p3), %s3016_s29, 3  ;;  %vm514_vm0 = vcmask (!%p432_p3), 261120   ;;  %v2876_v60 = vld [vmem:[%s3749_s3] sm:$0xff] (!%p432_p3)   ;;  %v2877_v61 = vld [vmem:[%s3749_s3 + $0x8] sm:$0xff] (!%p432_p3)   ;;  %vm3027_vm1 = vmmov (!%p432_p3), 0   ;;  %s3029_s22 = smov (!%p432_p3), 96  }
   0x7   : > { %435 = sbr.rel (%p432_p3) target bundleno = 2748 (0xabc), region = 76  ;;  %p481_p4 = scmp.lt.s32.totalorder (!%p432_p3), %s2497_s17, 15  ;;  %2650 = vmatprep.subr.bf16.mxu1 (!%p432_p3), %v2876_v60  ;;  %vm795_vm2 = vcmask (!%p432_p3), 130048   ;;  %vm2415_vm3 = vcmask (!%p432_p3), 257024  }
   0x8   : > { %2651 = vmatpush3.bf16.msra.mxu1 (!%p432_p3), %v2876_v60  ;;  %s3030_s20 = smov (!%p432_p3), 64   ;;  %s3031_s25 = smov (!%p432_p3), 16  }
   0x9   : > { %2652 = vmatprep.subr.bf16.mxu1 (!%p432_p3), %v2877_v61 }
   0xc   : > { %2653 = vmatpush3.bf16.msra.mxu1 (!%p432_p3), %v2877_v61 }
   0xe   : > { %s3766_s17 = smov (!%p481_p4, %s2497_s17), 15 }
   0xf   : > { %s2498_s18 = sshll.u32 %s3766_s17, 2 }
  0x10   : > { %s484_s21 = scalar_lea.vmem %s3746_s0, %s2498_s18 }
  0x11   : > { %v2570_v0 = vld [vmem:[%s484_s21] sm:$0xff]   ;;  %v2585_v1 = vld [vmem:[%s484_s21 + $0x8] sm:$0xff]   ;;  %v2586_v6 = vld [vmem:[%s484_s21 + $0x10] sm:$0xff]  }
  0x12   : > { %v3133_v2 = vunpack.c.l.bf16 %v2570_v0  ;;  %v3135_v3 = vunpack.c.l.bf16 %v2585_v1  ;;  %v3137_v4 = vunpack.c.h.bf16 %v2570_v0  ;;  %v3139_v5 = vunpack.c.h.bf16 %v2585_v1  ;;  %v2587_v13 = vld [vmem:[%s484_s21 + $0x18] sm:$0xff]   ;;  %s3028_s21 = smov 112  }
  0x13   : > { %v3149_v11 = vunpack.c.l.bf16 %v2586_v6  ;;  %v3151_v12 = vunpack.c.h.bf16 %v2586_v6  ;;  %v3157_v16 = vunpack.c.l.bf16 %v2587_v13  ;;  %v3159_v17 = vunpack.c.h.bf16 %v2587_v13 }
  0x14   : > { %v515_v7 = vsel %vm514_vm0, %v3133_v2, 0.0  ;;  %v521_v8 = vsel %vm514_vm0, %v3135_v3, 0.0  ;;  %v518_v9 = vsel %vm514_vm0, %v3137_v4, 0.0  ;;  %v524_v10 = vsel %vm514_vm0, %v3139_v5, 0.0 }
  0x15   : > { %516 = vadd.xlane.f32.xlu0 %v515_v7  ;;  %522 = vadd.xlane.f32.xlu1 %v521_v8  ;;  %v527_v14 = vsel %vm514_vm0, %v3149_v11, 0.0  ;;  %v530_v15 = vsel %vm514_vm0, %v3151_v12, 0.0  ;;  %v533_v18 = vsel %vm514_vm0, %v3157_v16, 0.0  ;;  %v536_v19 = vsel %vm514_vm0, %v3159_v17, 0.0 }
  0x19   : > { %519 = vadd.xlane.f32.xlu0 %v518_v9  ;;  %525 = vadd.xlane.f32.xlu1 %v524_v10 }
  0x1d   : > { %528 = vadd.xlane.f32.xlu0 %v527_v14  ;;  %531 = vadd.xlane.f32.xlu1 %v530_v15 }
  0x21   : > { %534 = vadd.xlane.f32.xlu0 %v533_v18  ;;  %537 = vadd.xlane.f32.xlu1 %v536_v19 }
  0xa2   : > { %v517_v20 = vpop.xlane.xlu0 %516  ;;  %v523_v21 = vpop.xlane.xlu1 %522 }
  0xa3   : > { %v540_v22 = vmul.f32 0.03125, %v517_v20  ;;  %v542_v23 = vmul.f32 0.03125, %v523_v21 }
  0xa5   : > { %v3166_v24 = vsub.f32 %v3133_v2, %v540_v22  ;;  %v3169_v25 = vsub.f32 %v3135_v3, %v542_v23 }
  0xa6   : > { %v520_v26 = vpop.xlane.xlu0 %519  ;;  %v526_v27 = vpop.xlane.xlu1 %525 }
  0xa7   : > { %v541_v28 = vmul.f32 0.03125, %v520_v26  ;;  %v543_v29 = vmul.f32 0.03125, %v526_v27  ;;  %v556_v30 = vmul.f32 %v3166_v24, %v3166_v24  ;;  %v558_v31 = vmul.f32 %v3169_v25, %v3169_v25 }
  0xa9   : > { %v3176_v32 = vsub.f32 %v3137_v4, %v541_v28  ;;  %v3179_v33 = vsub.f32 %v3139_v5, %v543_v29  ;;  %v564_v34 = vsel %vm514_vm0, %v556_v30, 0.0  ;;  %v570_v37 = vsel %vm514_vm0, %v558_v31, 0.0 }
  0xaa   : > { %565 = vadd.xlane.f32.xlu0 %v564_v34  ;;  %v529_v35 = vpop.xlane.xlu0 %528  ;;  %v532_v36 = vpop.xlane.xlu1 %531 }
  0xab   : > { %v544_v38 = vmul.f32 0.03125, %v529_v35  ;;  %v545_v39 = vmul.f32 0.03125, %v532_v36  ;;  %v557_v40 = vmul.f32 %v3176_v32, %v3176_v32  ;;  %v559_v41 = vmul.f32 %v3179_v33, %v3179_v33  ;;  %v2501_v35 = vld [vmem:[%s3747_s1] ss:$0 sm:$0xff] }
  0xad   : > { %v3188_v42 = vsub.f32 %v3149_v11, %v544_v38  ;;  %v3191_v43 = vsub.f32 %v3151_v12, %v545_v39  ;;  %v567_v44 = vsel %vm514_vm0, %v557_v40, 0.0  ;;  %v573_v47 = vsel %vm514_vm0, %v559_v41, 0.0 }
  0xae   : > { %571 = vadd.xlane.f32.xlu0 %v570_v37  ;;  %568 = vadd.xlane.f32.xlu1 %v567_v44  ;;  %v535_v45 = vpop.xlane.xlu0 %534  ;;  %v538_v46 = vpop.xlane.xlu1 %537 }
  0xaf   : > { %v546_v48 = vmul.f32 0.03125, %v535_v45  ;;  %v547_v49 = vmul.f32 0.03125, %v538_v46  ;;  %v560_v50 = vmul.f32 %v3188_v42, %v3188_v42  ;;  %v561_v51 = vmul.f32 %v3191_v43, %v3191_v43 }
  0xb1   : > { %v3200_v52 = vsub.f32 %v3157_v16, %v546_v48  ;;  %v3203_v53 = vsub.f32 %v3159_v17, %v547_v49  ;;  %v576_v54 = vsel %vm514_vm0, %v560_v50, 0.0  ;;  %v579_v55 = vsel %vm514_vm0, %v561_v51, 0.0 }
  0xb2   : > { %574 = vadd.xlane.f32.xlu1 %v573_v47  ;;  %577 = vadd.xlane.f32.xlu0 %v576_v54 }
  0xb3   : > { %v562_v56 = vmul.f32 %v3200_v52, %v3200_v52  ;;  %v563_v57 = vmul.f32 %v3203_v53, %v3203_v53 }
  0xb5   : > { %v582_v58 = vsel %vm514_vm0, %v562_v56, 0.0  ;;  %v585_v59 = vsel %vm514_vm0, %v563_v57, 0.0 }
  0xb6   : > { %580 = vadd.xlane.f32.xlu1 %v579_v55  ;;  %583 = vadd.xlane.f32.xlu0 %v582_v58 }
  0xba   : > { %586 = vadd.xlane.f32.xlu1 %v585_v59 }
 0x137   : > { %v566_v62 = vpop.xlane.xlu0 %565 }
 0x138   : > { %v588_v63 = vmul.f32 0.03125, %v566_v62 }
 0x13a   : > { %v596_v0 = vadd.f32 1e-05, %v588_v63 }
 0x13b   : > { %v569_v1 = vpop.xlane.xlu1 %568  ;;  %v572_v6 = vpop.xlane.xlu0 %571 }
 0x13c   : > { %2890 = vrsqrt.f32 %v596_v0  ;;  %v589_v7 = vmul.f32 0.03125, %v569_v1  ;;  %v590_v8 = vmul.f32 0.03125, %v572_v6 }
 0x13e   : > { %v597_v9 = vadd.f32 1e-05, %v589_v7  ;;  %v598_v10 = vadd.f32 1e-05, %v590_v8 }
 0x13f   : > { %v575_v13 = vpop.xlane.xlu1 %574  ;;  %v578_v14 = vpop.xlane.xlu0 %577 }
 0x140   : > { %2892 = vrsqrt.f32 %v597_v9  ;;  %v591_v15 = vmul.f32 0.03125, %v575_v13  ;;  %v592_v18 = vmul.f32 0.03125, %v578_v14 }
 0x141   : > { %2894 = vrsqrt.f32 %v598_v10  ;;  %v2503_v10 = vld [vmem:[%s3750_s4] ss:$0 sm:$0xff] }
 0x142   : > { %v599_v19 = vadd.f32 1e-05, %v591_v15  ;;  %v600_v20 = vadd.f32 1e-05, %v592_v18 }
 0x143   : > { %v581_v21 = vpop.xlane.xlu1 %580  ;;  %v584_v22 = vpop.xlane.xlu0 %583 }
 0x144   : > { %2896 = vrsqrt.f32 %v599_v19  ;;  %v593_v23 = vmul.f32 0.03125, %v581_v21  ;;  %v594_v26 = vmul.f32 0.03125, %v584_v22 }
 0x145   : > { %2898 = vrsqrt.f32 %v600_v20 }
 0x146   : > { %v2891_v27 = vpop.eup %2890  ;;  %v601_v28 = vadd.f32 1e-05, %v593_v23  ;;  %v602_v29 = vadd.f32 1e-05, %v594_v26 }
 0x147   : > { %v587_v30 = vpop.xlane.xlu1 %586  ;;  %v612_v31 = vmul.f32 %v2891_v27, %v3166_v24  ;;  %v2502_v24 = vld [vmem:[%s3748_s2] ss:$0 sm:$0xff] }
 0x148   : > { %2900 = vrsqrt.f32 %v601_v28  ;;  %v595_v34 = vmul.f32 0.03125, %v587_v30 }
 0x149   : > { %2902 = vrsqrt.f32 %v602_v29  ;;  %v626_v40 = vmul.f32 %v2501_v35, %v612_v31 }
 0x14a   : > { %v2893_v36 = vpop.eup %2892  ;;  %v603_v37 = vadd.f32 1e-05, %v595_v34 }
 0x14b   : > { %v2895_v38 = vpop.eup %2894  ;;  %v613_v39 = vmul.f32 %v2893_v36, %v3176_v32  ;;  %v640_v48 = vadd.f32 %v2502_v24, %v626_v40 }
 0x14c   : > { %v614_v41 = vmul.f32 %v2895_v38, %v3169_v25  ;;  %2904 = vrsqrt.f32 %v603_v37 }
 0x14d   : > { %v627_v44 = vmul.f32 %v2501_v35, %v613_v39 }
 0x14e   : > { %v2897_v45 = vpop.eup %2896  ;;  %v628_v50 = vmul.f32 %v2501_v35, %v614_v41 }
 0x14f   : > { %v2899_v46 = vpop.eup %2898  ;;  %v615_v47 = vmul.f32 %v2897_v45, %v3179_v33  ;;  %v641_v49 = vadd.f32 %v2502_v24, %v627_v44 }
 0x150   : > { %v616_v51 = vmul.f32 %v2899_v46, %v3188_v42  ;;  %v642_v57 = vadd.f32 %v2502_v24, %v628_v50 }
 0x151   : > { %v653_v54 = vpack.c.bf16 %v641_v49, %v640_v48  ;;  %v629_v32 = vmul.f32 %v2501_v35, %v615_v47 }
 0x152   : > { %v2901_v55 = vpop.eup %2900  ;;  %v630_v59 = vmul.f32 %v2501_v35, %v616_v51 }
 0x153   : > { %v2903_v56 = vpop.eup %2902  ;;  %v617_v25 = vmul.f32 %v2901_v55, %v3191_v43  ;;  %2654 = vmatprep.mubr.msk.bf16.mxu1 %vm514_vm0, %v653_v54  ;;  %v643_v58 = vadd.f32 %v2502_v24, %v629_v32 }
 0x154   : > { %v618_v60 = vmul.f32 %v2903_v56, %v3200_v52  ;;  %v644_v42 = vadd.f32 %v2502_v24, %v630_v59 }
 0x155   : > { %v654_v61 = vpack.c.bf16 %v643_v58, %v642_v57  ;;  %v631_v33 = vmul.f32 %v2501_v35, %v617_v25 }
 0x156   : > { %v2905_v62 = vpop.eup %2904  ;;  %v632_v1 = vmul.f32 %v2501_v35, %v618_v60 }
 0x157   : > { %v619_v63 = vmul.f32 %v2905_v62, %v3203_v53  ;;  %2655 = vmatmul.mubr.msk.bf16.vlgmr.msra.gmra.mrb[0].mxu1 %vm514_vm0, %v654_v61  ;;  %v645_v0 = vadd.f32 %v2502_v24, %v631_v33  ;;  %v3026_v53 = vmov 0.0  }
 0x158   : > { %v646_v43 = vadd.f32 %v2502_v24, %v632_v1  ;;  %2662 = vmatprep.subr.bf16.mxu1 %v3026_v53  ;;  %2674 = vmatprep.subr.bf16.mxu0 %v3026_v53 }
 0x159   : > { %v655_v6 = vpack.c.bf16 %v645_v0, %v644_v42  ;;  %v633_v7 = vmul.f32 %v2501_v35, %v619_v63  ;;  %2676 = vmatprep.mubr.msk.bf16.mxu0 %vm3027_vm1, %v3026_v53 }
 0x15b   : > { %2658 = vmatprep.mubr.msk.bf16.mxu1 %vm514_vm0, %v655_v6  ;;  %v647_v8 = vadd.f32 %v2502_v24, %v633_v7 }
 0x15d   : > { %v656_v9 = vpack.c.bf16 %v647_v8, %v646_v43 }
 0x15f   : > { %2659 = vmatmul.mubr.msk.bf16.gmra.mrb[4].mxu1 %vm514_vm0, %v656_v9 }
 0x160   : > { %2664 = vmatprep.mubr.msk.bf16.mxu1 %vm3027_vm1, %v3026_v53 }
 0x22a   : > { %v2656_v52 = vpop.f32.mrb[0].mxu1 }
 0x22b   : > { %v721_v13 = vpop.f32.mrb[1].mxu1  ;;  %v730_v15 = vadd.f32 %v2656_v52, %v2503_v10 }
 0x22c   : > { %v2657_v14 = vpop.f32.mrb[2].mxu1  ;;  %v722_v20 = vadd.f32 %v2503_v10, %v721_v13  ;;  %v1193_v13 = vld [vmem:[%s3759_s13] sm:$0xff] }
 0x22d   : > { %v733_v18 = vadd.f32 %v2657_v14, %v2503_v10  ;;  %v724_v19 = vpop.f32.mrb[3].mxu1 }
 0x22e   : > { %v725_v21 = vadd.f32 %v2503_v10, %v724_v19 }
 0x22f   : > { %v2841_v22 = vpack.i.bf16 %v733_v18, %v730_v15  ;;  %v3242_v23 = vpack.c.bf16 %v733_v18, %v730_v15  ;;  %v1194_v15 = vld [vmem:[%s3759_s13 + $0x8] sm:$0xff] }
 0x230   : > { %v2836_v26 = vpack.i.bf16 %v725_v21, %v722_v20  ;;  %v3244_v27 = vpack.c.bf16 %v725_v21, %v722_v20 }
 0x231   : > { %2842 = vrot.lane.b32.xlu1 %v2841_v22, %s3028_s21 }
 0x232   : > { %2837 = vrot.lane.b32.xlu0 %v2836_v26, %s3028_s21  ;;  %v2660_v28 = vpop.f32.mrb[4].mxu1 }
 0x233   : > { %v737_v29 = vpop.f32.mrb[5].mxu1  ;;  %v746_v31 = vadd.f32 %v2660_v28, %v2503_v10 }
 0x234   : > { %v2661_v30 = vpop.f32.mrb[6].mxu1  ;;  %v738_v36 = vadd.f32 %v2503_v10, %v737_v29 }
 0x235   : > { %v749_v34 = vadd.f32 %v2661_v30, %v2503_v10  ;;  %v740_v35 = vpop.f32.mrb[7].mxu1 }
 0x236   : > { %v741_v37 = vadd.f32 %v2503_v10, %v740_v35  ;;  %793 = vrot.lane.b32.xlu0 %v3244_v27, %s3029_s22 }
 0x237   : > { %v2851_v38 = vpack.i.bf16 %v749_v34, %v746_v31  ;;  %v3252_v39 = vpack.c.bf16 %v749_v34, %v746_v31 }
 0x238   : > { %v2846_v40 = vpack.i.bf16 %v741_v37, %v738_v36  ;;  %v3254_v41 = vpack.c.bf16 %v741_v37, %v738_v36 }
 0x23a   : > { %2847 = vrot.lane.b32.xlu1 %v2846_v40, %s3028_s21  ;;  %894 = vrot.lane.b32.xlu0 %v3254_v41, %s3029_s22 }
 0x23e   : > { %2852 = vrot.lane.b32.xlu1 %v2851_v38, %s3028_s21 }
 0x242   : > { %844 = vrot.lane.b32.xlu1 %v3242_v23, %s3029_s22 }
 0x246   : > { %944 = vrot.lane.b32.xlu1 %v3252_v39, %s3029_s22 }
 0x2a3   : > { %v2843_v24 = vpop.permute.xlu1 %2842 }
 0x2a4   : > { %v2845_v44 = vunpack.i.h.bf16 %v2843_v24  ;;  %v2844_v45 = vunpack.i.l.bf16 %v2843_v24  ;;  %v2838_v46 = vpop.permute.xlu0 %2837 }
 0x2a5   : > { %v2840_v47 = vunpack.i.h.bf16 %v2838_v46  ;;  %v2839_v48 = vunpack.i.l.bf16 %v2838_v46 }
 0x2a6   : > { %v3262_v49 = vpack.c.bf16 %v2845_v44, %v2844_v45 }
 0x2a7   : > { %v3264_v50 = vpack.c.bf16 %v2840_v47, %v2839_v48 }
 0x2a8   : > { %1044 = vrot.lane.b32.xlu1 %v3262_v49, %s3029_s22  ;;  %v794_v51 = vpop.permute.xlu0 %793 }
 0x2a9   : > { %v800_v54 = vsel %vm795_vm2, %v794_v51, 0  ;;  %994 = vrot.lane.b32.xlu0 %v3264_v50, %s3029_s22 }
 0x2aa   : > { %2663 = vmatpush3.bf16.xpose.msra.mxu1 %v800_v54 }
 0x2ab   : > { %2668 = vmatprep.subr.bf16.mxu1 %v3026_v53 }
 0x2ac   : > { %v2848_v32 = vpop.permute.xlu1 %2847  ;;  %v895_v55 = vpop.permute.xlu0 %894 }
 0x2ad   : > { %v2850_v56 = vunpack.i.h.bf16 %v2848_v32  ;;  %v2849_v25 = vunpack.i.l.bf16 %v2848_v32  ;;  %v900_v57 = vsel %vm795_vm2, %v895_v55, 0 }
 0x2ae   : > { %2675 = vmatpush3.bf16.xpose.msra.mxu0 %v900_v57 }
 0x2af   : > { %v3273_v58 = vpack.c.bf16 %v2850_v56, %v2849_v25  ;;  %2686 = vmatprep.subr.bf16.mxu0 %v3026_v53 }
 0x2b0   : > { %v2853_v59 = vpop.permute.xlu1 %2852 }
 0x2b1   : > { %v2855_v60 = vunpack.i.h.bf16 %v2853_v59  ;;  %v2854_v61 = vunpack.i.l.bf16 %v2853_v59  ;;  %2665 = vmatmul.mubr.msk.bf16.vlgmr.msra.gmra.mrb[8].mxu1 %vm795_vm2, %v3244_v27  ;;  %1094 = vrot.lane.b32.xlu0 %v3273_v58, %s3029_s22 }
 0x2b2   : > { %2670 = vmatprep.mubr.msk.bf16.mxu1 %vm3027_vm1, %v3026_v53 }
 0x2b3   : > { %v3282_v33 = vpack.c.bf16 %v2855_v60, %v2854_v61  ;;  %v1195_v61 = vld [vmem:[%s3759_s13 + $0x10] sm:$0xff] }
 0x2b4   : > { %v845_v62 = vpop.permute.xlu1 %844 }
 0x2b5   : > { %v850_v63 = vsel %vm795_vm2, %v845_v62, 0  ;;  %1144 = vrot.lane.b32.xlu1 %v3282_v33, %s3029_s22  ;;  %2677 = vmatmul.mubr.msk.bf16.vlgmr.msra.gmra.mrb[0].mxu0 %vm795_vm2, %v3254_v41 }
 0x2b6   : > { %2669 = vmatpush3.bf16.xpose.msra.mxu1 %v850_v63  ;;  %2688 = vmatprep.mubr.msk.bf16.mxu0 %vm3027_vm1, %v3026_v53  ;;  %v1196_v63 = vld [vmem:[%s3759_s13 + $0x18] sm:$0xff] }
 0x2b7   : > { %2680 = vmatprep.subr.bf16.mxu1 %v3026_v53 }
 0x2b8   : > { %v945_v42 = vpop.permute.xlu1 %944 }
 0x2b9   : > { %v950_v0 = vsel %vm795_vm2, %v945_v42, 0 }
 0x2bd   : > { %2671 = vmatmul.mubr.msk.bf16.vlgmr.msra.gmra.mrb[12].mxu1 %vm795_vm2, %v3242_v23 }
 0x2be   : > { %2681 = vmatpush3.bf16.xpose.msra.mxu1 %v950_v0  ;;  %2682 = vmatprep.mubr.msk.bf16.mxu1 %vm3027_vm1, %v3026_v53 }
 0x2bf   : > { %2692 = vmatprep.subr.bf16.mxu1 %v3026_v53 }
 0x2c5   : > { %2683 = vmatmul.mubr.msk.bf16.vlgmr.msra.gmra.mrb[16].mxu1 %vm795_vm2, %v3252_v39 }
 0x2c6   : > { %2694 = vmatprep.mubr.msk.bf16.mxu1 %vm3027_vm1, %v3026_v53 }
 0x31a   : > { %v1045_v1 = vpop.permute.xlu1 %1044 }
 0x31b   : > { %v1050_v6 = vsel %vm795_vm2, %v1045_v1, 0  ;;  %v995_v7 = vpop.permute.xlu0 %994 }
 0x31c   : > { %v1000_v43 = vsel %vm795_vm2, %v995_v7, 0  ;;  %2693 = vmatpush3.bf16.xpose.msra.mxu1 %v1050_v6 }
 0x31d   : > { %2687 = vmatpush3.bf16.xpose.msra.mxu0 %v1000_v43  ;;  %2704 = vmatprep.subr.bf16.mxu1 %v3026_v53 }
 0x31e   : > { %2698 = vmatprep.subr.bf16.mxu0 %v3026_v53 }
 0x323   : > { %2695 = vmatmul.mubr.msk.bf16.vlgmr.msra.gmra.mrb[20].mxu1 %vm795_vm2, %v3262_v49  ;;  %v1095_v8 = vpop.permute.xlu0 %1094 }
 0x324   : > { %v1100_v9 = vsel %vm795_vm2, %v1095_v8, 0  ;;  %2689 = vmatmul.mubr.msk.bf16.vlgmr.msra.gmra.mrb[4].mxu0 %vm795_vm2, %v3264_v50  ;;  %2706 = vmatprep.mubr.msk.bf16.mxu1 %vm3027_vm1, %v3026_v53 }
 0x325   : > { %2699 = vmatpush3.bf16.xpose.msra.mxu0 %v1100_v9  ;;  %2700 = vmatprep.mubr.msk.bf16.mxu0 %vm3027_vm1, %v3026_v53 }
 0x326   : > { %2710 = vmatprep.subr.bf16.mxu0 %v3026_v53 }
 0x327   : > { %v1145_v52 = vpop.permute.xlu1 %1144 }
 0x328   : > { %v1150_v10 = vsel %vm795_vm2, %v1145_v52, 0 }
 0x329   : > { %2705 = vmatpush3.bf16.xpose.msra.mxu1 %v1150_v10 }
 0x32a   : > { %2716 = vmatprep.subr.bf16.mxu1 %v3026_v53 }
 0x32c   : > { %2701 = vmatmul.mubr.msk.bf16.vlgmr.msra.gmra.mrb[8].mxu0 %vm795_vm2, %v3273_v58 }
 0x32d   : > { %2712 = vmatprep.mubr.msk.bf16.mxu0 %vm3027_vm1, %v3026_v53 }
 0x330   : > { %2707 = vmatmul.mubr.msk.bf16.vlgmr.msra.gmra.mrb[24].mxu1 %vm795_vm2, %v3282_v33 }
 0x331   : > { %2718 = vmatprep.mubr.msk.bf16.mxu1 %vm3027_vm1, %v3026_v53 }
 0x384   : > { %v836_v14 = vpop.f32.mrb[8].mxu1 }
 0x385   : > { %v3332_v18 = vadd.f32 %v1193_v13, %v836_v14  ;;  %v2666_v19 = vpop.f32.mrb[9].mxu1 }
 0x386   : > { %v839_v20 = vpop.f32.mrb[10].mxu1 }
 0x387   : > { %v3334_v21 = vadd.f32 %v1194_v15, %v839_v20  ;;  %v2667_v22 = vpop.f32.mrb[11].mxu1  ;;  %v1213_v26 = vsel %vm795_vm2, %v3332_v18, -inf }
 0x388   : > { %v936_v28 = vpop.f32.mrb[0].mxu0  ;;  %1214 = vmax.xlane.f32.xlu0 %v1213_v26 }
 0x389   : > { %v2678_v29 = vpop.f32.mrb[1].mxu0  ;;  %v1216_v30 = vsel %vm795_vm2, %v3334_v21, -inf  ;;  %v3350_v47 = vadd.f32 %v1193_v13, %v936_v28 }
 0x38a   : > { %1217 = vmax.xlane.f32.xlu1 %v1216_v30  ;;  %v939_v31 = vpop.f32.mrb[2].mxu0 }
 0x38b   : > { %v3340_v34 = vadd.f32 %v1194_v15, %v939_v31  ;;  %v2679_v35 = vpop.f32.mrb[3].mxu0  ;;  %v1225_v57 = vsel %vm795_vm2, %v3350_v47, -inf }
 0x38d   : > { %v1228_v36 = vsel %vm795_vm2, %v3340_v34, -inf }
 0x38e   : > { %1229 = vmax.xlane.f32.xlu1 %v1228_v36 }
 0x390   : > { %v886_v37 = vpop.f32.mrb[12].mxu1 }
 0x391   : > { %v3344_v38 = vadd.f32 %v1193_v13, %v886_v37  ;;  %v2672_v40 = vpop.f32.mrb[13].mxu1 }
 0x392   : > { %v889_v24 = vpop.f32.mrb[14].mxu1 }
 0x393   : > { %v3346_v44 = vadd.f32 %v1194_v15, %v889_v24  ;;  %v2673_v45 = vpop.f32.mrb[15].mxu1  ;;  %v1219_v46 = vsel %vm795_vm2, %v3344_v38, -inf }
 0x394   : > { %1220 = vmax.xlane.f32.xlu0 %v1219_v46 }
 0x395   : > { %v1222_v48 = vsel %vm795_vm2, %v3346_v44, -inf }
 0x398   : > { %v986_v51 = vpop.f32.mrb[16].mxu1  ;;  %1223 = vmax.xlane.f32.xlu0 %v1222_v48 }
 0x399   : > { %v2684_v54 = vpop.f32.mrb[17].mxu1  ;;  %v3354_v55 = vadd.f32 %v1193_v13, %v986_v51 }
 0x39a   : > { %v989_v32 = vpop.f32.mrb[18].mxu1 }
 0x39b   : > { %v3356_v56 = vadd.f32 %v1194_v15, %v989_v32  ;;  %v2685_v25 = vpop.f32.mrb[19].mxu1  ;;  %v1231_v60 = vsel %vm795_vm2, %v3354_v55, -inf }
 0x39c   : > { %1226 = vmax.xlane.f32.xlu0 %v1225_v57 }
 0x39d   : > { %v1234_v59 = vsel %vm795_vm2, %v3356_v56, -inf }
 0x39e   : > { %1235 = vmax.xlane.f32.xlu1 %v1234_v59 }
 0x3a0   : > { %1232 = vmax.xlane.f32.xlu0 %v1231_v60 }
 0x3f6   : > { %v1086_v62 = vpop.f32.mrb[20].mxu1 }
 0x3f7   : > { %v3370_v42 = vadd.f32 %v1195_v61, %v1086_v62  ;;  %v1036_v0 = vpop.f32.mrb[4].mxu0  ;;  %v2696_v1 = vpop.f32.mrb[21].mxu1 }
 0x3f8   : > { %v2690_v6 = vpop.f32.mrb[5].mxu0  ;;  %v1089_v7 = vpop.f32.mrb[22].mxu1  ;;  %v3372_v43 = vadd.f32 %v1195_v61, %v1036_v0 }
 0x3f9   : > { %v3374_v8 = vadd.f32 %v1196_v63, %v1089_v7  ;;  %v1039_v9 = vpop.f32.mrb[6].mxu0  ;;  %v2697_v52 = vpop.f32.mrb[23].mxu1  ;;  %v1243_v10 = vsel %vm795_vm2, %v3370_v42, -inf }
 0x3fa   : > { %1244 = vmax.xlane.f32.xlu0 %v1243_v10  ;;  %v2691_v13 = vpop.f32.mrb[7].mxu0  ;;  %v3378_v14 = vadd.f32 %v1196_v63, %v1039_v9  ;;  %v1237_v19 = vsel %vm795_vm2, %v3372_v43, -inf }
 0x3fb   : > { %v1246_v15 = vsel %vm795_vm2, %v3374_v8, -inf }
 0x3fc   : > { %1247 = vmax.xlane.f32.xlu1 %v1246_v15  ;;  %v1240_v22 = vsel %vm795_vm2, %v3378_v14, -inf }
 0x3fe   : > { %1238 = vmax.xlane.f32.xlu0 %v1237_v19 }
 0x3ff   : > { %v1136_v20 = vpop.f32.mrb[8].mxu0 }
 0x400   : > { %1241 = vmax.xlane.f32.xlu1 %v1240_v22  ;;  %v2702_v26 = vpop.f32.mrb[9].mxu0  ;;  %v3390_v40 = vadd.f32 %v1195_v61, %v1136_v20 }
 0x401   : > { %v1139_v28 = vpop.f32.mrb[10].mxu0 }
 0x402   : > { %v3386_v29 = vadd.f32 %v1196_v63, %v1139_v28  ;;  %v2703_v30 = vpop.f32.mrb[11].mxu0  ;;  %v1249_v48 = vsel %vm795_vm2, %v3390_v40, -inf }
 0x403   : > { %v1186_v31 = vpop.f32.mrb[24].mxu1 }
 0x404   : > { %v3388_v35 = vadd.f32 %v1195_v61, %v1186_v31  ;;  %v2708_v36 = vpop.f32.mrb[25].mxu1 }
 0x405   : > { %v1189_v37 = vpop.f32.mrb[26].mxu1 }
 0x406   : > { %v3392_v24 = vadd.f32 %v1196_v63, %v1189_v37  ;;  %v2709_v45 = vpop.f32.mrb[27].mxu1  ;;  %v1255_v46 = vsel %vm795_vm2, %v3388_v35, -inf }
 0x407   : > { %1256 = vmax.xlane.f32.xlu0 %v1255_v46 }
 0x408   : > { %v1258_v62 = vsel %vm795_vm2, %v3392_v24, -inf }
 0x40b   : > { %1250 = vmax.xlane.f32.xlu0 %v1249_v48 }
 0x411   : > { %1444 = vrot.lane.b32.xlu1 %v3242_v23, %s3030_s20 }
 0x415   : > { %1491 = vrot.lane.b32.xlu1 %v3254_v41, %s3030_s20  ;;  %v1215_v51 = vpop.xlane.xlu0 %1214 }
 0x416   : > { %v1261_v25 = vsub.f32 %v3332_v18, %v1215_v51 }
 0x417   : > { %v1218_v9 = vpop.xlane.xlu1 %1217 }
 0x418   : > { %v1277_v59 = vmul.f32 1.442695, %v1261_v25  ;;  %v1262_v52 = vsub.f32 %v3334_v21, %v1218_v9 }
 0x419   : > { %1538 = vrot.lane.b32.xlu1 %v3252_v39, %s3030_s20 }
 0x41a   : > { %2906 = vpow2.f32 %v1277_v59  ;;  %v1279_v10 = vmul.f32 1.442695, %v1262_v52 }
 0x41b   : > { %v1230_v15 = vpop.xlane.xlu1 %1229 }
 0x41c   : > { %v1266_v19 = vsub.f32 %v3340_v34, %v1230_v15 }
 0x41e   : > { %v1287_v26 = vmul.f32 1.442695, %v1266_v19 }
 0x421   : > { %1397 = vrot.lane.b32.xlu0 %v3244_v27, %s3030_s20  ;;  %v1221_v54 = vpop.xlane.xlu0 %1220 }
 0x422   : > { %v1263_v23 = vsub.f32 %v3344_v38, %v1221_v54  ;;  %v1252_v38 = vsel %vm795_vm2, %v3386_v29, -inf }
 0x424   : > { %v1281_v41 = vmul.f32 1.442695, %v1263_v23  ;;  %v3414_v18 = vpop.eup %2906 }
 0x425   : > { %1585 = vrot.lane.b32.xlu0 %v3264_v50, %s3030_s20  ;;  %v1224_v32 = vpop.xlane.xlu0 %1223 }
 0x426   : > { %2908 = vpow2.f32 %v1281_v41  ;;  %v1264_v13 = vsub.f32 %v3346_v44, %v1224_v32 }
 0x428   : > { %v1283_v20 = vmul.f32 1.442695, %v1264_v13 }
 0x429   : > { %v1227_v57 = vpop.xlane.xlu0 %1226 }
 0x42a   : > { %v1265_v60 = vsub.f32 %v3350_v47, %v1227_v57  ;;  %v1309_v47 = vsel %vm795_vm2, %v3414_v18, 0.0 }
 0x42b   : > { %v1236_v22 = vpop.xlane.xlu1 %1235 }
 0x42c   : > { %v1285_v61 = vmul.f32 1.442695, %v1265_v60  ;;  %v1268_v28 = vsub.f32 %v3356_v56, %v1236_v22 }
 0x42d   : > { %v1233_v39 = vpop.xlane.xlu0 %1232 }
 0x42e   : > { %v1267_v27 = vsub.f32 %v3354_v55, %v1233_v39  ;;  %2910 = vpow2.f32 %v1285_v61  ;;  %v1291_v30 = vmul.f32 1.442695, %v1268_v28 }
 0x430   : > { %v1289_v50 = vmul.f32 1.442695, %v1267_v27  ;;  %v3420_v63 = vpop.eup %2908 }
 0x431   : > { %v1315_v55 = vsel %vm795_vm2, %v3420_v63, 0.0 }
 0x432   : > { %2912 = vpow2.f32 %v1289_v50 }
 0x433   : > { %2914 = vpow2.f32 %v1279_v10 }
 0x434   : > { %2916 = vpow2.f32 %v1283_v20 }
 0x435   : > { %2918 = vpow2.f32 %v1287_v26 }
 0x436   : > { %2920 = vpow2.f32 %v1291_v30 }
 0x438   : > { %v3424_v0 = vpop.eup %2910 }
 0x439   : > { %v1321_v1 = vsel %vm795_vm2, %v3424_v0, 0.0 }
 0x43c   : > { %v3428_v6 = vpop.eup %2912 }
 0x43d   : > { %1259 = vmax.xlane.f32.xlu1 %v1258_v62  ;;  %v1327_v7 = vsel %vm795_vm2, %v3428_v6, 0.0  ;;  %v3438_v31 = vpop.eup %2914 }
 0x43e   : > { %v3442_v21 = vpop.eup %2916 }
 0x43f   : > { %v1318_v34 = vsel %vm795_vm2, %v3442_v21, 0.0  ;;  %v3446_v44 = vpop.eup %2918 }
 0x440   : > { %v1324_v56 = vsel %vm795_vm2, %v3446_v44, 0.0  ;;  %v3450_v36 = vpop.eup %2920 }
 0x441   : > { %1253 = vmax.xlane.f32.xlu1 %v1252_v38  ;;  %v1330_v37 = vsel %vm795_vm2, %v3450_v36, 0.0 }
 0x444   : > { %1310 = vadd.xlane.f32.xlu0 %v1309_v47 }
 0x448   : > { %1316 = vadd.xlane.f32.xlu0 %v1315_v55 }
 0x44c   : > { %1322 = vadd.xlane.f32.xlu0 %v1321_v1 }
 0x450   : > { %1328 = vadd.xlane.f32.xlu0 %v1327_v7 }
 0x452   : > { %1632 = vrot.lane.b32.xlu1 %v3262_v49, %s3030_s20  ;;  %v1312_v49 = vsel %vm795_vm2, %v3438_v31, 0.0 }
 0x476   : > { %1313 = vadd.xlane.f32.xlu1 %v1312_v49 }
 0x47a   : > { %1319 = vadd.xlane.f32.xlu1 %v1318_v34 }
 0x47e   : > { %1325 = vadd.xlane.f32.xlu1 %v1324_v56 }
 0x482   : > { %1331 = vadd.xlane.f32.xlu1 %v1330_v37 }
 0x487   : > { %v1245_v45 = vpop.xlane.xlu0 %1244 }
 0x488   : > { %v1271_v46 = vsub.f32 %v3370_v42, %v1245_v45 }
 0x489   : > { %v1248_v48 = vpop.xlane.xlu1 %1247 }
 0x48a   : > { %v1297_v51 = vmul.f32 1.442695, %v1271_v46  ;;  %v1272_v54 = vsub.f32 %v3374_v8, %v1248_v48 }
 0x48b   : > { %v1239_v32 = vpop.xlane.xlu0 %1238 }
 0x48c   : > { %2922 = vpow2.f32 %v1297_v51  ;;  %v1299_v25 = vmul.f32 1.442695, %v1272_v54  ;;  %v1269_v57 = vsub.f32 %v3372_v43, %v1239_v32 }
 0x48d   : > { %v1242_v59 = vpop.xlane.xlu1 %1241 }
 0x48e   : > { %2924 = vpow2.f32 %v1299_v25  ;;  %v1293_v23 = vmul.f32 1.442695, %v1269_v57  ;;  %v1270_v41 = vsub.f32 %v3378_v14, %v1242_v59 }
 0x490   : > { %2926 = vpow2.f32 %v1293_v23  ;;  %v1295_v60 = vmul.f32 1.442695, %v1270_v41 }
 0x491   : > { %v1445_v39 = vpop.permute.xlu1 %1444 }
 0x492   : > { %2928 = vpow2.f32 %v1295_v60  ;;  %2717 = vmatpush3.bf16.msra.mxu1 %v1445_v39 }
 0x493   : > { %2728 = vmatprep.subr.bf16.mxu1 %v3026_v53 }
 0x494   : > { %v1257_v42 = vpop.xlane.xlu0 %1256 }
 0x495   : > { %v1275_v8 = vsub.f32 %v3388_v35, %v1257_v42  ;;  %v1492_v15 = vpop.permute.xlu1 %1491 }
 0x496   : > { %v3460_v61 = vpop.eup %2922 }
 0x497   : > { %v1305_v27 = vmul.f32 1.442695, %v1275_v8  ;;  %v1339_v43 = vsel %vm795_vm2, %v3460_v61, 0.0 }
 0x498   : > { %v3464_v62 = vpop.eup %2924  ;;  %1340 = vadd.xlane.f32.xlu0 %v1339_v43  ;;  %v1251_v14 = vpop.xlane.xlu0 %1250 }
 0x499   : > { %2930 = vpow2.f32 %v1305_v27  ;;  %v1273_v50 = vsub.f32 %v3390_v40, %v1251_v14  ;;  %v1342_v38 = vsel %vm795_vm2, %v3464_v62, 0.0  ;;  %v1539_v19 = vpop.permute.xlu1 %1538 }
 0x49a   : > { %v3469_v47 = vpop.eup %2926  ;;  %1343 = vadd.xlane.f32.xlu1 %v1342_v38 }
 0x49b   : > { %v1301_v35 = vmul.f32 1.442695, %v1273_v50  ;;  %v1333_v55 = vsel %vm795_vm2, %v3469_v47, 0.0 }
 0x49c   : > { %v3473_v1 = vpop.eup %2928  ;;  %1334 = vadd.xlane.f32.xlu0 %v1333_v55  ;;  %v1398_v7 = vpop.permute.xlu0 %1397 }
 0x49d   : > { %2932 = vpow2.f32 %v1301_v35  ;;  %2711 = vmatpush3.bf16.msra.mxu0 %v1398_v7  ;;  %v1336_v9 = vsel %vm795_vm2, %v3473_v1, 0.0 }
 0x49e   : > { %1337 = vadd.xlane.f32.xlu1 %v1336_v9  ;;  %2722 = vmatprep.subr.bf16.mxu0 %v3026_v53 }
 0x4a3   : > { %v3478_v40 = vpop.eup %2930 }
 0x4a4   : > { %v1351_v52 = vsel %vm795_vm2, %v3478_v40, 0.0 }
 0x4a5   : > { %1352 = vadd.xlane.f32.xlu0 %v1351_v52 }
 0x4a7   : > { %v3482_v10 = vpop.eup %2932 }
 0x4a8   : > { %v1345_v13 = vsel %vm795_vm2, %v3482_v10, 0.0 }
 0x4a9   : > { %1346 = vadd.xlane.f32.xlu0 %v1345_v13 }
 0x4bf   : > { %1679 = vrot.lane.b32.xlu0 %v3273_v58, %s3030_s20 }
 0x4ca   : > { %v1260_v20 = vpop.xlane.xlu1 %1259 }
 0x4cb   : > { %v1276_v22 = vsub.f32 %v3392_v24, %v1260_v20  ;;  %v1586_v24 = vpop.permute.xlu0 %1585 }
 0x4cd   : > { %v1307_v26 = vmul.f32 1.442695, %v1276_v22 }
 0x4ce   : > { %v1254_v28 = vpop.xlane.xlu1 %1253 }
 0x4cf   : > { %2934 = vpow2.f32 %v1307_v26  ;;  %v1274_v30 = vsub.f32 %v3386_v29, %v1254_v28 }
 0x4d1   : > { %v1303_v49 = vmul.f32 1.442695, %v1274_v30  ;;  %v1311_v45 = vpop.xlane.xlu0 %1310 }
 0x4d2   : > { %v1633_v29 = vpop.permute.xlu1 %1632 }
 0x4d3   : > { %2936 = vpow2.f32 %v1303_v49 }
 0x4d4   : > { %2938 = vrcp.f32 %v1311_v45 }
 0x4d5   : > { %v1317_v46 = vpop.xlane.xlu0 %1316 }
 0x4d9   : > { %v3490_v34 = vpop.eup %2934  ;;  %v1323_v51 = vpop.xlane.xlu0 %1322 }
 0x4da   : > { %v1354_v56 = vsel %vm795_vm2, %v3490_v34, 0.0 }
 0x4db   : > { %1355 = vadd.xlane.f32.xlu1 %v1354_v56 }
 0x4dd   : > { %v3494_v37 = vpop.eup %2936  ;;  %v1329_v32 = vpop.xlane.xlu0 %1328 }
 0x4de   : > { %v1348_v58 = vsel %vm795_vm2, %v3494_v37, 0.0  ;;  %v2939_v57 = vpop.eup %2938 }
 0x4df   : > { %1349 = vadd.xlane.f32.xlu1 %v1348_v58 }
 0x4f0   : > { %1726 = vrot.lane.b32.xlu1 %v3282_v33, %s3030_s20  ;;  %v1373_v33 = vmul.f32 %v2939_v57, %v3414_v18 }
 0x503   : > { %v1314_v48 = vpop.xlane.xlu1 %1313 }
 0x504   : > { %2940 = vrcp.f32 %v1314_v48 }
 0x505   : > { %2942 = vrcp.f32 %v1317_v46 }
 0x507   : > { %v1320_v54 = vpop.xlane.xlu1 %1319 }
 0x508   : > { %2944 = vrcp.f32 %v1320_v54 }
 0x509   : > { %2946 = vrcp.f32 %v1323_v51 }
 0x50b   : > { %v1326_v25 = vpop.xlane.xlu1 %1325 }
 0x50c   : > { %2948 = vrcp.f32 %v1326_v25 }
 0x50d   : > { %2950 = vrcp.f32 %v1329_v32 }
 0x50e   : > { %v2941_v59 = vpop.eup %2940 }
 0x50f   : > { %v1374_v23 = vmul.f32 %v2941_v59, %v3438_v31  ;;  %v1332_v41 = vpop.xlane.xlu1 %1331  ;;  %v2943_v60 = vpop.eup %2942 }
 0x510   : > { %2952 = vrcp.f32 %v1332_v41  ;;  %v1375_v8 = vmul.f32 %v2943_v60, %v3420_v63 }
 0x511   : > { %v1389_v39 = vpack.c.bf16 %v1374_v23, %v1373_v33 }
 0x512   : > { %v2945_v42 = vpop.eup %2944 }
 0x513   : > { %v1376_v27 = vmul.f32 %v2945_v42, %v3442_v21  ;;  %2713 = vmatmul.mubr.msk.bf16.vlgmr.msra.gmra.mrb[12].mxu0 %vm795_vm2, %v1389_v39  ;;  %v2947_v43 = vpop.eup %2946 }
 0x514   : > { %2723 = vmatpush3.bf16.msra.mxu0 %v1492_v15  ;;  %2724 = vmatprep.mubr.msk.bf16.mxu0 %vm3027_vm1, %v3026_v53  ;;  %v1377_v31 = vmul.f32 %v2947_v43, %v3424_v0 }
 0x515   : > { %v1390_v14 = vpack.c.bf16 %v1376_v27, %v1375_v8  ;;  %2734 = vmatprep.subr.bf16.mxu0 %v3026_v53 }
 0x516   : > { %v2949_v18 = vpop.eup %2948 }
 0x517   : > { %v1378_v50 = vmul.f32 %v2949_v18, %v3446_v44  ;;  %2719 = vmatmul.mubr.msk.bf16.vlgmr.msra.gmra.mrb[28].mxu1 %vm795_vm2, %v1390_v14  ;;  %v2951_v63 = vpop.eup %2950  ;;  %v2878_v14 = vld [vmem:[%s3751_s5] sm:$0xff]   ;;  %v2879_v18 = vld [vmem:[%s3751_s5 + $0x8] sm:$0xff]  }
 0x518   : > { %2729 = vmatpush3.bf16.msra.mxu1 %v1539_v19  ;;  %2730 = vmatprep.mubr.msk.bf16.mxu1 %vm3027_vm1, %v3026_v53  ;;  %v1379_v35 = vmul.f32 %v2951_v63, %v3428_v6 }
 0x519   : > { %v1391_v21 = vpack.c.bf16 %v1378_v50, %v1377_v31  ;;  %2740 = vmatprep.subr.bf16.mxu1 %v3026_v53 }
 0x51a   : > { %v2953_v38 = vpop.eup %2952 }
 0x51b   : > { %v1380_v55 = vmul.f32 %v2953_v38, %v3450_v36  ;;  %2725 = vmatmul.mubr.msk.bf16.vlgmr.msra.gmra.mrb[16].mxu0 %vm795_vm2, %v1391_v21 }
 0x51c   : > { %2735 = vmatpush3.bf16.msra.mxu0 %v1586_v24  ;;  %2736 = vmatprep.mubr.msk.bf16.mxu0 %vm3027_vm1, %v3026_v53 }
 0x51d   : > { %v1392_v0 = vpack.c.bf16 %v1380_v55, %v1379_v35  ;;  %2746 = vmatprep.subr.bf16.mxu0 %v3026_v53 }
 0x51f   : > { %2731 = vmatmul.mubr.msk.bf16.vlgmr.msra.gmra.mrb[32].mxu1 %vm795_vm2, %v1392_v0 }
 0x520   : > { %2741 = vmatpush3.bf16.msra.mxu1 %v1633_v29  ;;  %2742 = vmatprep.mubr.msk.bf16.mxu1 %vm3027_vm1, %v3026_v53 }
 0x521   : > { %2752 = vmatprep.subr.bf16.mxu1 %v3026_v53 }
 0x525   : > { %v1341_v6 = vpop.xlane.xlu0 %1340 }
 0x526   : > { %2954 = vrcp.f32 %v1341_v6 }
 0x527   : > { %v1344_v44 = vpop.xlane.xlu1 %1343 }
 0x528   : > { %2956 = vrcp.f32 %v1344_v44 }
 0x529   : > { %v1335_v36 = vpop.xlane.xlu0 %1334 }
 0x52a   : > { %2958 = vrcp.f32 %v1335_v36 }
 0x52b   : > { %v1338_v7 = vpop.xlane.xlu1 %1337 }
 0x52c   : > { %2960 = vrcp.f32 %v1338_v7 }
 0x530   : > { %v2955_v9 = vpop.eup %2954 }
 0x531   : > { %v1383_v15 = vmul.f32 %v2955_v9, %v3460_v61 }
 0x532   : > { %v2957_v52 = vpop.eup %2956  ;;  %v1353_v13 = vpop.xlane.xlu0 %1352 }
 0x533   : > { %v1384_v19 = vmul.f32 %v2957_v52, %v3464_v62  ;;  %2962 = vrcp.f32 %v1353_v13 }
 0x534   : > { %v2959_v20 = vpop.eup %2958 }
 0x535   : > { %v1394_v22 = vpack.c.bf16 %v1384_v19, %v1383_v15  ;;  %v1381_v30 = vmul.f32 %v2959_v20, %v3469_v47 }
 0x536   : > { %v2961_v26 = vpop.eup %2960  ;;  %v1347_v28 = vpop.xlane.xlu0 %1346 }
 0x537   : > { %v1382_v49 = vmul.f32 %v2961_v26, %v3473_v1  ;;  %2743 = vmatmul.mubr.msk.bf16.vlgmr.msra.gmra.mrb[36].mxu1 %vm795_vm2, %v1394_v22 }
 0x538   : > { %2754 = vmatprep.mubr.msk.bf16.mxu1 %vm3027_vm1, %v3026_v53 }
 0x539   : > { %v1393_v56 = vpack.c.bf16 %v1382_v49, %v1381_v30 }
 0x53a   : > { %v1680_v58 = vpop.permute.xlu0 %1679 }
 0x53b   : > { %2737 = vmatmul.mubr.msk.bf16.vlgmr.msra.gmra.mrb[20].mxu0 %vm795_vm2, %v1393_v56 }
 0x53c   : > { %2747 = vmatpush3.bf16.msra.mxu0 %v1680_v58  ;;  %2748 = vmatprep.mubr.msk.bf16.mxu0 %vm3027_vm1, %v3026_v53 }
 0x53d   : > { %v2963_v1 = vpop.eup %2962  ;;  %2758 = vmatprep.subr.bf16.mxu0 %v2878_v14 }
 0x53e   : > { %v1387_v45 = vmul.f32 %v2963_v1, %v3478_v40 }
 0x568   : > { %v1356_v61 = vpop.xlane.xlu1 %1355 }
 0x569   : > { %2964 = vrcp.f32 %v1356_v61 }
 0x56a   : > { %2966 = vrcp.f32 %v1347_v28 }
 0x56c   : > { %v1350_v62 = vpop.xlane.xlu1 %1349 }
 0x56d   : > { %2968 = vrcp.f32 %v1350_v62 }
 0x570   : > { %v1727_v47 = vpop.permute.xlu1 %1726 }
 0x571   : > { %2753 = vmatpush3.bf16.msra.mxu1 %v1727_v47 }
 0x573   : > { %v2965_v24 = vpop.eup %2964 }
 0x574   : > { %v1388_v29 = vmul.f32 %v2965_v24, %v3490_v34  ;;  %v2967_v46 = vpop.eup %2966 }
 0x575   : > { %v1385_v54 = vmul.f32 %v2967_v46, %v3482_v10 }
 0x576   : > { %v1396_v48 = vpack.c.bf16 %v1388_v29, %v1387_v45 }
 0x577   : > { %v2969_v51 = vpop.eup %2968 }
 0x578   : > { %v1386_v53 = vmul.f32 %v2969_v51, %v3494_v37  ;;  %2755 = vmatmul.mubr.msk.bf16.vlgmr.msra.gmra.mrb[40].mxu1 %vm795_vm2, %v1396_v48 }
 0x57a   : > { %v1395_v32 = vpack.c.bf16 %v1386_v53, %v1385_v54 }
 0x57c   : > { %2749 = vmatmul.mubr.msk.bf16.vlgmr.msra.gmra.mrb[24].mxu0 %vm795_vm2, %v1395_v32 }
 0x57d   : > { %2759 = vmatpush3.bf16.msra.mxu0 %v2878_v14 }
 0x57e   : > { %2760 = vmatprep.subr.bf16.mxu0 %v2879_v18 }
 0x581   : > { %2761 = vmatpush3.bf16.msra.mxu0 %v2879_v18 }
 0x5e6   : > { %v1437_v25 = vpop.f32.mrb[12].mxu0 }
 0x5e7   : > { %v2714_v57 = vpop.f32.mrb[13].mxu0 }
 0x5e8   : > { %v1440_v59 = vpop.f32.mrb[14].mxu0 }
 0x5e9   : > { %v2715_v33 = vpop.f32.mrb[15].mxu0 }
 0x5ea   : > { %v1484_v23 = vpop.f32.mrb[28].mxu1 }
 0x5eb   : > { %v2720_v40 = vpop.f32.mrb[29].mxu1 }
 0x5ec   : > { %v1487_v41 = vpop.f32.mrb[30].mxu1 }
 0x5ed   : > { %v2721_v34 = vpop.f32.mrb[31].mxu1 }
 0x5ee   : > { %v3540_v60 = vpop.f32.mrb[16].mxu0 }
 0x5ef   : > { %v2726_v39 = vpop.f32.mrb[17].mxu0 }
 0x5f0   : > { %v1534_v42 = vpop.f32.mrb[18].mxu0 }
 0x5f1   : > { %v2727_v10 = vpop.f32.mrb[19].mxu0 }
 0x5f2   : > { %v1578_v8 = vpop.f32.mrb[32].mxu1 }
 0x5f3   : > { %v2732_v37 = vpop.f32.mrb[33].mxu1 }
 0x5f4   : > { %v1581_v27 = vpop.f32.mrb[34].mxu1 }
 0x5f5   : > { %v2733_v43 = vpop.f32.mrb[35].mxu1 }
 0x60a   : > { %v1672_v31 = vpop.f32.mrb[36].mxu1 }
 0x60b   : > { %v2744_v50 = vpop.f32.mrb[37].mxu1 }
 0x60c   : > { %v1675_v63 = vpop.f32.mrb[38].mxu1 }
 0x60d   : > { %v2861_v21 = vpack.i.bf16 %v1675_v63, %v1672_v31  ;;  %v2745_v38 = vpop.f32.mrb[39].mxu1 }
 0x60e   : > { %v1625_v35 = vpop.f32.mrb[20].mxu0 }
 0x60f   : > { %2862 = vrot.lane.b32.xlu1 %v2861_v21, %s3031_s25  ;;  %v2738_v55 = vpop.f32.mrb[21].mxu0 }
 0x610   : > { %v1628_v0 = vpop.f32.mrb[22].mxu0 }
 0x611   : > { %v2856_v6 = vpack.i.bf16 %v1628_v0, %v1625_v35  ;;  %v2739_v44 = vpop.f32.mrb[23].mxu0 }
 0x613   : > { %2857 = vrot.lane.b32.xlu0 %v2856_v6, %s3031_s25 }
 0x64b   : > { %v1766_v36 = vpop.f32.mrb[40].mxu1 }
 0x64c   : > { %v2756_v7 = vpop.f32.mrb[41].mxu1 }
 0x64d   : > { %v1769_v9 = vpop.f32.mrb[42].mxu1 }
 0x64e   : > { %v2871_v52 = vpack.i.bf16 %v1769_v9, %v1766_v36  ;;  %v2757_v13 = vpop.f32.mrb[43].mxu1 }
 0x64f   : > { %v1719_v15 = vpop.f32.mrb[24].mxu0 }
 0x650   : > { %2872 = vrot.lane.b32.xlu1 %v2871_v52, %s3031_s25  ;;  %v2750_v19 = vpop.f32.mrb[25].mxu0 }
 0x651   : > { %v1722_v20 = vpop.f32.mrb[26].mxu0 }
 0x652   : > { %v2866_v22 = vpack.i.bf16 %v1722_v20, %v1719_v15  ;;  %v2751_v26 = vpop.f32.mrb[27].mxu0 }
 0x654   : > { %2867 = vrot.lane.b32.xlu0 %v2866_v22, %s3031_s25  ;;  %s3712_s25 = scalar_lea.vmem %s3760_s14, %s2498_s18 }
 0x681   : > { %v2863_v28 = vpop.permute.xlu1 %2862 }
 0x682   : > { %v2865_v30 = vunpack.i.h.bf16 %v2863_v28  ;;  %v2864_v49 = vunpack.i.l.bf16 %v2863_v28 }
 0x684   : > { %v1808_v56 = vsel %vm795_vm2, %v1487_v41, %v2865_v30  ;;  %v1807_v58 = vsel %vm795_vm2, %v1484_v23, %v2864_v49  ;;  %v2526_v41 = vld [vmem:[%s3752_s6] ss:$0 sm:$0xff] }
 0x685   : > { %v1819_v61 = vpack.c.bf16 %v1808_v56, %v1807_v58  ;;  %v2858_v62 = vpop.permute.xlu0 %2857 }
 0x686   : > { %v2860_v47 = vunpack.i.h.bf16 %v2858_v62  ;;  %v2859_v1 = vunpack.i.l.bf16 %v2858_v62 }
 0x688   : > { %v1806_v24 = vsel %vm795_vm2, %v1440_v59, %v2860_v47  ;;  %v1805_v45 = vsel %vm795_vm2, %v1437_v25, %v2859_v1 }
 0x689   : > { %v1818_v29 = vpack.c.bf16 %v1806_v24, %v1805_v45 }
 0x68b   : > { %2762 = vmatprep.mubr.msk.bf16.mxu0 %vm514_vm0, %v1818_v29 }
 0x68c   : > { %2763 = vmatmul.mubr.msk.bf16.vlgmr.msra.gmra.mrb[28].mxu0 %vm514_vm0, %v1819_v61 }
 0x6c2   : > { %v2873_v46 = vpop.permute.xlu1 %2872 }
 0x6c3   : > { %v2875_v48 = vunpack.i.h.bf16 %v2873_v46  ;;  %v2874_v51 = vunpack.i.l.bf16 %v2873_v46 }
 0x6c5   : > { %v1812_v54 = vsel %vm795_vm2, %v1581_v27, %v2875_v48  ;;  %v1811_v53 = vsel %vm795_vm2, %v1578_v8, %v2874_v51  ;;  %v2880_v48 = vld [vmem:[%s3755_s9] sm:$0xff]   ;;  %v2881_v51 = vld [vmem:[%s3755_s9 + $0x8] sm:$0xff]  }
 0x6c6   : > { %v1821_v32 = vpack.c.bf16 %v1812_v54, %v1811_v53  ;;  %v2868_v57 = vpop.permute.xlu0 %2867  ;;  %2770 = vmatprep.subr.bf16.mxu1 %v2880_v48 }
 0x6c7   : > { %v2870_v33 = vunpack.i.h.bf16 %v2868_v57  ;;  %v2869_v23 = vunpack.i.l.bf16 %v2868_v57  ;;  %2771 = vmatpush3.bf16.msra.mxu1 %v2880_v48 }
 0x6c8   : > { %2772 = vmatprep.subr.bf16.mxu1 %v2881_v51 }
 0x6c9   : > { %v1810_v59 = vsel %vm795_vm2, %v1534_v42, %v2870_v33  ;;  %v1809_v25 = vsel %vm795_vm2, %v3540_v60, %v2869_v23 }
 0x6ca   : > { %v1820_v40 = vpack.c.bf16 %v1810_v59, %v1809_v25 }
 0x6cb   : > { %2773 = vmatpush3.bf16.msra.mxu1 %v2881_v51 }
 0x6cc   : > { %2766 = vmatprep.mubr.msk.bf16.mxu0 %vm514_vm0, %v1820_v40 }
 0x6cd   : > { %2767 = vmatmul.mubr.msk.bf16.gmra.mrb[32].mxu0 %vm514_vm0, %v1821_v32 }
 0x75f   : > { %v2764_v34 = vpop.f32.mrb[28].mxu0 }
 0x760   : > { %v1886_v39 = vpop.f32.mrb[29].mxu0  ;;  %v1895_v10 = vadd.f32 %v2764_v34, %v2526_v41 }
 0x761   : > { %v1887_v8 = vadd.f32 %v2526_v41, %v1886_v39  ;;  %v2765_v37 = vpop.f32.mrb[30].mxu0 }
 0x762   : > { %v1889_v27 = vpop.f32.mrb[31].mxu0  ;;  %v3568_v60 = vadd.f32 %v3135_v3, %v1895_v10  ;;  %v1898_v14 = vadd.f32 %v2765_v37, %v2526_v41 }
 0x763   : > { %v3565_v42 = vadd.f32 %v3133_v2, %v1887_v8  ;;  %v1890_v43 = vadd.f32 %v2526_v41, %v1889_v27 }
 0x764   : > { %v3578_v63 = vadd.f32 %v3139_v5, %v1898_v14  ;;  %v1933_v2 = vsel %vm514_vm0, %v3568_v60, 0.0 }
 0x765   : > { %v3571_v18 = vadd.f32 %v3137_v4, %v1890_v43  ;;  %v1927_v31 = vsel %vm514_vm0, %v3565_v42, 0.0 }
 0x766   : > { %1928 = vadd.xlane.f32.xlu0 %v1927_v31  ;;  %v1936_v3 = vsel %vm514_vm0, %v3578_v63, 0.0 }
 0x767   : > { %v1930_v50 = vsel %vm514_vm0, %v3571_v18, 0.0 }
 0x768   : > { %1931 = vadd.xlane.f32.xlu1 %v1930_v50 }
 0x76a   : > { %1934 = vadd.xlane.f32.xlu0 %v1933_v2 }
 0x76e   : > { %1937 = vadd.xlane.f32.xlu0 %v1936_v3 }
 0x7a0   : > { %v2768_v4 = vpop.f32.mrb[32].mxu0 }
 0x7a1   : > { %v1902_v21 = vpop.f32.mrb[33].mxu0  ;;  %v1911_v38 = vadd.f32 %v2768_v4, %v2526_v41 }
 0x7a2   : > { %v1903_v35 = vadd.f32 %v2526_v41, %v1902_v21  ;;  %v2769_v55 = vpop.f32.mrb[34].mxu0 }
 0x7a3   : > { %v1905_v0 = vpop.f32.mrb[35].mxu0  ;;  %v1914_v44 = vadd.f32 %v2769_v55, %v2526_v41  ;;  %v3588_v36 = vadd.f32 %v3157_v16, %v1911_v38 }
 0x7a4   : > { %v3585_v6 = vadd.f32 %v3149_v11, %v1903_v35  ;;  %v1906_v5 = vadd.f32 %v2526_v41, %v1905_v0 }
 0x7a5   : > { %v3596_v52 = vadd.f32 %v3159_v17, %v1914_v44  ;;  %v1945_v11 = vsel %vm514_vm0, %v3588_v36, 0.0 }
 0x7a6   : > { %v3591_v7 = vadd.f32 %v3151_v12, %v1906_v5  ;;  %v1939_v9 = vsel %vm514_vm0, %v3585_v6, 0.0 }
 0x7a7   : > { %1940 = vadd.xlane.f32.xlu0 %v1939_v9  ;;  %v1948_v16 = vsel %vm514_vm0, %v3596_v52, 0.0 }
 0x7a8   : > { %v1942_v13 = vsel %vm514_vm0, %v3591_v7, 0.0 }
 0x7a9   : > { %1943 = vadd.xlane.f32.xlu1 %v1942_v13 }
 0x7ab   : > { %1946 = vadd.xlane.f32.xlu0 %v1945_v11 }
 0x7ad   : > { %1949 = vadd.xlane.f32.xlu1 %v1948_v16  ;;  %v2533_v16 = vld [vmem:[%s3753_s7] ss:$0 sm:$0xff] }
 0x7f3   : > { %v1929_v12 = vpop.xlane.xlu0 %1928 }
 0x7f4   : > { %v1951_v15 = vmul.f32 0.03125, %v1929_v12 }
 0x7f5   : > { %v1932_v19 = vpop.xlane.xlu1 %1931 }
 0x7f6   : > { %v3605_v20 = vsub.f32 %v3565_v42, %v1951_v15  ;;  %v1952_v17 = vmul.f32 0.03125, %v1932_v19 }
 0x7f7   : > { %v1935_v22 = vpop.xlane.xlu0 %1934 }
 0x7f8   : > { %v3608_v26 = vsub.f32 %v3571_v18, %v1952_v17  ;;  %v1953_v28 = vmul.f32 0.03125, %v1935_v22  ;;  %v1967_v30 = vmul.f32 %v3605_v20, %v3605_v20 }
 0x7fa   : > { %v3613_v49 = vsub.f32 %v3568_v60, %v1953_v28  ;;  %v1975_v56 = vsel %vm514_vm0, %v1967_v30, 0.0  ;;  %v1968_v58 = vmul.f32 %v3608_v26, %v3608_v26  ;;  %v2534_v28 = vld [vmem:[%s3754_s8] ss:$0 sm:$0xff] }
 0x7fb   : > { %1976 = vadd.xlane.f32.xlu0 %v1975_v56  ;;  %v1938_v61 = vpop.xlane.xlu0 %1937 }
 0x7fc   : > { %v1954_v62 = vmul.f32 0.03125, %v1938_v61  ;;  %v1978_v47 = vsel %vm514_vm0, %v1968_v58, 0.0  ;;  %v1969_v1 = vmul.f32 %v3613_v49, %v3613_v49 }
 0x7fd   : > { %1979 = vadd.xlane.f32.xlu1 %v1978_v47 }
 0x7fe   : > { %v3622_v24 = vsub.f32 %v3578_v63, %v1954_v62  ;;  %v1981_v45 = vsel %vm514_vm0, %v1969_v1, 0.0 }
 0x7ff   : > { %1982 = vadd.xlane.f32.xlu0 %v1981_v45 }
 0x800   : > { %v1970_v29 = vmul.f32 %v3622_v24, %v3622_v24 }
 0x802   : > { %v1984_v46 = vsel %vm514_vm0, %v1970_v29, 0.0 }
 0x803   : > { %1985 = vadd.xlane.f32.xlu1 %v1984_v46 }
 0x834   : > { %v1941_v54 = vpop.xlane.xlu0 %1940 }
 0x835   : > { %v1955_v53 = vmul.f32 0.03125, %v1941_v54 }
 0x836   : > { %v1944_v32 = vpop.xlane.xlu1 %1943 }
 0x837   : > { %v3635_v57 = vsub.f32 %v3585_v6, %v1955_v53  ;;  %v1956_v33 = vmul.f32 0.03125, %v1944_v32 }
 0x838   : > { %v1947_v23 = vpop.xlane.xlu0 %1946 }
 0x839   : > { %v3638_v59 = vsub.f32 %v3591_v7, %v1956_v33  ;;  %v1957_v25 = vmul.f32 0.03125, %v1947_v23  ;;  %v1971_v40 = vmul.f32 %v3635_v57, %v3635_v57 }
 0x83a   : > { %v1950_v41 = vpop.xlane.xlu1 %1949 }
 0x83b   : > { %v3643_v34 = vsub.f32 %v3588_v36, %v1957_v25  ;;  %v1958_v39 = vmul.f32 0.03125, %v1950_v41  ;;  %v1987_v10 = vsel %vm514_vm0, %v1971_v40, 0.0  ;;  %v1972_v8 = vmul.f32 %v3638_v59, %v3638_v59 }
 0x83c   : > { %1988 = vadd.xlane.f32.xlu0 %v1987_v10 }
 0x83d   : > { %v3649_v37 = vsub.f32 %v3596_v52, %v1958_v39  ;;  %v1990_v27 = vsel %vm514_vm0, %v1972_v8, 0.0  ;;  %v1973_v43 = vmul.f32 %v3643_v34, %v3643_v34 }
 0x83e   : > { %1991 = vadd.xlane.f32.xlu1 %v1990_v27 }
 0x83f   : > { %v1993_v14 = vsel %vm514_vm0, %v1973_v43, 0.0  ;;  %v1974_v31 = vmul.f32 %v3649_v37, %v3649_v37 }
 0x840   : > { %1994 = vadd.xlane.f32.xlu0 %v1993_v14 }
 0x841   : > { %v1996_v50 = vsel %vm514_vm0, %v1974_v31, 0.0 }
 0x842   : > { %1997 = vadd.xlane.f32.xlu1 %v1996_v50 }
 0x888   : > { %v1977_v2 = vpop.xlane.xlu0 %1976 }
 0x889   : > { %v1999_v3 = vmul.f32 0.03125, %v1977_v2 }
 0x88a   : > { %v1980_v4 = vpop.xlane.xlu1 %1979 }
 0x88b   : > { %v2007_v21 = vadd.f32 1e-05, %v1999_v3  ;;  %v2000_v38 = vmul.f32 0.03125, %v1980_v4 }
 0x88c   : > { %v1983_v35 = vpop.xlane.xlu0 %1982 }
 0x88d   : > { %2970 = vrsqrt.f32 %v2007_v21  ;;  %v2008_v55 = vadd.f32 1e-05, %v2000_v38  ;;  %v2001_v0 = vmul.f32 0.03125, %v1983_v35 }
 0x88f   : > { %2972 = vrsqrt.f32 %v2008_v55  ;;  %v2009_v44 = vadd.f32 1e-05, %v2001_v0 }
 0x890   : > { %v1986_v5 = vpop.xlane.xlu1 %1985 }
 0x891   : > { %2974 = vrsqrt.f32 %v2009_v44  ;;  %v2002_v9 = vmul.f32 0.03125, %v1986_v5  ;;  %v2885_v5 = vld [vmem:[%s3757_s11 + $0x18] sm:$0xff]  }
 0x893   : > { %v2010_v13 = vadd.f32 1e-05, %v2002_v9  ;;  %v2886_v9 = vld [vmem:[%s3757_s11 + $0x20] sm:$0xff]  }
 0x895   : > { %2976 = vrsqrt.f32 %v2010_v13  ;;  %v2887_v13 = vld [vmem:[%s3757_s11 + $0x28] sm:$0xff]  }
 0x897   : > { %v2971_v11 = vpop.eup %2970 }
 0x898   : > { %v2023_v12 = vmul.f32 %v2971_v11, %v3605_v20  ;;  %v2888_v11 = vld [vmem:[%s3757_s11 + $0x30] sm:$0xff]  }
 0x899   : > { %v2973_v15 = vpop.eup %2972 }
 0x89a   : > { %v2024_v19 = vmul.f32 %v2973_v15, %v3608_v26  ;;  %v2037_v17 = vmul.f32 %v2533_v16, %v2023_v12  ;;  %v2535_v12 = vld [vmem:[%s3756_s10] ss:$0 sm:$0xff] }
 0x89b   : > { %v2975_v22 = vpop.eup %2974 }
 0x89c   : > { %v2025_v30 = vmul.f32 %v2975_v22, %v3613_v49  ;;  %v2038_v56 = vmul.f32 %v2533_v16, %v2024_v19  ;;  %v2051_v58 = vadd.f32 %v2534_v28, %v2037_v17 }
 0x89e   : > { %v2052_v61 = vadd.f32 %v2534_v28, %v2038_v56  ;;  %v2039_v47 = vmul.f32 %v2533_v16, %v2025_v30 }
 0x89f   : > { %v2977_v62 = vpop.eup %2976 }
 0x8a0   : > { %v2026_v1 = vmul.f32 %v2977_v62, %v3622_v24  ;;  %v2064_v45 = vpack.c.bf16 %v2052_v61, %v2051_v58  ;;  %v2053_v26 = vadd.f32 %v2534_v28, %v2039_v47 }
 0x8a2   : > { %v2040_v20 = vmul.f32 %v2533_v16, %v2026_v1  ;;  %2774 = vmatprep.mubr.msk.bf16.mxu1 %vm514_vm0, %v2064_v45 }
 0x8a4   : > { %v2054_v29 = vadd.f32 %v2534_v28, %v2040_v20 }
 0x8a6   : > { %v2065_v46 = vpack.c.bf16 %v2054_v29, %v2053_v26 }
 0x8a8   : > { %2775 = vmatmul.mubr.msk.bf16.vlgmr.msra.gmra.mrb[44].mxu1 %vm514_vm0, %v2065_v46 }
 0x8c9   : > { %v1989_v48 = vpop.xlane.xlu0 %1988 }
 0x8ca   : > { %v2003_v51 = vmul.f32 0.03125, %v1989_v48 }
 0x8cb   : > { %v1992_v54 = vpop.xlane.xlu1 %1991 }
 0x8cc   : > { %v2011_v49 = vadd.f32 1e-05, %v2003_v51  ;;  %v2004_v53 = vmul.f32 0.03125, %v1992_v54 }
 0x8cd   : > { %v1995_v32 = vpop.xlane.xlu0 %1994 }
 0x8ce   : > { %2978 = vrsqrt.f32 %v2011_v49  ;;  %v2012_v33 = vadd.f32 1e-05, %v2004_v53  ;;  %v2005_v23 = vmul.f32 0.03125, %v1995_v32 }
 0x8cf   : > { %v1998_v25 = vpop.xlane.xlu1 %1997 }
 0x8d0   : > { %2980 = vrsqrt.f32 %v2012_v33  ;;  %v2013_v24 = vadd.f32 1e-05, %v2005_v23  ;;  %v2006_v40 = vmul.f32 0.03125, %v1998_v25 }
 0x8d2   : > { %2982 = vrsqrt.f32 %v2013_v24  ;;  %v2014_v41 = vadd.f32 1e-05, %v2006_v40 }
 0x8d4   : > { %2984 = vrsqrt.f32 %v2014_v41 }
 0x8d8   : > { %v2979_v39 = vpop.eup %2978 }
 0x8d9   : > { %v2027_v10 = vmul.f32 %v2979_v39, %v3635_v57 }
 0x8da   : > { %v2981_v8 = vpop.eup %2980 }
 0x8db   : > { %v2028_v27 = vmul.f32 %v2981_v8, %v3638_v59  ;;  %v2041_v43 = vmul.f32 %v2533_v16, %v2027_v10  ;;  %v2882_v59 = vld [vmem:[%s3757_s11] sm:$0xff]  }
 0x8dc   : > { %v2983_v14 = vpop.eup %2982  ;;  %2782 = vmatprep.subr.bf16.mxu0 %v2882_v59 }
 0x8dd   : > { %v2029_v31 = vmul.f32 %v2983_v14, %v3643_v34  ;;  %v2042_v50 = vmul.f32 %v2533_v16, %v2028_v27  ;;  %v2055_v4 = vadd.f32 %v2534_v28, %v2041_v43  ;;  %2783 = vmatpush3.bf16.msra.mxu0 %v2882_v59  ;;  %v2883_v34 = vld [vmem:[%s3757_s11 + $0x8] sm:$0xff]  }
 0x8de   : > { %v2985_v2 = vpop.eup %2984  ;;  %2784 = vmatprep.subr.bf16.mxu0 %v2883_v34 }
 0x8df   : > { %v2030_v3 = vmul.f32 %v2985_v2, %v3649_v37  ;;  %v2056_v21 = vadd.f32 %v2534_v28, %v2042_v50  ;;  %v2043_v38 = vmul.f32 %v2533_v16, %v2029_v31  ;;  %v2884_v37 = vld [vmem:[%s3757_s11 + $0x10] sm:$0xff]  }
 0x8e1   : > { %v2066_v35 = vpack.c.bf16 %v2056_v21, %v2055_v4  ;;  %v2044_v55 = vmul.f32 %v2533_v16, %v2030_v3  ;;  %v2057_v0 = vadd.f32 %v2534_v28, %v2043_v38  ;;  %2785 = vmatpush3.bf16.msra.mxu0 %v2883_v34  ;;  %v2889_v16 = vld [vmem:[%s3757_s11 + $0x38] sm:$0xff]  }
 0x8e2   : > { %2786 = vmatprep.subr.bf16.mxu0 %v2884_v37 }
 0x8e3   : > { %2778 = vmatprep.mubr.msk.bf16.mxu1 %vm514_vm0, %v2066_v35  ;;  %v2058_v57 = vadd.f32 %v2534_v28, %v2044_v55 }
 0x8e5   : > { %v2067_v44 = vpack.c.bf16 %v2058_v57, %v2057_v0  ;;  %2787 = vmatpush3.bf16.msra.mxu0 %v2884_v37 }
 0x8e6   : > { %2788 = vmatprep.subr.bf16.mxu0 %v2885_v5 }
 0x8e7   : > { %2779 = vmatmul.mubr.msk.bf16.gmra.mrb[48].mxu1 %vm514_vm0, %v2067_v44 }
 0x8e9   : > { %2789 = vmatpush3.bf16.msra.mxu0 %v2885_v5 }
 0x8ea   : > { %2790 = vmatprep.subr.bf16.mxu0 %v2886_v9 }
 0x8ed   : > { %2791 = vmatpush3.bf16.msra.mxu0 %v2886_v9 }
 0x8ee   : > { %2792 = vmatprep.subr.bf16.mxu0 %v2887_v13 }
 0x8f1   : > { %2793 = vmatpush3.bf16.msra.mxu0 %v2887_v13 }
 0x8f2   : > { %2794 = vmatprep.subr.bf16.mxu0 %v2888_v11 }
 0x8f5   : > { %2795 = vmatpush3.bf16.msra.mxu0 %v2888_v11 }
 0x8f6   : > { %2796 = vmatprep.subr.bf16.mxu0 %v2889_v16 }
 0x8f9   : > { %2797 = vmatpush3.bf16.msra.mxu0 %v2889_v16 }
 0x97b   : > { %v2776_v15 = vpop.f32.mrb[44].mxu1 }
 0x97c   : > { %v2141_v19 = vadd.f32 %v2776_v15, %v2535_v12  ;;  %v2132_v17 = vpop.f32.mrb[45].mxu1 }
 0x97d   : > { %v2133_v22 = vadd.f32 %v2535_v12, %v2132_v17  ;;  %v2777_v28 = vpop.f32.mrb[46].mxu1 }
 0x97e   : > { %v2165_v30 = vmul.f32 %v2141_v19, %v2141_v19  ;;  %v2144_v56 = vadd.f32 %v2777_v28, %v2535_v12  ;;  %v2135_v58 = vpop.f32.mrb[47].mxu1 }
 0x97f   : > { %v2163_v61 = vmul.f32 %v2133_v22, %v2133_v22  ;;  %v2136_v62 = vadd.f32 %v2535_v12, %v2135_v58 }
 0x980   : > { %v2173_v47 = vmul.f32 %v2165_v30, %v2141_v19  ;;  %v2166_v1 = vmul.f32 %v2144_v56, %v2144_v56 }
 0x981   : > { %v2171_v45 = vmul.f32 %v2163_v61, %v2133_v22  ;;  %v2164_v20 = vmul.f32 %v2136_v62, %v2136_v62 }
 0x982   : > { %v2181_v26 = vmul.f32 0.044715, %v2173_v47  ;;  %v2174_v29 = vmul.f32 %v2166_v1, %v2144_v56 }
 0x983   : > { %v2179_v46 = vmul.f32 0.044715, %v2171_v45  ;;  %v2172_v48 = vmul.f32 %v2164_v20, %v2136_v62 }
 0x984   : > { %v2189_v51 = vadd.f32 %v2181_v26, %v2141_v19  ;;  %v2182_v54 = vmul.f32 0.044715, %v2174_v29 }
 0x985   : > { %v2187_v49 = vadd.f32 %v2179_v46, %v2133_v22  ;;  %v2180_v53 = vmul.f32 0.044715, %v2172_v48 }
 0x986   : > { %v2197_v32 = vmul.f32 0.7978846, %v2189_v51  ;;  %v2190_v33 = vadd.f32 %v2182_v54, %v2144_v56 }
 0x987   : > { %v2195_v23 = vmul.f32 0.7978846, %v2187_v49  ;;  %v2188_v25 = vadd.f32 %v2180_v53, %v2136_v62 }
 0x988   : > { %2986 = vtanh.f32 %v2197_v32  ;;  %v2198_v24 = vmul.f32 0.7978846, %v2190_v33 }
 0x989   : > { %2988 = vtanh.f32 %v2195_v23  ;;  %v2196_v40 = vmul.f32 0.7978846, %v2188_v25 }
 0x98a   : > { %2990 = vtanh.f32 %v2198_v24 }
 0x98b   : > { %2992 = vtanh.f32 %v2196_v40 }
 0x992   : > { %v2987_v41 = vpop.eup %2986 }
 0x993   : > { %v2989_v39 = vpop.eup %2988  ;;  %v2213_v10 = vadd.f32 1.0, %v2987_v41 }
 0x994   : > { %v2991_v8 = vpop.eup %2990  ;;  %v2211_v27 = vadd.f32 1.0, %v2989_v39 }
 0x995   : > { %v2993_v43 = vpop.eup %2992  ;;  %v2221_v14 = vmul.f32 0.5, %v2213_v10  ;;  %v2214_v31 = vadd.f32 1.0, %v2991_v8 }
 0x996   : > { %v2212_v50 = vadd.f32 1.0, %v2993_v43  ;;  %v2219_v2 = vmul.f32 0.5, %v2211_v27 }
 0x997   : > { %v2222_v3 = vmul.f32 0.5, %v2214_v31  ;;  %v2229_v21 = vmul.f32 %v2221_v14, %v2141_v19 }
 0x998   : > { %v2220_v4 = vmul.f32 0.5, %v2212_v50  ;;  %v2227_v35 = vmul.f32 %v2219_v2, %v2133_v22  ;;  %v2542_v50 = vld [vmem:[%s3758_s12] ss:$0 sm:$0xff] }
 0x999   : > { %v2230_v38 = vmul.f32 %v2222_v3, %v2144_v56 }
 0x99a   : > { %v2228_v55 = vmul.f32 %v2220_v4, %v2136_v62 }
 0x99b   : > { %v2253_v0 = vpack.c.bf16 %v2230_v38, %v2229_v21 }
 0x99c   : > { %v2252_v57 = vpack.c.bf16 %v2228_v55, %v2227_v35 }
 0x99e   : > { %2798 = vmatprep.mubr.bf16.mxu0 %v2252_v57 }
 0x99f   : > { %2799 = vmatmul.mubr.bf16.vlgmr.msra.gmra.mrb[36].mxu0 %v2253_v0 }
 0x9ba   : > { %v2780_v44 = vpop.f32.mrb[48].mxu1 }
 0x9bb   : > { %v2157_v59 = vadd.f32 %v2780_v44, %v2535_v12  ;;  %v2148_v34 = vpop.f32.mrb[49].mxu1 }
 0x9bc   : > { %v2149_v37 = vadd.f32 %v2535_v12, %v2148_v34  ;;  %v2781_v5 = vpop.f32.mrb[50].mxu1 }
 0x9bd   : > { %v2169_v9 = vmul.f32 %v2157_v59, %v2157_v59  ;;  %v2160_v13 = vadd.f32 %v2781_v5, %v2535_v12  ;;  %v2151_v11 = vpop.f32.mrb[51].mxu1 }
 0x9be   : > { %v2167_v16 = vmul.f32 %v2149_v37, %v2149_v37  ;;  %v2152_v15 = vadd.f32 %v2535_v12, %v2151_v11 }
 0x9bf   : > { %v2177_v17 = vmul.f32 %v2169_v9, %v2157_v59  ;;  %v2170_v28 = vmul.f32 %v2160_v13, %v2160_v13 }
 0x9c0   : > { %v2175_v19 = vmul.f32 %v2167_v16, %v2149_v37  ;;  %v2168_v30 = vmul.f32 %v2152_v15, %v2152_v15 }
 0x9c1   : > { %v2185_v22 = vmul.f32 0.044715, %v2177_v17  ;;  %v2178_v56 = vmul.f32 %v2170_v28, %v2160_v13 }
 0x9c2   : > { %v2183_v58 = vmul.f32 0.044715, %v2175_v19  ;;  %v2176_v61 = vmul.f32 %v2168_v30, %v2152_v15 }
 0x9c3   : > { %v2193_v62 = vadd.f32 %v2185_v22, %v2157_v59  ;;  %v2186_v47 = vmul.f32 0.044715, %v2178_v56 }
 0x9c4   : > { %v2191_v1 = vadd.f32 %v2183_v58, %v2149_v37  ;;  %v2184_v45 = vmul.f32 0.044715, %v2176_v61 }
 0x9c5   : > { %v2201_v20 = vmul.f32 0.7978846, %v2193_v62  ;;  %v2194_v26 = vadd.f32 %v2186_v47, %v2160_v13 }
 0x9c6   : > { %v2199_v29 = vmul.f32 0.7978846, %v2191_v1  ;;  %v2192_v46 = vadd.f32 %v2184_v45, %v2152_v15 }
 0x9c7   : > { %2994 = vtanh.f32 %v2201_v20  ;;  %v2202_v48 = vmul.f32 0.7978846, %v2194_v26 }
 0x9c8   : > { %2996 = vtanh.f32 %v2199_v29  ;;  %v2200_v12 = vmul.f32 0.7978846, %v2192_v46 }
 0x9c9   : > { %2998 = vtanh.f32 %v2202_v48 }
 0x9ca   : > { %3000 = vtanh.f32 %v2200_v12 }
 0x9d1   : > { %v2995_v51 = vpop.eup %2994 }
 0x9d2   : > { %v2997_v54 = vpop.eup %2996  ;;  %v2217_v49 = vadd.f32 1.0, %v2995_v51 }
 0x9d3   : > { %v2999_v53 = vpop.eup %2998  ;;  %v2215_v32 = vadd.f32 1.0, %v2997_v54 }
 0x9d4   : > { %v3001_v33 = vpop.eup %3000  ;;  %v2218_v23 = vadd.f32 1.0, %v2999_v53  ;;  %v2225_v25 = vmul.f32 0.5, %v2217_v49 }
 0x9d5   : > { %v2216_v24 = vadd.f32 1.0, %v3001_v33  ;;  %v2223_v40 = vmul.f32 0.5, %v2215_v32 }
 0x9d6   : > { %v2226_v41 = vmul.f32 0.5, %v2218_v23  ;;  %v2233_v10 = vmul.f32 %v2225_v25, %v2157_v59 }
 0x9d7   : > { %v2224_v39 = vmul.f32 0.5, %v2216_v24  ;;  %v2231_v27 = vmul.f32 %v2223_v40, %v2149_v37 }
 0x9d8   : > { %v2234_v8 = vmul.f32 %v2226_v41, %v2160_v13 }
 0x9d9   : > { %v2232_v43 = vmul.f32 %v2224_v39, %v2152_v15 }
 0x9da   : > { %v2255_v14 = vpack.c.bf16 %v2234_v8, %v2233_v10 }
 0x9db   : > { %v2254_v31 = vpack.c.bf16 %v2232_v43, %v2231_v27 }
 0x9dd   : > { %2802 = vmatprep.mubr.bf16.mxu0 %v2254_v31 }
 0x9de   : > { %2803 = vmatmul.mubr.bf16.gmra.mrb[40].mxu0 %v2255_v14 }
 0xa72   : > { %v2800_v2 = vpop.f32.mrb[36].mxu0 }
 0xa73   : > { %v2353_v3 = vadd.f32 %v2800_v2, %v2542_v50  ;;  %v2344_v4 = vpop.f32.mrb[37].mxu0 }
 0xa74   : > { %v2345_v21 = vadd.f32 %v2542_v50, %v2344_v4  ;;  %v2801_v38 = vpop.f32.mrb[38].mxu0 }
 0xa75   : > { %v2377_v35 = vadd.f32 %v2353_v3, %v3568_v60  ;;  %v2356_v55 = vadd.f32 %v2801_v38, %v2542_v50  ;;  %v2347_v0 = vpop.f32.mrb[39].mxu0 }
 0xa76   : > { %v2375_v57 = vadd.f32 %v2345_v21, %v3565_v42  ;;  %v2348_v44 = vadd.f32 %v2542_v50, %v2347_v0 }
 0xa77   : > { %v2563_v59 = vpack.c.bf16 %v2377_v35, %v2377_v35  ;;  %v2378_v34 = vadd.f32 %v2356_v55, %v3578_v63 }
 0xa78   : > { %v2561_v60 = vpack.c.bf16 %v2375_v57, %v2375_v57  ;;  %v2376_v37 = vadd.f32 %v2348_v44, %v3571_v18 }
 0xa79   : > { %2418 = vst.msk [vmem:[%s3712_s25 + $0x8] sm:$0xf] %vm2415_vm3, %v2563_v59  ;;  %v2564_v5 = vpack.c.bf16 %v2378_v34, %v2378_v34 }
 0xa7a   : > { %2416 = vst.msk [vmem:[%s3712_s25] sm:$0xf] %vm2415_vm3, %v2561_v60  ;;  %v2562_v9 = vpack.c.bf16 %v2376_v37, %v2376_v37 }
 0xa7b   : > { %2419 = vst.msk [vmem:[%s3712_s25 + $0xc] sm:$0xf] %vm2415_vm3, %v2564_v5 }
 0xa7c   : > { %2417 = vst.msk [vmem:[%s3712_s25 + $0x4] sm:$0xf] %vm2415_vm3, %v2562_v9 }
 0xab1   : > { %v2804_v13 = vpop.f32.mrb[40].mxu0 }
 0xab2   : > { %v2369_v42 = vadd.f32 %v2804_v13, %v2542_v50  ;;  %v2360_v11 = vpop.f32.mrb[41].mxu0 }
 0xab3   : > { %v2361_v63 = vadd.f32 %v2542_v50, %v2360_v11  ;;  %v2805_v16 = vpop.f32.mrb[42].mxu0 }
 0xab4   : > { %v2381_v18 = vadd.f32 %v2369_v42, %v3588_v36  ;;  %v2372_v15 = vadd.f32 %v2805_v16, %v2542_v50  ;;  %v2363_v17 = vpop.f32.mrb[43].mxu0 }
 0xab5   : > { %v2379_v28 = vadd.f32 %v2361_v63, %v3585_v6  ;;  %v2364_v19 = vadd.f32 %v2542_v50, %v2363_v17 }
 0xab6   : > { %v2567_v30 = vpack.c.bf16 %v2381_v18, %v2381_v18  ;;  %v2382_v22 = vadd.f32 %v2372_v15, %v3596_v52 }
 0xab7   : > { %v2565_v56 = vpack.c.bf16 %v2379_v28, %v2379_v28  ;;  %v2380_v58 = vadd.f32 %v2364_v19, %v3591_v7 }
 0xab8   : > { %2422 = vst.msk [vmem:[%s3712_s25 + $0x18] sm:$0xf] %vm2415_vm3, %v2567_v30  ;;  %v2568_v61 = vpack.c.bf16 %v2382_v22, %v2382_v22 }
 0xab9   : > { %2420 = vst.msk [vmem:[%s3712_s25 + $0x10] sm:$0xf] %vm2415_vm3, %v2565_v56  ;;  %v2566_v62 = vpack.c.bf16 %v2380_v58, %v2380_v58 }
 0xaba   : > { %2423 = vst.msk [vmem:[%s3712_s25 + $0x1c] sm:$0xf] %vm2415_vm3, %v2568_v61 }
 0xabb   : > { %2421 = vst.msk [vmem:[%s3712_s25 + $0x14] sm:$0xf] %vm2415_vm3, %v2566_v62 }
 0xabc PF: > { %s24_s15 = sadd.s32 1, %s3024_s15   ;;  %s3761_s29 = smov %s3020_s30 }
 0xabd   : > { %p21_p5 = scmp.ge.s32.totalorder %s24_s15, 4   ;;  %s3762_s30 = smov %s3764_s16 }
 0xabf   :  { %23 = sbr.rel (!%p21_p5) target bundleno = 2 (0x2), region = 106 }

// kernel: _lambda_.9
= control target key start
LH: loop header
LB: loop body
LE: loop exit
PB: predicated region body
PF: predicated region fallthrough
CT: control target
= control target key end

     0   :  { %s3204_s18 = smov 0   ;;  %s3206_s19 = smov 0   ;;  %s3883_s0 = inlined_call_operand.vmem [shape: bf16[128,32], index: 0, kind: input, shape index: {}]   ;;  %s3884_s1 = inlined_call_operand.vmem [shape: f32[1,32], index: 1, kind: input, shape index: {}]   ;;  %s3885_s2 = inlined_call_operand.vmem [shape: f32[1,32], index: 2, kind: input, shape index: {}]   ;;  %s3886_s3 = inlined_call_operand.vmem [shape: bf16[32,96], index: 3, kind: input, shape index: {}]   ;;  %s3887_s4 = inlined_call_operand.vmem [shape: f32[1,96], index: 4, kind: input, shape index: {}]   ;;  %s3888_s5 = inlined_call_operand.vmem [shape: bf16[32,32], index: 5, kind: input, shape index: {}]   ;;  %s3889_s6 = inlined_call_operand.vmem [shape: f32[1,32], index: 6, kind: input, shape index: {}]   ;;  %s3890_s7 = inlined_call_operand.vmem [shape: f32[1,32], index: 7, kind: input, shape index: {}]   ;;  %s3891_s8 = inlined_call_operand.vmem [shape: f32[1,32], index: 8, kind: input, shape index: {}]   ;;  %s3892_s9 = inlined_call_operand.vmem [shape: bf16[32,128], index: 9, kind: input, shape index: {}]   ;;  %s3893_s10 = inlined_call_operand.vmem [shape: f32[1,128], index: 10, kind: input, shape index: {}]   ;;  %s3894_s11 = inlined_call_operand.vmem [shape: bf16[128,32], index: 11, kind: input, shape index: {}]   ;;  %s3895_s12 = inlined_call_operand.vmem [shape: f32[1,32], index: 12, kind: input, shape index: {}]   ;;  %s3896_s13 = inlined_call_operand.vmem [shape: f32[2,16,16], index: 13, kind: input, shape index: {}]   ;;  %s3897_s14 = inlined_call_operand.vmem [shape: f32[4,16,16], index: 14, kind: input, shape index: {}]   ;;  %s3898_s15 = inlined_call_operand.vmem [shape: bf16[128,32], index: 15, kind: output, shape index: {}]  }
   0x1   :  { %s3208_s20 = smov 0  }
   0x2 LB: > { %s37_s21 = sadd.s32 1, %s3112_s19  ;;  %p2588_p0 = scmp.ge.s32.totalorder %s3116_s20, 1  ;;  %s3116_s20 = sphi %s3208_s20, %s25_s20   ;;  %s3112_s19 = sphi %s3206_s19, %s3900_s19   ;;  %s3108_s18 = sphi %s3204_s18, %s3899_s18  }
   0x3   : > { %p39_p1 = scmp.ge.s32.totalorder %s37_s21, 2  ;;  %p468_p2 = scmp.lt.s32.totalorder %s3116_s20, 3 }
   0x5   : > { %s3902_s21 = smov (%p39_p1, %s37_s21), 0  ;;  %p469_p3 = pnand %p2588_p0, %p468_p2 }
   0x6   : > { %s2589_s22 = sshll.u32 (!%p469_p3), %s3108_s18, 3  ;;  %vm566_vm0 = vcmask (!%p469_p3), 261120   ;;  %v2968_v60 = vld [vmem:[%s3886_s3] sm:$0xff] (!%p469_p3)   ;;  %v2969_v61 = vld [vmem:[%s3886_s3 + $0x8] sm:$0xff] (!%p469_p3)   ;;  %vm3119_vm1 = vmmov (!%p469_p3), 0   ;;  %s3120_s27 = smov (!%p469_p3), 112  }
   0x7   : > { %472 = sbr.rel (%p469_p3) target bundleno = 2750 (0xabe), region = 80  ;;  %p526_p4 = scmp.lt.s32.totalorder (!%p469_p3), %s2589_s22, 15  ;;  %2742 = vmatprep.subr.bf16.mxu1 (!%p469_p3), %v2968_v60  ;;  %vm847_vm2 = vcmask (!%p469_p3), 130048   ;;  %vm2491_vm3 = vcmask (!%p469_p3), 257024  }
   0x8   : > { %2743 = vmatpush3.bf16.msra.mxu1 (!%p469_p3), %v2968_v60  ;;  %s3121_s28 = smov (!%p469_p3), 96   ;;  %s3122_s18 = smov (!%p469_p3), 64  }
   0x9   : > { %2744 = vmatprep.subr.bf16.mxu1 (!%p469_p3), %v2969_v61 }
   0xc   : > { %2745 = vmatpush3.bf16.msra.mxu1 (!%p469_p3), %v2969_v61 }
   0xe   : > { %s3904_s22 = smov (!%p526_p4, %s2589_s22), 15 }
   0xf   : > { %s2590_s23 = sshll.u32 %s3904_s22, 2 }
  0x10   : > { %s529_s26 = scalar_lea.vmem %s3883_s0, %s2590_s23  ;;  %s3849_s16 = scalar_lea.vmem %s3898_s15, %s2590_s23 }
  0x11   : > { %v2662_v0 = vld [vmem:[%s529_s26] sm:$0xff]   ;;  %v2677_v1 = vld [vmem:[%s529_s26 + $0x8] sm:$0xff]   ;;  %v2678_v6 = vld [vmem:[%s529_s26 + $0x10] sm:$0xff]  }
  0x12   : > { %v3230_v2 = vunpack.c.l.bf16 %v2662_v0  ;;  %v3232_v3 = vunpack.c.l.bf16 %v2677_v1  ;;  %v3234_v4 = vunpack.c.h.bf16 %v2662_v0  ;;  %v3236_v5 = vunpack.c.h.bf16 %v2677_v1  ;;  %v2679_v13 = vld [vmem:[%s529_s26 + $0x18] sm:$0xff]  }
  0x13   : > { %v3246_v11 = vunpack.c.l.bf16 %v2678_v6  ;;  %v3248_v12 = vunpack.c.h.bf16 %v2678_v6  ;;  %v3254_v16 = vunpack.c.l.bf16 %v2679_v13  ;;  %v3256_v17 = vunpack.c.h.bf16 %v2679_v13 }
  0x14   : > { %v567_v7 = vsel %vm566_vm0, %v3230_v2, 0.0  ;;  %v573_v8 = vsel %vm566_vm0, %v3232_v3, 0.0  ;;  %v570_v9 = vsel %vm566_vm0, %v3234_v4, 0.0  ;;  %v576_v10 = vsel %vm566_vm0, %v3236_v5, 0.0 }
  0x15   : > { %568 = vadd.xlane.f32.xlu0 %v567_v7  ;;  %574 = vadd.xlane.f32.xlu1 %v573_v8  ;;  %v579_v14 = vsel %vm566_vm0, %v3246_v11, 0.0  ;;  %v582_v15 = vsel %vm566_vm0, %v3248_v12, 0.0  ;;  %v585_v18 = vsel %vm566_vm0, %v3254_v16, 0.0  ;;  %v588_v19 = vsel %vm566_vm0, %v3256_v17, 0.0 }
  0x19   : > { %571 = vadd.xlane.f32.xlu0 %v570_v9  ;;  %577 = vadd.xlane.f32.xlu1 %v576_v10 }
  0x1d   : > { %580 = vadd.xlane.f32.xlu0 %v579_v14  ;;  %583 = vadd.xlane.f32.xlu1 %v582_v15 }
  0x21   : > { %586 = vadd.xlane.f32.xlu0 %v585_v18  ;;  %589 = vadd.xlane.f32.xlu1 %v588_v19 }
  0xa2   : > { %v569_v20 = vpop.xlane.xlu0 %568  ;;  %v575_v21 = vpop.xlane.xlu1 %574 }
  0xa3   : > { %v592_v22 = vmul.f32 0.03125, %v569_v20  ;;  %v594_v23 = vmul.f32 0.03125, %v575_v21 }
  0xa5   : > { %v3263_v24 = vsub.f32 %v3230_v2, %v592_v22  ;;  %v3266_v25 = vsub.f32 %v3232_v3, %v594_v23 }
  0xa6   : > { %v572_v26 = vpop.xlane.xlu0 %571  ;;  %v578_v27 = vpop.xlane.xlu1 %577 }
  0xa7   : > { %v593_v28 = vmul.f32 0.03125, %v572_v26  ;;  %v595_v29 = vmul.f32 0.03125, %v578_v27  ;;  %v608_v30 = vmul.f32 %v3263_v24, %v3263_v24  ;;  %v610_v31 = vmul.f32 %v3266_v25, %v3266_v25 }
  0xa9   : > { %v3273_v32 = vsub.f32 %v3234_v4, %v593_v28  ;;  %v3276_v33 = vsub.f32 %v3236_v5, %v595_v29  ;;  %v616_v34 = vsel %vm566_vm0, %v608_v30, 0.0  ;;  %v622_v37 = vsel %vm566_vm0, %v610_v31, 0.0 }
  0xaa   : > { %617 = vadd.xlane.f32.xlu0 %v616_v34  ;;  %v581_v35 = vpop.xlane.xlu0 %580  ;;  %v584_v36 = vpop.xlane.xlu1 %583 }
  0xab   : > { %v596_v38 = vmul.f32 0.03125, %v581_v35  ;;  %v597_v39 = vmul.f32 0.03125, %v584_v36  ;;  %v609_v40 = vmul.f32 %v3273_v32, %v3273_v32  ;;  %v611_v41 = vmul.f32 %v3276_v33, %v3276_v33  ;;  %v2593_v35 = vld [vmem:[%s3884_s1] ss:$0 sm:$0xff] }
  0xad   : > { %v3285_v42 = vsub.f32 %v3246_v11, %v596_v38  ;;  %v3288_v43 = vsub.f32 %v3248_v12, %v597_v39  ;;  %v619_v44 = vsel %vm566_vm0, %v609_v40, 0.0  ;;  %v625_v47 = vsel %vm566_vm0, %v611_v41, 0.0 }
  0xae   : > { %623 = vadd.xlane.f32.xlu0 %v622_v37  ;;  %620 = vadd.xlane.f32.xlu1 %v619_v44  ;;  %v587_v45 = vpop.xlane.xlu0 %586  ;;  %v590_v46 = vpop.xlane.xlu1 %589 }
  0xaf   : > { %v598_v48 = vmul.f32 0.03125, %v587_v45  ;;  %v599_v49 = vmul.f32 0.03125, %v590_v46  ;;  %v612_v50 = vmul.f32 %v3285_v42, %v3285_v42  ;;  %v613_v51 = vmul.f32 %v3288_v43, %v3288_v43 }
  0xb1   : > { %v3297_v52 = vsub.f32 %v3254_v16, %v598_v48  ;;  %v3300_v53 = vsub.f32 %v3256_v17, %v599_v49  ;;  %v628_v54 = vsel %vm566_vm0, %v612_v50, 0.0  ;;  %v631_v55 = vsel %vm566_vm0, %v613_v51, 0.0 }
  0xb2   : > { %626 = vadd.xlane.f32.xlu1 %v625_v47  ;;  %629 = vadd.xlane.f32.xlu0 %v628_v54 }
  0xb3   : > { %v614_v56 = vmul.f32 %v3297_v52, %v3297_v52  ;;  %v615_v57 = vmul.f32 %v3300_v53, %v3300_v53 }
  0xb5   : > { %v634_v58 = vsel %vm566_vm0, %v614_v56, 0.0  ;;  %v637_v59 = vsel %vm566_vm0, %v615_v57, 0.0 }
  0xb6   : > { %632 = vadd.xlane.f32.xlu1 %v631_v55  ;;  %635 = vadd.xlane.f32.xlu0 %v634_v58 }
  0xba   : > { %638 = vadd.xlane.f32.xlu1 %v637_v59 }
 0x137   : > { %v618_v62 = vpop.xlane.xlu0 %617 }
 0x138   : > { %v640_v63 = vmul.f32 0.03125, %v618_v62 }
 0x13a   : > { %v648_v0 = vadd.f32 1e-05, %v640_v63 }
 0x13b   : > { %v621_v1 = vpop.xlane.xlu1 %620  ;;  %v624_v6 = vpop.xlane.xlu0 %623 }
 0x13c   : > { %2982 = vrsqrt.f32 %v648_v0  ;;  %v641_v7 = vmul.f32 0.03125, %v621_v1  ;;  %v642_v8 = vmul.f32 0.03125, %v624_v6 }
 0x13e   : > { %v649_v9 = vadd.f32 1e-05, %v641_v7  ;;  %v650_v10 = vadd.f32 1e-05, %v642_v8 }
 0x13f   : > { %v627_v13 = vpop.xlane.xlu1 %626  ;;  %v630_v14 = vpop.xlane.xlu0 %629 }
 0x140   : > { %2984 = vrsqrt.f32 %v649_v9  ;;  %v643_v15 = vmul.f32 0.03125, %v627_v13  ;;  %v644_v18 = vmul.f32 0.03125, %v630_v14 }
 0x141   : > { %2986 = vrsqrt.f32 %v650_v10  ;;  %v2595_v10 = vld [vmem:[%s3887_s4] ss:$0 sm:$0xff] }
 0x142   : > { %v651_v19 = vadd.f32 1e-05, %v643_v15  ;;  %v652_v20 = vadd.f32 1e-05, %v644_v18 }
 0x143   : > { %v633_v21 = vpop.xlane.xlu1 %632  ;;  %v636_v22 = vpop.xlane.xlu0 %635 }
 0x144   : > { %2988 = vrsqrt.f32 %v651_v19  ;;  %v645_v23 = vmul.f32 0.03125, %v633_v21  ;;  %v646_v26 = vmul.f32 0.03125, %v636_v22 }
 0x145   : > { %2990 = vrsqrt.f32 %v652_v20 }
 0x146   : > { %v2983_v27 = vpop.eup %2982  ;;  %v653_v28 = vadd.f32 1e-05, %v645_v23  ;;  %v654_v29 = vadd.f32 1e-05, %v646_v26 }
 0x147   : > { %v639_v30 = vpop.xlane.xlu1 %638  ;;  %v664_v31 = vmul.f32 %v2983_v27, %v3263_v24  ;;  %v2594_v24 = vld [vmem:[%s3885_s2] ss:$0 sm:$0xff] }
 0x148   : > { %2992 = vrsqrt.f32 %v653_v28  ;;  %v647_v34 = vmul.f32 0.03125, %v639_v30 }
 0x149   : > { %2994 = vrsqrt.f32 %v654_v29  ;;  %v678_v40 = vmul.f32 %v2593_v35, %v664_v31 }
 0x14a   : > { %v2985_v36 = vpop.eup %2984  ;;  %v655_v37 = vadd.f32 1e-05, %v647_v34 }
 0x14b   : > { %v2987_v38 = vpop.eup %2986  ;;  %v665_v39 = vmul.f32 %v2985_v36, %v3273_v32  ;;  %v692_v48 = vadd.f32 %v2594_v24, %v678_v40 }
 0x14c   : > { %v666_v41 = vmul.f32 %v2987_v38, %v3266_v25  ;;  %2996 = vrsqrt.f32 %v655_v37 }
 0x14d   : > { %v679_v44 = vmul.f32 %v2593_v35, %v665_v39 }
 0x14e   : > { %v2989_v45 = vpop.eup %2988  ;;  %v680_v50 = vmul.f32 %v2593_v35, %v666_v41 }
 0x14f   : > { %v2991_v46 = vpop.eup %2990  ;;  %v667_v47 = vmul.f32 %v2989_v45, %v3276_v33  ;;  %v693_v49 = vadd.f32 %v2594_v24, %v679_v44 }
 0x150   : > { %v668_v51 = vmul.f32 %v2991_v46, %v3285_v42  ;;  %v694_v57 = vadd.f32 %v2594_v24, %v680_v50 }
 0x151   : > { %v705_v54 = vpack.c.bf16 %v693_v49, %v692_v48  ;;  %v681_v32 = vmul.f32 %v2593_v35, %v667_v47 }
 0x152   : > { %v2993_v55 = vpop.eup %2992  ;;  %v682_v59 = vmul.f32 %v2593_v35, %v668_v51 }
 0x153   : > { %v2995_v56 = vpop.eup %2994  ;;  %v669_v25 = vmul.f32 %v2993_v55, %v3288_v43  ;;  %2746 = vmatprep.mubr.msk.bf16.mxu1 %vm566_vm0, %v705_v54  ;;  %v695_v58 = vadd.f32 %v2594_v24, %v681_v32 }
 0x154   : > { %v670_v60 = vmul.f32 %v2995_v56, %v3297_v52  ;;  %v696_v42 = vadd.f32 %v2594_v24, %v682_v59 }
 0x155   : > { %v706_v61 = vpack.c.bf16 %v695_v58, %v694_v57  ;;  %v683_v33 = vmul.f32 %v2593_v35, %v669_v25 }
 0x156   : > { %v2997_v62 = vpop.eup %2996  ;;  %v684_v1 = vmul.f32 %v2593_v35, %v670_v60 }
 0x157   : > { %v671_v63 = vmul.f32 %v2997_v62, %v3300_v53  ;;  %2747 = vmatmul.mubr.msk.bf16.vlgmr.msra.gmra.mrb[0].mxu1 %vm566_vm0, %v706_v61  ;;  %v697_v0 = vadd.f32 %v2594_v24, %v683_v33  ;;  %v3118_v53 = vmov 0.0  }
 0x158   : > { %v698_v43 = vadd.f32 %v2594_v24, %v684_v1  ;;  %2754 = vmatprep.subr.bf16.mxu1 %v3118_v53  ;;  %2766 = vmatprep.subr.bf16.mxu0 %v3118_v53 }
 0x159   : > { %v707_v6 = vpack.c.bf16 %v697_v0, %v696_v42  ;;  %v685_v7 = vmul.f32 %v2593_v35, %v671_v63  ;;  %2768 = vmatprep.mubr.msk.bf16.mxu0 %vm3119_vm1, %v3118_v53 }
 0x15b   : > { %2750 = vmatprep.mubr.msk.bf16.mxu1 %vm566_vm0, %v707_v6  ;;  %v699_v8 = vadd.f32 %v2594_v24, %v685_v7 }
 0x15d   : > { %v708_v9 = vpack.c.bf16 %v699_v8, %v698_v43 }
 0x15f   : > { %2751 = vmatmul.mubr.msk.bf16.gmra.mrb[4].mxu1 %vm566_vm0, %v708_v9 }
 0x160   : > { %2756 = vmatprep.mubr.msk.bf16.mxu1 %vm3119_vm1, %v3118_v53 }
 0x22a   : > { %v2748_v52 = vpop.f32.mrb[0].mxu1 }
 0x22b   : > { %v773_v13 = vpop.f32.mrb[1].mxu1  ;;  %v782_v15 = vadd.f32 %v2748_v52, %v2595_v10 }
 0x22c   : > { %v2749_v14 = vpop.f32.mrb[2].mxu1  ;;  %v774_v20 = vadd.f32 %v2595_v10, %v773_v13  ;;  %v1245_v13 = vld [vmem:[%s3896_s13] sm:$0xff] }
 0x22d   : > { %v785_v18 = vadd.f32 %v2749_v14, %v2595_v10  ;;  %v776_v19 = vpop.f32.mrb[3].mxu1 }
 0x22e   : > { %v777_v21 = vadd.f32 %v2595_v10, %v776_v19 }
 0x22f   : > { %v2933_v22 = vpack.i.bf16 %v785_v18, %v782_v15  ;;  %v3339_v23 = vpack.c.bf16 %v785_v18, %v782_v15  ;;  %v1246_v15 = vld [vmem:[%s3896_s13 + $0x8] sm:$0xff]  ;;  %v3432_v18 = vld [vmem:[%s3897_s14] sm:$0xff] }
 0x230   : > { %v2928_v26 = vpack.i.bf16 %v777_v21, %v774_v20  ;;  %v3341_v27 = vpack.c.bf16 %v777_v21, %v774_v20 }
 0x231   : > { %2934 = vrot.lane.b32.xlu1 %v2933_v22, %s3120_s27  ;;  %v3437_v22 = vld [vmem:[%s3897_s14 + $0x8] sm:$0xff] }
 0x232   : > { %2929 = vrot.lane.b32.xlu0 %v2928_v26, %s3120_s27  ;;  %v2752_v28 = vpop.f32.mrb[4].mxu1 }
 0x233   : > { %v789_v29 = vpop.f32.mrb[5].mxu1  ;;  %v798_v31 = vadd.f32 %v2752_v28, %v2595_v10 }
 0x234   : > { %v2753_v30 = vpop.f32.mrb[6].mxu1  ;;  %v790_v36 = vadd.f32 %v2595_v10, %v789_v29 }
 0x235   : > { %v801_v34 = vadd.f32 %v2753_v30, %v2595_v10  ;;  %v792_v35 = vpop.f32.mrb[7].mxu1 }
 0x236   : > { %v793_v37 = vadd.f32 %v2595_v10, %v792_v35  ;;  %845 = vrot.lane.b32.xlu0 %v3341_v27, %s3121_s28 }
 0x237   : > { %v2943_v38 = vpack.i.bf16 %v801_v34, %v798_v31  ;;  %v3349_v39 = vpack.c.bf16 %v801_v34, %v798_v31 }
 0x238   : > { %v2938_v40 = vpack.i.bf16 %v793_v37, %v790_v36  ;;  %v3351_v41 = vpack.c.bf16 %v793_v37, %v790_v36  ;;  %v3450_v37 = vld [vmem:[%s3897_s14 + $0x28] sm:$0xff] }
 0x23a   : > { %2939 = vrot.lane.b32.xlu1 %v2938_v40, %s3120_s27  ;;  %946 = vrot.lane.b32.xlu0 %v3351_v41, %s3121_s28 }
 0x23e   : > { %2944 = vrot.lane.b32.xlu1 %v2943_v38, %s3120_s27 }
 0x242   : > { %896 = vrot.lane.b32.xlu1 %v3339_v23, %s3121_s28 }
 0x246   : > { %996 = vrot.lane.b32.xlu1 %v3349_v39, %s3121_s28 }
 0x2a3   : > { %v2935_v24 = vpop.permute.xlu1 %2934 }
 0x2a4   : > { %v2937_v44 = vunpack.i.h.bf16 %v2935_v24  ;;  %v2936_v45 = vunpack.i.l.bf16 %v2935_v24  ;;  %v2930_v46 = vpop.permute.xlu0 %2929 }
 0x2a5   : > { %v2932_v47 = vunpack.i.h.bf16 %v2930_v46  ;;  %v2931_v48 = vunpack.i.l.bf16 %v2930_v46 }
 0x2a6   : > { %v3359_v49 = vpack.c.bf16 %v2937_v44, %v2936_v45 }
 0x2a7   : > { %v3361_v50 = vpack.c.bf16 %v2932_v47, %v2931_v48  ;;  %v1267_v47 = vld [vmem:[%s3897_s14 + $0x10] sm:$0xff] }
 0x2a8   : > { %1096 = vrot.lane.b32.xlu1 %v3359_v49, %s3121_s28  ;;  %v846_v51 = vpop.permute.xlu0 %845 }
 0x2a9   : > { %v852_v54 = vsel %vm847_vm2, %v846_v51, 0  ;;  %1046 = vrot.lane.b32.xlu0 %v3361_v50, %s3121_s28 }
 0x2aa   : > { %2755 = vmatpush3.bf16.xpose.msra.mxu1 %v852_v54 }
 0x2ab   : > { %2760 = vmatprep.subr.bf16.mxu1 %v3118_v53 }
 0x2ac   : > { %v2940_v32 = vpop.permute.xlu1 %2939  ;;  %v947_v55 = vpop.permute.xlu0 %946 }
 0x2ad   : > { %v2942_v56 = vunpack.i.h.bf16 %v2940_v32  ;;  %v2941_v25 = vunpack.i.l.bf16 %v2940_v32  ;;  %v952_v57 = vsel %vm847_vm2, %v947_v55, 0  ;;  %v1268_v32 = vld [vmem:[%s3897_s14 + $0x18] sm:$0xff] }
 0x2ae   : > { %2767 = vmatpush3.bf16.xpose.msra.mxu0 %v952_v57 }
 0x2af   : > { %v3370_v58 = vpack.c.bf16 %v2942_v56, %v2941_v25  ;;  %2778 = vmatprep.subr.bf16.mxu0 %v3118_v53 }
 0x2b0   : > { %v2945_v59 = vpop.permute.xlu1 %2944 }
 0x2b1   : > { %v2947_v60 = vunpack.i.h.bf16 %v2945_v59  ;;  %v2946_v61 = vunpack.i.l.bf16 %v2945_v59  ;;  %2757 = vmatmul.mubr.msk.bf16.vlgmr.msra.gmra.mrb[8].mxu1 %vm847_vm2, %v3341_v27  ;;  %1146 = vrot.lane.b32.xlu0 %v3370_v58, %s3121_s28 }
 0x2b2   : > { %2762 = vmatprep.mubr.msk.bf16.mxu1 %vm3119_vm1, %v3118_v53 }
 0x2b3   : > { %v3379_v33 = vpack.c.bf16 %v2947_v60, %v2946_v61  ;;  %v1269_v61 = vld [vmem:[%s3897_s14 + $0x20] sm:$0xff] }
 0x2b4   : > { %v897_v62 = vpop.permute.xlu1 %896 }
 0x2b5   : > { %v902_v63 = vsel %vm847_vm2, %v897_v62, 0  ;;  %1196 = vrot.lane.b32.xlu1 %v3379_v33, %s3121_s28  ;;  %2769 = vmatmul.mubr.msk.bf16.vlgmr.msra.gmra.mrb[0].mxu0 %vm847_vm2, %v3351_v41  ;;  %s3123_s28 = smov 16  }
 0x2b6   : > { %2761 = vmatpush3.bf16.xpose.msra.mxu1 %v902_v63  ;;  %2780 = vmatprep.mubr.msk.bf16.mxu0 %vm3119_vm1, %v3118_v53 }
 0x2b7   : > { %2772 = vmatprep.subr.bf16.mxu1 %v3118_v53 }
 0x2b8   : > { %v997_v42 = vpop.permute.xlu1 %996 }
 0x2b9   : > { %v1002_v0 = vsel %vm847_vm2, %v997_v42, 0 }
 0x2bd   : > { %2763 = vmatmul.mubr.msk.bf16.vlgmr.msra.gmra.mrb[12].mxu1 %vm847_vm2, %v3339_v23 }
 0x2be   : > { %2773 = vmatpush3.bf16.xpose.msra.mxu1 %v1002_v0  ;;  %2774 = vmatprep.mubr.msk.bf16.mxu1 %vm3119_vm1, %v3118_v53 }
 0x2bf   : > { %2784 = vmatprep.subr.bf16.mxu1 %v3118_v53 }
 0x2c5   : > { %2775 = vmatmul.mubr.msk.bf16.vlgmr.msra.gmra.mrb[16].mxu1 %vm847_vm2, %v3349_v39 }
 0x2c6   : > { %2786 = vmatprep.mubr.msk.bf16.mxu1 %vm3119_vm1, %v3118_v53 }
 0x31a   : > { %v1097_v1 = vpop.permute.xlu1 %1096 }
 0x31b   : > { %v1102_v6 = vsel %vm847_vm2, %v1097_v1, 0  ;;  %v1047_v7 = vpop.permute.xlu0 %1046 }
 0x31c   : > { %v1052_v43 = vsel %vm847_vm2, %v1047_v7, 0  ;;  %2785 = vmatpush3.bf16.xpose.msra.mxu1 %v1102_v6  ;;  %v3481_v7 = vld [vmem:[%s3897_s14 + $0x38] sm:$0xff] }
 0x31d   : > { %2779 = vmatpush3.bf16.xpose.msra.mxu0 %v1052_v43  ;;  %2796 = vmatprep.subr.bf16.mxu1 %v3118_v53  ;;  %v1271_v43 = vld [vmem:[%s3897_s14 + $0x30] sm:$0xff] }
 0x31e   : > { %2790 = vmatprep.subr.bf16.mxu0 %v3118_v53 }
 0x323   : > { %2787 = vmatmul.mubr.msk.bf16.vlgmr.msra.gmra.mrb[20].mxu1 %vm847_vm2, %v3359_v49  ;;  %v1147_v8 = vpop.permute.xlu0 %1146 }
 0x324   : > { %v1152_v9 = vsel %vm847_vm2, %v1147_v8, 0  ;;  %2781 = vmatmul.mubr.msk.bf16.vlgmr.msra.gmra.mrb[4].mxu0 %vm847_vm2, %v3361_v50  ;;  %2798 = vmatprep.mubr.msk.bf16.mxu1 %vm3119_vm1, %v3118_v53 }
 0x325   : > { %2791 = vmatpush3.bf16.xpose.msra.mxu0 %v1152_v9  ;;  %2792 = vmatprep.mubr.msk.bf16.mxu0 %vm3119_vm1, %v3118_v53 }
 0x326   : > { %2802 = vmatprep.subr.bf16.mxu0 %v3118_v53 }
 0x327   : > { %v1197_v52 = vpop.permute.xlu1 %1196 }
 0x328   : > { %v1202_v10 = vsel %vm847_vm2, %v1197_v52, 0 }
 0x329   : > { %2797 = vmatpush3.bf16.xpose.msra.mxu1 %v1202_v10 }
 0x32a   : > { %2808 = vmatprep.subr.bf16.mxu1 %v3118_v53 }
 0x32c   : > { %2793 = vmatmul.mubr.msk.bf16.vlgmr.msra.gmra.mrb[8].mxu0 %vm847_vm2, %v3370_v58 }
 0x32d   : > { %2804 = vmatprep.mubr.msk.bf16.mxu0 %vm3119_vm1, %v3118_v53 }
 0x330   : > { %2799 = vmatmul.mubr.msk.bf16.vlgmr.msra.gmra.mrb[24].mxu1 %vm847_vm2, %v3379_v33 }
 0x331   : > { %2810 = vmatprep.mubr.msk.bf16.mxu1 %vm3119_vm1, %v3118_v53 }
 0x384   : > { %v888_v14 = vpop.f32.mrb[8].mxu1 }
 0x385   : > { %v1249_v19 = vadd.f32 %v1245_v13, %v888_v14  ;;  %v2758_v20 = vpop.f32.mrb[9].mxu1 }
 0x386   : > { %v891_v21 = vpop.f32.mrb[10].mxu1 }
 0x387   : > { %v1250_v26 = vadd.f32 %v1246_v15, %v891_v21  ;;  %v2759_v28 = vpop.f32.mrb[11].mxu1  ;;  %v3440_v29 = vadd.f32 %v3432_v18, %v1249_v19  ;;  %v1248_v21 = vld [vmem:[%s3896_s13 + $0x18] sm:$0xff] }
 0x388   : > { %v988_v30 = vpop.f32.mrb[0].mxu0 }
 0x389   : > { %v2770_v31 = vpop.f32.mrb[1].mxu0  ;;  %v1289_v34 = vsel %vm847_vm2, %v3440_v29, -inf  ;;  %v3445_v35 = vadd.f32 %v3437_v22, %v1250_v26  ;;  %v1253_v57 = vadd.f32 %v1245_v13, %v988_v30 }
 0x38a   : > { %v991_v36 = vpop.f32.mrb[2].mxu0  ;;  %1290 = vmax.xlane.f32.xlu0 %v1289_v34 }
 0x38b   : > { %v1254_v38 = vadd.f32 %v1246_v15, %v991_v36  ;;  %v2771_v40 = vpop.f32.mrb[3].mxu0  ;;  %v1292_v24 = vsel %vm847_vm2, %v3445_v35, -inf  ;;  %v3476_v1 = vadd.f32 %v1269_v61, %v1253_v57 }
 0x38c   : > { %1293 = vmax.xlane.f32.xlu1 %v1292_v24 }
 0x38d   : > { %v3455_v44 = vadd.f32 %v3450_v37, %v1254_v38  ;;  %v1301_v52 = vsel %vm847_vm2, %v3476_v1, -inf }
 0x38f   : > { %v1304_v45 = vsel %vm847_vm2, %v3455_v44, -inf }
 0x390   : > { %v938_v46 = vpop.f32.mrb[12].mxu1  ;;  %1305 = vmax.xlane.f32.xlu1 %v1304_v45 }
 0x391   : > { %v1251_v48 = vadd.f32 %v1245_v13, %v938_v46  ;;  %v2764_v51 = vpop.f32.mrb[13].mxu1 }
 0x392   : > { %v941_v54 = vpop.f32.mrb[14].mxu1 }
 0x393   : > { %v1252_v55 = vadd.f32 %v1246_v15, %v941_v54  ;;  %v2765_v56 = vpop.f32.mrb[15].mxu1  ;;  %v3465_v25 = vadd.f32 %v1267_v47, %v1251_v48 }
 0x395   : > { %v1295_v59 = vsel %vm847_vm2, %v3465_v25, -inf  ;;  %v3469_v60 = vadd.f32 %v1268_v32, %v1252_v55 }
 0x396   : > { %1296 = vmax.xlane.f32.xlu0 %v1295_v59 }
 0x397   : > { %v1298_v0 = vsel %vm847_vm2, %v3469_v60, -inf }
 0x398   : > { %v1038_v62 = vpop.f32.mrb[16].mxu1 }
 0x399   : > { %v1255_v63 = vadd.f32 %v1245_v13, %v1038_v62  ;;  %v2776_v42 = vpop.f32.mrb[17].mxu1 }
 0x39a   : > { %v1041_v6 = vpop.f32.mrb[18].mxu1  ;;  %1299 = vmax.xlane.f32.xlu0 %v1298_v0 }
 0x39b   : > { %v1256_v8 = vadd.f32 %v1246_v15, %v1041_v6  ;;  %v2777_v9 = vpop.f32.mrb[19].mxu1  ;;  %v3491_v13 = vadd.f32 %v1271_v43, %v1255_v63  ;;  %v1247_v15 = vld [vmem:[%s3896_s13 + $0x10] sm:$0xff] }
 0x39d   : > { %v3489_v10 = vadd.f32 %v3481_v7, %v1256_v8  ;;  %v1307_v19 = vsel %vm847_vm2, %v3491_v13, -inf }
 0x39e   : > { %1302 = vmax.xlane.f32.xlu0 %v1301_v52 }
 0x39f   : > { %v1310_v14 = vsel %vm847_vm2, %v3489_v10, -inf }
 0x3a0   : > { %1311 = vmax.xlane.f32.xlu1 %v1310_v14 }
 0x3a2   : > { %1308 = vmax.xlane.f32.xlu0 %v1307_v19 }
 0x3f6   : > { %v1138_v20 = vpop.f32.mrb[20].mxu1 }
 0x3f7   : > { %v1259_v26 = vadd.f32 %v1247_v15, %v1138_v20  ;;  %v1088_v28 = vpop.f32.mrb[4].mxu0  ;;  %v2788_v30 = vpop.f32.mrb[21].mxu1 }
 0x3f8   : > { %v1257_v31 = vadd.f32 %v1247_v15, %v1088_v28  ;;  %v2782_v34 = vpop.f32.mrb[5].mxu0  ;;  %v1141_v36 = vpop.f32.mrb[22].mxu1 }
 0x3f9   : > { %v1260_v38 = vadd.f32 %v1248_v21, %v1141_v36  ;;  %v1091_v40 = vpop.f32.mrb[6].mxu0  ;;  %v2789_v24 = vpop.f32.mrb[23].mxu1  ;;  %v3503_v45 = vadd.f32 %v1267_v47, %v1259_v26 }
 0x3fa   : > { %v1258_v46 = vadd.f32 %v1248_v21, %v1091_v40  ;;  %v2783_v48 = vpop.f32.mrb[7].mxu0  ;;  %v3510_v55 = vadd.f32 %v3432_v18, %v1257_v31 }
 0x3fb   : > { %v1319_v51 = vsel %vm847_vm2, %v3503_v45, -inf  ;;  %v3507_v54 = vadd.f32 %v1268_v32, %v1260_v38 }
 0x3fc   : > { %1320 = vmax.xlane.f32.xlu0 %v1319_v51  ;;  %v3515_v57 = vadd.f32 %v3437_v22, %v1258_v46  ;;  %v1313_v59 = vsel %vm847_vm2, %v3510_v55, -inf }
 0x3fd   : > { %v1322_v56 = vsel %vm847_vm2, %v3507_v54, -inf }
 0x3fe   : > { %1323 = vmax.xlane.f32.xlu1 %v1322_v56  ;;  %v1316_v32 = vsel %vm847_vm2, %v3515_v57, -inf }
 0x3ff   : > { %v1188_v47 = vpop.f32.mrb[8].mxu0 }
 0x400   : > { %1314 = vmax.xlane.f32.xlu0 %v1313_v59  ;;  %v2794_v62 = vpop.f32.mrb[9].mxu0  ;;  %v1261_v6 = vadd.f32 %v1247_v15, %v1188_v47 }
 0x401   : > { %v1191_v63 = vpop.f32.mrb[10].mxu0 }
 0x402   : > { %v1262_v18 = vadd.f32 %v1248_v21, %v1191_v63  ;;  %1317 = vmax.xlane.f32.xlu1 %v1316_v32  ;;  %v2795_v42 = vpop.f32.mrb[11].mxu0  ;;  %v3525_v26 = vadd.f32 %v1269_v61, %v1261_v6 }
 0x403   : > { %v1238_v0 = vpop.f32.mrb[24].mxu1 }
 0x404   : > { %v1263_v8 = vadd.f32 %v1247_v15, %v1238_v0  ;;  %v2800_v9 = vpop.f32.mrb[25].mxu1  ;;  %v1325_v28 = vsel %vm847_vm2, %v3525_v26, -inf }
 0x405   : > { %v1241_v22 = vpop.f32.mrb[26].mxu1 }
 0x406   : > { %v1264_v52 = vadd.f32 %v1248_v21, %v1241_v22  ;;  %v2801_v14 = vpop.f32.mrb[27].mxu1  ;;  %v3521_v19 = vadd.f32 %v1271_v43, %v1263_v8 }
 0x408   : > { %v1331_v20 = vsel %vm847_vm2, %v3521_v19, -inf  ;;  %v3543_v36 = vadd.f32 %v3481_v7, %v1264_v52 }
 0x409   : > { %1332 = vmax.xlane.f32.xlu0 %v1331_v20 }
 0x40d   : > { %1326 = vmax.xlane.f32.xlu0 %v1325_v28 }
 0x413   : > { %1520 = vrot.lane.b32.xlu1 %v3339_v23, %s3122_s18 }
 0x417   : > { %1567 = vrot.lane.b32.xlu1 %v3351_v41, %s3122_s18  ;;  %v1291_v43 = vpop.xlane.xlu0 %1290 }
 0x418   : > { %v1337_v21 = vsub.f32 %v3440_v29, %v1291_v43  ;;  %v3549_v29 = vadd.f32 %v3450_v37, %v1262_v18 }
 0x419   : > { %v1294_v56 = vpop.xlane.xlu1 %1293 }
 0x41a   : > { %v1353_v31 = vmul.f32 1.442695, %v1337_v21  ;;  %v1338_v47 = vsub.f32 %v3445_v35, %v1294_v56 }
 0x41b   : > { %1614 = vrot.lane.b32.xlu1 %v3349_v39, %s3122_s18 }
 0x41c   : > { %2998 = vpow2.f32 %v1353_v31  ;;  %v1355_v59 = vmul.f32 1.442695, %v1338_v47 }
 0x41d   : > { %v1306_v63 = vpop.xlane.xlu1 %1305 }
 0x41e   : > { %v1342_v32 = vsub.f32 %v3455_v44, %v1306_v63 }
 0x420   : > { %v1363_v0 = vmul.f32 1.442695, %v1342_v32 }
 0x423   : > { %1473 = vrot.lane.b32.xlu0 %v3341_v27, %s3122_s18  ;;  %v1297_v61 = vpop.xlane.xlu0 %1296 }
 0x424   : > { %v1339_v23 = vsub.f32 %v3465_v25, %v1297_v61 }
 0x426   : > { %v1357_v41 = vmul.f32 1.442695, %v1339_v23  ;;  %v3551_v40 = vpop.eup %2998 }
 0x427   : > { %1661 = vrot.lane.b32.xlu0 %v3361_v50, %s3122_s18  ;;  %v1300_v15 = vpop.xlane.xlu0 %1299  ;;  %v1334_v50 = vsel %vm847_vm2, %v3543_v36, -inf  ;;  %v1385_v7 = vsel %vm847_vm2, %v3551_v40, 0.0 }
 0x428   : > { %3000 = vpow2.f32 %v1357_v41  ;;  %v1340_v62 = vsub.f32 %v3469_v60, %v1300_v15 }
 0x42a   : > { %v1359_v18 = vmul.f32 1.442695, %v1340_v62 }
 0x42b   : > { %v1303_v30 = vpop.xlane.xlu0 %1302 }
 0x42c   : > { %v1341_v34 = vsub.f32 %v3476_v1, %v1303_v30  ;;  %v1328_v1 = vsel %vm847_vm2, %v3549_v29, -inf }
 0x42d   : > { %v1312_v42 = vpop.xlane.xlu1 %1311 }
 0x42e   : > { %v1361_v27 = vmul.f32 1.442695, %v1341_v34  ;;  %v1344_v6 = vsub.f32 %v3489_v10, %v1312_v42 }
 0x42f   : > { %v1309_v39 = vpop.xlane.xlu0 %1308 }
 0x430   : > { %v1343_v38 = vsub.f32 %v3491_v13, %v1309_v39  ;;  %3002 = vpow2.f32 %v1361_v27  ;;  %v1367_v8 = vmul.f32 1.442695, %v1344_v6 }
 0x432   : > { %v1365_v25 = vmul.f32 1.442695, %v1343_v38  ;;  %v3557_v13 = vpop.eup %3000 }
 0x433   : > { %v1391_v37 = vsel %vm847_vm2, %v3557_v13, 0.0 }
 0x434   : > { %3004 = vpow2.f32 %v1365_v25 }
 0x435   : > { %3006 = vpow2.f32 %v1355_v59 }
 0x436   : > { %3008 = vpow2.f32 %v1359_v18 }
 0x437   : > { %3010 = vpow2.f32 %v1363_v0 }
 0x438   : > { %3012 = vpow2.f32 %v1367_v8 }
 0x43a   : > { %v3561_v24 = vpop.eup %3002 }
 0x43b   : > { %v1397_v46 = vsel %vm847_vm2, %v3561_v24, 0.0 }
 0x43e   : > { %v3565_v48 = vpop.eup %3004 }
 0x43f   : > { %1335 = vmax.xlane.f32.xlu1 %v1334_v50  ;;  %v1403_v51 = vsel %vm847_vm2, %v3565_v48, 0.0  ;;  %v3575_v9 = vpop.eup %3006 }
 0x440   : > { %v3579_v35 = vpop.eup %3008 }
 0x441   : > { %v1394_v44 = vsel %vm847_vm2, %v3579_v35, 0.0  ;;  %v3583_v60 = vpop.eup %3010 }
 0x442   : > { %v1400_v10 = vsel %vm847_vm2, %v3583_v60, 0.0  ;;  %v3587_v22 = vpop.eup %3012 }
 0x443   : > { %1329 = vmax.xlane.f32.xlu1 %v1328_v1  ;;  %v1406_v52 = vsel %vm847_vm2, %v3587_v22, 0.0 }
 0x446   : > { %1386 = vadd.xlane.f32.xlu0 %v1385_v7 }
 0x44a   : > { %1392 = vadd.xlane.f32.xlu0 %v1391_v37 }
 0x44e   : > { %1398 = vadd.xlane.f32.xlu0 %v1397_v46 }
 0x452   : > { %1404 = vadd.xlane.f32.xlu0 %v1403_v51 }
 0x454   : > { %1708 = vrot.lane.b32.xlu1 %v3359_v49, %s3122_s18  ;;  %v1388_v49 = vsel %vm847_vm2, %v3575_v9, 0.0 }
 0x478   : > { %1389 = vadd.xlane.f32.xlu1 %v1388_v49 }
 0x47c   : > { %1395 = vadd.xlane.f32.xlu1 %v1394_v44 }
 0x480   : > { %1401 = vadd.xlane.f32.xlu1 %v1400_v10 }
 0x484   : > { %1407 = vadd.xlane.f32.xlu1 %v1406_v52 }
 0x489   : > { %v1321_v14 = vpop.xlane.xlu0 %1320 }
 0x48a   : > { %v1347_v20 = vsub.f32 %v3503_v45, %v1321_v14 }
 0x48b   : > { %v1324_v28 = vpop.xlane.xlu1 %1323 }
 0x48c   : > { %v1373_v43 = vmul.f32 1.442695, %v1347_v20  ;;  %v1348_v61 = vsub.f32 %v3507_v54, %v1324_v28 }
 0x48d   : > { %v1315_v15 = vpop.xlane.xlu0 %1314 }
 0x48e   : > { %3014 = vpow2.f32 %v1373_v43  ;;  %v1375_v21 = vmul.f32 1.442695, %v1348_v61  ;;  %v1345_v30 = vsub.f32 %v3510_v55, %v1315_v15 }
 0x48f   : > { %v1318_v31 = vpop.xlane.xlu1 %1317 }
 0x490   : > { %3016 = vpow2.f32 %v1375_v21  ;;  %v1369_v23 = vmul.f32 1.442695, %v1345_v30  ;;  %v1346_v41 = vsub.f32 %v3515_v57, %v1318_v31 }
 0x492   : > { %3018 = vpow2.f32 %v1369_v23  ;;  %v1371_v34 = vmul.f32 1.442695, %v1346_v41 }
 0x493   : > { %v1521_v39 = vpop.permute.xlu1 %1520 }
 0x494   : > { %3020 = vpow2.f32 %v1371_v34  ;;  %2809 = vmatpush3.bf16.msra.mxu1 %v1521_v39 }
 0x495   : > { %2820 = vmatprep.subr.bf16.mxu1 %v3118_v53 }
 0x496   : > { %v1333_v45 = vpop.xlane.xlu0 %1332 }
 0x497   : > { %v1351_v54 = vsub.f32 %v3521_v19, %v1333_v45  ;;  %v1568_v63 = vpop.permute.xlu1 %1567 }
 0x498   : > { %v3597_v27 = vpop.eup %3014 }
 0x499   : > { %v1381_v38 = vmul.f32 1.442695, %v1351_v54  ;;  %v1415_v55 = vsel %vm847_vm2, %v3597_v27, 0.0 }
 0x49a   : > { %v3601_v50 = vpop.eup %3016  ;;  %1416 = vadd.xlane.f32.xlu0 %v1415_v55  ;;  %v1327_v57 = vpop.xlane.xlu0 %1326 }
 0x49b   : > { %3022 = vpow2.f32 %v1381_v38  ;;  %v1349_v25 = vsub.f32 %v3525_v26, %v1327_v57  ;;  %v1418_v1 = vsel %vm847_vm2, %v3601_v50, 0.0  ;;  %v1615_v32 = vpop.permute.xlu1 %1614 }
 0x49c   : > { %v3606_v7 = vpop.eup %3018  ;;  %1419 = vadd.xlane.f32.xlu1 %v1418_v1 }
 0x49d   : > { %v1377_v19 = vmul.f32 1.442695, %v1349_v25  ;;  %v1409_v37 = vsel %vm847_vm2, %v3606_v7, 0.0 }
 0x49e   : > { %v3610_v46 = vpop.eup %3020  ;;  %1410 = vadd.xlane.f32.xlu0 %v1409_v37  ;;  %v1474_v51 = vpop.permute.xlu0 %1473 }
 0x49f   : > { %3024 = vpow2.f32 %v1377_v19  ;;  %2803 = vmatpush3.bf16.msra.mxu0 %v1474_v51  ;;  %v1412_v56 = vsel %vm847_vm2, %v3610_v46, 0.0 }
 0x4a0   : > { %1413 = vadd.xlane.f32.xlu1 %v1412_v56  ;;  %2814 = vmatprep.subr.bf16.mxu0 %v3118_v53 }
 0x4a5   : > { %v3615_v26 = vpop.eup %3022 }
 0x4a6   : > { %v1427_v47 = vsel %vm847_vm2, %v3615_v26, 0.0 }
 0x4a7   : > { %1428 = vadd.xlane.f32.xlu0 %v1427_v47 }
 0x4a9   : > { %v3619_v59 = vpop.eup %3024 }
 0x4aa   : > { %v1421_v62 = vsel %vm847_vm2, %v3619_v59, 0.0 }
 0x4ab   : > { %1422 = vadd.xlane.f32.xlu0 %v1421_v62 }
 0x4c1   : > { %1755 = vrot.lane.b32.xlu0 %v3370_v58, %s3122_s18 }
 0x4cc   : > { %v1336_v18 = vpop.xlane.xlu1 %1335 }
 0x4cd   : > { %v1352_v42 = vsub.f32 %v3543_v36, %v1336_v18  ;;  %v1662_v36 = vpop.permute.xlu0 %1661 }
 0x4cf   : > { %v1383_v0 = vmul.f32 1.442695, %v1352_v42 }
 0x4d0   : > { %v1330_v6 = vpop.xlane.xlu1 %1329 }
 0x4d1   : > { %3026 = vpow2.f32 %v1383_v0  ;;  %v1350_v8 = vsub.f32 %v3549_v29, %v1330_v6 }
 0x4d3   : > { %v1379_v49 = vmul.f32 1.442695, %v1350_v8  ;;  %v1387_v14 = vpop.xlane.xlu0 %1386 }
 0x4d4   : > { %v1709_v29 = vpop.permute.xlu1 %1708 }
 0x4d5   : > { %3028 = vpow2.f32 %v1379_v49 }
 0x4d6   : > { %3030 = vrcp.f32 %v1387_v14 }
 0x4d7   : > { %v1393_v20 = vpop.xlane.xlu0 %1392 }
 0x4db   : > { %v3627_v44 = vpop.eup %3026  ;;  %v1399_v43 = vpop.xlane.xlu0 %1398 }
 0x4dc   : > { %v1430_v10 = vsel %vm847_vm2, %v3627_v44, 0.0 }
 0x4dd   : > { %1431 = vadd.xlane.f32.xlu1 %v1430_v10 }
 0x4df   : > { %v3631_v52 = vpop.eup %3028  ;;  %v1405_v15 = vpop.xlane.xlu0 %1404 }
 0x4e0   : > { %v1424_v58 = vsel %vm847_vm2, %v3631_v52, 0.0  ;;  %v3031_v30 = vpop.eup %3030 }
 0x4e1   : > { %1425 = vadd.xlane.f32.xlu1 %v1424_v58 }
 0x4f2   : > { %1802 = vrot.lane.b32.xlu1 %v3379_v33, %s3122_s18  ;;  %v1449_v33 = vmul.f32 %v3031_v30, %v3551_v40 }
 0x505   : > { %v1390_v28 = vpop.xlane.xlu1 %1389 }
 0x506   : > { %3032 = vrcp.f32 %v1390_v28 }
 0x507   : > { %3034 = vrcp.f32 %v1393_v20 }
 0x509   : > { %v1396_v61 = vpop.xlane.xlu1 %1395 }
 0x50a   : > { %3036 = vrcp.f32 %v1396_v61 }
 0x50b   : > { %3038 = vrcp.f32 %v1399_v43 }
 0x50d   : > { %v1402_v21 = vpop.xlane.xlu1 %1401 }
 0x50e   : > { %3040 = vrcp.f32 %v1402_v21 }
 0x50f   : > { %3042 = vrcp.f32 %v1405_v15 }
 0x510   : > { %v3033_v31 = vpop.eup %3032 }
 0x511   : > { %v1450_v23 = vmul.f32 %v3033_v31, %v3575_v9  ;;  %v1408_v41 = vpop.xlane.xlu1 %1407  ;;  %v3035_v34 = vpop.eup %3034 }
 0x512   : > { %3044 = vrcp.f32 %v1408_v41  ;;  %v1451_v54 = vmul.f32 %v3035_v34, %v3557_v13 }
 0x513   : > { %v1465_v39 = vpack.c.bf16 %v1450_v23, %v1449_v33 }
 0x514   : > { %v3037_v45 = vpop.eup %3036 }
 0x515   : > { %v1452_v38 = vmul.f32 %v3037_v45, %v3579_v35  ;;  %2805 = vmatmul.mubr.msk.bf16.vlgmr.msra.gmra.mrb[12].mxu0 %vm847_vm2, %v1465_v39  ;;  %v3039_v55 = vpop.eup %3038 }
 0x516   : > { %2815 = vmatpush3.bf16.msra.mxu0 %v1568_v63  ;;  %2816 = vmatprep.mubr.msk.bf16.mxu0 %vm3119_vm1, %v3118_v53  ;;  %v1453_v9 = vmul.f32 %v3039_v55, %v3561_v24 }
 0x517   : > { %v1466_v57 = vpack.c.bf16 %v1452_v38, %v1451_v54  ;;  %2826 = vmatprep.subr.bf16.mxu0 %v3118_v53 }
 0x518   : > { %v3041_v40 = vpop.eup %3040 }
 0x519   : > { %v1454_v25 = vmul.f32 %v3041_v40, %v3583_v60  ;;  %2811 = vmatmul.mubr.msk.bf16.vlgmr.msra.gmra.mrb[28].mxu1 %vm847_vm2, %v1466_v57  ;;  %v3043_v13 = vpop.eup %3042  ;;  %v2970_v57 = vld [vmem:[%s3888_s5] sm:$0xff]   ;;  %v2971_v40 = vld [vmem:[%s3888_s5 + $0x8] sm:$0xff]  }
 0x51a   : > { %2821 = vmatpush3.bf16.msra.mxu1 %v1615_v32  ;;  %2822 = vmatprep.mubr.msk.bf16.mxu1 %vm3119_vm1, %v3118_v53  ;;  %v1455_v19 = vmul.f32 %v3043_v13, %v3565_v48 }
 0x51b   : > { %v1467_v35 = vpack.c.bf16 %v1454_v25, %v1453_v9  ;;  %2832 = vmatprep.subr.bf16.mxu1 %v3118_v53 }
 0x51c   : > { %v3045_v1 = vpop.eup %3044 }
 0x51d   : > { %v1456_v37 = vmul.f32 %v3045_v1, %v3587_v22  ;;  %2817 = vmatmul.mubr.msk.bf16.vlgmr.msra.gmra.mrb[16].mxu0 %vm847_vm2, %v1467_v35 }
 0x51e   : > { %2827 = vmatpush3.bf16.msra.mxu0 %v1662_v36  ;;  %2828 = vmatprep.mubr.msk.bf16.mxu0 %vm3119_vm1, %v3118_v53 }
 0x51f   : > { %v1468_v24 = vpack.c.bf16 %v1456_v37, %v1455_v19  ;;  %2838 = vmatprep.subr.bf16.mxu0 %v3118_v53 }
 0x521   : > { %2823 = vmatmul.mubr.msk.bf16.vlgmr.msra.gmra.mrb[32].mxu1 %vm847_vm2, %v1468_v24 }
 0x522   : > { %2833 = vmatpush3.bf16.msra.mxu1 %v1709_v29  ;;  %2834 = vmatprep.mubr.msk.bf16.mxu1 %vm3119_vm1, %v3118_v53 }
 0x523   : > { %2844 = vmatprep.subr.bf16.mxu1 %v3118_v53 }
 0x527   : > { %v1417_v48 = vpop.xlane.xlu0 %1416 }
 0x528   : > { %3046 = vrcp.f32 %v1417_v48 }
 0x529   : > { %v1420_v60 = vpop.xlane.xlu1 %1419 }
 0x52a   : > { %3048 = vrcp.f32 %v1420_v60 }
 0x52b   : > { %v1411_v22 = vpop.xlane.xlu0 %1410 }
 0x52c   : > { %3050 = vrcp.f32 %v1411_v22 }
 0x52d   : > { %v1414_v51 = vpop.xlane.xlu1 %1413 }
 0x52e   : > { %3052 = vrcp.f32 %v1414_v51 }
 0x532   : > { %v3047_v56 = vpop.eup %3046 }
 0x533   : > { %v1459_v63 = vmul.f32 %v3047_v56, %v3597_v27 }
 0x534   : > { %v3049_v47 = vpop.eup %3048  ;;  %v1429_v62 = vpop.xlane.xlu0 %1428 }
 0x535   : > { %v1460_v32 = vmul.f32 %v3049_v47, %v3601_v50  ;;  %3054 = vrcp.f32 %v1429_v62 }
 0x536   : > { %v3051_v18 = vpop.eup %3050 }
 0x537   : > { %v1470_v42 = vpack.c.bf16 %v1460_v32, %v1459_v63  ;;  %v1457_v8 = vmul.f32 %v3051_v18, %v3606_v7 }
 0x538   : > { %v3053_v0 = vpop.eup %3052  ;;  %v1423_v6 = vpop.xlane.xlu0 %1422 }
 0x539   : > { %v1458_v49 = vmul.f32 %v3053_v0, %v3610_v46  ;;  %2835 = vmatmul.mubr.msk.bf16.vlgmr.msra.gmra.mrb[36].mxu1 %vm847_vm2, %v1470_v42 }
 0x53a   : > { %2846 = vmatprep.mubr.msk.bf16.mxu1 %vm3119_vm1, %v3118_v53 }
 0x53b   : > { %v1469_v10 = vpack.c.bf16 %v1458_v49, %v1457_v8 }
 0x53c   : > { %v1756_v58 = vpop.permute.xlu0 %1755 }
 0x53d   : > { %2829 = vmatmul.mubr.msk.bf16.vlgmr.msra.gmra.mrb[20].mxu0 %vm847_vm2, %v1469_v10 }
 0x53e   : > { %2839 = vmatpush3.bf16.msra.mxu0 %v1756_v58  ;;  %2840 = vmatprep.mubr.msk.bf16.mxu0 %vm3119_vm1, %v3118_v53 }
 0x53f   : > { %v3055_v46 = vpop.eup %3054  ;;  %2850 = vmatprep.subr.bf16.mxu0 %v2970_v57 }
 0x540   : > { %v1463_v14 = vmul.f32 %v3055_v46, %v3615_v26 }
 0x56a   : > { %v1432_v27 = vpop.xlane.xlu1 %1431 }
 0x56b   : > { %3056 = vrcp.f32 %v1432_v27 }
 0x56c   : > { %3058 = vrcp.f32 %v1423_v6 }
 0x56e   : > { %v1426_v50 = vpop.xlane.xlu1 %1425 }
 0x56f   : > { %3060 = vrcp.f32 %v1426_v50 }
 0x572   : > { %v1803_v7 = vpop.permute.xlu1 %1802 }
 0x573   : > { %2845 = vmatpush3.bf16.msra.mxu1 %v1803_v7 }
 0x575   : > { %v3057_v36 = vpop.eup %3056 }
 0x576   : > { %v1464_v29 = vmul.f32 %v3057_v36, %v3627_v44  ;;  %v3059_v20 = vpop.eup %3058 }
 0x577   : > { %v1461_v61 = vmul.f32 %v3059_v20, %v3619_v59 }
 0x578   : > { %v1472_v28 = vpack.c.bf16 %v1464_v29, %v1463_v14 }
 0x579   : > { %v3061_v43 = vpop.eup %3060 }
 0x57a   : > { %v1462_v53 = vmul.f32 %v3061_v43, %v3631_v52  ;;  %2847 = vmatmul.mubr.msk.bf16.vlgmr.msra.gmra.mrb[40].mxu1 %vm847_vm2, %v1472_v28 }
 0x57c   : > { %v1471_v15 = vpack.c.bf16 %v1462_v53, %v1461_v61 }
 0x57e   : > { %2841 = vmatmul.mubr.msk.bf16.vlgmr.msra.gmra.mrb[24].mxu0 %vm847_vm2, %v1471_v15 }
 0x57f   : > { %2851 = vmatpush3.bf16.msra.mxu0 %v2970_v57 }
 0x580   : > { %2852 = vmatprep.subr.bf16.mxu0 %v2971_v40 }
 0x583   : > { %2853 = vmatpush3.bf16.msra.mxu0 %v2971_v40 }
 0x5e8   : > { %v1513_v21 = vpop.f32.mrb[12].mxu0 }
 0x5e9   : > { %v2806_v30 = vpop.f32.mrb[13].mxu0 }
 0x5ea   : > { %v1516_v31 = vpop.f32.mrb[14].mxu0 }
 0x5eb   : > { %v2807_v33 = vpop.f32.mrb[15].mxu0 }
 0x5ec   : > { %v1560_v23 = vpop.f32.mrb[28].mxu1 }
 0x5ed   : > { %v2812_v26 = vpop.f32.mrb[29].mxu1 }
 0x5ee   : > { %v1563_v41 = vpop.f32.mrb[30].mxu1 }
 0x5ef   : > { %v2813_v44 = vpop.f32.mrb[31].mxu1 }
 0x5f0   : > { %v3677_v34 = vpop.f32.mrb[16].mxu0 }
 0x5f1   : > { %v2818_v39 = vpop.f32.mrb[17].mxu0 }
 0x5f2   : > { %v1610_v45 = vpop.f32.mrb[18].mxu0 }
 0x5f3   : > { %v2819_v59 = vpop.f32.mrb[19].mxu0 }
 0x5f4   : > { %v1654_v54 = vpop.f32.mrb[32].mxu1 }
 0x5f5   : > { %v2824_v52 = vpop.f32.mrb[33].mxu1 }
 0x5f6   : > { %v1657_v38 = vpop.f32.mrb[34].mxu1 }
 0x5f7   : > { %v2825_v55 = vpop.f32.mrb[35].mxu1 }
 0x60c   : > { %v1748_v9 = vpop.f32.mrb[36].mxu1 }
 0x60d   : > { %v2836_v25 = vpop.f32.mrb[37].mxu1 }
 0x60e   : > { %v1751_v13 = vpop.f32.mrb[38].mxu1 }
 0x60f   : > { %v2953_v35 = vpack.i.bf16 %v1751_v13, %v1748_v9  ;;  %v2837_v1 = vpop.f32.mrb[39].mxu1 }
 0x610   : > { %v1701_v19 = vpop.f32.mrb[20].mxu0 }
 0x611   : > { %2954 = vrot.lane.b32.xlu1 %v2953_v35, %s3123_s28  ;;  %v2830_v37 = vpop.f32.mrb[21].mxu0 }
 0x612   : > { %v1704_v24 = vpop.f32.mrb[22].mxu0 }
 0x613   : > { %v2948_v48 = vpack.i.bf16 %v1704_v24, %v1701_v19  ;;  %v2831_v60 = vpop.f32.mrb[23].mxu0 }
 0x615   : > { %2949 = vrot.lane.b32.xlu0 %v2948_v48, %s3123_s28 }
 0x64d   : > { %v1842_v22 = vpop.f32.mrb[40].mxu1 }
 0x64e   : > { %v2848_v51 = vpop.f32.mrb[41].mxu1 }
 0x64f   : > { %v1845_v56 = vpop.f32.mrb[42].mxu1 }
 0x650   : > { %v2963_v47 = vpack.i.bf16 %v1845_v56, %v1842_v22  ;;  %v2849_v62 = vpop.f32.mrb[43].mxu1 }
 0x651   : > { %v1795_v63 = vpop.f32.mrb[24].mxu0 }
 0x652   : > { %2964 = vrot.lane.b32.xlu1 %v2963_v47, %s3123_s28  ;;  %v2842_v32 = vpop.f32.mrb[25].mxu0 }
 0x653   : > { %v1798_v18 = vpop.f32.mrb[26].mxu0 }
 0x654   : > { %v2958_v42 = vpack.i.bf16 %v1798_v18, %v1795_v63  ;;  %v2843_v0 = vpop.f32.mrb[27].mxu0 }
 0x656   : > { %2959 = vrot.lane.b32.xlu0 %v2958_v42, %s3123_s28 }
 0x683   : > { %v2955_v6 = vpop.permute.xlu1 %2954 }
 0x684   : > { %v2957_v8 = vunpack.i.h.bf16 %v2955_v6  ;;  %v2956_v49 = vunpack.i.l.bf16 %v2955_v6 }
 0x686   : > { %v1884_v10 = vsel %vm847_vm2, %v1563_v41, %v2957_v8  ;;  %v1883_v58 = vsel %vm847_vm2, %v1560_v23, %v2956_v49  ;;  %v2618_v41 = vld [vmem:[%s3889_s6] ss:$0 sm:$0xff] }
 0x687   : > { %v1895_v27 = vpack.c.bf16 %v1884_v10, %v1883_v58  ;;  %v2950_v50 = vpop.permute.xlu0 %2949 }
 0x688   : > { %v2952_v7 = vunpack.i.h.bf16 %v2950_v50  ;;  %v2951_v46 = vunpack.i.l.bf16 %v2950_v50 }
 0x68a   : > { %v1882_v36 = vsel %vm847_vm2, %v1516_v31, %v2952_v7  ;;  %v1881_v14 = vsel %vm847_vm2, %v1513_v21, %v2951_v46 }
 0x68b   : > { %v1894_v29 = vpack.c.bf16 %v1882_v36, %v1881_v14 }
 0x68d   : > { %2854 = vmatprep.mubr.msk.bf16.mxu0 %vm566_vm0, %v1894_v29 }
 0x68e   : > { %2855 = vmatmul.mubr.msk.bf16.vlgmr.msra.gmra.mrb[28].mxu0 %vm566_vm0, %v1895_v27 }
 0x6c4   : > { %v2965_v20 = vpop.permute.xlu1 %2964 }
 0x6c5   : > { %v2967_v28 = vunpack.i.h.bf16 %v2965_v20  ;;  %v2966_v43 = vunpack.i.l.bf16 %v2965_v20 }
 0x6c7   : > { %v1888_v61 = vsel %vm847_vm2, %v1657_v38, %v2967_v28  ;;  %v1887_v53 = vsel %vm847_vm2, %v1654_v54, %v2966_v43  ;;  %v2972_v28 = vld [vmem:[%s3892_s9] sm:$0xff]   ;;  %v2973_v43 = vld [vmem:[%s3892_s9 + $0x8] sm:$0xff]  }
 0x6c8   : > { %v1897_v15 = vpack.c.bf16 %v1888_v61, %v1887_v53  ;;  %v2960_v30 = vpop.permute.xlu0 %2959  ;;  %2862 = vmatprep.subr.bf16.mxu1 %v2972_v28 }
 0x6c9   : > { %v2962_v33 = vunpack.i.h.bf16 %v2960_v30  ;;  %v2961_v23 = vunpack.i.l.bf16 %v2960_v30  ;;  %2863 = vmatpush3.bf16.msra.mxu1 %v2972_v28 }
 0x6ca   : > { %2864 = vmatprep.subr.bf16.mxu1 %v2973_v43 }
 0x6cb   : > { %v1886_v31 = vsel %vm847_vm2, %v1610_v45, %v2962_v33  ;;  %v1885_v21 = vsel %vm847_vm2, %v3677_v34, %v2961_v23 }
 0x6cc   : > { %v1896_v26 = vpack.c.bf16 %v1886_v31, %v1885_v21 }
 0x6cd   : > { %2865 = vmatpush3.bf16.msra.mxu1 %v2973_v43 }
 0x6ce   : > { %2858 = vmatprep.mubr.msk.bf16.mxu0 %vm566_vm0, %v1896_v26 }
 0x6cf   : > { %2859 = vmatmul.mubr.msk.bf16.gmra.mrb[32].mxu0 %vm566_vm0, %v1897_v15 }
 0x761   : > { %v2856_v44 = vpop.f32.mrb[28].mxu0 }
 0x762   : > { %v1962_v39 = vpop.f32.mrb[29].mxu0  ;;  %v1971_v59 = vadd.f32 %v2856_v44, %v2618_v41 }
 0x763   : > { %v1963_v54 = vadd.f32 %v2618_v41, %v1962_v39  ;;  %v2857_v52 = vpop.f32.mrb[30].mxu0 }
 0x764   : > { %v1965_v38 = vpop.f32.mrb[31].mxu0  ;;  %v3705_v34 = vadd.f32 %v3232_v3, %v1971_v59  ;;  %v1974_v57 = vadd.f32 %v2857_v52, %v2618_v41 }
 0x765   : > { %v3702_v45 = vadd.f32 %v3230_v2, %v1963_v54  ;;  %v1966_v55 = vadd.f32 %v2618_v41, %v1965_v38 }
 0x766   : > { %v3715_v13 = vadd.f32 %v3236_v5, %v1974_v57  ;;  %v2009_v2 = vsel %vm566_vm0, %v3705_v34, 0.0 }
 0x767   : > { %v3708_v40 = vadd.f32 %v3234_v4, %v1966_v55  ;;  %v2003_v9 = vsel %vm566_vm0, %v3702_v45, 0.0 }
 0x768   : > { %2004 = vadd.xlane.f32.xlu0 %v2003_v9  ;;  %v2012_v3 = vsel %vm566_vm0, %v3715_v13, 0.0 }
 0x769   : > { %v2006_v25 = vsel %vm566_vm0, %v3708_v40, 0.0 }
 0x76a   : > { %2007 = vadd.xlane.f32.xlu1 %v2006_v25 }
 0x76c   : > { %2010 = vadd.xlane.f32.xlu0 %v2009_v2 }
 0x770   : > { %2013 = vadd.xlane.f32.xlu0 %v2012_v3 }
 0x7a2   : > { %v2860_v4 = vpop.f32.mrb[32].mxu0 }
 0x7a3   : > { %v1978_v35 = vpop.f32.mrb[33].mxu0  ;;  %v1987_v1 = vadd.f32 %v2860_v4, %v2618_v41 }
 0x7a4   : > { %v1979_v19 = vadd.f32 %v2618_v41, %v1978_v35  ;;  %v2861_v37 = vpop.f32.mrb[34].mxu0 }
 0x7a5   : > { %v1981_v24 = vpop.f32.mrb[35].mxu0  ;;  %v1990_v60 = vadd.f32 %v2861_v37, %v2618_v41  ;;  %v3725_v22 = vadd.f32 %v3254_v16, %v1987_v1 }
 0x7a6   : > { %v3722_v48 = vadd.f32 %v3246_v11, %v1979_v19  ;;  %v1982_v5 = vadd.f32 %v2618_v41, %v1981_v24 }
 0x7a7   : > { %v3733_v47 = vadd.f32 %v3256_v17, %v1990_v60  ;;  %v2021_v11 = vsel %vm566_vm0, %v3725_v22, 0.0 }
 0x7a8   : > { %v3728_v51 = vadd.f32 %v3248_v12, %v1982_v5  ;;  %v2015_v56 = vsel %vm566_vm0, %v3722_v48, 0.0 }
 0x7a9   : > { %2016 = vadd.xlane.f32.xlu0 %v2015_v56  ;;  %v2024_v16 = vsel %vm566_vm0, %v3733_v47, 0.0 }
 0x7aa   : > { %v2018_v62 = vsel %vm566_vm0, %v3728_v51, 0.0 }
 0x7ab   : > { %2019 = vadd.xlane.f32.xlu1 %v2018_v62 }
 0x7ad   : > { %2022 = vadd.xlane.f32.xlu0 %v2021_v11 }
 0x7af   : > { %2025 = vadd.xlane.f32.xlu1 %v2024_v16  ;;  %v2625_v16 = vld [vmem:[%s3890_s7] ss:$0 sm:$0xff] }
 0x7f5   : > { %v2005_v12 = vpop.xlane.xlu0 %2004 }
 0x7f6   : > { %v2027_v63 = vmul.f32 0.03125, %v2005_v12 }
 0x7f7   : > { %v2008_v32 = vpop.xlane.xlu1 %2007 }
 0x7f8   : > { %v3742_v18 = vsub.f32 %v3702_v45, %v2027_v63  ;;  %v2028_v17 = vmul.f32 0.03125, %v2008_v32 }
 0x7f9   : > { %v2011_v42 = vpop.xlane.xlu0 %2010 }
 0x7fa   : > { %v3745_v0 = vsub.f32 %v3708_v40, %v2028_v17  ;;  %v2029_v6 = vmul.f32 0.03125, %v2011_v42  ;;  %v2043_v8 = vmul.f32 %v3742_v18, %v3742_v18 }
 0x7fc   : > { %v3750_v49 = vsub.f32 %v3705_v34, %v2029_v6  ;;  %v2051_v10 = vsel %vm566_vm0, %v2043_v8, 0.0  ;;  %v2044_v58 = vmul.f32 %v3745_v0, %v3745_v0  ;;  %v2626_v6 = vld [vmem:[%s3891_s8] ss:$0 sm:$0xff] }
 0x7fd   : > { %2052 = vadd.xlane.f32.xlu0 %v2051_v10  ;;  %v2014_v27 = vpop.xlane.xlu0 %2013 }
 0x7fe   : > { %v2030_v50 = vmul.f32 0.03125, %v2014_v27  ;;  %v2054_v7 = vsel %vm566_vm0, %v2044_v58, 0.0  ;;  %v2045_v46 = vmul.f32 %v3750_v49, %v3750_v49 }
 0x7ff   : > { %2055 = vadd.xlane.f32.xlu1 %v2054_v7 }
 0x800   : > { %v3759_v36 = vsub.f32 %v3715_v13, %v2030_v50  ;;  %v2057_v14 = vsel %vm566_vm0, %v2045_v46, 0.0 }
 0x801   : > { %2058 = vadd.xlane.f32.xlu0 %v2057_v14 }
 0x802   : > { %v2046_v29 = vmul.f32 %v3759_v36, %v3759_v36 }
 0x804   : > { %v2060_v20 = vsel %vm566_vm0, %v2046_v29, 0.0 }
 0x805   : > { %2061 = vadd.xlane.f32.xlu1 %v2060_v20 }
 0x836   : > { %v2017_v61 = vpop.xlane.xlu0 %2016 }
 0x837   : > { %v2031_v53 = vmul.f32 0.03125, %v2017_v61 }
 0x838   : > { %v2020_v15 = vpop.xlane.xlu1 %2019 }
 0x839   : > { %v3772_v30 = vsub.f32 %v3722_v48, %v2031_v53  ;;  %v2032_v33 = vmul.f32 0.03125, %v2020_v15 }
 0x83a   : > { %v2023_v23 = vpop.xlane.xlu0 %2022 }
 0x83b   : > { %v3775_v31 = vsub.f32 %v3728_v51, %v2032_v33  ;;  %v2033_v21 = vmul.f32 0.03125, %v2023_v23  ;;  %v2047_v26 = vmul.f32 %v3772_v30, %v3772_v30 }
 0x83c   : > { %v2026_v41 = vpop.xlane.xlu1 %2025 }
 0x83d   : > { %v3780_v44 = vsub.f32 %v3725_v22, %v2033_v21  ;;  %v2034_v39 = vmul.f32 0.03125, %v2026_v41  ;;  %v2063_v59 = vsel %vm566_vm0, %v2047_v26, 0.0  ;;  %v2048_v54 = vmul.f32 %v3775_v31, %v3775_v31 }
 0x83e   : > { %2064 = vadd.xlane.f32.xlu0 %v2063_v59 }
 0x83f   : > { %v3786_v52 = vsub.f32 %v3733_v47, %v2034_v39  ;;  %v2066_v38 = vsel %vm566_vm0, %v2048_v54, 0.0  ;;  %v2049_v55 = vmul.f32 %v3780_v44, %v3780_v44 }
 0x840   : > { %2067 = vadd.xlane.f32.xlu1 %v2066_v38 }
 0x841   : > { %v2069_v57 = vsel %vm566_vm0, %v2049_v55, 0.0  ;;  %v2050_v9 = vmul.f32 %v3786_v52, %v3786_v52 }
 0x842   : > { %2070 = vadd.xlane.f32.xlu0 %v2069_v57 }
 0x843   : > { %v2072_v25 = vsel %vm566_vm0, %v2050_v9, 0.0 }
 0x844   : > { %2073 = vadd.xlane.f32.xlu1 %v2072_v25 }
 0x88a   : > { %v2053_v2 = vpop.xlane.xlu0 %2052 }
 0x88b   : > { %v2075_v3 = vmul.f32 0.03125, %v2053_v2 }
 0x88c   : > { %v2056_v4 = vpop.xlane.xlu1 %2055 }
 0x88d   : > { %v2083_v35 = vadd.f32 1e-05, %v2075_v3  ;;  %v2076_v1 = vmul.f32 0.03125, %v2056_v4 }
 0x88e   : > { %v2059_v19 = vpop.xlane.xlu0 %2058 }
 0x88f   : > { %3062 = vrsqrt.f32 %v2083_v35  ;;  %v2084_v37 = vadd.f32 1e-05, %v2076_v1  ;;  %v2077_v24 = vmul.f32 0.03125, %v2059_v19 }
 0x891   : > { %3064 = vrsqrt.f32 %v2084_v37  ;;  %v2085_v60 = vadd.f32 1e-05, %v2077_v24 }
 0x892   : > { %v2062_v5 = vpop.xlane.xlu1 %2061 }
 0x893   : > { %3066 = vrsqrt.f32 %v2085_v60  ;;  %v2078_v56 = vmul.f32 0.03125, %v2062_v5  ;;  %v2977_v5 = vld [vmem:[%s3894_s11 + $0x18] sm:$0xff]  }
 0x895   : > { %v2086_v62 = vadd.f32 1e-05, %v2078_v56  ;;  %v2978_v56 = vld [vmem:[%s3894_s11 + $0x20] sm:$0xff]  }
 0x897   : > { %3068 = vrsqrt.f32 %v2086_v62  ;;  %v2979_v62 = vld [vmem:[%s3894_s11 + $0x28] sm:$0xff]  }
 0x899   : > { %v3063_v11 = vpop.eup %3062 }
 0x89a   : > { %v2099_v12 = vmul.f32 %v3063_v11, %v3742_v18  ;;  %v2980_v11 = vld [vmem:[%s3894_s11 + $0x30] sm:$0xff]  }
 0x89b   : > { %v3065_v63 = vpop.eup %3064 }
 0x89c   : > { %v2100_v32 = vmul.f32 %v3065_v63, %v3745_v0  ;;  %v2113_v17 = vmul.f32 %v2625_v16, %v2099_v12  ;;  %v2627_v12 = vld [vmem:[%s3893_s10] ss:$0 sm:$0xff] }
 0x89d   : > { %v3067_v42 = vpop.eup %3066 }
 0x89e   : > { %v2101_v8 = vmul.f32 %v3067_v42, %v3750_v49  ;;  %v2114_v10 = vmul.f32 %v2625_v16, %v2100_v32  ;;  %v2127_v58 = vadd.f32 %v2626_v6, %v2113_v17 }
 0x8a0   : > { %v2128_v27 = vadd.f32 %v2626_v6, %v2114_v10  ;;  %v2115_v7 = vmul.f32 %v2625_v16, %v2101_v8 }
 0x8a1   : > { %v3069_v50 = vpop.eup %3068 }
 0x8a2   : > { %v2102_v46 = vmul.f32 %v3069_v50, %v3759_v36  ;;  %v2140_v14 = vpack.c.bf16 %v2128_v27, %v2127_v58  ;;  %v2129_v0 = vadd.f32 %v2626_v6, %v2115_v7 }
 0x8a4   : > { %v2116_v18 = vmul.f32 %v2625_v16, %v2102_v46  ;;  %2866 = vmatprep.mubr.msk.bf16.mxu1 %vm566_vm0, %v2140_v14 }
 0x8a6   : > { %v2130_v29 = vadd.f32 %v2626_v6, %v2116_v18 }
 0x8a8   : > { %v2141_v20 = vpack.c.bf16 %v2130_v29, %v2129_v0 }
 0x8aa   : > { %2867 = vmatmul.mubr.msk.bf16.vlgmr.msra.gmra.mrb[44].mxu1 %vm566_vm0, %v2141_v20 }
 0x8cb   : > { %v2065_v28 = vpop.xlane.xlu0 %2064 }
 0x8cc   : > { %v2079_v43 = vmul.f32 0.03125, %v2065_v28 }
 0x8cd   : > { %v2068_v61 = vpop.xlane.xlu1 %2067 }
 0x8ce   : > { %v2087_v49 = vadd.f32 1e-05, %v2079_v43  ;;  %v2080_v53 = vmul.f32 0.03125, %v2068_v61 }
 0x8cf   : > { %v2071_v15 = vpop.xlane.xlu0 %2070 }
 0x8d0   : > { %3070 = vrsqrt.f32 %v2087_v49  ;;  %v2088_v33 = vadd.f32 1e-05, %v2080_v53  ;;  %v2081_v23 = vmul.f32 0.03125, %v2071_v15 }
 0x8d1   : > { %v2074_v21 = vpop.xlane.xlu1 %2073 }
 0x8d2   : > { %3072 = vrsqrt.f32 %v2088_v33  ;;  %v2089_v36 = vadd.f32 1e-05, %v2081_v23  ;;  %v2082_v26 = vmul.f32 0.03125, %v2074_v21 }
 0x8d4   : > { %3074 = vrsqrt.f32 %v2089_v36  ;;  %v2090_v41 = vadd.f32 1e-05, %v2082_v26 }
 0x8d6   : > { %3076 = vrsqrt.f32 %v2090_v41 }
 0x8da   : > { %v3071_v39 = vpop.eup %3070 }
 0x8db   : > { %v2103_v59 = vmul.f32 %v3071_v39, %v3772_v30 }
 0x8dc   : > { %v3073_v54 = vpop.eup %3072 }
 0x8dd   : > { %v2104_v38 = vmul.f32 %v3073_v54, %v3775_v31  ;;  %v2117_v55 = vmul.f32 %v2625_v16, %v2103_v59  ;;  %v2974_v31 = vld [vmem:[%s3894_s11] sm:$0xff]  }
 0x8de   : > { %v3075_v57 = vpop.eup %3074  ;;  %2874 = vmatprep.subr.bf16.mxu0 %v2974_v31 }
 0x8df   : > { %v2105_v9 = vmul.f32 %v3075_v57, %v3780_v44  ;;  %v2118_v25 = vmul.f32 %v2625_v16, %v2104_v38  ;;  %v2131_v4 = vadd.f32 %v2626_v6, %v2117_v55  ;;  %2875 = vmatpush3.bf16.msra.mxu0 %v2974_v31  ;;  %v2975_v44 = vld [vmem:[%s3894_s11 + $0x8] sm:$0xff]  }
 0x8e0   : > { %v3077_v2 = vpop.eup %3076  ;;  %2876 = vmatprep.subr.bf16.mxu0 %v2975_v44 }
 0x8e1   : > { %v2106_v3 = vmul.f32 %v3077_v2, %v3786_v52  ;;  %v2132_v35 = vadd.f32 %v2626_v6, %v2118_v25  ;;  %v2119_v1 = vmul.f32 %v2625_v16, %v2105_v9  ;;  %v2976_v52 = vld [vmem:[%s3894_s11 + $0x10] sm:$0xff]  }
 0x8e3   : > { %v2142_v19 = vpack.c.bf16 %v2132_v35, %v2131_v4  ;;  %v2120_v37 = vmul.f32 %v2625_v16, %v2106_v3  ;;  %v2133_v24 = vadd.f32 %v2626_v6, %v2119_v1  ;;  %2877 = vmatpush3.bf16.msra.mxu0 %v2975_v44  ;;  %v2981_v16 = vld [vmem:[%s3894_s11 + $0x38] sm:$0xff]  }
 0x8e4   : > { %2878 = vmatprep.subr.bf16.mxu0 %v2976_v52 }
 0x8e5   : > { %2870 = vmatprep.mubr.msk.bf16.mxu1 %vm566_vm0, %v2142_v19  ;;  %v2134_v30 = vadd.f32 %v2626_v6, %v2120_v37 }
 0x8e7   : > { %v2143_v60 = vpack.c.bf16 %v2134_v30, %v2133_v24  ;;  %2879 = vmatpush3.bf16.msra.mxu0 %v2976_v52 }
 0x8e8   : > { %2880 = vmatprep.subr.bf16.mxu0 %v2977_v5 }
 0x8e9   : > { %2871 = vmatmul.mubr.msk.bf16.gmra.mrb[48].mxu1 %vm566_vm0, %v2143_v60 }
 0x8eb   : > { %2881 = vmatpush3.bf16.msra.mxu0 %v2977_v5 }
 0x8ec   : > { %2882 = vmatprep.subr.bf16.mxu0 %v2978_v56 }
 0x8ef   : > { %2883 = vmatpush3.bf16.msra.mxu0 %v2978_v56 }
 0x8f0   : > { %2884 = vmatprep.subr.bf16.mxu0 %v2979_v62 }
 0x8f3   : > { %2885 = vmatpush3.bf16.msra.mxu0 %v2979_v62 }
 0x8f4   : > { %2886 = vmatprep.subr.bf16.mxu0 %v2980_v11 }
 0x8f7   : > { %2887 = vmatpush3.bf16.msra.mxu0 %v2980_v11 }
 0x8f8   : > { %2888 = vmatprep.subr.bf16.mxu0 %v2981_v16 }
 0x8fb   : > { %2889 = vmatpush3.bf16.msra.mxu0 %v2981_v16 }
 0x97d   : > { %v2868_v63 = vpop.f32.mrb[44].mxu1 }
 0x97e   : > { %v2217_v32 = vadd.f32 %v2868_v63, %v2627_v12  ;;  %v2208_v17 = vpop.f32.mrb[45].mxu1 }
 0x97f   : > { %v2209_v42 = vadd.f32 %v2627_v12, %v2208_v17  ;;  %v2869_v6 = vpop.f32.mrb[46].mxu1 }
 0x980   : > { %v2241_v8 = vmul.f32 %v2217_v32, %v2217_v32  ;;  %v2220_v10 = vadd.f32 %v2869_v6, %v2627_v12  ;;  %v2211_v58 = vpop.f32.mrb[47].mxu1 }
 0x981   : > { %v2239_v27 = vmul.f32 %v2209_v42, %v2209_v42  ;;  %v2212_v50 = vadd.f32 %v2627_v12, %v2211_v58 }
 0x982   : > { %v2249_v7 = vmul.f32 %v2241_v8, %v2217_v32  ;;  %v2242_v46 = vmul.f32 %v2220_v10, %v2220_v10 }
 0x983   : > { %v2247_v14 = vmul.f32 %v2239_v27, %v2209_v42  ;;  %v2240_v18 = vmul.f32 %v2212_v50, %v2212_v50 }
 0x984   : > { %v2257_v0 = vmul.f32 0.044715, %v2249_v7  ;;  %v2250_v29 = vmul.f32 %v2242_v46, %v2220_v10 }
 0x985   : > { %v2255_v20 = vmul.f32 0.044715, %v2247_v14  ;;  %v2248_v28 = vmul.f32 %v2240_v18, %v2212_v50 }
 0x986   : > { %v2265_v43 = vadd.f32 %v2257_v0, %v2217_v32  ;;  %v2258_v61 = vmul.f32 0.044715, %v2250_v29 }
 0x987   : > { %v2263_v49 = vadd.f32 %v2255_v20, %v2209_v42  ;;  %v2256_v53 = vmul.f32 0.044715, %v2248_v28 }
 0x988   : > { %v2273_v15 = vmul.f32 0.7978846, %v2265_v43  ;;  %v2266_v33 = vadd.f32 %v2258_v61, %v2220_v10 }
 0x989   : > { %v2271_v23 = vmul.f32 0.7978846, %v2263_v49  ;;  %v2264_v21 = vadd.f32 %v2256_v53, %v2212_v50 }
 0x98a   : > { %3078 = vtanh.f32 %v2273_v15  ;;  %v2274_v36 = vmul.f32 0.7978846, %v2266_v33 }
 0x98b   : > { %3080 = vtanh.f32 %v2271_v23  ;;  %v2272_v26 = vmul.f32 0.7978846, %v2264_v21 }
 0x98c   : > { %3082 = vtanh.f32 %v2274_v36 }
 0x98d   : > { %3084 = vtanh.f32 %v2272_v26 }
 0x994   : > { %v3079_v41 = vpop.eup %3078 }
 0x995   : > { %v3081_v39 = vpop.eup %3080  ;;  %v2289_v59 = vadd.f32 1.0, %v3079_v41 }
 0x996   : > { %v3083_v54 = vpop.eup %3082  ;;  %v2287_v38 = vadd.f32 1.0, %v3081_v39 }
 0x997   : > { %v3085_v55 = vpop.eup %3084  ;;  %v2297_v57 = vmul.f32 0.5, %v2289_v59  ;;  %v2290_v9 = vadd.f32 1.0, %v3083_v54 }
 0x998   : > { %v2288_v25 = vadd.f32 1.0, %v3085_v55  ;;  %v2295_v2 = vmul.f32 0.5, %v2287_v38 }
 0x999   : > { %v2298_v3 = vmul.f32 0.5, %v2290_v9  ;;  %v2305_v35 = vmul.f32 %v2297_v57, %v2217_v32 }
 0x99a   : > { %v2296_v4 = vmul.f32 0.5, %v2288_v25  ;;  %v2303_v19 = vmul.f32 %v2295_v2, %v2209_v42  ;;  %v2634_v25 = vld [vmem:[%s3895_s12] ss:$0 sm:$0xff] }
 0x99b   : > { %v2306_v1 = vmul.f32 %v2298_v3, %v2220_v10 }
 0x99c   : > { %v2304_v37 = vmul.f32 %v2296_v4, %v2212_v50 }
 0x99d   : > { %v2329_v24 = vpack.c.bf16 %v2306_v1, %v2305_v35 }
 0x99e   : > { %v2328_v30 = vpack.c.bf16 %v2304_v37, %v2303_v19 }
 0x9a0   : > { %2890 = vmatprep.mubr.bf16.mxu0 %v2328_v30 }
 0x9a1   : > { %2891 = vmatmul.mubr.bf16.vlgmr.msra.gmra.mrb[36].mxu0 %v2329_v24 }
 0x9bc   : > { %v2872_v60 = vpop.f32.mrb[48].mxu1 }
 0x9bd   : > { %v2233_v31 = vadd.f32 %v2872_v60, %v2627_v12  ;;  %v2224_v44 = vpop.f32.mrb[49].mxu1 }
 0x9be   : > { %v2225_v52 = vadd.f32 %v2627_v12, %v2224_v44  ;;  %v2873_v5 = vpop.f32.mrb[50].mxu1 }
 0x9bf   : > { %v2245_v56 = vmul.f32 %v2233_v31, %v2233_v31  ;;  %v2236_v62 = vadd.f32 %v2873_v5, %v2627_v12  ;;  %v2227_v11 = vpop.f32.mrb[51].mxu1 }
 0x9c0   : > { %v2243_v16 = vmul.f32 %v2225_v52, %v2225_v52  ;;  %v2228_v63 = vadd.f32 %v2627_v12, %v2227_v11 }
 0x9c1   : > { %v2253_v17 = vmul.f32 %v2245_v56, %v2233_v31  ;;  %v2246_v6 = vmul.f32 %v2236_v62, %v2236_v62 }
 0x9c2   : > { %v2251_v32 = vmul.f32 %v2243_v16, %v2225_v52  ;;  %v2244_v8 = vmul.f32 %v2228_v63, %v2228_v63 }
 0x9c3   : > { %v2261_v42 = vmul.f32 0.044715, %v2253_v17  ;;  %v2254_v10 = vmul.f32 %v2246_v6, %v2236_v62 }
 0x9c4   : > { %v2259_v58 = vmul.f32 0.044715, %v2251_v32  ;;  %v2252_v27 = vmul.f32 %v2244_v8, %v2228_v63 }
 0x9c5   : > { %v2269_v50 = vadd.f32 %v2261_v42, %v2233_v31  ;;  %v2262_v7 = vmul.f32 0.044715, %v2254_v10 }
 0x9c6   : > { %v2267_v46 = vadd.f32 %v2259_v58, %v2225_v52  ;;  %v2260_v14 = vmul.f32 0.044715, %v2252_v27 }
 0x9c7   : > { %v2277_v18 = vmul.f32 0.7978846, %v2269_v50  ;;  %v2270_v0 = vadd.f32 %v2262_v7, %v2236_v62 }
 0x9c8   : > { %v2275_v29 = vmul.f32 0.7978846, %v2267_v46  ;;  %v2268_v20 = vadd.f32 %v2260_v14, %v2228_v63 }
 0x9c9   : > { %3086 = vtanh.f32 %v2277_v18  ;;  %v2278_v28 = vmul.f32 0.7978846, %v2270_v0 }
 0x9ca   : > { %3088 = vtanh.f32 %v2275_v29  ;;  %v2276_v12 = vmul.f32 0.7978846, %v2268_v20 }
 0x9cb   : > { %3090 = vtanh.f32 %v2278_v28 }
 0x9cc   : > { %3092 = vtanh.f32 %v2276_v12 }
 0x9d3   : > { %v3087_v43 = vpop.eup %3086 }
 0x9d4   : > { %v3089_v61 = vpop.eup %3088  ;;  %v2293_v49 = vadd.f32 1.0, %v3087_v43 }
 0x9d5   : > { %v3091_v53 = vpop.eup %3090  ;;  %v2291_v15 = vadd.f32 1.0, %v3089_v61 }
 0x9d6   : > { %v3093_v33 = vpop.eup %3092  ;;  %v2294_v23 = vadd.f32 1.0, %v3091_v53  ;;  %v2301_v21 = vmul.f32 0.5, %v2293_v49 }
 0x9d7   : > { %v2292_v36 = vadd.f32 1.0, %v3093_v33  ;;  %v2299_v26 = vmul.f32 0.5, %v2291_v15 }
 0x9d8   : > { %v2302_v41 = vmul.f32 0.5, %v2294_v23  ;;  %v2309_v59 = vmul.f32 %v2301_v21, %v2233_v31 }
 0x9d9   : > { %v2300_v39 = vmul.f32 0.5, %v2292_v36  ;;  %v2307_v38 = vmul.f32 %v2299_v26, %v2225_v52 }
 0x9da   : > { %v2310_v54 = vmul.f32 %v2302_v41, %v2236_v62 }
 0x9db   : > { %v2308_v55 = vmul.f32 %v2300_v39, %v2228_v63 }
 0x9dc   : > { %v2331_v57 = vpack.c.bf16 %v2310_v54, %v2309_v59 }
 0x9dd   : > { %v2330_v9 = vpack.c.bf16 %v2308_v55, %v2307_v38 }
 0x9df   : > { %2894 = vmatprep.mubr.bf16.mxu0 %v2330_v9 }
 0x9e0   : > { %2895 = vmatmul.mubr.bf16.gmra.mrb[40].mxu0 %v2331_v57 }
 0xa74   : > { %v2892_v2 = vpop.f32.mrb[36].mxu0 }
 0xa75   : > { %v2429_v3 = vadd.f32 %v2892_v2, %v2634_v25  ;;  %v2420_v4 = vpop.f32.mrb[37].mxu0 }
 0xa76   : > { %v2421_v35 = vadd.f32 %v2634_v25, %v2420_v4  ;;  %v2893_v1 = vpop.f32.mrb[38].mxu0 }
 0xa77   : > { %v2453_v19 = vadd.f32 %v2429_v3, %v3705_v34  ;;  %v2432_v37 = vadd.f32 %v2893_v1, %v2634_v25  ;;  %v2423_v24 = vpop.f32.mrb[39].mxu0 }
 0xa78   : > { %v2451_v30 = vadd.f32 %v2421_v35, %v3702_v45  ;;  %v2424_v60 = vadd.f32 %v2634_v25, %v2423_v24 }
 0xa79   : > { %v2655_v31 = vpack.c.bf16 %v2453_v19, %v2453_v19  ;;  %v2454_v44 = vadd.f32 %v2432_v37, %v3715_v13 }
 0xa7a   : > { %v2653_v34 = vpack.c.bf16 %v2451_v30, %v2451_v30  ;;  %v2452_v52 = vadd.f32 %v2424_v60, %v3708_v40 }
 0xa7b   : > { %2494 = vst.msk [vmem:[%s3849_s16 + $0x8] sm:$0xf] %vm2491_vm3, %v2655_v31  ;;  %v2656_v5 = vpack.c.bf16 %v2454_v44, %v2454_v44 }
 0xa7c   : > { %2492 = vst.msk [vmem:[%s3849_s16] sm:$0xf] %vm2491_vm3, %v2653_v34  ;;  %v2654_v56 = vpack.c.bf16 %v2452_v52, %v2452_v52 }
 0xa7d   : > { %2495 = vst.msk [vmem:[%s3849_s16 + $0xc] sm:$0xf] %vm2491_vm3, %v2656_v5 }
 0xa7e   : > { %2493 = vst.msk [vmem:[%s3849_s16 + $0x4] sm:$0xf] %vm2491_vm3, %v2654_v56 }
 0xab3   : > { %v2896_v62 = vpop.f32.mrb[40].mxu0 }
 0xab4   : > { %v2445_v45 = vadd.f32 %v2896_v62, %v2634_v25  ;;  %v2436_v11 = vpop.f32.mrb[41].mxu0 }
 0xab5   : > { %v2437_v13 = vadd.f32 %v2634_v25, %v2436_v11  ;;  %v2897_v16 = vpop.f32.mrb[42].mxu0 }
 0xab6   : > { %v2457_v40 = vadd.f32 %v2445_v45, %v3725_v22  ;;  %v2448_v63 = vadd.f32 %v2897_v16, %v2634_v25  ;;  %v2439_v17 = vpop.f32.mrb[43].mxu0 }
 0xab7   : > { %v2455_v6 = vadd.f32 %v2437_v13, %v3722_v48  ;;  %v2440_v32 = vadd.f32 %v2634_v25, %v2439_v17 }
 0xab8   : > { %v2659_v8 = vpack.c.bf16 %v2457_v40, %v2457_v40  ;;  %v2458_v42 = vadd.f32 %v2448_v63, %v3733_v47 }
 0xab9   : > { %v2657_v10 = vpack.c.bf16 %v2455_v6, %v2455_v6  ;;  %v2456_v58 = vadd.f32 %v2440_v32, %v3728_v51 }
 0xaba   : > { %2498 = vst.msk [vmem:[%s3849_s16 + $0x18] sm:$0xf] %vm2491_vm3, %v2659_v8  ;;  %v2660_v27 = vpack.c.bf16 %v2458_v42, %v2458_v42 }
 0xabb   : > { %2496 = vst.msk [vmem:[%s3849_s16 + $0x10] sm:$0xf] %vm2491_vm3, %v2657_v10  ;;  %v2658_v50 = vpack.c.bf16 %v2456_v58, %v2456_v58 }
 0xabc   : > { %2499 = vst.msk [vmem:[%s3849_s16 + $0x1c] sm:$0xf] %vm2491_vm3, %v2660_v27 }
 0xabd   : > { %2497 = vst.msk [vmem:[%s3849_s16 + $0x14] sm:$0xf] %vm2491_vm3, %v2658_v50 }
 0xabe PF: > { %s25_s20 = sadd.s32 1, %s3116_s20   ;;  %s3899_s18 = smov %s3112_s19 }
 0xabf   : > { %p22_p5 = scmp.ge.s32.totalorder %s25_s20, 4   ;;  %s3900_s19 = smov %s3902_s21 }
 0xac1   :  { %24 = sbr.rel (!%p22_p5) target bundleno = 2 (0x2), region = 113 }

// kernel: _lambda_.13
= control target key start
LH: loop header
LB: loop body
LE: loop exit
PB: predicated region body
PF: predicated region fallthrough
CT: control target
= control target key end

     0   :  { %vm25_vm0 = vcmask 523264   ;;  %s224_s0 = inlined_call_operand.vmem [shape: bf16[32,64], index: 0, kind: input, shape index: {}]   ;;  %s225_s1 = inlined_call_operand.vmem [shape: f32[1,64], index: 1, kind: input, shape index: {}]   ;;  %s226_s2 = inlined_call_operand.vmem [shape: f32[1,64], index: 2, kind: input, shape index: {}]   ;;  %s227_s3 = inlined_call_operand.hbm [shape: f32[32,64], index: 3, kind: output, shape index: {}]  }
   0x1   :  { %v122_v0 = vld [vmem:[%s224_s0] sm:$0xff]   ;;  %v129_v1 = vld [vmem:[%s224_s0 + $0x8] sm:$0xff]  }
   0x2   :  { %8 = vsyncpa [#allocation3], 0  ;;  %v123_v2 = vunpack.c.l.bf16 %v122_v0  ;;  %v127_v3 = vunpack.c.l.bf16 %v129_v1  ;;  %v124_v4 = vunpack.c.h.bf16 %v122_v0  ;;  %v128_v5 = vunpack.c.h.bf16 %v129_v1  ;;  %v119_v43 = vld [vmem:[%s225_s1] ss:$0 sm:$0xff]  ;;  %s165_s1 = smov [#allocation2]  }
   0x3   :  { %v120_v45 = vld [vmem:[%s226_s2] ss:$0 sm:$0xff]  ;;  %s108_s19 = sshll.u32 %s165_s1, 4  ;;  %s109_s19 = int_to_ptr.vmem [resolvable:$true] %s108_s19 }
   0x4   :  { %v26_v6 = vsel %vm25_vm0, %v123_v2, 0.0  ;;  %v32_v7 = vsel %vm25_vm0, %v127_v3, 0.0  ;;  %v29_v8 = vsel %vm25_vm0, %v124_v4, 0.0  ;;  %v35_v9 = vsel %vm25_vm0, %v128_v5, 0.0  ;;  %s141_s2 = scalar_lea.vmem %s109_s19, 512  ;;  %p146_p1 = scmp.lt.s32.totalorder %s109_s19, %s109_s19 }
   0x5   :  { %27 = vadd.xlane.f32.xlu0 %v26_v6  ;;  %33 = vadd.xlane.f32.xlu1 %v32_v7  ;;  %p142_p0 = scmp.ne.s32.totalorder %s109_s19, %s141_s2  ;;  %p147_p2 = scmp.lt.s32.totalorder %s141_s2, %s141_s2 }
   0x7   :  { %p148_p3 = por %p147_p2, %p146_p1 }
   0x9   :  { %30 = vadd.xlane.f32.xlu0 %v29_v8  ;;  %36 = vadd.xlane.f32.xlu1 %v35_v9  ;;  %p149_p4 = pnand %p148_p3, %p142_p0 }
  0x92   :  { %v28_v10 = vpop.xlane.xlu0 %27  ;;  %v34_v11 = vpop.xlane.xlu1 %33 }
  0x93   :  { %v39_v12 = vmul.f32 0.015625, %v28_v10  ;;  %v41_v13 = vmul.f32 0.015625, %v34_v11 }
  0x95   :  { %v43_v14 = vsub.f32 %v123_v2, %v39_v12  ;;  %v45_v15 = vsub.f32 %v127_v3, %v41_v13 }
  0x96   :  { %v31_v16 = vpop.xlane.xlu0 %30  ;;  %v37_v17 = vpop.xlane.xlu1 %36 }
  0x97   :  { %v40_v18 = vmul.f32 0.015625, %v31_v16  ;;  %v42_v19 = vmul.f32 0.015625, %v37_v17  ;;  %v47_v20 = vmul.f32 %v43_v14, %v43_v14  ;;  %v49_v21 = vmul.f32 %v45_v15, %v45_v15 }
  0x99   :  { %v44_v22 = vsub.f32 %v124_v4, %v40_v18  ;;  %v46_v23 = vsub.f32 %v128_v5, %v42_v19  ;;  %v51_v24 = vsel %vm25_vm0, %v47_v20, 0.0  ;;  %v57_v25 = vsel %vm25_vm0, %v49_v21, 0.0 }
  0x9a   :  { %52 = vadd.xlane.f32.xlu0 %v51_v24 }
  0x9b   :  { %v48_v26 = vmul.f32 %v44_v22, %v44_v22  ;;  %v50_v27 = vmul.f32 %v46_v23, %v46_v23 }
  0x9d   :  { %v54_v28 = vsel %vm25_vm0, %v48_v26, 0.0  ;;  %v60_v29 = vsel %vm25_vm0, %v50_v27, 0.0 }
  0x9e   :  { %58 = vadd.xlane.f32.xlu0 %v57_v25  ;;  %55 = vadd.xlane.f32.xlu1 %v54_v28 }
  0xa2   :  { %61 = vadd.xlane.f32.xlu1 %v60_v29 }
 0x127   :  { %v53_v30 = vpop.xlane.xlu0 %52 }
 0x128   :  { %v63_v31 = vmul.f32 0.015625, %v53_v30 }
 0x12a   :  { %v67_v32 = vadd.f32 1e-05, %v63_v31 }
 0x12b   :  { %v56_v33 = vpop.xlane.xlu1 %55  ;;  %v59_v34 = vpop.xlane.xlu0 %58 }
 0x12c   :  { %133 = vrsqrt.f32 %v67_v32  ;;  %v64_v35 = vmul.f32 0.015625, %v56_v33  ;;  %v65_v36 = vmul.f32 0.015625, %v59_v34 }
 0x12e   :  { %v68_v37 = vadd.f32 1e-05, %v64_v35  ;;  %v69_v38 = vadd.f32 1e-05, %v65_v36 }
 0x12f   :  { %v62_v39 = vpop.xlane.xlu1 %61 }
 0x130   :  { %135 = vrsqrt.f32 %v68_v37  ;;  %v66_v40 = vmul.f32 0.015625, %v62_v39 }
 0x131   :  { %137 = vrsqrt.f32 %v69_v38 }
 0x132   :  { %v70_v41 = vadd.f32 1e-05, %v66_v40 }
 0x134   :  { %139 = vrsqrt.f32 %v70_v41 }
 0x136   :  { %v134_v42 = vpop.eup %133 }
 0x137   :  { %v75_v44 = vmul.f32 %v134_v42, %v43_v14 }
 0x139   :  { %v85_v46 = vmul.f32 %v119_v43, %v75_v44 }
 0x13a   :  { %v136_v47 = vpop.eup %135 }
 0x13b   :  { %v138_v48 = vpop.eup %137  ;;  %v95_v49 = vadd.f32 %v120_v45, %v85_v46  ;;  %v76_v50 = vmul.f32 %v136_v47, %v44_v22 }
 0x13c   :  { %v77_v51 = vmul.f32 %v138_v48, %v45_v15 }
 0x13d   :  { %99 = vst.msk [vmem:[#allocation2] sm:$0xff] %vm25_vm0, %v95_v49  ;;  %v86_v52 = vmul.f32 %v119_v43, %v76_v50 }
 0x13e   :  { %v140_v53 = vpop.eup %139  ;;  %v87_v54 = vmul.f32 %v119_v43, %v77_v51 }
 0x13f   :  { %v96_v55 = vadd.f32 %v120_v45, %v86_v52  ;;  %v78_v56 = vmul.f32 %v140_v53, %v46_v23 }
 0x140   :  { %v97_v57 = vadd.f32 %v120_v45, %v87_v54 }
 0x141   :  { %100 = vst.msk [vmem:[#allocation2 + $0x8] sm:$0xff] %vm25_vm0, %v96_v55  ;;  %v88_v58 = vmul.f32 %v119_v43, %v78_v56 }
 0x142   :  { %101 = vst.msk [vmem:[#allocation2 + $0x10] sm:$0xff] %vm25_vm0, %v97_v57 }
 0x143   :  { %v98_v59 = vadd.f32 %v120_v45, %v88_v58 }
 0x145   :  { %102 = vst.msk [vmem:[#allocation2 + $0x18] sm:$0xff] %vm25_vm0, %v98_v59 }
 0x146   :  { %152 = shalt.err (!%p149_p4)
}
 0x147   :  { %s153_s22 = scalar_lea.hbm %s227_s3, 512 }
 0x148   :  { %p154_p5 = scmp.ne.s32.totalorder %s227_s3, %s153_s22  ;;  %p157_p6 = scmp.lt.u32.totalorder %s153_s22, %s227_s3 }
 0x14a   :  { %p159_p7 = pnand %p157_p6, %p154_p5 }
 0x14c   :  { %162 = shalt.err (!%p159_p7)
}
 0x14d   :  { %s166_s27 = smov 128   ;;  %s167_s28 = smov 8  }
 0x14e   :  { %114 = dma.vmem_to_hbm [thread:$0]  %s109_s19, 512, %s227_s3, [#allocation3], %s166_s27, %s166_s27, %s167_s28  }
 0x14f   :  { %163 = dma.done.wait [#allocation3], 512  }
 0x150   :  { %164 = vsyncadd [#allocation3], 4294966784 }
 0x151   :  { %118 = vsyncpa [#allocation3], 1 }

// kernel: _lambda_.11
= control target key start
LH: loop header
LB: loop body
LE: loop exit
PB: predicated region body
PF: predicated region fallthrough
CT: control target
= control target key end

     0   :  { %s2205_s29 = smov 0   ;;  %s2207_s30 = smov 0   ;;  %s2521_s0 = inlined_call_operand.vmem [shape: bf16[32,64], index: 0, kind: input, shape index: {}]   ;;  %s2522_s1 = inlined_call_operand.vmem [shape: f32[1,64], index: 1, kind: input, shape index: {}]   ;;  %s2523_s2 = inlined_call_operand.vmem [shape: f32[1,64], index: 2, kind: input, shape index: {}]   ;;  %s2524_s3 = inlined_call_operand.vmem [shape: bf16[64,192], index: 3, kind: input, shape index: {}]   ;;  %s2525_s4 = inlined_call_operand.vmem [shape: f32[1,192], index: 4, kind: input, shape index: {}]   ;;  %s2526_s5 = inlined_call_operand.vmem [shape: bf16[64,64], index: 5, kind: input, shape index: {}]   ;;  %s2527_s6 = inlined_call_operand.vmem [shape: f32[1,64], index: 6, kind: input, shape index: {}]   ;;  %s2528_s7 = inlined_call_operand.vmem [shape: f32[1,64], index: 7, kind: input, shape index: {}]   ;;  %s2529_s8 = inlined_call_operand.vmem [shape: f32[1,64], index: 8, kind: input, shape index: {}]   ;;  %s2530_s9 = inlined_call_operand.vmem [shape: bf16[64,256], index: 9, kind: input, shape index: {}]   ;;  %s2531_s10 = inlined_call_operand.vmem [shape: f32[1,256], index: 10, kind: input, shape index: {}]   ;;  %s2532_s11 = inlined_call_operand.vmem [shape: bf16[256,64], index: 11, kind: input, shape index: {}]   ;;  %s2533_s12 = inlined_call_operand.vmem [shape: f32[1,64], index: 12, kind: input, shape index: {}]   ;;  %s2534_s13 = inlined_call_operand.vmem [shape: f32[4,16,16], index: 13, kind: input, shape index: {}]   ;;  %s2535_s14 = inlined_call_operand.vmem [shape: bf16[32,64], index: 14, kind: output, shape index: {}]  }
   0x1   :  { %s2209_s15 = smov 0  }
   0x2 LB: > { %s36_s16 = sadd.s32 1, %s2114_s30  ;;  %p1754_p0 = scmp.ge.s32.totalorder %s2118_s15, 1  ;;  %s2118_s15 = sphi %s2209_s15, %s24_s15   ;;  %s2114_s30 = sphi %s2207_s30, %s2537_s30   ;;  %s2110_s29 = sphi %s2205_s29, %s2536_s29  }
   0x3   : > { %p38_p1 = scmp.ge.s32.totalorder %s36_s16, 2  ;;  %p431_p2 = scmp.lt.s32.totalorder %s2118_s15, 3 }
   0x5   : > { %s2539_s16 = smov (%p38_p1, %s36_s16), 0  ;;  %p432_p3 = pnand %p1754_p0, %p431_p2 }
   0x6   : > { %s1755_s17 = sshll.u32 (!%p432_p3), %s2110_s29, 1  ;;  %vm502_vm0 = vcmask (!%p432_p3), 523264   ;;  %v2004_v15 = vld [vmem:[%s2524_s3 + $0x4] ss:$8 sps:$4 sm:$0xff] (!%p432_p3)   ;;  %v2006_v16 = vld [vmem:[%s2524_s3] ss:$8 sps:$4 sm:$0xff] (!%p432_p3)   ;;  %v557_v41 = vlaneseq (!%p432_p3) }
   0x7   : > { %435 = sbr.rel (%p432_p3) target bundleno = 2683 (0xa7b), region = 76  ;;  %p481_p4 = scmp.lt.s32.totalorder (!%p432_p3), %s1755_s17, 3  ;;  %610 = vmatprep.subr.bf16.mxu1 (!%p432_p3), %v2004_v15  ;;  %v2007_v17 = vld [vmem:[%s2524_s3 + $0x14] ss:$8 sps:$4 sm:$0xff] (!%p432_p3)   ;;  %v2009_v18 = vld [vmem:[%s2524_s3 + $0x10] ss:$8 sps:$4 sm:$0xff] (!%p432_p3)  }
   0x8   : > { %611 = vmatpush1.bf16.msra.mxu1 (!%p432_p3), %v2006_v16  ;;  %v2010_v19 = vld [vmem:[%s2524_s3 + $0x24] ss:$8 sps:$4 sm:$0xff] (!%p432_p3)   ;;  %v2012_v20 = vld [vmem:[%s2524_s3 + $0x20] ss:$8 sps:$4 sm:$0xff] (!%p432_p3)   ;;  %v2013_v21 = vld [vmem:[%s2524_s3 + $0x34] ss:$8 sps:$4 sm:$0xff] (!%p432_p3)  }
   0x9   : > { %612 = vmatprep.subr.bf16.mxu1 (!%p432_p3), %v2007_v17  ;;  %v2015_v22 = vld [vmem:[%s2524_s3 + $0x30] ss:$8 sps:$4 sm:$0xff] (!%p432_p3)   ;;  %v2120_v23 = vmov (!%p432_p3), 0   ;;  %v1759_v32 = vld [vmem:[%s2522_s1] ss:$0 sm:$0xff] (!%p432_p3)  ;;  %v2275_v42 = vshrl.u32 (!%p432_p3), %v557_v41, 7 }
   0xa   : > { %642 = vmatprep.mubr.bf16.mxu1 (!%p432_p3), %v2120_v23  ;;  %v1760_v36 = vld [vmem:[%s2523_s2] ss:$0 sm:$0xff] (!%p432_p3)  ;;  %v2121_v51 = vmov (!%p432_p3), 0.0   ;;  %vm2122_vm1 = vmmov (!%p432_p3), 0   ;;  %s2123_s22 = smov (!%p432_p3), 96   ;;  %s2124_s23 = smov (!%p432_p3), 112  }
   0xb   : > { %v559_v43 = vsub.s32 (!%p432_p3), 0, %v2275_v42  ;;  %v554_v44 = vld [vmem:[%s2525_s4] sm:$0x3] (!%p432_p3)  ;;  %v563_v45 = vsub.s32 (!%p432_p3), 1, %v2275_v42  ;;  %1877 = vmatprep.subr.bf16.mxu0 (!%p432_p3), %v2121_v51  ;;  %1879 = vmatprep.mubr.msk.bf16.mxu0 (!%p432_p3), %vm2122_vm1, %v2121_v51  ;;  %s2125_s24 = smov (!%p432_p3), 80   ;;  %s2126_s25 = smov (!%p432_p3), 64  }
   0xc   : > { %613 = vmatpush1.bf16.msra.mxu1 (!%p432_p3), %v2009_v18  ;;  %vm704_vm2 = vcmask (!%p432_p3), 130048   ;;  %s2127_s20 = smov (!%p432_p3), 16   ;;  %vm1212_vm3 = vcmask (!%p432_p3), 261120   ;;  %vm1215_vm4 = vcmask (!%p432_p3), 392192   ;;  %vm1679_vm5 = vcmask (!%p432_p3), 519168  }
   0xd   : > { %614 = vmatprep.subr.bf16.mxu1 (!%p432_p3), %v2010_v19  ;;  %v560_v46 = vrot.slane (!%p432_p3), %v554_v44, %v559_v43  ;;  %v564_v48 = vrot.slane (!%p432_p3), %v554_v44, %v563_v45  ;;  %v902_v19 = vld [vmem:[%s2534_s13] sm:$0xff] (!%p432_p3) }
   0xe   : > { %s2541_s17 = smov (!%p481_p4, %s1755_s17), 3 }
   0xf   : > { %s1756_s18 = sshll.u32 %s2541_s17, 2 }
  0x10   : > { %s484_s21 = scalar_lea.vmem %s2521_s0, %s1756_s18  ;;  %615 = vmatpush1.bf16.msra.mxu1 %v2012_v20  ;;  %s492_s28 = scalar_lea.vmem %s2535_s14, %s1756_s18 }
  0x11   : > { %v1819_v0 = vld [vmem:[%s484_s21] sm:$0xff]   ;;  %616 = vmatprep.subr.bf16.mxu1 %v2013_v21  ;;  %v903_v21 = vld [vmem:[%s2534_s13 + $0x8] sm:$0xff]  ;;  %s2128_s21 = smov 32  }
  0x12   : > { %v2231_v1 = vunpack.c.l.bf16 %v1819_v0  ;;  %v2233_v2 = vunpack.c.h.bf16 %v1819_v0 }
  0x14   : > { %v503_v3 = vsel %vm502_vm0, %v2231_v1, 0.0  ;;  %v506_v4 = vsel %vm502_vm0, %v2233_v2, 0.0  ;;  %617 = vmatpush1.bf16.msra.mxu1 %v2015_v22 }
  0x15   : > { %504 = vadd.xlane.f32.xlu0 %v503_v3  ;;  %1865 = vmatprep.subr.bf16.mxu1 %v2121_v51 }
  0x19   : > { %507 = vadd.xlane.f32.xlu0 %v506_v4 }
  0xa2   : > { %v505_v5 = vpop.xlane.xlu0 %504 }
  0xa3   : > { %v510_v6 = vmul.f32 0.015625, %v505_v5 }
  0xa5   : > { %v512_v7 = vsub.f32 %v2231_v1, %v510_v6 }
  0xa6   : > { %v508_v8 = vpop.xlane.xlu0 %507 }
  0xa7   : > { %v511_v9 = vmul.f32 0.015625, %v508_v8  ;;  %v514_v10 = vmul.f32 %v512_v7, %v512_v7 }
  0xa9   : > { %v513_v11 = vsub.f32 %v2233_v2, %v511_v9  ;;  %v516_v12 = vsel %vm502_vm0, %v514_v10, 0.0 }
  0xaa   : > { %517 = vadd.xlane.f32.xlu1 %v516_v12 }
  0xab   : > { %v515_v13 = vmul.f32 %v513_v11, %v513_v11 }
  0xad   : > { %v519_v14 = vsel %vm502_vm0, %v515_v13, 0.0 }
  0xae   : > { %520 = vadd.xlane.f32.xlu1 %v519_v14 }
 0x137   : > { %v518_v24 = vpop.xlane.xlu1 %517 }
 0x138   : > { %v522_v25 = vmul.f32 0.015625, %v518_v24 }
 0x13a   : > { %v524_v26 = vadd.f32 1e-05, %v522_v25 }
 0x13b   : > { %v521_v27 = vpop.xlane.xlu1 %520 }
 0x13c   : > { %2048 = vrsqrt.f32 %v524_v26  ;;  %v523_v28 = vmul.f32 0.015625, %v521_v27 }
 0x13e   : > { %v525_v29 = vadd.f32 1e-05, %v523_v28 }
 0x140   : > { %2050 = vrsqrt.f32 %v525_v29 }
 0x146   : > { %v2049_v30 = vpop.eup %2048 }
 0x147   : > { %v528_v31 = vmul.f32 %v2049_v30, %v512_v7  ;;  %v904_v30 = vld [vmem:[%s2534_s13 + $0x10] sm:$0xff] }
 0x149   : > { %v536_v35 = vmul.f32 %v1759_v32, %v528_v31  ;;  %v906_v31 = vld [vmem:[%s2534_s13 + $0x20] sm:$0xff] }
 0x14a   : > { %v2051_v33 = vpop.eup %2050 }
 0x14b   : > { %v529_v34 = vmul.f32 %v2051_v33, %v513_v11  ;;  %v544_v38 = vadd.f32 %v1760_v36, %v536_v35 }
 0x14d   : > { %v537_v37 = vmul.f32 %v1759_v32, %v529_v34  ;;  %v905_v34 = vld [vmem:[%s2534_s13 + $0x18] sm:$0xff] }
 0x14f   : > { %v545_v39 = vadd.f32 %v1760_v36, %v537_v37 }
 0x151   : > { %v555_v40 = vpack.c.bf16 %v545_v39, %v544_v38 }
 0x153   : > { %1769 = vmatmul.mubr.msk.bf16.vlgmr.msra.gmra.mrb[0].mxu1 %vm502_vm0, %v555_v40 }
 0x154   : > { %1867 = vmatprep.mubr.msk.bf16.mxu1 %vm2122_vm1, %v2121_v51 }
 0x226   : > { %v644_v47 = vpop.f32.mrb[0].mxu1 }
 0x227   : > { %v646_v49 = vpop.f32.mrb[1].mxu1  ;;  %v645_v52 = vadd.f32 %v644_v47, %v560_v46 }
 0x228   : > { %v648_v50 = vpop.f32.mrb[2].mxu1  ;;  %v647_v55 = vadd.f32 %v646_v49, %v564_v48  ;;  %v907_v49 = vld [vmem:[%s2534_s13 + $0x28] sm:$0xff] }
 0x229   : > { %v649_v53 = vadd.f32 %v648_v50, %v560_v46  ;;  %v650_v54 = vpop.f32.mrb[3].mxu1  ;;  %v908_v50 = vld [vmem:[%s2534_s13 + $0x30] sm:$0xff] }
 0x22a   : > { %v651_v56 = vadd.f32 %v650_v54, %v564_v48 }
 0x22b   : > { %v1964_v57 = vpack.i.bf16 %v649_v53, %v645_v52  ;;  %v673_v58 = vpack.c.bf16 %v649_v53, %v645_v52 }
 0x22c   : > { %v697_v59 = vpack.c.bf16 %v651_v56, %v647_v55  ;;  %v2292_v60 = vpack.i.bf16 %v651_v56, %v647_v55  ;;  %v909_v55 = vld [vmem:[%s2534_s13 + $0x38] sm:$0xff] }
 0x22d   : > { %1965 = vrot.lane.b32.xlu1 %v1964_v57, %s2123_s22  ;;  %1960 = vrot.lane.b32.xlu0 %v1964_v57, %s2124_s23 }
 0x231   : > { %1970 = vrot.lane.b32.xlu1 %v1964_v57, %s2125_s24 }
 0x235   : > { %702 = vrot.lane.b32.xlu1 %v673_v58, %s2126_s25 }
 0x29f   : > { %v1966_v61 = vpop.permute.xlu1 %1965  ;;  %v1961_v62 = vpop.permute.xlu0 %1960 }
 0x2a0   : > { %v1968_v63 = vunpack.i.h.bf16 %v1966_v61  ;;  %v1967_v0 = vunpack.i.l.bf16 %v1966_v61  ;;  %v1963_v3 = vunpack.i.h.bf16 %v1961_v62  ;;  %v1962_v4 = vunpack.i.l.bf16 %v1961_v62 }
 0x2a2   : > { %v675_v5 = vpack.c.bf16 %v1968_v63, %v1967_v0  ;;  %v674_v6 = vpack.c.bf16 %v1963_v3, %v1962_v4 }
 0x2a3   : > { %v1971_v7 = vpop.permute.xlu1 %1970 }
 0x2a4   : > { %v1973_v8 = vunpack.i.h.bf16 %v1971_v7  ;;  %v1972_v9 = vunpack.i.l.bf16 %v1971_v7  ;;  %753 = vrot.lane.b32.xlu0 %v674_v6, %s2126_s25  ;;  %803 = vrot.lane.b32.xlu1 %v675_v5, %s2126_s25 }
 0x2a6   : > { %v676_v10 = vpack.c.bf16 %v1973_v8, %v1972_v9 }
 0x2a7   : > { %v703_v11 = vpop.permute.xlu1 %702 }
 0x2a8   : > { %v709_v12 = vsel %vm704_vm2, %v703_v11, 0  ;;  %853 = vrot.lane.b32.xlu0 %v676_v10, %s2126_s25  ;;  %s2129_s25 = smov 48  }
 0x2a9   : > { %1866 = vmatpush3.bf16.xpose.msra.mxu1 %v709_v12 }
 0x2aa   : > { %1871 = vmatprep.subr.bf16.mxu1 %v2121_v51 }
 0x2b0   : > { %1868 = vmatmul.mubr.msk.bf16.vlgmr.msra.gmra.mrb[4].mxu1 %vm704_vm2, %v673_v58 }
 0x2b1   : > { %1873 = vmatprep.mubr.msk.bf16.mxu1 %vm2122_vm1, %v2121_v51 }
 0x316   : > { %v754_v13 = vpop.permute.xlu0 %753  ;;  %v804_v14 = vpop.permute.xlu1 %803 }
 0x317   : > { %v759_v15 = vsel %vm704_vm2, %v754_v13, 0  ;;  %v809_v16 = vsel %vm704_vm2, %v804_v14, 0 }
 0x318   : > { %1872 = vmatpush3.bf16.xpose.msra.mxu1 %v759_v15  ;;  %1878 = vmatpush3.bf16.xpose.msra.mxu0 %v809_v16 }
 0x319   : > { %1883 = vmatprep.subr.bf16.mxu1 %v2121_v51  ;;  %1889 = vmatprep.subr.bf16.mxu0 %v2121_v51 }
 0x31a   : > { %v854_v17 = vpop.permute.xlu0 %853 }
 0x31b   : > { %v859_v18 = vsel %vm704_vm2, %v854_v17, 0 }
 0x31f   : > { %1874 = vmatmul.mubr.msk.bf16.vlgmr.msra.gmra.mrb[8].mxu1 %vm704_vm2, %v674_v6  ;;  %1880 = vmatmul.mubr.msk.bf16.vlgmr.msra.gmra.mrb[0].mxu0 %vm704_vm2, %v675_v5 }
 0x320   : > { %1884 = vmatpush3.bf16.xpose.msra.mxu1 %v859_v18  ;;  %1890 = vmatpush3.bf16.msra.mxu0 %v697_v59 }
 0x321   : > { %1885 = vmatprep.mubr.msk.bf16.mxu1 %vm2122_vm1, %v2121_v51  ;;  %1895 = vmatprep.subr.bf16.mxu1 %v2121_v51 }
 0x322   : > { %1891 = vmatprep.mubr.msk.bf16.mxu0 %vm2122_vm1, %v2121_v51  ;;  %1901 = vmatprep.subr.bf16.mxu0 %v2121_v51 }
 0x327   : > { %1886 = vmatmul.mubr.msk.bf16.vlgmr.msra.gmra.mrb[12].mxu1 %vm704_vm2, %v676_v10 }
 0x328   : > { %1897 = vmatprep.mubr.msk.bf16.mxu1 %vm2122_vm1, %v2121_v51 }
 0x383   : > { %v745_v20 = vpop.f32.mrb[4].mxu1 }
 0x384   : > { %v910_v22 = vadd.f32 %v902_v19, %v745_v20  ;;  %v1869_v24 = vpop.f32.mrb[5].mxu1 }
 0x385   : > { %v748_v25 = vpop.f32.mrb[6].mxu1 }
 0x386   : > { %v911_v26 = vadd.f32 %v903_v21, %v748_v25  ;;  %v1870_v27 = vpop.f32.mrb[7].mxu1  ;;  %v918_v28 = vsel %vm704_vm2, %v910_v22, -inf }
 0x387   : > { %919 = vmax.xlane.f32.xlu1 %v918_v28 }
 0x388   : > { %v921_v29 = vsel %vm704_vm2, %v911_v26, -inf }
 0x389   : > { %922 = vmax.xlane.f32.xlu0 %v921_v29 }
 0x3f2   : > { %v795_v32 = vpop.f32.mrb[8].mxu1  ;;  %v845_v33 = vpop.f32.mrb[0].mxu0 }
 0x3f3   : > { %v912_v35 = vadd.f32 %v904_v30, %v795_v32  ;;  %v914_v36 = vadd.f32 %v906_v31, %v845_v33  ;;  %v1875_v37 = vpop.f32.mrb[9].mxu1  ;;  %v1881_v38 = vpop.f32.mrb[1].mxu0 }
 0x3f4   : > { %v798_v39 = vpop.f32.mrb[10].mxu1  ;;  %v848_v40 = vpop.f32.mrb[2].mxu0 }
 0x3f5   : > { %v913_v41 = vadd.f32 %v905_v34, %v798_v39  ;;  %v1876_v44 = vpop.f32.mrb[11].mxu1  ;;  %v1882_v46 = vpop.f32.mrb[3].mxu0  ;;  %v924_v47 = vsel %vm704_vm2, %v912_v35, -inf  ;;  %v930_v48 = vsel %vm704_vm2, %v914_v36, -inf  ;;  %v915_v52 = vadd.f32 %v907_v49, %v848_v40 }
 0x3f6   : > { %925 = vmax.xlane.f32.xlu0 %v924_v47  ;;  %931 = vmax.xlane.f32.xlu1 %v930_v48 }
 0x3f7   : > { %v927_v53 = vsel %vm704_vm2, %v913_v41, -inf  ;;  %v933_v63 = vsel %vm704_vm2, %v915_v52, -inf }
 0x3fa   : > { %928 = vmax.xlane.f32.xlu0 %v927_v53  ;;  %v895_v54 = vpop.f32.mrb[12].mxu1 }
 0x3fb   : > { %v916_v56 = vadd.f32 %v908_v50, %v895_v54  ;;  %v1887_v57 = vpop.f32.mrb[13].mxu1 }
 0x3fc   : > { %v898_v58 = vpop.f32.mrb[14].mxu1 }
 0x3fd   : > { %v917_v59 = vadd.f32 %v909_v55, %v898_v58  ;;  %v1888_v61 = vpop.f32.mrb[15].mxu1  ;;  %v936_v62 = vsel %vm704_vm2, %v916_v56, -inf }
 0x3fe   : > { %937 = vmax.xlane.f32.xlu1 %v936_v62  ;;  %934 = vmax.xlane.f32.xlu0 %v933_v63 }
 0x3ff   : > { %v939_v0 = vsel %vm704_vm2, %v917_v59, -inf }
 0x402   : > { %940 = vmax.xlane.f32.xlu0 %v939_v0 }
 0x40f   : > { %1975 = vrot.lane.b32.xlu1 %v2292_v60, %s2124_s23 }
 0x414   : > { %v920_v6 = vpop.xlane.xlu1 %919 }
 0x415   : > { %v942_v7 = vsub.f32 %v910_v22, %v920_v6 }
 0x416   : > { %v923_v3 = vpop.xlane.xlu0 %922 }
 0x417   : > { %v943_v4 = vsub.f32 %v911_v26, %v923_v3  ;;  %v950_v8 = vmul.f32 1.442695, %v942_v7 }
 0x419   : > { %v952_v5 = vmul.f32 1.442695, %v943_v4 }
 0x41b   : > { %2052 = vpow2.f32 %v952_v5 }
 0x41c   : > { %2054 = vpow2.f32 %v950_v8 }
 0x425   : > { %v2352_v9 = vpop.eup %2052 }
 0x426   : > { %v969_v10 = vsel %vm704_vm2, %v2352_v9, 0.0  ;;  %v2055_v11 = vpop.eup %2054 }
 0x427   : > { %970 = vadd.xlane.f32.xlu0 %v969_v10  ;;  %v966_v12 = vsel %vm704_vm2, %v2055_v11, 0.0 }
 0x433   : > { %967 = vadd.xlane.f32.xlu1 %v966_v12 }
 0x483   : > { %v926_v13 = vpop.xlane.xlu0 %925  ;;  %v932_v14 = vpop.xlane.xlu1 %931 }
 0x484   : > { %v944_v15 = vsub.f32 %v912_v35, %v926_v13  ;;  %v946_v16 = vsub.f32 %v914_v36, %v932_v14 }
 0x486   : > { %v954_v17 = vmul.f32 1.442695, %v944_v15  ;;  %v958_v18 = vmul.f32 1.442695, %v946_v16 }
 0x487   : > { %v929_v19 = vpop.xlane.xlu0 %928 }
 0x488   : > { %2056 = vpow2.f32 %v954_v17  ;;  %v945_v20 = vsub.f32 %v913_v41, %v929_v19 }
 0x489   : > { %2058 = vpow2.f32 %v958_v18 }
 0x48a   : > { %v956_v21 = vmul.f32 1.442695, %v945_v20 }
 0x48b   : > { %v935_v22 = vpop.xlane.xlu0 %934  ;;  %v938_v24 = vpop.xlane.xlu1 %937 }
 0x48c   : > { %2060 = vpow2.f32 %v956_v21  ;;  %v947_v25 = vsub.f32 %v915_v52, %v935_v22  ;;  %v948_v26 = vsub.f32 %v916_v56, %v938_v24 }
 0x48e   : > { %v960_v27 = vmul.f32 1.442695, %v947_v25  ;;  %v962_v28 = vmul.f32 1.442695, %v948_v26 }
 0x48f   : > { %v941_v29 = vpop.xlane.xlu0 %940  ;;  %v1976_v30 = vpop.permute.xlu1 %1975 }
 0x490   : > { %2062 = vpow2.f32 %v960_v27  ;;  %v949_v31 = vsub.f32 %v917_v59, %v941_v29  ;;  %v1978_v32 = vunpack.i.h.bf16 %v1976_v30  ;;  %v1977_v33 = vunpack.i.l.bf16 %v1976_v30  ;;  %v2016_v27 = vld [vmem:[%s2526_s5] sm:$0xff]  }
 0x491   : > { %2064 = vpow2.f32 %v962_v28 }
 0x492   : > { %v2057_v34 = vpop.eup %2056  ;;  %v964_v35 = vmul.f32 1.442695, %v949_v31  ;;  %v698_v36 = vpack.c.bf16 %v1978_v32, %v1977_v33  ;;  %v2017_v32 = vld [vmem:[%s2526_s5 + $0x8] sm:$0xff]  }
 0x493   : > { %v972_v37 = vsel %vm704_vm2, %v2057_v34, 0.0  ;;  %v2059_v38 = vpop.eup %2058 }
 0x494   : > { %2066 = vpow2.f32 %v964_v35  ;;  %973 = vadd.xlane.f32.xlu1 %v972_v37  ;;  %1896 = vmatpush3.bf16.msra.mxu1 %v698_v36  ;;  %v978_v41 = vsel %vm704_vm2, %v2059_v38, 0.0  ;;  %v2019_v35 = vld [vmem:[%s2526_s5 + $0x18] sm:$0xff]  }
 0x495   : > { %1907 = vmatprep.subr.bf16.mxu1 %v2121_v51 }
 0x496   : > { %v2061_v39 = vpop.eup %2060 }
 0x497   : > { %v975_v40 = vsel %vm704_vm2, %v2061_v39, 0.0 }
 0x498   : > { %976 = vadd.xlane.f32.xlu0 %v975_v40  ;;  %979 = vadd.xlane.f32.xlu1 %v978_v41 }
 0x49a   : > { %v2063_v44 = vpop.eup %2062 }
 0x49b   : > { %v2065_v46 = vpop.eup %2064  ;;  %v981_v47 = vsel %vm704_vm2, %v2063_v44, 0.0 }
 0x49c   : > { %982 = vadd.xlane.f32.xlu0 %v981_v47  ;;  %v984_v48 = vsel %vm704_vm2, %v2065_v46, 0.0 }
 0x49d   : > { %985 = vadd.xlane.f32.xlu1 %v984_v48 }
 0x49e   : > { %v2067_v49 = vpop.eup %2066 }
 0x49f   : > { %v987_v50 = vsel %vm704_vm2, %v2067_v49, 0.0 }
 0x4a0   : > { %988 = vadd.xlane.f32.xlu0 %v987_v50 }
 0x4ae   : > { %1985 = vrot.lane.b32.xlu1 %v2292_v60, %s2125_s24 }
 0x4b4   : > { %v971_v52 = vpop.xlane.xlu0 %970 }
 0x4b5   : > { %2068 = vrcp.f32 %v971_v52 }
 0x4b6   : > { %1980 = vrot.lane.b32.xlu0 %v2292_v60, %s2123_s22 }
 0x4bf   : > { %v2069_v54 = vpop.eup %2068 }
 0x4c0   : > { %v968_v53 = vpop.xlane.xlu1 %967  ;;  %v999_v56 = vmul.f32 %v2069_v54, %v2352_v9 }
 0x4c1   : > { %2070 = vrcp.f32 %v968_v53 }
 0x4cb   : > { %v2071_v55 = vpop.eup %2070 }
 0x4cc   : > { %v998_v57 = vmul.f32 %v2071_v55, %v2055_v11 }
 0x4ce   : > { %v1006_v58 = vpack.c.bf16 %v999_v56, %v998_v57 }
 0x4d0   : > { %1892 = vmatmul.mubr.msk.bf16.vlgmr.msra.gmra.mrb[4].mxu0 %vm704_vm2, %v1006_v58 }
 0x4d1   : > { %1903 = vmatprep.mubr.msk.bf16.mxu0 %vm2122_vm1, %v2121_v51 }
 0x521   : > { %v974_v59 = vpop.xlane.xlu1 %973 }
 0x522   : > { %2072 = vrcp.f32 %v974_v59 }
 0x525   : > { %v977_v61 = vpop.xlane.xlu0 %976  ;;  %v980_v62 = vpop.xlane.xlu1 %979 }
 0x526   : > { %2074 = vrcp.f32 %v977_v61 }
 0x527   : > { %2076 = vrcp.f32 %v980_v62 }
 0x529   : > { %v983_v60 = vpop.xlane.xlu0 %982 }
 0x52a   : > { %2078 = vrcp.f32 %v983_v60  ;;  %v986_v63 = vpop.xlane.xlu1 %985 }
 0x52b   : > { %2080 = vrcp.f32 %v986_v63 }
 0x52c   : > { %v2073_v3 = vpop.eup %2072 }
 0x52d   : > { %v989_v0 = vpop.xlane.xlu0 %988  ;;  %v1000_v8 = vmul.f32 %v2073_v3, %v2057_v34 }
 0x52e   : > { %2082 = vrcp.f32 %v989_v0  ;;  %v1986_v4 = vpop.permute.xlu1 %1985 }
 0x52f   : > { %v1988_v6 = vunpack.i.h.bf16 %v1986_v4  ;;  %v1987_v7 = vunpack.i.l.bf16 %v1986_v4 }
 0x530   : > { %v2075_v5 = vpop.eup %2074 }
 0x531   : > { %v1001_v9 = vmul.f32 %v2075_v5, %v2061_v39  ;;  %v1981_v10 = vpop.permute.xlu0 %1980  ;;  %v2077_v11 = vpop.eup %2076  ;;  %v700_v16 = vpack.c.bf16 %v1988_v6, %v1987_v7  ;;  %v1778_v6 = vld [vmem:[%s2527_s6] ss:$0 sm:$0xff] }
 0x532   : > { %v1983_v12 = vunpack.i.h.bf16 %v1981_v10  ;;  %v1982_v13 = vunpack.i.l.bf16 %v1981_v10  ;;  %v1002_v18 = vmul.f32 %v2077_v11, %v2059_v38 }
 0x533   : > { %v1007_v14 = vpack.c.bf16 %v1001_v9, %v1000_v8 }
 0x534   : > { %v2079_v15 = vpop.eup %2078  ;;  %v699_v17 = vpack.c.bf16 %v1983_v12, %v1982_v13 }
 0x535   : > { %v1003_v19 = vmul.f32 %v2079_v15, %v2063_v44  ;;  %1898 = vmatmul.mubr.msk.bf16.vlgmr.msra.gmra.mrb[16].mxu1 %vm704_vm2, %v1007_v14  ;;  %v2081_v20 = vpop.eup %2080 }
 0x536   : > { %1908 = vmatpush3.bf16.msra.mxu1 %v700_v16  ;;  %1902 = vmatpush3.bf16.msra.mxu0 %v699_v17  ;;  %v1004_v24 = vmul.f32 %v2081_v20, %v2065_v46 }
 0x537   : > { %v1008_v21 = vpack.c.bf16 %v1003_v19, %v1002_v18  ;;  %1909 = vmatprep.mubr.msk.bf16.mxu1 %vm2122_vm1, %v2121_v51  ;;  %1913 = vmatprep.subr.bf16.mxu0 %v2121_v51 }
 0x538   : > { %v2083_v22 = vpop.eup %2082 }
 0x539   : > { %v1005_v25 = vmul.f32 %v2083_v22, %v2067_v49  ;;  %1904 = vmatmul.mubr.msk.bf16.vlgmr.msra.gmra.mrb[8].mxu0 %vm704_vm2, %v1008_v21 }
 0x53a   : > { %1921 = vmatprep.mubr.msk.bf16.mxu0 %vm2122_vm1, %v2121_v51  ;;  %1914 = vmatpush3.bf16.msra.mxu0 %v2016_v27  ;;  %v2020_v27 = vld [vmem:[%s2530_s9] ss:$8 sps:$4 sm:$0xff]  }
 0x53b   : > { %v1009_v26 = vpack.c.bf16 %v1005_v25, %v1004_v24  ;;  %1915 = vmatprep.subr.bf16.mxu0 %v2121_v51 }
 0x53d   : > { %1910 = vmatmul.mubr.msk.bf16.vlgmr.msra.gmra.mrb[20].mxu1 %vm704_vm2, %v1009_v26  ;;  %v2022_v26 = vld [vmem:[%s2530_s9 + $0x4] ss:$8 sps:$4 sm:$0xff]  }
 0x53e   : > { %1444 = vmatprep.mubr.bf16.mxu1 %v2120_v23  ;;  %1916 = vmatpush3.bf16.msra.mxu0 %v2017_v32  ;;  %v2018_v23 = vld [vmem:[%s2526_s5 + $0x10] sm:$0xff]  }
 0x53f   : > { %1917 = vmatprep.subr.bf16.mxu0 %v2121_v51  ;;  %1412 = vmatprep.subr.bf16.mxu1 %v2022_v26  ;;  %v2029_v32 = vld [vmem:[%s2530_s9 + $0x30] ss:$8 sps:$4 sm:$0xff]  }
 0x540   : > { %1413 = vmatpush1.bf16.msra.mxu1 %v2020_v27 }
 0x542   : > { %1918 = vmatpush3.bf16.msra.mxu0 %v2018_v23  ;;  %v2031_v23 = vld [vmem:[%s2530_s9 + $0x34] ss:$8 sps:$4 sm:$0xff]  }
 0x543   : > { %1919 = vmatprep.subr.bf16.mxu0 %v2121_v51 }
 0x546   : > { %1920 = vmatpush3.bf16.msra.mxu0 %v2019_v35 }
 0x5a3   : > { %v1047_v28 = vpop.f32.mrb[4].mxu0 }
 0x5a4   : > { %v1893_v29 = vpop.f32.mrb[5].mxu0 }
 0x5a5   : > { %v1050_v30 = vpop.f32.mrb[6].mxu0  ;;  %v2023_v29 = vld [vmem:[%s2530_s9 + $0x10] ss:$8 sps:$4 sm:$0xff]  }
 0x5a6   : > { %v1894_v31 = vpop.f32.mrb[7].mxu0 }
 0x5a7   : > { %v2026_v31 = vld [vmem:[%s2530_s9 + $0x20] ss:$8 sps:$4 sm:$0xff]  }
 0x608   : > { %v1091_v33 = vpop.f32.mrb[16].mxu1 }
 0x609   : > { %v1899_v34 = vpop.f32.mrb[17].mxu1 }
 0x60a   : > { %v1094_v36 = vpop.f32.mrb[18].mxu1 }
 0x60b   : > { %v1989_v37 = vpack.i.bf16 %v1094_v36, %v1091_v33  ;;  %v1900_v38 = vpop.f32.mrb[19].mxu1 }
 0x60c   : > { %v1135_v39 = vpop.f32.mrb[8].mxu0 }
 0x60d   : > { %v1905_v40 = vpop.f32.mrb[9].mxu0  ;;  %1990 = vrot.lane.b32.xlu1 %v1989_v37, %s2127_s20 }
 0x60e   : > { %v1138_v41 = vpop.f32.mrb[10].mxu0 }
 0x60f   : > { %v1994_v44 = vpack.i.bf16 %v1138_v41, %v1135_v39  ;;  %v1906_v46 = vpop.f32.mrb[11].mxu0  ;;  %v1784_v41 = vld [vmem:[%s2528_s7] ss:$0 sm:$0xff] }
 0x610   : > { %v1179_v47 = vpop.f32.mrb[20].mxu1 }
 0x611   : > { %1995 = vrot.lane.b32.xlu1 %v1994_v44, %s2128_s21  ;;  %v1911_v51 = vpop.f32.mrb[21].mxu1 }
 0x612   : > { %v1182_v48 = vpop.f32.mrb[22].mxu1  ;;  %v1785_v51 = vld [vmem:[%s2529_s8] ss:$0 sm:$0xff] }
 0x613   : > { %v1999_v49 = vpack.i.bf16 %v1182_v48, %v1179_v47  ;;  %v1912_v50 = vpop.f32.mrb[23].mxu1 }
 0x615   : > { %2000 = vrot.lane.b32.xlu0 %v1999_v49, %s2129_s25 }
 0x67f   : > { %v1991_v52 = vpop.permute.xlu1 %1990 }
 0x680   : > { %v1993_v54 = vunpack.i.h.bf16 %v1991_v52  ;;  %v1992_v55 = vunpack.i.l.bf16 %v1991_v52 }
 0x682   : > { %v1211_v59 = vsel %vm704_vm2, %v1050_v30, %v1993_v54  ;;  %v1210_v61 = vsel %vm704_vm2, %v1047_v28, %v1992_v55  ;;  %v2025_v28 = vld [vmem:[%s2530_s9 + $0x14] ss:$8 sps:$4 sm:$0xff]   ;;  %v2028_v30 = vld [vmem:[%s2530_s9 + $0x24] ss:$8 sps:$4 sm:$0xff]  }
 0x683   : > { %v1996_v53 = vpop.permute.xlu1 %1995  ;;  %1414 = vmatprep.subr.bf16.mxu1 %v2025_v28  ;;  %v2033_v54 = vld [vmem:[%s2532_s11] sm:$0xff]   ;;  %v2034_v55 = vld [vmem:[%s2532_s11 + $0x48] sm:$0xff]  }
 0x684   : > { %v1998_v56 = vunpack.i.h.bf16 %v1996_v53  ;;  %v1997_v57 = vunpack.i.l.bf16 %v1996_v53  ;;  %1415 = vmatpush1.bf16.msra.mxu1 %v2023_v29  ;;  %v2032_v53 = vld [vmem:[%s2532_s11 + $0x40] sm:$0xff]  }
 0x685   : > { %1416 = vmatprep.subr.bf16.mxu1 %v2028_v30  ;;  %1843 = vmatprep.subr.bf16.mxu0 %v2032_v53 }
 0x686   : > { %v1213_v63 = vsel %vm1212_vm3, %v1210_v61, %v1997_v57  ;;  %v1214_v0 = vsel %vm1212_vm3, %v1211_v59, %v1998_v56  ;;  %v2035_v56 = vld [vmem:[%s2532_s11 + $0x8] sm:$0xff]   ;;  %v2036_v57 = vld [vmem:[%s2532_s11 + $0x50] sm:$0xff]   ;;  %v2038_v59 = vld [vmem:[%s2532_s11 + $0x58] sm:$0xff]  }
 0x687   : > { %v2001_v58 = vpop.permute.xlu0 %2000  ;;  %v2039_v61 = vld [vmem:[%s2532_s11 + $0x18] sm:$0xff]  }
 0x688   : > { %v2003_v62 = vunpack.i.h.bf16 %v2001_v58  ;;  %v2002_v60 = vunpack.i.l.bf16 %v2001_v58  ;;  %1417 = vmatpush1.bf16.msra.mxu1 %v2026_v31  ;;  %v2037_v58 = vld [vmem:[%s2532_s11 + $0x10] sm:$0xff]  }
 0x689   : > { %1418 = vmatprep.subr.bf16.mxu1 %v2031_v23 }
 0x68a   : > { %v1217_v3 = vsel %vm1215_vm4, %v1214_v0, %v2003_v62  ;;  %v1216_v4 = vsel %vm1215_vm4, %v1213_v63, %v2002_v60  ;;  %v2040_v62 = vld [vmem:[%s2532_s11 + $0x60] sm:$0xff]   ;;  %v2042_v63 = vld [vmem:[%s2532_s11 + $0x68] sm:$0xff]  }
 0x68b   : > { %v1227_v5 = vpack.c.bf16 %v1217_v3, %v1216_v4  ;;  %v2041_v60 = vld [vmem:[%s2532_s11 + $0x20] sm:$0xff]   ;;  %v2043_v0 = vld [vmem:[%s2532_s11 + $0x28] sm:$0xff]   ;;  %v2044_v3 = vld [vmem:[%s2532_s11 + $0x70] sm:$0xff]  }
 0x68c   : > { %1419 = vmatpush1.bf16.msra.mxu1 %v2029_v32  ;;  %v2045_v4 = vld [vmem:[%s2532_s11 + $0x30] sm:$0xff]  }
 0x68d   : > { %1922 = vmatmul.mubr.msk.bf16.vlgmr.msra.gmra.mrb[12].mxu0 %vm502_vm0, %v1227_v5  ;;  %v2046_v5 = vld [vmem:[%s2532_s11 + $0x78] sm:$0xff]  }
 0x68e   : > { %1844 = vmatpush3.bf16.msra.mxu0 %v2033_v54 }
 0x68f   : > { %1845 = vmatprep.subr.bf16.mxu0 %v2034_v55 }
 0x692   : > { %1846 = vmatpush3.bf16.msra.mxu0 %v2035_v56 }
 0x693   : > { %1847 = vmatprep.subr.bf16.mxu0 %v2036_v57  ;;  %v1795_v57 = vld [vmem:[%s2533_s12] ss:$0 sm:$0xff] }
 0x696   : > { %1848 = vmatpush3.bf16.msra.mxu0 %v2037_v58 }
 0x697   : > { %1849 = vmatprep.subr.bf16.mxu0 %v2038_v59 }
 0x69a   : > { %1850 = vmatpush3.bf16.msra.mxu0 %v2039_v61 }
 0x69b   : > { %1851 = vmatprep.subr.bf16.mxu0 %v2040_v62 }
 0x69e   : > { %1852 = vmatpush3.bf16.msra.mxu0 %v2041_v60 }
 0x69f   : > { %1853 = vmatprep.subr.bf16.mxu0 %v2042_v63 }
 0x6a2   : > { %1854 = vmatpush3.bf16.msra.mxu0 %v2043_v0 }
 0x6a3   : > { %1855 = vmatprep.subr.bf16.mxu0 %v2044_v3 }
 0x6a6   : > { %1856 = vmatpush3.bf16.msra.mxu0 %v2045_v4 }
 0x6a7   : > { %1857 = vmatprep.subr.bf16.mxu0 %v2046_v5 }
 0x760   : > { %v1295_v7 = vpop.f32.mrb[12].mxu0 }
 0x761   : > { %v1296_v8 = vadd.f32 %v1778_v6, %v1295_v7  ;;  %v1923_v9 = vpop.f32.mrb[13].mxu0  ;;  %v1356_v7 = vld [vmem:[%s2531_s10] sm:$0x3] }
 0x762   : > { %v1298_v10 = vpop.f32.mrb[14].mxu0  ;;  %v1366_v9 = vrot.slane %v1356_v7, %v563_v45 }
 0x763   : > { %v2403_v11 = vadd.f32 %v2231_v1, %v1296_v8  ;;  %v1299_v12 = vadd.f32 %v1778_v6, %v1298_v10  ;;  %v1924_v13 = vpop.f32.mrb[15].mxu0  ;;  %v2047_v6 = vld [vmem:[%s2532_s11 + $0x38] sm:$0xff]   ;;  %v1362_v8 = vrot.slane %v1356_v7, %v559_v43 }
 0x764   : > { %1858 = vmatpush3.bf16.msra.mxu0 %v2047_v6 }
 0x765   : > { %v2406_v14 = vadd.f32 %v2233_v2, %v1299_v12  ;;  %v1306_v15 = vsel %vm502_vm0, %v2403_v11, 0.0 }
 0x766   : > { %1307 = vadd.xlane.f32.xlu1 %v1306_v15 }
 0x767   : > { %v1309_v16 = vsel %vm502_vm0, %v2406_v14, 0.0 }
 0x768   : > { %1310 = vadd.xlane.f32.xlu0 %v1309_v16 }
 0x7f3   : > { %v1308_v17 = vpop.xlane.xlu1 %1307 }
 0x7f4   : > { %v1312_v18 = vmul.f32 0.015625, %v1308_v17 }
 0x7f5   : > { %v1311_v19 = vpop.xlane.xlu0 %1310 }
 0x7f6   : > { %v1314_v20 = vsub.f32 %v2403_v11, %v1312_v18  ;;  %v1313_v1 = vmul.f32 0.015625, %v1311_v19 }
 0x7f8   : > { %v1315_v21 = vsub.f32 %v2406_v14, %v1313_v1  ;;  %v1316_v22 = vmul.f32 %v1314_v20, %v1314_v20 }
 0x7fa   : > { %v1318_v2 = vsel %vm502_vm0, %v1316_v22, 0.0  ;;  %v1317_v24 = vmul.f32 %v1315_v21, %v1315_v21 }
 0x7fb   : > { %1319 = vadd.xlane.f32.xlu0 %v1318_v2 }
 0x7fc   : > { %v1321_v25 = vsel %vm502_vm0, %v1317_v24, 0.0 }
 0x7ff   : > { %1322 = vadd.xlane.f32.xlu0 %v1321_v25 }
 0x888   : > { %v1320_v33 = vpop.xlane.xlu0 %1319 }
 0x889   : > { %v1324_v34 = vmul.f32 0.015625, %v1320_v33 }
 0x88b   : > { %v1326_v35 = vadd.f32 1e-05, %v1324_v34 }
 0x88c   : > { %v1323_v36 = vpop.xlane.xlu0 %1322 }
 0x88d   : > { %2084 = vrsqrt.f32 %v1326_v35  ;;  %v1325_v37 = vmul.f32 0.015625, %v1323_v36 }
 0x88f   : > { %v1327_v38 = vadd.f32 1e-05, %v1325_v37 }
 0x891   : > { %2086 = vrsqrt.f32 %v1327_v38 }
 0x897   : > { %v2085_v39 = vpop.eup %2084 }
 0x898   : > { %v1330_v40 = vmul.f32 %v2085_v39, %v1314_v20 }
 0x89a   : > { %v1338_v46 = vmul.f32 %v1784_v41, %v1330_v40 }
 0x89b   : > { %v2087_v44 = vpop.eup %2086 }
 0x89c   : > { %v1331_v47 = vmul.f32 %v2087_v44, %v1315_v21  ;;  %v1346_v49 = vadd.f32 %v1785_v51, %v1338_v46 }
 0x89e   : > { %v1339_v48 = vmul.f32 %v1784_v41, %v1331_v47 }
 0x8a0   : > { %v1347_v50 = vadd.f32 %v1785_v51, %v1339_v48 }
 0x8a2   : > { %v1357_v52 = vpack.c.bf16 %v1347_v50, %v1346_v49 }
 0x8a4   : > { %1794 = vmatmul.mubr.msk.bf16.vlgmr.msra.gmra.mrb[24].mxu1 %vm502_vm0, %v1357_v52 }
 0x977   : > { %v1446_v10 = vpop.f32.mrb[24].mxu1 }
 0x978   : > { %v1447_v12 = vadd.f32 %v1446_v10, %v1362_v8  ;;  %v1448_v13 = vpop.f32.mrb[25].mxu1 }
 0x979   : > { %v1449_v15 = vadd.f32 %v1448_v13, %v1366_v9  ;;  %v1450_v16 = vpop.f32.mrb[26].mxu1 }
 0x97a   : > { %v1455_v17 = vmul.f32 %v1447_v12, %v1447_v12  ;;  %v1451_v18 = vadd.f32 %v1450_v16, %v1362_v8  ;;  %v1452_v19 = vpop.f32.mrb[27].mxu1 }
 0x97b   : > { %v1456_v20 = vmul.f32 %v1449_v15, %v1449_v15  ;;  %v1453_v1 = vadd.f32 %v1452_v19, %v1366_v9 }
 0x97c   : > { %v1459_v21 = vmul.f32 %v1455_v17, %v1447_v12  ;;  %v1457_v22 = vmul.f32 %v1451_v18, %v1451_v18 }
 0x97d   : > { %v1460_v2 = vmul.f32 %v1456_v20, %v1449_v15  ;;  %v1458_v24 = vmul.f32 %v1453_v1, %v1453_v1 }
 0x97e   : > { %v1463_v25 = vmul.f32 0.044715, %v1459_v21  ;;  %v1461_v26 = vmul.f32 %v1457_v22, %v1451_v18 }
 0x97f   : > { %v1464_v43 = vmul.f32 0.044715, %v1460_v2  ;;  %v1462_v27 = vmul.f32 %v1458_v24, %v1453_v1 }
 0x980   : > { %v1467_v42 = vadd.f32 %v1463_v25, %v1447_v12  ;;  %v1465_v45 = vmul.f32 0.044715, %v1461_v26 }
 0x981   : > { %v1468_v28 = vadd.f32 %v1464_v43, %v1449_v15  ;;  %v1466_v29 = vmul.f32 0.044715, %v1462_v27 }
 0x982   : > { %v1471_v30 = vmul.f32 0.7978846, %v1467_v42  ;;  %v1469_v31 = vadd.f32 %v1465_v45, %v1451_v18 }
 0x983   : > { %v1472_v32 = vmul.f32 0.7978846, %v1468_v28  ;;  %v1470_v23 = vadd.f32 %v1466_v29, %v1453_v1 }
 0x984   : > { %2088 = vtanh.f32 %v1471_v30  ;;  %v1473_v33 = vmul.f32 0.7978846, %v1469_v31 }
 0x985   : > { %2090 = vtanh.f32 %v1472_v32  ;;  %v1474_v34 = vmul.f32 0.7978846, %v1470_v23 }
 0x986   : > { %2092 = vtanh.f32 %v1473_v33 }
 0x987   : > { %2094 = vtanh.f32 %v1474_v34 }
 0x98e   : > { %v2089_v35 = vpop.eup %2088 }
 0x98f   : > { %v2091_v36 = vpop.eup %2090  ;;  %v1479_v37 = vadd.f32 1.0, %v2089_v35 }
 0x990   : > { %v2093_v38 = vpop.eup %2092  ;;  %v1480_v39 = vadd.f32 1.0, %v2091_v36 }
 0x991   : > { %v2095_v40 = vpop.eup %2094  ;;  %v1483_v41 = vmul.f32 0.5, %v1479_v37  ;;  %v1481_v44 = vadd.f32 1.0, %v2093_v38 }
 0x992   : > { %v1482_v46 = vadd.f32 1.0, %v2095_v40  ;;  %v1484_v47 = vmul.f32 0.5, %v1480_v39 }
 0x993   : > { %v1485_v51 = vmul.f32 0.5, %v1481_v44  ;;  %v1487_v49 = vmul.f32 %v1483_v41, %v1447_v12 }
 0x994   : > { %v1486_v48 = vmul.f32 0.5, %v1482_v46  ;;  %v1488_v52 = vmul.f32 %v1484_v47, %v1449_v15 }
 0x995   : > { %v1489_v50 = vmul.f32 %v1485_v51, %v1451_v18 }
 0x996   : > { %v1490_v53 = vmul.f32 %v1486_v48, %v1453_v1 }
 0x997   : > { %v1524_v54 = vpack.c.bf16 %v1489_v50, %v1487_v49 }
 0x998   : > { %v1525_v55 = vpack.c.bf16 %v1490_v53, %v1488_v52 }
 0x99a   : > { %1660 = vmatprep.mubr.bf16.mxu0 %v1525_v55 }
 0x99b   : > { %1661 = vmatmul.mubr.bf16.vlgmr.msra.gmra.mrb[16].mxu0 %v1524_v54 }
 0xa6e   : > { %v1859_v56 = vpop.f32.mrb[16].mxu0 }
 0xa6f   : > { %v1860_v58 = vpop.f32.mrb[17].mxu0 }
 0xa70   : > { %v1861_v59 = vadd.f32 %v1860_v58, %v1859_v56  ;;  %v1862_v61 = vpop.f32.mrb[18].mxu0 }
 0xa71   : > { %v1863_v62 = vpop.f32.mrb[19].mxu0 }
 0xa72   : > { %v1663_v60 = vadd.f32 %v1861_v59, %v1795_v57  ;;  %v1864_v63 = vadd.f32 %v1863_v62, %v1862_v61 }
 0xa74   : > { %v1669_v0 = vadd.f32 %v1663_v60, %v2403_v11  ;;  %v1666_v3 = vadd.f32 %v1864_v63, %v1795_v57 }
 0xa76   : > { %v1816_v4 = vpack.c.bf16 %v1669_v0, %v1669_v0  ;;  %v1670_v5 = vadd.f32 %v1666_v3, %v2406_v14 }
 0xa78   : > { %1680 = vst.msk [vmem:[%s492_s28] sm:$0xf] %vm1679_vm5, %v1816_v4  ;;  %v1817_v6 = vpack.c.bf16 %v1670_v5, %v1670_v5 }
 0xa7a   : > { %1681 = vst.msk [vmem:[%s492_s28 + $0x4] sm:$0xf] %vm1679_vm5, %v1817_v6 }
 0xa7b PF: > { %s24_s15 = sadd.s32 1, %s2118_s15   ;;  %s2536_s29 = smov %s2114_s30 }
 0xa7c   : > { %p21_p5 = scmp.ge.s32.totalorder %s24_s15, 4   ;;  %s2537_s30 = smov %s2539_s16 }
 0xa7e   :  { %23 = sbr.rel (!%p21_p5) target bundleno = 2 (0x2), region = 106 }

</bundles_post_ra>
